<compile_context>
chip_gen: v6e
topology: v6e:2x2x1
jax: 0.10.0
libtpu: 0.0.40
codegen_flags: <defaults>
</compile_context>

<pallas_src>
import functools

import jax
import jax.numpy as jnp
from jax.experimental import pallas as pl
from jax.experimental.pallas import tpu as pltpu

EPS = 1e-5


def _round_up(x, m):
    return ((x + m - 1) // m) * m


def _default_vmem_limit():
    # Re-budget per generation: ~40 MiB on v7x (64 MiB physical), larger on
    # v5e/v6e (128 MiB physical).  Conservative fallback if the query fails.
    try:
        cap = int(getattr(pltpu.get_tpu_info(), "vmem_capacity_bytes", 0))
    except Exception:
        cap = 0
    if cap <= 0:
        cap = 64 * 1024 * 1024
    return max(32 * 1024 * 1024, min(cap - 24 * 1024 * 1024, 96 * 1024 * 1024))


_VMEM_LIMIT = _default_vmem_limit()


# ---------------------------------------------------------------------------
# Pass 1 kernels: conv via one big-K MXU dot per (n, d_out) plane + BN partial
# statistics.  The RHS [K, Lc] is assembled in a VMEM scratch from
# lane-shifted slices of the padded wide-plane activation; the conv result is
# kept in a local f32 value and stored once (no ref read-modify-write).
# ---------------------------------------------------------------------------
def _down_pass1_kernel(s0, s1, s2, w_ref, msk_ref,
                       y_ref, ssum_ref, sqsum_ref, rhs_ref,
                       *, depth, wp, lc, j0):
    """k=3, stride-(1,2,2), pad-1 conv for one (n, d_out) plane."""
    d = pl.program_id(1)

    @pl.when(d == 0)
    def _init():
        ssum_ref[...] = jnp.zeros_like(ssum_ref)
        sqsum_ref[...] = jnp.zeros_like(sqsum_ref)

    views = (s0, s1, s2)
    cin = s0.shape[3]

    for a in range(3):                       # depth taps (pad=1, stride=1)
        di = d + a - 1
        in_range = jnp.logical_and(di >= 0, di < depth)
        row0 = a * 9 * cin

        @pl.when(in_range)
        def _fill(a=a, row0=row0):
            for b in range(3):
                for c in range(3):
                    p = (b % 2) * 2 + (c % 2)        # (h, w) parity plane
                    off = (b // 2) * wp + (c // 2)   # lane shift inside plane
                    r = row0 + (b * 3 + c) * cin
                    rhs_ref[r:r + cin, :] = views[a][0, 0, p, :, off:off + lc]

        @pl.when(jnp.logical_not(in_range))
        def _zero(row0=row0):
            rhs_ref[row0:row0 + 9 * cin, :] = jnp.zeros(
                (9 * cin, lc), jnp.bfloat16)

    conv = jnp.dot(w_ref[...], rhs_ref[...],
                   preferred_element_type=jnp.float32)       # [Cout, Lc] f32

    m = msk_ref[...]                                         # [1, Lc]
    ym = conv * m
    ssum_ref[0] += jnp.sum(ym, axis=1, keepdims=True)
    sqsum_ref[0] += jnp.sum(conv * ym, axis=1, keepdims=True)

    cout = y_ref.shape[2]
    la = y_ref.shape[3]
    y_full = jnp.concatenate(
        [jnp.zeros((cout, j0), jnp.float32),
         conv,
         jnp.zeros((cout, la - j0 - lc), jnp.float32)], axis=1)
    y_ref[0, 0] = y_full.astype(y_ref.dtype)


def _lu_pass1_kernel(x0, x1, x2, x3, x4, w_ref, msk_ref,
                     y_ref, ssum_ref, sqsum_ref, rhs_ref,
                     *, depth, wp, lc, j0):
    """k=5, pad-2, stride-1 conv for one (n, d_out) plane."""
    d = pl.program_id(1)

    @pl.when(d == 0)
    def _init():
        ssum_ref[...] = jnp.zeros_like(ssum_ref)
        sqsum_ref[...] = jnp.zeros_like(sqsum_ref)

    views = (x0, x1, x2, x3, x4)
    cin = x0.shape[2]

    for a in range(5):                       # depth taps (pad=2, stride=1)
        di = d + a - 2
        in_range = jnp.logical_and(di >= 0, di < depth)
        row0 = a * 25 * cin

        @pl.when(in_range)
        def _fill(a=a, row0=row0):
            for b in range(5):
                for c in range(5):
                    r = row0 + (b * 5 + c) * cin
                    off = b * wp + c
                    rhs_ref[r:r + cin, :] = views[a][0, 0, :, off:off + lc]

        @pl.when(jnp.logical_not(in_range))
        def _zero(row0=row0):
            rhs_ref[row0:row0 + 25 * cin, :] = jnp.zeros(
                (25 * cin, lc), jnp.bfloat16)

    conv = jnp.dot(w_ref[...], rhs_ref[...],
                   preferred_element_type=jnp.float32)       # [Cout, Lc] f32

    m = msk_ref[...]
    ym = conv * m
    ssum_ref[0] += jnp.sum(ym, axis=1, keepdims=True)
    sqsum_ref[0] += jnp.sum(conv * ym, axis=1, keepdims=True)

    cout = y_ref.shape[2]
    la = y_ref.shape[3]
    y_full = jnp.concatenate(
        [jnp.zeros((cout, j0), jnp.float32),
         conv,
         jnp.zeros((cout, la - j0 - lc), jnp.float32)], axis=1)
    y_ref[0, 0] = y_full.astype(y_ref.dtype)


def down_conv_pass1(split, w_mat, mask_span, *, wp, lc, j0, la):
    N, D, P, Cin, LAin = split.shape
    Cout, K = w_mat.shape
    kern = functools.partial(_down_pass1_kernel, depth=D, wp=wp, lc=lc, j0=j0)
    view_specs = [
        pl.BlockSpec(
            (1, 1, P, Cin, LAin),
            lambda n, d, a=a: (
                n, jnp.minimum(jnp.maximum(d + a - 1, 0), D - 1), 0, 0, 0))
        for a in range(3)
    ]
    return pl.pallas_call(
        kern,
        grid=(N, D),
        in_specs=view_specs + [
            pl.BlockSpec((Cout, K), lambda n, d: (0, 0)),     # resident weight
            pl.BlockSpec((1, lc), lambda n, d: (0, 0)),
        ],
        out_specs=[
            pl.BlockSpec((1, 1, Cout, la), lambda n, d: (n, d, 0, 0)),
            pl.BlockSpec((1, Cout, 1), lambda n, d: (n, 0, 0)),
            pl.BlockSpec((1, Cout, 1), lambda n, d: (n, 0, 0)),
        ],
        out_shape=(
            jax.ShapeDtypeStruct((N, D, Cout, la), jnp.bfloat16),
            jax.ShapeDtypeStruct((N, Cout, 1), jnp.float32),
            jax.ShapeDtypeStruct((N, Cout, 1), jnp.float32),
        ),
        scratch_shapes=[pltpu.VMEM((K, lc), jnp.bfloat16)],
        compiler_params=pltpu.CompilerParams(
            dimension_semantics=("parallel", "arbitrary"),
            vmem_limit_bytes=_VMEM_LIMIT,
        ),
    )(split, split, split, w_mat, mask_span)


def luconv_pass1(act, w_mat, mask_span, *, wp, lc, j0):
    N, D, C, LA = act.shape
    Cout, K = w_mat.shape
    kern = functools.partial(_lu_pass1_kernel, depth=D, wp=wp, lc=lc, j0=j0)
    view_specs = [
        pl.BlockSpec(
            (1, 1, C, LA),
            lambda n, d, a=a: (
                n, jnp.minimum(jnp.maximum(d + a - 2, 0), D - 1), 0, 0))
        for a in range(5)
    ]
    return pl.pallas_call(
        kern,
        grid=(N, D),
        in_specs=view_specs + [
            pl.BlockSpec((Cout, K), lambda n, d: (0, 0)),     # resident weight
            pl.BlockSpec((1, lc), lambda n, d: (0, 0)),
        ],
        out_specs=[
            pl.BlockSpec((1, 1, Cout, LA), lambda n, d: (n, d, 0, 0)),
            pl.BlockSpec((1, Cout, 1), lambda n, d: (n, 0, 0)),
            pl.BlockSpec((1, Cout, 1), lambda n, d: (n, 0, 0)),
        ],
        out_shape=(
            jax.ShapeDtypeStruct((N, D, Cout, LA), jnp.bfloat16),
            jax.ShapeDtypeStruct((N, Cout, 1), jnp.float32),
            jax.ShapeDtypeStruct((N, Cout, 1), jnp.float32),
        ),
        scratch_shapes=[pltpu.VMEM((K, lc), jnp.bfloat16)],
        compiler_params=pltpu.CompilerParams(
            dimension_semantics=("parallel", "arbitrary"),
            vmem_limit_bytes=_VMEM_LIMIT,
        ),
    )(act, act, act, act, act, w_mat, mask_span)


# ---------------------------------------------------------------------------
# Pass 2: BN(apply) + ELU (+ fused residual add + second ELU), blocked over
# several depth planes.  Output stays in the same padded wide-plane layout so
# it feeds the next conv directly (mask keeps the halos at exact zero).
# ---------------------------------------------------------------------------
def _elu(z):
    return jnp.where(z > 0, z, jnp.exp(z) - 1.0)


def _bn_act_kernel(*refs, has_residual):
    if has_residual:
        y_ref, r_ref, sc_ref, sh_ref, m_ref, o_ref = refs
    else:
        y_ref, sc_ref, sh_ref, m_ref, o_ref = refs
    y = y_ref[0].astype(jnp.float32)                     # [Dt, C, LA]
    z = _elu(y * sc_ref[...] + sh_ref[...])
    if has_residual:
        z = _elu(z + r_ref[0].astype(jnp.float32))
    o_ref[0] = (z * m_ref[...]).astype(o_ref.dtype)


def _pick_depth_tile(D, C, LA, cap_bytes=1 << 20):
    dt = 1
    for cand in range(1, D + 1):
        if D % cand == 0 and cand * C * LA * 4 <= cap_bytes:
            dt = cand
    return dt


def bn_act_apply(y, scale, shift, mask_full, out_dtype, residual=None):
    N, D, C, LA = y.shape
    has_res = residual is not None
    dt = _pick_depth_tile(D, C, LA)
    big = pl.BlockSpec((1, dt, C, LA), lambda n, t: (n, t, 0, 0))
    small = pl.BlockSpec((C, 1), lambda n, t: (0, 0))
    mspec = pl.BlockSpec((1, LA), lambda n, t: (0, 0))
    in_specs = [big] + ([big] if has_res else []) + [small, small, mspec]
    args = [y] + ([residual] if has_res else []) + [scale, shift, mask_full]
    return pl.pallas_call(
        functools.partial(_bn_act_kernel, has_residual=has_res),
        grid=(N, D // dt),
        in_specs=in_specs,
        out_specs=big,
        out_shape=jax.ShapeDtypeStruct((N, D, C, LA), out_dtype),
        compiler_params=pltpu.CompilerParams(
            dimension_semantics=("parallel", "parallel"),
            vmem_limit_bytes=_VMEM_LIMIT,
        ),
    )(*args)


# ---------------------------------------------------------------------------
# Wrapper-side layout / weight plumbing (plain XLA ops, run once per conv).
# ---------------------------------------------------------------------------
def conv3_weight_matrix(w):
    # [Cout, Cin, 3, 3, 3] -> [Cout, 27*Cin] with K ordered (a, b, c, cin).
    Cout, Cin = w.shape[0], w.shape[1]
    return jnp.transpose(w, (2, 3, 4, 1, 0)).reshape(27 * Cin, Cout).T


def conv5_weight_matrix(w):
    # [Cout, Cin, 5, 5, 5] -> [Cout, 125*Cin] with K ordered (a, b, c, cin).
    Cout, Cin = w.shape[0], w.shape[1]
    return jnp.transpose(w, (2, 3, 4, 1, 0)).reshape(125 * Cin, Cout).T


def build_down_split(x, wp, la):
    # Pre-split the (pad-1) input into 4 (h, w)-parity planes so the stride-2
    # taps become contiguous lane slices: [N, D, 4, Cin, LA] bf16, each plane
    # stored with row stride wp (= Wo+4) and zero fill outside the data.
    N, Cin, D, H, W = x.shape
    Hh = (H + 2 + 1) // 2
    xp = jnp.pad(x, ((0, 0), (0, 0), (0, 0), (1, 1), (1, 1)))
    planes = []
    for ph in range(2):
        for pw in range(2):
            sub = xp[:, :, :, ph::2, pw::2]              # [N, Cin, D, hh, ww]
            hh, ww = sub.shape[3], sub.shape[4]
            sub = jnp.pad(sub, ((0, 0), (0, 0), (0, 0),
                                (0, Hh - hh), (0, wp - ww)))
            planes.append(sub)
    s = jnp.stack(planes, axis=2)                        # [N, Cin, 4, D, Hh, wp]
    s = s.transpose(0, 3, 2, 1, 4, 5).reshape(N, D, 4, Cin, Hh * wp)
    s = jnp.pad(s, ((0, 0), (0, 0), (0, 0), (0, 0), (0, la - Hh * wp)))
    return s.astype(jnp.bfloat16)


def _bn_scale_shift(s, q, count, gamma, beta, eps=EPS):
    # ContBatchNorm3d: always current-batch statistics, biased variance.
    mean = s / count
    var = jnp.maximum(q / count - mean * mean, 0.0)
    scale = gamma * jax.lax.rsqrt(var + eps)
    shift = beta - mean * scale
    return scale, shift


# ---------------------------------------------------------------------------
# DownTransition forward
# ---------------------------------------------------------------------------
def down_transition_forward(x, params):
    """x: [N, Cin, D, H, W] f32 -> [N, 2*Cin, D, ceil(H/2), ceil(W/2)] f32."""
    N, Cin, D, H, W = x.shape
    Cout = params["down_w"].shape[0]
    Ho, Wo = (H - 1) // 2 + 1, (W - 1) // 2 + 1

    WP = Wo + 4                          # padded-plane row stride
    J0 = 2 * WP + 2                      # lane offset of output (0, 0)
    Lspan = (Ho - 1) * WP + Wo           # lane span covering all outputs
    Lc = _round_up(Lspan, 128)           # conv compute window (lane-dense)
    LA = _round_up(4 * WP + 4 + Lc, 128)  # full padded-plane lane width

    lane = jnp.arange(LA)
    hp, wq = lane // WP, lane % WP
    valid = ((lane < (Ho + 4) * WP) & (hp >= 2) & (hp < Ho + 2)
             & (wq >= 2) & (wq < Wo + 2))
    mask_full = valid.astype(jnp.float32)[None, :]       # [1, LA]
    mask_span = mask_full[:, J0:J0 + Lc]                  # [1, Lc]
    count = float(N * D * Ho * Wo)

    # ---- down conv (k=3, stride (1,2,2), pad 1) + BN(batch stats) + ELU ----
    # Conv bias omitted: training-mode BN subtracts the per-channel batch
    # mean, which cancels a constant bias exactly.
    split = build_down_split(x, WP, LA)
    w3 = conv3_weight_matrix(params["down_w"]).astype(jnp.bfloat16)
    y, s, q = down_conv_pass1(split, w3, mask_span, wp=WP, lc=Lc, j0=J0, la=LA)
    scale, shift = _bn_scale_shift(jnp.sum(s, axis=0), jnp.sum(q, axis=0),
                                   count, params["down_gamma"],
                                   params["down_beta"])
    a_down = bn_act_apply(y, scale, shift, mask_full, jnp.bfloat16)

    lu = params["luconvs"]
    if not lu:
        # nConvs == 0: out = ELU(down + down) == ELU(2 * down)
        out_pad = bn_act_apply(a_down,
                               2.0 * jnp.ones((Cout, 1), jnp.float32),
                               jnp.zeros((Cout, 1), jnp.float32),
                               mask_full, jnp.float32)
    else:
        cur = a_down
        out_pad = None
        for i, (w, gamma, beta) in enumerate(lu):
            w5 = conv5_weight_matrix(w).astype(jnp.bfloat16)
            y, s, q = luconv_pass1(cur, w5, mask_span, wp=WP, lc=Lc, j0=J0)
            scale, shift = _bn_scale_shift(jnp.sum(s, axis=0),
                                           jnp.sum(q, axis=0),
                                           count, gamma, beta)
            if i == len(lu) - 1:
                # fused residual add + final ELU
                out_pad = bn_act_apply(y, scale, shift, mask_full, jnp.float32,
                                       residual=a_down)
            else:
                cur = bn_act_apply(y, scale, shift, mask_full, jnp.bfloat16)

    # Extract interior [N, Cout, D, Ho, Wo] from the padded wide layout.
    v = out_pad[..., : (Ho + 4) * WP].reshape(N, D, Cout, Ho + 4, WP)
    v = v[:, :, :, 2:2 + Ho, 2:2 + Wo]
    return v.transpose(0, 2, 1, 3, 4)


# ---------------------------------------------------------------------------
# Deterministic synthetic parameters (shapes follow the nn.Module __init__).
# ---------------------------------------------------------------------------
def init_params(key, in_chans, n_convs):
    out_chans = 2 * in_chans
    keys = jax.random.split(key, 1 + n_convs)
    s3 = 1.0 / jnp.sqrt(in_chans * 27.0)
    params = {
        "down_w": s3 * jax.random.normal(
            keys[0], (out_chans, in_chans, 3, 3, 3), jnp.float32),
        # BN affine params (PyTorch default init: weight=1, bias=0).
        "down_gamma": jnp.ones((out_chans, 1), jnp.float32),
        "down_beta": jnp.zeros((out_chans, 1), jnp.float32),
        "luconvs": [],
    }
    s5 = 1.0 / jnp.sqrt(out_chans * 125.0)
    for i in range(n_convs):
        w = s5 * jax.random.normal(
            keys[1 + i], (out_chans, out_chans, 5, 5, 5), jnp.float32)
        params["luconvs"].append(
            (w,
             jnp.ones((out_chans, 1), jnp.float32),
             jnp.zeros((out_chans, 1), jnp.float32)))
    return params


if __name__ == "__main__":
    # DownTransition(inChans=4, nConvs=2, elu=True, dropout=False)
    key = jax.random.PRNGKey(0)
    k_x, k_p = jax.random.split(key)

    N, Cin, D, H, W = 2, 4, 8, 16, 16
    x = jax.random.normal(k_x, (N, Cin, D, H, W), jnp.float32)
    params = init_params(k_p, in_chans=Cin, n_convs=2)

    fwd = jax.jit(down_transition_forward)
    out = fwd(x, params)
    jax.block_until_ready(out)

    assert out.shape == (N, 2 * Cin, D, H // 2, W // 2), out.shape
    assert bool(jnp.all(jnp.isfinite(out)))
    print("KERNEL_OK")
</pallas_src>

<mosaic_0001>
module attributes {stable_mosaic.version = 11 : i64} {
  func.func @_down_pass1_kernel(%arg0: i32, %arg1: i32, %arg2: memref<1x1x4x4x256xbf16, #tpu.memory_space<vmem>>, %arg3: memref<1x1x4x4x256xbf16, #tpu.memory_space<vmem>>, %arg4: memref<1x1x4x4x256xbf16, #tpu.memory_space<vmem>>, %arg5: memref<8x108xbf16, #tpu.memory_space<vmem>>, %arg6: memref<1x128xf32, #tpu.memory_space<vmem>>, %arg7: memref<1x1x8x256xbf16, #tpu.memory_space<vmem>>, %arg8: memref<1x8x1xf32, #tpu.memory_space<vmem>>, %arg9: memref<1x8x1xf32, #tpu.memory_space<vmem>>, %arg10: memref<108x128xbf16, #tpu.memory_space<vmem>>) attributes {dimension_semantics = [#tpu.dimension_semantics<parallel>, #tpu.dimension_semantics<arbitrary>], iteration_bounds = array<i64: 2, 8>, scalar_prefetch = 0 : i64, scratch_operands = 1 : i64, tpu.core_type = #tpu.core_type<tc>, window_params = [{transform_indices = @transform_0, window_bounds = array<i64: 1, 1, 4, 4, 256>}, {transform_indices = @transform_1, window_bounds = array<i64: 1, 1, 4, 4, 256>}, {transform_indices = @transform_2, window_bounds = array<i64: 1, 1, 4, 4, 256>}, {pipeline_mode = #tpu.pipeline_mode<synchronous>, transform_indices = @transform_3, window_bounds = array<i64: 8, 108>}, {pipeline_mode = #tpu.pipeline_mode<synchronous>, transform_indices = @transform_4, window_bounds = array<i64: 1, 128>}, {transform_indices = @transform_5, window_bounds = array<i64: 1, 1, 8, 256>}, {transform_indices = @transform_6, window_bounds = array<i64: 1, 8, 1>}, {transform_indices = @transform_7, window_bounds = array<i64: 1, 8, 1>}]} {
    %c0_i32 = arith.constant 0 : i32
    %0 = arith.cmpi eq, %arg1, %c0_i32 : i32
    %1 = arith.extui %0 : i1 to i32
    %c0_i32_0 = arith.constant 0 : i32
    %2 = arith.cmpi ne, %1, %c0_i32_0 : i32
    scf.if %2 {
      %cst_43 = arith.constant 0.000000e+00 : f32
      %63 = vector.broadcast %cst_43 : f32 to vector<1x8x1xf32>
      %c0_44 = arith.constant 0 : index
      %c0_45 = arith.constant 0 : index
      %c0_46 = arith.constant 0 : index
      %64 = vector.load %arg8[%c0_44, %c0_45, %c0_46] : memref<1x8x1xf32, #tpu.memory_space<vmem>>, vector<1x8x1xf32>
      tpu.vector_store %arg8[%c0_44, %c0_45, %c0_46], %63 {strides = array<i32>} : memref<1x8x1xf32, #tpu.memory_space<vmem>>, vector<1x8x1xf32>,
      %cst_47 = arith.constant 0.000000e+00 : f32
      %65 = vector.broadcast %cst_47 : f32 to vector<1x8x1xf32>
      %c0_48 = arith.constant 0 : index
      %c0_49 = arith.constant 0 : index
      %c0_50 = arith.constant 0 : index
      %66 = vector.load %arg9[%c0_48, %c0_49, %c0_50] : memref<1x8x1xf32, #tpu.memory_space<vmem>>, vector<1x8x1xf32>
      tpu.vector_store %arg9[%c0_48, %c0_49, %c0_50], %65 {strides = array<i32>} : memref<1x8x1xf32, #tpu.memory_space<vmem>>, vector<1x8x1xf32>,
    } else {
    }
    %c0_i32_1 = arith.constant 0 : i32
    %3 = arith.addi %arg1, %c0_i32_1 : i32
    %c1_i32 = arith.constant 1 : i32
    %4 = arith.subi %3, %c1_i32 : i32
    %c0_i32_2 = arith.constant 0 : i32
    %5 = arith.cmpi sge, %4, %c0_i32_2 : i32
    %c8_i32 = arith.constant 8 : i32
    %6 = arith.cmpi slt, %4, %c8_i32 : i32
    %7 = arith.andi %5, %6 : i1
    %8 = arith.extui %7 : i1 to i32
    %c0_i32_3 = arith.constant 0 : i32
    %9 = arith.cmpi ne, %8, %c0_i32_3 : i32
    scf.if %9 {
      %c0_43 = arith.constant 0 : index
      %c0_44 = arith.constant 0 : index
      %c0_45 = arith.constant 0 : index
      %c0_46 = arith.constant 0 : index
      %c0_47 = arith.constant 0 : index
      %63 = vector.load %arg2[%c0_43, %c0_44, %c0_45, %c0_46, %c0_47] : memref<1x1x4x4x256xbf16, #tpu.memory_space<vmem>>, vector<1x1x1x4x128xbf16>
      %64 = vector.shape_cast %63 : vector<1x1x1x4x128xbf16> to vector<4x128xbf16>
      %c0_48 = arith.constant 0 : index
      %c0_49 = arith.constant 0 : index
      %65 = vector.load %arg10[%c0_48, %c0_49] : memref<108x128xbf16, #tpu.memory_space<vmem>>, vector<4x128xbf16>
      tpu.vector_store %arg10[%c0_48, %c0_49], %64 {strides = array<i32>} : memref<108x128xbf16, #tpu.memory_space<vmem>>, vector<4x128xbf16>,
      %c0_50 = arith.constant 0 : index
      %c0_51 = arith.constant 0 : index
      %c1 = arith.constant 1 : index
      %c0_52 = arith.constant 0 : index
      %c0_53 = arith.constant 0 : index
      %66 = vector.load %arg2[%c0_50, %c0_51, %c1, %c0_52, %c0_53] : memref<1x1x4x4x256xbf16, #tpu.memory_space<vmem>>, vector<1x1x1x4x128xbf16>
      %67 = vector.shape_cast %66 : vector<1x1x1x4x128xbf16> to vector<4x128xbf16>
      %c4 = arith.constant 4 : index
      %c0_54 = arith.constant 0 : index
      %68 = vector.load %arg10[%c4, %c0_54] : memref<108x128xbf16, #tpu.memory_space<vmem>>, vector<4x128xbf16>
      tpu.vector_store %arg10[%c4, %c0_54], %67 {strides = array<i32>} : memref<108x128xbf16, #tpu.memory_space<vmem>>, vector<4x128xbf16>,
      %c0_55 = arith.constant 0 : index
      %c0_56 = arith.constant 0 : index
      %c0_57 = arith.constant 0 : index
      %c0_58 = arith.constant 0 : index
      %c1_59 = arith.constant 1 : index
      %69 = vector.load %arg2[%c0_55, %c0_56, %c0_57, %c0_58, %c1_59] : memref<1x1x4x4x256xbf16, #tpu.memory_space<vmem>>, vector<1x1x1x4x128xbf16>
      %70 = vector.shape_cast %69 : vector<1x1x1x4x128xbf16> to vector<4x128xbf16>
      %c8 = arith.constant 8 : index
      %c0_60 = arith.constant 0 : index
      %71 = vector.load %arg10[%c8, %c0_60] : memref<108x128xbf16, #tpu.memory_space<vmem>>, vector<4x128xbf16>
      tpu.vector_store %arg10[%c8, %c0_60], %70 {strides = array<i32>} : memref<108x128xbf16, #tpu.memory_space<vmem>>, vector<4x128xbf16>,
      %c0_61 = arith.constant 0 : index
      %c0_62 = arith.constant 0 : index
      %c2 = arith.constant 2 : index
      %c0_63 = arith.constant 0 : index
      %c0_64 = arith.constant 0 : index
      %72 = vector.load %arg2[%c0_61, %c0_62, %c2, %c0_63, %c0_64] : memref<1x1x4x4x256xbf16, #tpu.memory_space<vmem>>, vector<1x1x1x4x128xbf16>
      %73 = vector.shape_cast %72 : vector<1x1x1x4x128xbf16> to vector<4x128xbf16>
      %c12 = arith.constant 12 : index
      %c0_65 = arith.constant 0 : index
      %74 = vector.load %arg10[%c12, %c0_65] : memref<108x128xbf16, #tpu.memory_space<vmem>>, vector<4x128xbf16>
      tpu.vector_store %arg10[%c12, %c0_65], %73 {strides = array<i32>} : memref<108x128xbf16, #tpu.memory_space<vmem>>, vector<4x128xbf16>,
      %c0_66 = arith.constant 0 : index
      %c0_67 = arith.constant 0 : index
      %c3 = arith.constant 3 : index
      %c0_68 = arith.constant 0 : index
      %c0_69 = arith.constant 0 : index
      %75 = vector.load %arg2[%c0_66, %c0_67, %c3, %c0_68, %c0_69] : memref<1x1x4x4x256xbf16, #tpu.memory_space<vmem>>, vector<1x1x1x4x128xbf16>
      %76 = vector.shape_cast %75 : vector<1x1x1x4x128xbf16> to vector<4x128xbf16>
      %c16 = arith.constant 16 : index
      %c0_70 = arith.constant 0 : index
      %77 = vector.load %arg10[%c16, %c0_70] : memref<108x128xbf16, #tpu.memory_space<vmem>>, vector<4x128xbf16>
      tpu.vector_store %arg10[%c16, %c0_70], %76 {strides = array<i32>} : memref<108x128xbf16, #tpu.memory_space<vmem>>, vector<4x128xbf16>,
      %c0_71 = arith.constant 0 : index
      %c0_72 = arith.constant 0 : index
      %c2_73 = arith.constant 2 : index
      %c0_74 = arith.constant 0 : index
      %c1_75 = arith.constant 1 : index
      %78 = vector.load %arg2[%c0_71, %c0_72, %c2_73, %c0_74, %c1_75] : memref<1x1x4x4x256xbf16, #tpu.memory_space<vmem>>, vector<1x1x1x4x128xbf16>
      %79 = vector.shape_cast %78 : vector<1x1x1x4x128xbf16> to vector<4x128xbf16>
      %c20 = arith.constant 20 : index
      %c0_76 = arith.constant 0 : index
      %80 = vector.load %arg10[%c20, %c0_76] : memref<108x128xbf16, #tpu.memory_space<vmem>>, vector<4x128xbf16>
      tpu.vector_store %arg10[%c20, %c0_76], %79 {strides = array<i32>} : memref<108x128xbf16, #tpu.memory_space<vmem>>, vector<4x128xbf16>,
      %c0_77 = arith.constant 0 : index
      %c0_78 = arith.constant 0 : index
      %c0_79 = arith.constant 0 : index
      %c0_80 = arith.constant 0 : index
      %c12_81 = arith.constant 12 : index
      %81 = vector.load %arg2[%c0_77, %c0_78, %c0_79, %c0_80, %c12_81] : memref<1x1x4x4x256xbf16, #tpu.memory_space<vmem>>, vector<1x1x1x4x128xbf16>
      %82 = vector.shape_cast %81 : vector<1x1x1x4x128xbf16> to vector<4x128xbf16>
      %c24 = arith.constant 24 : index
      %c0_82 = arith.constant 0 : index
      %83 = vector.load %arg10[%c24, %c0_82] : memref<108x128xbf16, #tpu.memory_space<vmem>>, vector<4x128xbf16>
      tpu.vector_store %arg10[%c24, %c0_82], %82 {strides = array<i32>} : memref<108x128xbf16, #tpu.memory_space<vmem>>, vector<4x128xbf16>,
      %c0_83 = arith.constant 0 : index
      %c0_84 = arith.constant 0 : index
      %c1_85 = arith.constant 1 : index
      %c0_86 = arith.constant 0 : index
      %c12_87 = arith.constant 12 : index
      %84 = vector.load %arg2[%c0_83, %c0_84, %c1_85, %c0_86, %c12_87] : memref<1x1x4x4x256xbf16, #tpu.memory_space<vmem>>, vector<1x1x1x4x128xbf16>
      %85 = vector.shape_cast %84 : vector<1x1x1x4x128xbf16> to vector<4x128xbf16>
      %c28 = arith.constant 28 : index
      %c0_88 = arith.constant 0 : index
      %86 = vector.load %arg10[%c28, %c0_88] : memref<108x128xbf16, #tpu.memory_space<vmem>>, vector<4x128xbf16>
      tpu.vector_store %arg10[%c28, %c0_88], %85 {strides = array<i32>} : memref<108x128xbf16, #tpu.memory_space<vmem>>, vector<4x128xbf16>,
      %c0_89 = arith.constant 0 : index
      %c0_90 = arith.constant 0 : index
      %c0_91 = arith.constant 0 : index
      %c0_92 = arith.constant 0 : index
      %c13 = arith.constant 13 : index
      %87 = vector.load %arg2[%c0_89, %c0_90, %c0_91, %c0_92, %c13] : memref<1x1x4x4x256xbf16, #tpu.memory_space<vmem>>, vector<1x1x1x4x128xbf16>
      %88 = vector.shape_cast %87 : vector<1x1x1x4x128xbf16> to vector<4x128xbf16>
      %c32 = arith.constant 32 : index
      %c0_93 = arith.constant 0 : index
      %89 = vector.load %arg10[%c32, %c0_93] : memref<108x128xbf16, #tpu.memory_space<vmem>>, vector<4x128xbf16>
      tpu.vector_store %arg10[%c32, %c0_93], %88 {strides = array<i32>} : memref<108x128xbf16, #tpu.memory_space<vmem>>, vector<4x128xbf16>,
    } else {
    }
    %true = arith.constant true
    %10 = arith.xori %7, %true : i1
    %11 = arith.extui %10 : i1 to i32
    %c0_i32_4 = arith.constant 0 : i32
    %12 = arith.cmpi ne, %11, %c0_i32_4 : i32
    scf.if %12 {
      %cst_43 = arith.constant 0.000000e+00 : bf16
      %63 = vector.broadcast %cst_43 : bf16 to vector<36x128xbf16>
      %c0_44 = arith.constant 0 : index
      %c0_45 = arith.constant 0 : index
      %64 = vector.load %arg10[%c0_44, %c0_45] : memref<108x128xbf16, #tpu.memory_space<vmem>>, vector<36x128xbf16>
      tpu.vector_store %arg10[%c0_44, %c0_45], %63 {strides = array<i32>} : memref<108x128xbf16, #tpu.memory_space<vmem>>, vector<36x128xbf16>,
    } else {
    }
    %c1_i32_5 = arith.constant 1 : i32
    %13 = arith.addi %arg1, %c1_i32_5 : i32
    %c1_i32_6 = arith.constant 1 : i32
    %14 = arith.subi %13, %c1_i32_6 : i32
    %c0_i32_7 = arith.constant 0 : i32
    %15 = arith.cmpi sge, %14, %c0_i32_7 : i32
    %c8_i32_8 = arith.constant 8 : i32
    %16 = arith.cmpi slt, %14, %c8_i32_8 : i32
    %17 = arith.andi %15, %16 : i1
    %18 = arith.extui %17 : i1 to i32
    %c0_i32_9 = arith.constant 0 : i32
    %19 = arith.cmpi ne, %18, %c0_i32_9 : i32
    scf.if %19 {
      %c0_43 = arith.constant 0 : index
      %c0_44 = arith.constant 0 : index
      %c0_45 = arith.constant 0 : index
      %c0_46 = arith.constant 0 : index
      %c0_47 = arith.constant 0 : index
      %63 = vector.load %arg3[%c0_43, %c0_44, %c0_45, %c0_46, %c0_47] : memref<1x1x4x4x256xbf16, #tpu.memory_space<vmem>>, vector<1x1x1x4x128xbf16>
      %64 = vector.shape_cast %63 : vector<1x1x1x4x128xbf16> to vector<4x128xbf16>
      %c36 = arith.constant 36 : index
      %c0_48 = arith.constant 0 : index
      %65 = vector.load %arg10[%c36, %c0_48] : memref<108x128xbf16, #tpu.memory_space<vmem>>, vector<4x128xbf16>
      tpu.vector_store %arg10[%c36, %c0_48], %64 {strides = array<i32>} : memref<108x128xbf16, #tpu.memory_space<vmem>>, vector<4x128xbf16>,
      %c0_49 = arith.constant 0 : index
      %c0_50 = arith.constant 0 : index
      %c1 = arith.constant 1 : index
      %c0_51 = arith.constant 0 : index
      %c0_52 = arith.constant 0 : index
      %66 = vector.load %arg3[%c0_49, %c0_50, %c1, %c0_51, %c0_52] : memref<1x1x4x4x256xbf16, #tpu.memory_space<vmem>>, vector<1x1x1x4x128xbf16>
      %67 = vector.shape_cast %66 : vector<1x1x1x4x128xbf16> to vector<4x128xbf16>
      %c40 = arith.constant 40 : index
      %c0_53 = arith.constant 0 : index
      %68 = vector.load %arg10[%c40, %c0_53] : memref<108x128xbf16, #tpu.memory_space<vmem>>, vector<4x128xbf16>
      tpu.vector_store %arg10[%c40, %c0_53], %67 {strides = array<i32>} : memref<108x128xbf16, #tpu.memory_space<vmem>>, vector<4x128xbf16>,
      %c0_54 = arith.constant 0 : index
      %c0_55 = arith.constant 0 : index
      %c0_56 = arith.constant 0 : index
      %c0_57 = arith.constant 0 : index
      %c1_58 = arith.constant 1 : index
      %69 = vector.load %arg3[%c0_54, %c0_55, %c0_56, %c0_57, %c1_58] : memref<1x1x4x4x256xbf16, #tpu.memory_space<vmem>>, vector<1x1x1x4x128xbf16>
      %70 = vector.shape_cast %69 : vector<1x1x1x4x128xbf16> to vector<4x128xbf16>
      %c44 = arith.constant 44 : index
      %c0_59 = arith.constant 0 : index
      %71 = vector.load %arg10[%c44, %c0_59] : memref<108x128xbf16, #tpu.memory_space<vmem>>, vector<4x128xbf16>
      tpu.vector_store %arg10[%c44, %c0_59], %70 {strides = array<i32>} : memref<108x128xbf16, #tpu.memory_space<vmem>>, vector<4x128xbf16>,
      %c0_60 = arith.constant 0 : index
      %c0_61 = arith.constant 0 : index
      %c2 = arith.constant 2 : index
      %c0_62 = arith.constant 0 : index
      %c0_63 = arith.constant 0 : index
      %72 = vector.load %arg3[%c0_60, %c0_61, %c2, %c0_62, %c0_63] : memref<1x1x4x4x256xbf16, #tpu.memory_space<vmem>>, vector<1x1x1x4x128xbf16>
      %73 = vector.shape_cast %72 : vector<1x1x1x4x128xbf16> to vector<4x128xbf16>
      %c48 = arith.constant 48 : index
      %c0_64 = arith.constant 0 : index
      %74 = vector.load %arg10[%c48, %c0_64] : memref<108x128xbf16, #tpu.memory_space<vmem>>, vector<4x128xbf16>
      tpu.vector_store %arg10[%c48, %c0_64], %73 {strides = array<i32>} : memref<108x128xbf16, #tpu.memory_space<vmem>>, vector<4x128xbf16>,
      %c0_65 = arith.constant 0 : index
      %c0_66 = arith.constant 0 : index
      %c3 = arith.constant 3 : index
      %c0_67 = arith.constant 0 : index
      %c0_68 = arith.constant 0 : index
      %75 = vector.load %arg3[%c0_65, %c0_66, %c3, %c0_67, %c0_68] : memref<1x1x4x4x256xbf16, #tpu.memory_space<vmem>>, vector<1x1x1x4x128xbf16>
      %76 = vector.shape_cast %75 : vector<1x1x1x4x128xbf16> to vector<4x128xbf16>
      %c52 = arith.constant 52 : index
      %c0_69 = arith.constant 0 : index
      %77 = vector.load %arg10[%c52, %c0_69] : memref<108x128xbf16, #tpu.memory_space<vmem>>, vector<4x128xbf16>
      tpu.vector_store %arg10[%c52, %c0_69], %76 {strides = array<i32>} : memref<108x128xbf16, #tpu.memory_space<vmem>>, vector<4x128xbf16>,
      %c0_70 = arith.constant 0 : index
      %c0_71 = arith.constant 0 : index
      %c2_72 = arith.constant 2 : index
      %c0_73 = arith.constant 0 : index
      %c1_74 = arith.constant 1 : index
      %78 = vector.load %arg3[%c0_70, %c0_71, %c2_72, %c0_73, %c1_74] : memref<1x1x4x4x256xbf16, #tpu.memory_space<vmem>>, vector<1x1x1x4x128xbf16>
      %79 = vector.shape_cast %78 : vector<1x1x1x4x128xbf16> to vector<4x128xbf16>
      %c56 = arith.constant 56 : index
      %c0_75 = arith.constant 0 : index
      %80 = vector.load %arg10[%c56, %c0_75] : memref<108x128xbf16, #tpu.memory_space<vmem>>, vector<4x128xbf16>
      tpu.vector_store %arg10[%c56, %c0_75], %79 {strides = array<i32>} : memref<108x128xbf16, #tpu.memory_space<vmem>>, vector<4x128xbf16>,
      %c0_76 = arith.constant 0 : index
      %c0_77 = arith.constant 0 : index
      %c0_78 = arith.constant 0 : index
      %c0_79 = arith.constant 0 : index
      %c12 = arith.constant 12 : index
      %81 = vector.load %arg3[%c0_76, %c0_77, %c0_78, %c0_79, %c12] : memref<1x1x4x4x256xbf16, #tpu.memory_space<vmem>>, vector<1x1x1x4x128xbf16>
      %82 = vector.shape_cast %81 : vector<1x1x1x4x128xbf16> to vector<4x128xbf16>
      %c60 = arith.constant 60 : index
      %c0_80 = arith.constant 0 : index
      %83 = vector.load %arg10[%c60, %c0_80] : memref<108x128xbf16, #tpu.memory_space<vmem>>, vector<4x128xbf16>
      tpu.vector_store %arg10[%c60, %c0_80], %82 {strides = array<i32>} : memref<108x128xbf16, #tpu.memory_space<vmem>>, vector<4x128xbf16>,
      %c0_81 = arith.constant 0 : index
      %c0_82 = arith.constant 0 : index
      %c1_83 = arith.constant 1 : index
      %c0_84 = arith.constant 0 : index
      %c12_85 = arith.constant 12 : index
      %84 = vector.load %arg3[%c0_81, %c0_82, %c1_83, %c0_84, %c12_85] : memref<1x1x4x4x256xbf16, #tpu.memory_space<vmem>>, vector<1x1x1x4x128xbf16>
      %85 = vector.shape_cast %84 : vector<1x1x1x4x128xbf16> to vector<4x128xbf16>
      %c64 = arith.constant 64 : index
      %c0_86 = arith.constant 0 : index
      %86 = vector.load %arg10[%c64, %c0_86] : memref<108x128xbf16, #tpu.memory_space<vmem>>, vector<4x128xbf16>
      tpu.vector_store %arg10[%c64, %c0_86], %85 {strides = array<i32>} : memref<108x128xbf16, #tpu.memory_space<vmem>>, vector<4x128xbf16>,
      %c0_87 = arith.constant 0 : index
      %c0_88 = arith.constant 0 : index
      %c0_89 = arith.constant 0 : index
      %c0_90 = arith.constant 0 : index
      %c13 = arith.constant 13 : index
      %87 = vector.load %arg3[%c0_87, %c0_88, %c0_89, %c0_90, %c13] : memref<1x1x4x4x256xbf16, #tpu.memory_space<vmem>>, vector<1x1x1x4x128xbf16>
      %88 = vector.shape_cast %87 : vector<1x1x1x4x128xbf16> to vector<4x128xbf16>
      %c68 = arith.constant 68 : index
      %c0_91 = arith.constant 0 : index
      %89 = vector.load %arg10[%c68, %c0_91] : memref<108x128xbf16, #tpu.memory_space<vmem>>, vector<4x128xbf16>
      tpu.vector_store %arg10[%c68, %c0_91], %88 {strides = array<i32>} : memref<108x128xbf16, #tpu.memory_space<vmem>>, vector<4x128xbf16>,
    } else {
    }
    %true_10 = arith.constant true
    %20 = arith.xori %17, %true_10 : i1
    %21 = arith.extui %20 : i1 to i32
    %c0_i32_11 = arith.constant 0 : i32
    %22 = arith.cmpi ne, %21, %c0_i32_11 : i32
    scf.if %22 {
      %cst_43 = arith.constant 0.000000e+00 : bf16
      %63 = vector.broadcast %cst_43 : bf16 to vector<36x128xbf16>
      %c36 = arith.constant 36 : index
      %c0_44 = arith.constant 0 : index
      %64 = vector.load %arg10[%c36, %c0_44] : memref<108x128xbf16, #tpu.memory_space<vmem>>, vector<36x128xbf16>
      tpu.vector_store %arg10[%c36, %c0_44], %63 {strides = array<i32>} : memref<108x128xbf16, #tpu.memory_space<vmem>>, vector<36x128xbf16>,
    } else {
    }
    %c2_i32 = arith.constant 2 : i32
    %23 = arith.addi %arg1, %c2_i32 : i32
    %c1_i32_12 = arith.constant 1 : i32
    %24 = arith.subi %23, %c1_i32_12 : i32
    %c0_i32_13 = arith.constant 0 : i32
    %25 = arith.cmpi sge, %24, %c0_i32_13 : i32
    %c8_i32_14 = arith.constant 8 : i32
    %26 = arith.cmpi slt, %24, %c8_i32_14 : i32
    %27 = arith.andi %25, %26 : i1
    %28 = arith.extui %27 : i1 to i32
    %c0_i32_15 = arith.constant 0 : i32
    %29 = arith.cmpi ne, %28, %c0_i32_15 : i32
    scf.if %29 {
      %c0_43 = arith.constant 0 : index
      %c0_44 = arith.constant 0 : index
      %c0_45 = arith.constant 0 : index
      %c0_46 = arith.constant 0 : index
      %c0_47 = arith.constant 0 : index
      %63 = vector.load %arg4[%c0_43, %c0_44, %c0_45, %c0_46, %c0_47] : memref<1x1x4x4x256xbf16, #tpu.memory_space<vmem>>, vector<1x1x1x4x128xbf16>
      %64 = vector.shape_cast %63 : vector<1x1x1x4x128xbf16> to vector<4x128xbf16>
      %c72 = arith.constant 72 : index
      %c0_48 = arith.constant 0 : index
      %65 = vector.load %arg10[%c72, %c0_48] : memref<108x128xbf16, #tpu.memory_space<vmem>>, vector<4x128xbf16>
      tpu.vector_store %arg10[%c72, %c0_48], %64 {strides = array<i32>} : memref<108x128xbf16, #tpu.memory_space<vmem>>, vector<4x128xbf16>,
      %c0_49 = arith.constant 0 : index
      %c0_50 = arith.constant 0 : index
      %c1 = arith.constant 1 : index
      %c0_51 = arith.constant 0 : index
      %c0_52 = arith.constant 0 : index
      %66 = vector.load %arg4[%c0_49, %c0_50, %c1, %c0_51, %c0_52] : memref<1x1x4x4x256xbf16, #tpu.memory_space<vmem>>, vector<1x1x1x4x128xbf16>
      %67 = vector.shape_cast %66 : vector<1x1x1x4x128xbf16> to vector<4x128xbf16>
      %c76 = arith.constant 76 : index
      %c0_53 = arith.constant 0 : index
      %68 = vector.load %arg10[%c76, %c0_53] : memref<108x128xbf16, #tpu.memory_space<vmem>>, vector<4x128xbf16>
      tpu.vector_store %arg10[%c76, %c0_53], %67 {strides = array<i32>} : memref<108x128xbf16, #tpu.memory_space<vmem>>, vector<4x128xbf16>,
      %c0_54 = arith.constant 0 : index
      %c0_55 = arith.constant 0 : index
      %c0_56 = arith.constant 0 : index
      %c0_57 = arith.constant 0 : index
      %c1_58 = arith.constant 1 : index
      %69 = vector.load %arg4[%c0_54, %c0_55, %c0_56, %c0_57, %c1_58] : memref<1x1x4x4x256xbf16, #tpu.memory_space<vmem>>, vector<1x1x1x4x128xbf16>
      %70 = vector.shape_cast %69 : vector<1x1x1x4x128xbf16> to vector<4x128xbf16>
      %c80 = arith.constant 80 : index
      %c0_59 = arith.constant 0 : index
      %71 = vector.load %arg10[%c80, %c0_59] : memref<108x128xbf16, #tpu.memory_space<vmem>>, vector<4x128xbf16>
      tpu.vector_store %arg10[%c80, %c0_59], %70 {strides = array<i32>} : memref<108x128xbf16, #tpu.memory_space<vmem>>, vector<4x128xbf16>,
      %c0_60 = arith.constant 0 : index
      %c0_61 = arith.constant 0 : index
      %c2 = arith.constant 2 : index
      %c0_62 = arith.constant 0 : index
      %c0_63 = arith.constant 0 : index
      %72 = vector.load %arg4[%c0_60, %c0_61, %c2, %c0_62, %c0_63] : memref<1x1x4x4x256xbf16, #tpu.memory_space<vmem>>, vector<1x1x1x4x128xbf16>
      %73 = vector.shape_cast %72 : vector<1x1x1x4x128xbf16> to vector<4x128xbf16>
      %c84 = arith.constant 84 : index
      %c0_64 = arith.constant 0 : index
      %74 = vector.load %arg10[%c84, %c0_64] : memref<108x128xbf16, #tpu.memory_space<vmem>>, vector<4x128xbf16>
      tpu.vector_store %arg10[%c84, %c0_64], %73 {strides = array<i32>} : memref<108x128xbf16, #tpu.memory_space<vmem>>, vector<4x128xbf16>,
      %c0_65 = arith.constant 0 : index
      %c0_66 = arith.constant 0 : index
      %c3 = arith.constant 3 : index
      %c0_67 = arith.constant 0 : index
      %c0_68 = arith.constant 0 : index
      %75 = vector.load %arg4[%c0_65, %c0_66, %c3, %c0_67, %c0_68] : memref<1x1x4x4x256xbf16, #tpu.memory_space<vmem>>, vector<1x1x1x4x128xbf16>
      %76 = vector.shape_cast %75 : vector<1x1x1x4x128xbf16> to vector<4x128xbf16>
      %c88 = arith.constant 88 : index
      %c0_69 = arith.constant 0 : index
      %77 = vector.load %arg10[%c88, %c0_69] : memref<108x128xbf16, #tpu.memory_space<vmem>>, vector<4x128xbf16>
      tpu.vector_store %arg10[%c88, %c0_69], %76 {strides = array<i32>} : memref<108x128xbf16, #tpu.memory_space<vmem>>, vector<4x128xbf16>,
      %c0_70 = arith.constant 0 : index
      %c0_71 = arith.constant 0 : index
      %c2_72 = arith.constant 2 : index
      %c0_73 = arith.constant 0 : index
      %c1_74 = arith.constant 1 : index
      %78 = vector.load %arg4[%c0_70, %c0_71, %c2_72, %c0_73, %c1_74] : memref<1x1x4x4x256xbf16, #tpu.memory_space<vmem>>, vector<1x1x1x4x128xbf16>
      %79 = vector.shape_cast %78 : vector<1x1x1x4x128xbf16> to vector<4x128xbf16>
      %c92 = arith.constant 92 : index
      %c0_75 = arith.constant 0 : index
      %80 = vector.load %arg10[%c92, %c0_75] : memref<108x128xbf16, #tpu.memory_space<vmem>>, vector<4x128xbf16>
      tpu.vector_store %arg10[%c92, %c0_75], %79 {strides = array<i32>} : memref<108x128xbf16, #tpu.memory_space<vmem>>, vector<4x128xbf16>,
      %c0_76 = arith.constant 0 : index
      %c0_77 = arith.constant 0 : index
      %c0_78 = arith.constant 0 : index
      %c0_79 = arith.constant 0 : index
      %c12 = arith.constant 12 : index
      %81 = vector.load %arg4[%c0_76, %c0_77, %c0_78, %c0_79, %c12] : memref<1x1x4x4x256xbf16, #tpu.memory_space<vmem>>, vector<1x1x1x4x128xbf16>
      %82 = vector.shape_cast %81 : vector<1x1x1x4x128xbf16> to vector<4x128xbf16>
      %c96 = arith.constant 96 : index
      %c0_80 = arith.constant 0 : index
      %83 = vector.load %arg10[%c96, %c0_80] : memref<108x128xbf16, #tpu.memory_space<vmem>>, vector<4x128xbf16>
      tpu.vector_store %arg10[%c96, %c0_80], %82 {strides = array<i32>} : memref<108x128xbf16, #tpu.memory_space<vmem>>, vector<4x128xbf16>,
      %c0_81 = arith.constant 0 : index
      %c0_82 = arith.constant 0 : index
      %c1_83 = arith.constant 1 : index
      %c0_84 = arith.constant 0 : index
      %c12_85 = arith.constant 12 : index
      %84 = vector.load %arg4[%c0_81, %c0_82, %c1_83, %c0_84, %c12_85] : memref<1x1x4x4x256xbf16, #tpu.memory_space<vmem>>, vector<1x1x1x4x128xbf16>
      %85 = vector.shape_cast %84 : vector<1x1x1x4x128xbf16> to vector<4x128xbf16>
      %c100 = arith.constant 100 : index
      %c0_86 = arith.constant 0 : index
      %86 = vector.load %arg10[%c100, %c0_86] : memref<108x128xbf16, #tpu.memory_space<vmem>>, vector<4x128xbf16>
      tpu.vector_store %arg10[%c100, %c0_86], %85 {strides = array<i32>} : memref<108x128xbf16, #tpu.memory_space<vmem>>, vector<4x128xbf16>,
      %c0_87 = arith.constant 0 : index
      %c0_88 = arith.constant 0 : index
      %c0_89 = arith.constant 0 : index
      %c0_90 = arith.constant 0 : index
      %c13 = arith.constant 13 : index
      %87 = vector.load %arg4[%c0_87, %c0_88, %c0_89, %c0_90, %c13] : memref<1x1x4x4x256xbf16, #tpu.memory_space<vmem>>, vector<1x1x1x4x128xbf16>
      %88 = vector.shape_cast %87 : vector<1x1x1x4x128xbf16> to vector<4x128xbf16>
      %c104 = arith.constant 104 : index
      %c0_91 = arith.constant 0 : index
      %89 = vector.load %arg10[%c104, %c0_91] : memref<108x128xbf16, #tpu.memory_space<vmem>>, vector<4x128xbf16>
      tpu.vector_store %arg10[%c104, %c0_91], %88 {strides = array<i32>} : memref<108x128xbf16, #tpu.memory_space<vmem>>, vector<4x128xbf16>,
    } else {
    }
    %true_16 = arith.constant true
    %30 = arith.xori %27, %true_16 : i1
    %31 = arith.extui %30 : i1 to i32
    %c0_i32_17 = arith.constant 0 : i32
    %32 = arith.cmpi ne, %31, %c0_i32_17 : i32
    scf.if %32 {
      %cst_43 = arith.constant 0.000000e+00 : bf16
      %63 = vector.broadcast %cst_43 : bf16 to vector<36x128xbf16>
      %c72 = arith.constant 72 : index
      %c0_44 = arith.constant 0 : index
      %64 = vector.load %arg10[%c72, %c0_44] : memref<108x128xbf16, #tpu.memory_space<vmem>>, vector<36x128xbf16>
      tpu.vector_store %arg10[%c72, %c0_44], %63 {strides = array<i32>} : memref<108x128xbf16, #tpu.memory_space<vmem>>, vector<36x128xbf16>,
    } else {
    }
    %c0 = arith.constant 0 : index
    %c0_18 = arith.constant 0 : index
    %33 = vector.load %arg5[%c0, %c0_18] : memref<8x108xbf16, #tpu.memory_space<vmem>>, vector<8x108xbf16>
    %c0_19 = arith.constant 0 : index
    %c0_20 = arith.constant 0 : index
    %34 = vector.load %arg10[%c0_19, %c0_20] : memref<108x128xbf16, #tpu.memory_space<vmem>>, vector<108x128xbf16>
    %cst = arith.constant dense<0.000000e+00> : vector<8x128xf32>
    %35 = tpu.matmul %33, %34, %cst {dimension_numbers = #tpu.dot_dimension_numbers<[1], [0], [0], [1], [0, 0, 1, 1], [], []>} : vector<8x108xbf16>, vector<108x128xbf16>, vector<8x128xf32> -> vector<8x128xf32>
    %c0_21 = arith.constant 0 : index
    %c0_22 = arith.constant 0 : index
    %36 = vector.load %arg6[%c0_21, %c0_22] : memref<1x128xf32, #tpu.memory_space<vmem>>, vector<1x128xf32>
    %37 = vector.broadcast %36 : vector<1x128xf32> to vector<8x128xf32>
    %38 = arith.mulf %35, %37 : vector<8x128xf32>
    %c0_23 = arith.constant 0 : index
    %c0_24 = arith.constant 0 : index
    %c0_25 = arith.constant 0 : index
    %39 = vector.load %arg8[%c0_23, %c0_24, %c0_25] : memref<1x8x1xf32, #tpu.memory_space<vmem>>, vector<1x8x1xf32>
    %40 = vector.shape_cast %39 : vector<1x8x1xf32> to vector<8x1xf32>
    %cst_26 = arith.constant dense<0.000000e+00> : vector<8xf32>
    %41 = vector.multi_reduction <add>, %38, %cst_26 [1] : vector<8x128xf32> to vector<8xf32>
    %42 = vector.shape_cast %41 : vector<8xf32> to vector<8x1xf32>
    %43 = arith.addf %40, %42 : vector<8x1xf32>
    %c0_27 = arith.constant 0 : index
    %c0_28 = arith.constant 0 : index
    %c0_29 = arith.constant 0 : index
    %44 = vector.load %arg8[%c0_27, %c0_28, %c0_29] : memref<1x8x1xf32, #tpu.memory_space<vmem>>, vector<1x8x1xf32>
    %45 = vector.shape_cast %44 : vector<1x8x1xf32> to vector<8x1xf32>
    %46 = vector.shape_cast %43 : vector<8x1xf32> to vector<1x8x1xf32>
    tpu.vector_store %arg8[%c0_27, %c0_28, %c0_29], %46 {strides = array<i32>} : memref<1x8x1xf32, #tpu.memory_space<vmem>>, vector<1x8x1xf32>,
    %c0_30 = arith.constant 0 : index
    %c0_31 = arith.constant 0 : index
    %c0_32 = arith.constant 0 : index
    %47 = vector.load %arg9[%c0_30, %c0_31, %c0_32] : memref<1x8x1xf32, #tpu.memory_space<vmem>>, vector<1x8x1xf32>
    %48 = vector.shape_cast %47 : vector<1x8x1xf32> to vector<8x1xf32>
    %49 = arith.mulf %35, %38 : vector<8x128xf32>
    %cst_33 = arith.constant dense<0.000000e+00> : vector<8xf32>
    %50 = vector.multi_reduction <add>, %49, %cst_33 [1] : vector<8x128xf32> to vector<8xf32>
    %51 = vector.shape_cast %50 : vector<8xf32> to vector<8x1xf32>
    %52 = arith.addf %48, %51 : vector<8x1xf32>
    %c0_34 = arith.constant 0 : index
    %c0_35 = arith.constant 0 : index
    %c0_36 = arith.constant 0 : index
    %53 = vector.load %arg9[%c0_34, %c0_35, %c0_36] : memref<1x8x1xf32, #tpu.memory_space<vmem>>, vector<1x8x1xf32>
    %54 = vector.shape_cast %53 : vector<1x8x1xf32> to vector<8x1xf32>
    %55 = vector.shape_cast %52 : vector<8x1xf32> to vector<1x8x1xf32>
    tpu.vector_store %arg9[%c0_34, %c0_35, %c0_36], %55 {strides = array<i32>} : memref<1x8x1xf32, #tpu.memory_space<vmem>>, vector<1x8x1xf32>,
    %cst_37 = arith.constant 0.000000e+00 : f32
    %56 = vector.broadcast %cst_37 : f32 to vector<8x26xf32>
    %cst_38 = arith.constant 0.000000e+00 : f32
    %57 = vector.broadcast %cst_38 : f32 to vector<8x102xf32>
    %58 = tpu.concatenate %56, %35, %57 in 1 : vector<8x26xf32>, vector<8x128xf32>, vector<8x102xf32> -> vector<8x256xf32>
    %59 = arith.truncf %58 : vector<8x256xf32> to vector<8x256xbf16>
    %c0_39 = arith.constant 0 : index
    %c0_40 = arith.constant 0 : index
    %c0_41 = arith.constant 0 : index
    %c0_42 = arith.constant 0 : index
    %60 = vector.load %arg7[%c0_39, %c0_40, %c0_41, %c0_42] : memref<1x1x8x256xbf16, #tpu.memory_space<vmem>>, vector<1x1x8x256xbf16>
    %61 = vector.shape_cast %60 : vector<1x1x8x256xbf16> to vector<8x256xbf16>
    %62 = vector.shape_cast %59 : vector<8x256xbf16> to vector<1x1x8x256xbf16>
    tpu.vector_store %arg7[%c0_39, %c0_40, %c0_41, %c0_42], %62 {strides = array<i32>} : memref<1x1x8x256xbf16, #tpu.memory_space<vmem>>, vector<1x1x8x256xbf16>,
    return
  }
  func.func @transform_0(%arg0: i32, %arg1: i32) -> (i32, i32, i32, i32, i32) {
    %c0_i32 = arith.constant 0 : i32
    %0 = arith.addi %arg1, %c0_i32 : i32
    %c1_i32 = arith.constant 1 : i32
    %1 = arith.subi %0, %c1_i32 : i32
    %c0_i32_0 = arith.constant 0 : i32
    %2 = arith.maxsi %1, %c0_i32_0 : i32
    %c7_i32 = arith.constant 7 : i32
    %3 = arith.minsi %2, %c7_i32 : i32
    %c0_i32_1 = arith.constant 0 : i32
    %c0_i32_2 = arith.constant 0 : i32
    %c0_i32_3 = arith.constant 0 : i32
    %c0_i32_4 = arith.constant 0 : i32
    return %arg0, %3, %c0_i32_1, %c0_i32_2, %c0_i32_3 : i32, i32, i32, i32, i32
  }
  func.func @transform_1(%arg0: i32, %arg1: i32) -> (i32, i32, i32, i32, i32) {
    %c1_i32 = arith.constant 1 : i32
    %0 = arith.addi %arg1, %c1_i32 : i32
    %c1_i32_0 = arith.constant 1 : i32
    %1 = arith.subi %0, %c1_i32_0 : i32
    %c0_i32 = arith.constant 0 : i32
    %2 = arith.maxsi %1, %c0_i32 : i32
    %c7_i32 = arith.constant 7 : i32
    %3 = arith.minsi %2, %c7_i32 : i32
    %c0_i32_1 = arith.constant 0 : i32
    %c0_i32_2 = arith.constant 0 : i32
    %c0_i32_3 = arith.constant 0 : i32
    %c0_i32_4 = arith.constant 0 : i32
    return %arg0, %3, %c0_i32_1, %c0_i32_2, %c0_i32_3 : i32, i32, i32, i32, i32
  }
  func.func @transform_2(%arg0: i32, %arg1: i32) -> (i32, i32, i32, i32, i32) {
    %c2_i32 = arith.constant 2 : i32
    %0 = arith.addi %arg1, %c2_i32 : i32
    %c1_i32 = arith.constant 1 : i32
    %1 = arith.subi %0, %c1_i32 : i32
    %c0_i32 = arith.constant 0 : i32
    %2 = arith.maxsi %1, %c0_i32 : i32
    %c7_i32 = arith.constant 7 : i32
    %3 = arith.minsi %2, %c7_i32 : i32
    %c0_i32_0 = arith.constant 0 : i32
    %c0_i32_1 = arith.constant 0 : i32
    %c0_i32_2 = arith.constant 0 : i32
    %c0_i32_3 = arith.constant 0 : i32
    return %arg0, %3, %c0_i32_0, %c0_i32_1, %c0_i32_2 : i32, i32, i32, i32, i32
  }
  func.func @transform_3(%arg0: i32, %arg1: i32) -> (i32, i32) {
    %c0_i32 = arith.constant 0 : i32
    %c0_i32_0 = arith.constant 0 : i32
    %c0_i32_1 = arith.constant 0 : i32
    return %c0_i32, %c0_i32_0 : i32, i32
  }
  func.func @transform_4(%arg0: i32, %arg1: i32) -> (i32, i32) {
    %c0_i32 = arith.constant 0 : i32
    %c0_i32_0 = arith.constant 0 : i32
    %c0_i32_1 = arith.constant 0 : i32
    return %c0_i32, %c0_i32_0 : i32, i32
  }
  func.func @transform_5(%arg0: i32, %arg1: i32) -> (i32, i32, i32, i32) {
    %c0_i32 = arith.constant 0 : i32
    %c0_i32_0 = arith.constant 0 : i32
    %c0_i32_1 = arith.constant 0 : i32
    return %arg0, %arg1, %c0_i32, %c0_i32_0 : i32, i32, i32, i32
  }
  func.func @transform_6(%arg0: i32, %arg1: i32) -> (i32, i32, i32) {
    %c0_i32 = arith.constant 0 : i32
    %c0_i32_0 = arith.constant 0 : i32
    %c0_i32_1 = arith.constant 0 : i32
    return %arg0, %c0_i32, %c0_i32_0 : i32, i32, i32
  }
  func.func @transform_7(%arg0: i32, %arg1: i32) -> (i32, i32, i32) {
    %c0_i32 = arith.constant 0 : i32
    %c0_i32_0 = arith.constant 0 : i32
    %c0_i32_1 = arith.constant 0 : i32
    return %arg0, %c0_i32, %c0_i32_0 : i32, i32, i32
  }
}

module attributes {stable_mosaic.version = 11 : i64} {
  func.func @_bn_act_kernel(%arg0: i32, %arg1: i32, %arg2: memref<1x8x8x256xbf16, #tpu.memory_space<vmem>>, %arg3: memref<8x1xf32, #tpu.memory_space<vmem>>, %arg4: memref<8x1xf32, #tpu.memory_space<vmem>>, %arg5: memref<1x256xf32, #tpu.memory_space<vmem>>, %arg6: memref<1x8x8x256xbf16, #tpu.memory_space<vmem>>) attributes {dimension_semantics = [#tpu.dimension_semantics<parallel>, #tpu.dimension_semantics<parallel>], iteration_bounds = array<i64: 2, 1>, scalar_prefetch = 0 : i64, scratch_operands = 0 : i64, tpu.core_type = #tpu.core_type<tc>, window_params = [{transform_indices = @transform_0, window_bounds = array<i64: 1, 8, 8, 256>}, {pipeline_mode = #tpu.pipeline_mode<synchronous>, transform_indices = @transform_1, window_bounds = array<i64: 8, 1>}, {pipeline_mode = #tpu.pipeline_mode<synchronous>, transform_indices = @transform_2, window_bounds = array<i64: 8, 1>}, {pipeline_mode = #tpu.pipeline_mode<synchronous>, transform_indices = @transform_3, window_bounds = array<i64: 1, 256>}, {transform_indices = @transform_4, window_bounds = array<i64: 1, 8, 8, 256>}]} {
    %c0 = arith.constant 0 : index
    %c0_0 = arith.constant 0 : index
    %c0_1 = arith.constant 0 : index
    %c0_2 = arith.constant 0 : index
    %0 = vector.load %arg2[%c0, %c0_0, %c0_1, %c0_2] : memref<1x8x8x256xbf16, #tpu.memory_space<vmem>>, vector<1x8x8x256xbf16>
    %1 = vector.shape_cast %0 : vector<1x8x8x256xbf16> to vector<8x8x256xbf16>
    %2 = arith.extf %1 : vector<8x8x256xbf16> to vector<8x8x256xf32>
    %c0_3 = arith.constant 0 : index
    %c0_4 = arith.constant 0 : index
    %3 = vector.load %arg3[%c0_3, %c0_4] : memref<8x1xf32, #tpu.memory_space<vmem>>, vector<8x1xf32>
    %4 = vector.shape_cast %3 : vector<8x1xf32> to vector<1x8x1xf32>
    %5 = vector.broadcast %4 : vector<1x8x1xf32> to vector<8x8x256xf32>
    %6 = arith.mulf %2, %5 : vector<8x8x256xf32>
    %c0_5 = arith.constant 0 : index
    %c0_6 = arith.constant 0 : index
    %7 = vector.load %arg4[%c0_5, %c0_6] : memref<8x1xf32, #tpu.memory_space<vmem>>, vector<8x1xf32>
    %8 = vector.shape_cast %7 : vector<8x1xf32> to vector<1x8x1xf32>
    %9 = vector.broadcast %8 : vector<1x8x1xf32> to vector<8x8x256xf32>
    %10 = arith.addf %6, %9 : vector<8x8x256xf32>
    %cst = arith.constant 0.000000e+00 : f32
    %11 = vector.broadcast %cst : f32 to vector<8x8x256xf32>
    %12 = arith.cmpf ogt, %10, %11 : vector<8x8x256xf32>
    %13 = math.exp %10 : vector<8x8x256xf32>
    %cst_7 = arith.constant 1.000000e+00 : f32
    %14 = vector.broadcast %cst_7 : f32 to vector<8x8x256xf32>
    %15 = arith.subf %13, %14 : vector<8x8x256xf32>
    %16 = arith.select %12, %10, %15 : vector<8x8x256xi1>, vector<8x8x256xf32>
    %c0_8 = arith.constant 0 : index
    %c0_9 = arith.constant 0 : index
    %17 = vector.load %arg5[%c0_8, %c0_9] : memref<1x256xf32, #tpu.memory_space<vmem>>, vector<1x256xf32>
    %18 = vector.shape_cast %17 : vector<1x256xf32> to vector<1x1x256xf32>
    %19 = vector.broadcast %18 : vector<1x1x256xf32> to vector<8x8x256xf32>
    %20 = arith.mulf %16, %19 : vector<8x8x256xf32>
    %21 = arith.truncf %20 : vector<8x8x256xf32> to vector<8x8x256xbf16>
    %c0_10 = arith.constant 0 : index
    %c0_11 = arith.constant 0 : index
    %c0_12 = arith.constant 0 : index
    %c0_13 = arith.constant 0 : index
    %22 = vector.load %arg6[%c0_10, %c0_11, %c0_12, %c0_13] : memref<1x8x8x256xbf16, #tpu.memory_space<vmem>>, vector<1x8x8x256xbf16>
    %23 = vector.shape_cast %22 : vector<1x8x8x256xbf16> to vector<8x8x256xbf16>
    %24 = vector.shape_cast %21 : vector<8x8x256xbf16> to vector<1x8x8x256xbf16>
    tpu.vector_store %arg6[%c0_10, %c0_11, %c0_12, %c0_13], %24 {strides = array<i32>} : memref<1x8x8x256xbf16, #tpu.memory_space<vmem>>, vector<1x8x8x256xbf16>,
    return
  }
  func.func @transform_0(%arg0: i32, %arg1: i32) -> (i32, i32, i32, i32) {
    %c0_i32 = arith.constant 0 : i32
    %c0_i32_0 = arith.constant 0 : i32
    %c0_i32_1 = arith.constant 0 : i32
    return %arg0, %arg1, %c0_i32, %c0_i32_0 : i32, i32, i32, i32
  }
  func.func @transform_1(%arg0: i32, %arg1: i32) -> (i32, i32) {
    %c0_i32 = arith.constant 0 : i32
    %c0_i32_0 = arith.constant 0 : i32
    %c0_i32_1 = arith.constant 0 : i32
    return %c0_i32, %c0_i32_0 : i32, i32
  }
  func.func @transform_2(%arg0: i32, %arg1: i32) -> (i32, i32) {
    %c0_i32 = arith.constant 0 : i32
    %c0_i32_0 = arith.constant 0 : i32
    %c0_i32_1 = arith.constant 0 : i32
    return %c0_i32, %c0_i32_0 : i32, i32
  }
  func.func @transform_3(%arg0: i32, %arg1: i32) -> (i32, i32) {
    %c0_i32 = arith.constant 0 : i32
    %c0_i32_0 = arith.constant 0 : i32
    %c0_i32_1 = arith.constant 0 : i32
    return %c0_i32, %c0_i32_0 : i32, i32
  }
  func.func @transform_4(%arg0: i32, %arg1: i32) -> (i32, i32, i32, i32) {
    %c0_i32 = arith.constant 0 : i32
    %c0_i32_0 = arith.constant 0 : i32
    %c0_i32_1 = arith.constant 0 : i32
    return %arg0, %arg1, %c0_i32, %c0_i32_0 : i32, i32, i32, i32
  }
}

module attributes {stable_mosaic.version = 11 : i64} {
  func.func @_lu_pass1_kernel(%arg0: i32, %arg1: i32, %arg2: memref<1x1x8x256xbf16, #tpu.memory_space<vmem>>, %arg3: memref<1x1x8x256xbf16, #tpu.memory_space<vmem>>, %arg4: memref<1x1x8x256xbf16, #tpu.memory_space<vmem>>, %arg5: memref<1x1x8x256xbf16, #tpu.memory_space<vmem>>, %arg6: memref<1x1x8x256xbf16, #tpu.memory_space<vmem>>, %arg7: memref<8x1000xbf16, #tpu.memory_space<vmem>>, %arg8: memref<1x128xf32, #tpu.memory_space<vmem>>, %arg9: memref<1x1x8x256xbf16, #tpu.memory_space<vmem>>, %arg10: memref<1x8x1xf32, #tpu.memory_space<vmem>>, %arg11: memref<1x8x1xf32, #tpu.memory_space<vmem>>, %arg12: memref<1000x128xbf16, #tpu.memory_space<vmem>>) attributes {dimension_semantics = [#tpu.dimension_semantics<parallel>, #tpu.dimension_semantics<arbitrary>], iteration_bounds = array<i64: 2, 8>, scalar_prefetch = 0 : i64, scratch_operands = 1 : i64, tpu.core_type = #tpu.core_type<tc>, window_params = [{transform_indices = @transform_0, window_bounds = array<i64: 1, 1, 8, 256>}, {transform_indices = @transform_1, window_bounds = array<i64: 1, 1, 8, 256>}, {transform_indices = @transform_2, window_bounds = array<i64: 1, 1, 8, 256>}, {transform_indices = @transform_3, window_bounds = array<i64: 1, 1, 8, 256>}, {transform_indices = @transform_4, window_bounds = array<i64: 1, 1, 8, 256>}, {pipeline_mode = #tpu.pipeline_mode<synchronous>, transform_indices = @transform_5, window_bounds = array<i64: 8, 1000>}, {pipeline_mode = #tpu.pipeline_mode<synchronous>, transform_indices = @transform_6, window_bounds = array<i64: 1, 128>}, {transform_indices = @transform_7, window_bounds = array<i64: 1, 1, 8, 256>}, {transform_indices = @transform_8, window_bounds = array<i64: 1, 8, 1>}, {transform_indices = @transform_9, window_bounds = array<i64: 1, 8, 1>}]} {
    %c0_i32 = arith.constant 0 : i32
    %0 = arith.cmpi eq, %arg1, %c0_i32 : i32
    %1 = arith.extui %0 : i1 to i32
    %c0_i32_0 = arith.constant 0 : i32
    %2 = arith.cmpi ne, %1, %c0_i32_0 : i32
    scf.if %2 {
      %cst_55 = arith.constant 0.000000e+00 : f32
      %83 = vector.broadcast %cst_55 : f32 to vector<1x8x1xf32>
      %c0_56 = arith.constant 0 : index
      %c0_57 = arith.constant 0 : index
      %c0_58 = arith.constant 0 : index
      %84 = vector.load %arg10[%c0_56, %c0_57, %c0_58] : memref<1x8x1xf32, #tpu.memory_space<vmem>>, vector<1x8x1xf32>
      tpu.vector_store %arg10[%c0_56, %c0_57, %c0_58], %83 {strides = array<i32>} : memref<1x8x1xf32, #tpu.memory_space<vmem>>, vector<1x8x1xf32>,
      %cst_59 = arith.constant 0.000000e+00 : f32
      %85 = vector.broadcast %cst_59 : f32 to vector<1x8x1xf32>
      %c0_60 = arith.constant 0 : index
      %c0_61 = arith.constant 0 : index
      %c0_62 = arith.constant 0 : index
      %86 = vector.load %arg11[%c0_60, %c0_61, %c0_62] : memref<1x8x1xf32, #tpu.memory_space<vmem>>, vector<1x8x1xf32>
      tpu.vector_store %arg11[%c0_60, %c0_61, %c0_62], %85 {strides = array<i32>} : memref<1x8x1xf32, #tpu.memory_space<vmem>>, vector<1x8x1xf32>,
    } else {
    }
    %c0_i32_1 = arith.constant 0 : i32
    %3 = arith.addi %arg1, %c0_i32_1 : i32
    %c2_i32 = arith.constant 2 : i32
    %4 = arith.subi %3, %c2_i32 : i32
    %c0_i32_2 = arith.constant 0 : i32
    %5 = arith.cmpi sge, %4, %c0_i32_2 : i32
    %c8_i32 = arith.constant 8 : i32
    %6 = arith.cmpi slt, %4, %c8_i32 : i32
    %7 = arith.andi %5, %6 : i1
    %8 = arith.extui %7 : i1 to i32
    %c0_i32_3 = arith.constant 0 : i32
    %9 = arith.cmpi ne, %8, %c0_i32_3 : i32
    scf.if %9 {
      %c0_55 = arith.constant 0 : index
      %c0_56 = arith.constant 0 : index
      %c0_57 = arith.constant 0 : index
      %c0_58 = arith.constant 0 : index
      %83 = vector.load %arg2[%c0_55, %c0_56, %c0_57, %c0_58] : memref<1x1x8x256xbf16, #tpu.memory_space<vmem>>, vector<1x1x8x128xbf16>
      %84 = vector.shape_cast %83 : vector<1x1x8x128xbf16> to vector<8x128xbf16>
      %c0_59 = arith.constant 0 : index
      %c0_60 = arith.constant 0 : index
      %85 = vector.load %arg12[%c0_59, %c0_60] : memref<1000x128xbf16, #tpu.memory_space<vmem>>, vector<8x128xbf16>
      tpu.vector_store %arg12[%c0_59, %c0_60], %84 {strides = array<i32>} : memref<1000x128xbf16, #tpu.memory_space<vmem>>, vector<8x128xbf16>,
      %c0_61 = arith.constant 0 : index
      %c0_62 = arith.constant 0 : index
      %c0_63 = arith.constant 0 : index
      %c1 = arith.constant 1 : index
      %86 = vector.load %arg2[%c0_61, %c0_62, %c0_63, %c1] : memref<1x1x8x256xbf16, #tpu.memory_space<vmem>>, vector<1x1x8x128xbf16>
      %87 = vector.shape_cast %86 : vector<1x1x8x128xbf16> to vector<8x128xbf16>
      %c8 = arith.constant 8 : index
      %c0_64 = arith.constant 0 : index
      %88 = vector.load %arg12[%c8, %c0_64] : memref<1000x128xbf16, #tpu.memory_space<vmem>>, vector<8x128xbf16>
      tpu.vector_store %arg12[%c8, %c0_64], %87 {strides = array<i32>} : memref<1000x128xbf16, #tpu.memory_space<vmem>>, vector<8x128xbf16>,
      %c0_65 = arith.constant 0 : index
      %c0_66 = arith.constant 0 : index
      %c0_67 = arith.constant 0 : index
      %c2 = arith.constant 2 : index
      %89 = vector.load %arg2[%c0_65, %c0_66, %c0_67, %c2] : memref<1x1x8x256xbf16, #tpu.memory_space<vmem>>, vector<1x1x8x128xbf16>
      %90 = vector.shape_cast %89 : vector<1x1x8x128xbf16> to vector<8x128xbf16>
      %c16 = arith.constant 16 : index
      %c0_68 = arith.constant 0 : index
      %91 = vector.load %arg12[%c16, %c0_68] : memref<1000x128xbf16, #tpu.memory_space<vmem>>, vector<8x128xbf16>
      tpu.vector_store %arg12[%c16, %c0_68], %90 {strides = array<i32>} : memref<1000x128xbf16, #tpu.memory_space<vmem>>, vector<8x128xbf16>,
      %c0_69 = arith.constant 0 : index
      %c0_70 = arith.constant 0 : index
      %c0_71 = arith.constant 0 : index
      %c3 = arith.constant 3 : index
      %92 = vector.load %arg2[%c0_69, %c0_70, %c0_71, %c3] : memref<1x1x8x256xbf16, #tpu.memory_space<vmem>>, vector<1x1x8x128xbf16>
      %93 = vector.shape_cast %92 : vector<1x1x8x128xbf16> to vector<8x128xbf16>
      %c24 = arith.constant 24 : index
      %c0_72 = arith.constant 0 : index
      %94 = vector.load %arg12[%c24, %c0_72] : memref<1000x128xbf16, #tpu.memory_space<vmem>>, vector<8x128xbf16>
      tpu.vector_store %arg12[%c24, %c0_72], %93 {strides = array<i32>} : memref<1000x128xbf16, #tpu.memory_space<vmem>>, vector<8x128xbf16>,
      %c0_73 = arith.constant 0 : index
      %c0_74 = arith.constant 0 : index
      %c0_75 = arith.constant 0 : index
      %c4 = arith.constant 4 : index
      %95 = vector.load %arg2[%c0_73, %c0_74, %c0_75, %c4] : memref<1x1x8x256xbf16, #tpu.memory_space<vmem>>, vector<1x1x8x128xbf16>
      %96 = vector.shape_cast %95 : vector<1x1x8x128xbf16> to vector<8x128xbf16>
      %c32 = arith.constant 32 : index
      %c0_76 = arith.constant 0 : index
      %97 = vector.load %arg12[%c32, %c0_76] : memref<1000x128xbf16, #tpu.memory_space<vmem>>, vector<8x128xbf16>
      tpu.vector_store %arg12[%c32, %c0_76], %96 {strides = array<i32>} : memref<1000x128xbf16, #tpu.memory_space<vmem>>, vector<8x128xbf16>,
      %c0_77 = arith.constant 0 : index
      %c0_78 = arith.constant 0 : index
      %c0_79 = arith.constant 0 : index
      %c12 = arith.constant 12 : index
      %98 = vector.load %arg2[%c0_77, %c0_78, %c0_79, %c12] : memref<1x1x8x256xbf16, #tpu.memory_space<vmem>>, vector<1x1x8x128xbf16>
      %99 = vector.shape_cast %98 : vector<1x1x8x128xbf16> to vector<8x128xbf16>
      %c40 = arith.constant 40 : index
      %c0_80 = arith.constant 0 : index
      %100 = vector.load %arg12[%c40, %c0_80] : memref<1000x128xbf16, #tpu.memory_space<vmem>>, vector<8x128xbf16>
      tpu.vector_store %arg12[%c40, %c0_80], %99 {strides = array<i32>} : memref<1000x128xbf16, #tpu.memory_space<vmem>>, vector<8x128xbf16>,
      %c0_81 = arith.constant 0 : index
      %c0_82 = arith.constant 0 : index
      %c0_83 = arith.constant 0 : index
      %c13 = arith.constant 13 : index
      %101 = vector.load %arg2[%c0_81, %c0_82, %c0_83, %c13] : memref<1x1x8x256xbf16, #tpu.memory_space<vmem>>, vector<1x1x8x128xbf16>
      %102 = vector.shape_cast %101 : vector<1x1x8x128xbf16> to vector<8x128xbf16>
      %c48 = arith.constant 48 : index
      %c0_84 = arith.constant 0 : index
      %103 = vector.load %arg12[%c48, %c0_84] : memref<1000x128xbf16, #tpu.memory_space<vmem>>, vector<8x128xbf16>
      tpu.vector_store %arg12[%c48, %c0_84], %102 {strides = array<i32>} : memref<1000x128xbf16, #tpu.memory_space<vmem>>, vector<8x128xbf16>,
      %c0_85 = arith.constant 0 : index
      %c0_86 = arith.constant 0 : index
      %c0_87 = arith.constant 0 : index
      %c14 = arith.constant 14 : index
      %104 = vector.load %arg2[%c0_85, %c0_86, %c0_87, %c14] : memref<1x1x8x256xbf16, #tpu.memory_space<vmem>>, vector<1x1x8x128xbf16>
      %105 = vector.shape_cast %104 : vector<1x1x8x128xbf16> to vector<8x128xbf16>
      %c56 = arith.constant 56 : index
      %c0_88 = arith.constant 0 : index
      %106 = vector.load %arg12[%c56, %c0_88] : memref<1000x128xbf16, #tpu.memory_space<vmem>>, vector<8x128xbf16>
      tpu.vector_store %arg12[%c56, %c0_88], %105 {strides = array<i32>} : memref<1000x128xbf16, #tpu.memory_space<vmem>>, vector<8x128xbf16>,
      %c0_89 = arith.constant 0 : index
      %c0_90 = arith.constant 0 : index
      %c0_91 = arith.constant 0 : index
      %c15 = arith.constant 15 : index
      %107 = vector.load %arg2[%c0_89, %c0_90, %c0_91, %c15] : memref<1x1x8x256xbf16, #tpu.memory_space<vmem>>, vector<1x1x8x128xbf16>
      %108 = vector.shape_cast %107 : vector<1x1x8x128xbf16> to vector<8x128xbf16>
      %c64 = arith.constant 64 : index
      %c0_92 = arith.constant 0 : index
      %109 = vector.load %arg12[%c64, %c0_92] : memref<1000x128xbf16, #tpu.memory_space<vmem>>, vector<8x128xbf16>
      tpu.vector_store %arg12[%c64, %c0_92], %108 {strides = array<i32>} : memref<1000x128xbf16, #tpu.memory_space<vmem>>, vector<8x128xbf16>,
      %c0_93 = arith.constant 0 : index
      %c0_94 = arith.constant 0 : index
      %c0_95 = arith.constant 0 : index
      %c16_96 = arith.constant 16 : index
      %110 = vector.load %arg2[%c0_93, %c0_94, %c0_95, %c16_96] : memref<1x1x8x256xbf16, #tpu.memory_space<vmem>>, vector<1x1x8x128xbf16>
      %111 = vector.shape_cast %110 : vector<1x1x8x128xbf16> to vector<8x128xbf16>
      %c72 = arith.constant 72 : index
      %c0_97 = arith.constant 0 : index
      %112 = vector.load %arg12[%c72, %c0_97] : memref<1000x128xbf16, #tpu.memory_space<vmem>>, vector<8x128xbf16>
      tpu.vector_store %arg12[%c72, %c0_97], %111 {strides = array<i32>} : memref<1000x128xbf16, #tpu.memory_space<vmem>>, vector<8x128xbf16>,
      %c0_98 = arith.constant 0 : index
      %c0_99 = arith.constant 0 : index
      %c0_100 = arith.constant 0 : index
      %c24_101 = arith.constant 24 : index
      %113 = vector.load %arg2[%c0_98, %c0_99, %c0_100, %c24_101] : memref<1x1x8x256xbf16, #tpu.memory_space<vmem>>, vector<1x1x8x128xbf16>
      %114 = vector.shape_cast %113 : vector<1x1x8x128xbf16> to vector<8x128xbf16>
      %c80 = arith.constant 80 : index
      %c0_102 = arith.constant 0 : index
      %115 = vector.load %arg12[%c80, %c0_102] : memref<1000x128xbf16, #tpu.memory_space<vmem>>, vector<8x128xbf16>
      tpu.vector_store %arg12[%c80, %c0_102], %114 {strides = array<i32>} : memref<1000x128xbf16, #tpu.memory_space<vmem>>, vector<8x128xbf16>,
      %c0_103 = arith.constant 0 : index
      %c0_104 = arith.constant 0 : index
      %c0_105 = arith.constant 0 : index
      %c25 = arith.constant 25 : index
      %116 = vector.load %arg2[%c0_103, %c0_104, %c0_105, %c25] : memref<1x1x8x256xbf16, #tpu.memory_space<vmem>>, vector<1x1x8x128xbf16>
      %117 = vector.shape_cast %116 : vector<1x1x8x128xbf16> to vector<8x128xbf16>
      %c88 = arith.constant 88 : index
      %c0_106 = arith.constant 0 : index
      %118 = vector.load %arg12[%c88, %c0_106] : memref<1000x128xbf16, #tpu.memory_space<vmem>>, vector<8x128xbf16>
      tpu.vector_store %arg12[%c88, %c0_106], %117 {strides = array<i32>} : memref<1000x128xbf16, #tpu.memory_space<vmem>>, vector<8x128xbf16>,
      %c0_107 = arith.constant 0 : index
      %c0_108 = arith.constant 0 : index
      %c0_109 = arith.constant 0 : index
      %c26 = arith.constant 26 : index
      %119 = vector.load %arg2[%c0_107, %c0_108, %c0_109, %c26] : memref<1x1x8x256xbf16, #tpu.memory_space<vmem>>, vector<1x1x8x128xbf16>
      %120 = vector.shape_cast %119 : vector<1x1x8x128xbf16> to vector<8x128xbf16>
      %c96 = arith.constant 96 : index
      %c0_110 = arith.constant 0 : index
      %121 = vector.load %arg12[%c96, %c0_110] : memref<1000x128xbf16, #tpu.memory_space<vmem>>, vector<8x128xbf16>
      tpu.vector_store %arg12[%c96, %c0_110], %120 {strides = array<i32>} : memref<1000x128xbf16, #tpu.memory_space<vmem>>, vector<8x128xbf16>,
      %c0_111 = arith.constant 0 : index
      %c0_112 = arith.constant 0 : index
      %c0_113 = arith.constant 0 : index
      %c27 = arith.constant 27 : index
      %122 = vector.load %arg2[%c0_111, %c0_112, %c0_113, %c27] : memref<1x1x8x256xbf16, #tpu.memory_space<vmem>>, vector<1x1x8x128xbf16>
      %123 = vector.shape_cast %122 : vector<1x1x8x128xbf16> to vector<8x128xbf16>
      %c104 = arith.constant 104 : index
      %c0_114 = arith.constant 0 : index
      %124 = vector.load %arg12[%c104, %c0_114] : memref<1000x128xbf16, #tpu.memory_space<vmem>>, vector<8x128xbf16>
      tpu.vector_store %arg12[%c104, %c0_114], %123 {strides = array<i32>} : memref<1000x128xbf16, #tpu.memory_space<vmem>>, vector<8x128xbf16>,
      %c0_115 = arith.constant 0 : index
      %c0_116 = arith.constant 0 : index
      %c0_117 = arith.constant 0 : index
      %c28 = arith.constant 28 : index
      %125 = vector.load %arg2[%c0_115, %c0_116, %c0_117, %c28] : memref<1x1x8x256xbf16, #tpu.memory_space<vmem>>, vector<1x1x8x128xbf16>
      %126 = vector.shape_cast %125 : vector<1x1x8x128xbf16> to vector<8x128xbf16>
      %c112 = arith.constant 112 : index
      %c0_118 = arith.constant 0 : index
      %127 = vector.load %arg12[%c112, %c0_118] : memref<1000x128xbf16, #tpu.memory_space<vmem>>, vector<8x128xbf16>
      tpu.vector_store %arg12[%c112, %c0_118], %126 {strides = array<i32>} : memref<1000x128xbf16, #tpu.memory_space<vmem>>, vector<8x128xbf16>,
      %c0_119 = arith.constant 0 : index
      %c0_120 = arith.constant 0 : index
      %c0_121 = arith.constant 0 : index
      %c36 = arith.constant 36 : index
      %128 = vector.load %arg2[%c0_119, %c0_120, %c0_121, %c36] : memref<1x1x8x256xbf16, #tpu.memory_space<vmem>>, vector<1x1x8x128xbf16>
      %129 = vector.shape_cast %128 : vector<1x1x8x128xbf16> to vector<8x128xbf16>
      %c120 = arith.constant 120 : index
      %c0_122 = arith.constant 0 : index
      %130 = vector.load %arg12[%c120, %c0_122] : memref<1000x128xbf16, #tpu.memory_space<vmem>>, vector<8x128xbf16>
      tpu.vector_store %arg12[%c120, %c0_122], %129 {strides = array<i32>} : memref<1000x128xbf16, #tpu.memory_space<vmem>>, vector<8x128xbf16>,
      %c0_123 = arith.constant 0 : index
      %c0_124 = arith.constant 0 : index
      %c0_125 = arith.constant 0 : index
      %c37 = arith.constant 37 : index
      %131 = vector.load %arg2[%c0_123, %c0_124, %c0_125, %c37] : memref<1x1x8x256xbf16, #tpu.memory_space<vmem>>, vector<1x1x8x128xbf16>
      %132 = vector.shape_cast %131 : vector<1x1x8x128xbf16> to vector<8x128xbf16>
      %c128 = arith.constant 128 : index
      %c0_126 = arith.constant 0 : index
      %133 = vector.load %arg12[%c128, %c0_126] : memref<1000x128xbf16, #tpu.memory_space<vmem>>, vector<8x128xbf16>
      tpu.vector_store %arg12[%c128, %c0_126], %132 {strides = array<i32>} : memref<1000x128xbf16, #tpu.memory_space<vmem>>, vector<8x128xbf16>,
      %c0_127 = arith.constant 0 : index
      %c0_128 = arith.constant 0 : index
      %c0_129 = arith.constant 0 : index
      %c38 = arith.constant 38 : index
      %134 = vector.load %arg2[%c0_127, %c0_128, %c0_129, %c38] : memref<1x1x8x256xbf16, #tpu.memory_space<vmem>>, vector<1x1x8x128xbf16>
      %135 = vector.shape_cast %134 : vector<1x1x8x128xbf16> to vector<8x128xbf16>
      %c136 = arith.constant 136 : index
      %c0_130 = arith.constant 0 : index
      %136 = vector.load %arg12[%c136, %c0_130] : memref<1000x128xbf16, #tpu.memory_space<vmem>>, vector<8x128xbf16>
      tpu.vector_store %arg12[%c136, %c0_130], %135 {strides = array<i32>} : memref<1000x128xbf16, #tpu.memory_space<vmem>>, vector<8x128xbf16>,
      %c0_131 = arith.constant 0 : index
      %c0_132 = arith.constant 0 : index
      %c0_133 = arith.constant 0 : index
      %c39 = arith.constant 39 : index
      %137 = vector.load %arg2[%c0_131, %c0_132, %c0_133, %c39] : memref<1x1x8x256xbf16, #tpu.memory_space<vmem>>, vector<1x1x8x128xbf16>
      %138 = vector.shape_cast %137 : vector<1x1x8x128xbf16> to vector<8x128xbf16>
      %c144 = arith.constant 144 : index
      %c0_134 = arith.constant 0 : index
      %139 = vector.load %arg12[%c144, %c0_134] : memref<1000x128xbf16, #tpu.memory_space<vmem>>, vector<8x128xbf16>
      tpu.vector_store %arg12[%c144, %c0_134], %138 {strides = array<i32>} : memref<1000x128xbf16, #tpu.memory_space<vmem>>, vector<8x128xbf16>,
      %c0_135 = arith.constant 0 : index
      %c0_136 = arith.constant 0 : index
      %c0_137 = arith.constant 0 : index
      %c40_138 = arith.constant 40 : index
      %140 = vector.load %arg2[%c0_135, %c0_136, %c0_137, %c40_138] : memref<1x1x8x256xbf16, #tpu.memory_space<vmem>>, vector<1x1x8x128xbf16>
      %141 = vector.shape_cast %140 : vector<1x1x8x128xbf16> to vector<8x128xbf16>
      %c152 = arith.constant 152 : index
      %c0_139 = arith.constant 0 : index
      %142 = vector.load %arg12[%c152, %c0_139] : memref<1000x128xbf16, #tpu.memory_space<vmem>>, vector<8x128xbf16>
      tpu.vector_store %arg12[%c152, %c0_139], %141 {strides = array<i32>} : memref<1000x128xbf16, #tpu.memory_space<vmem>>, vector<8x128xbf16>,
      %c0_140 = arith.constant 0 : index
      %c0_141 = arith.constant 0 : index
      %c0_142 = arith.constant 0 : index
      %c48_143 = arith.constant 48 : index
      %143 = vector.load %arg2[%c0_140, %c0_141, %c0_142, %c48_143] : memref<1x1x8x256xbf16, #tpu.memory_space<vmem>>, vector<1x1x8x128xbf16>
      %144 = vector.shape_cast %143 : vector<1x1x8x128xbf16> to vector<8x128xbf16>
      %c160 = arith.constant 160 : index
      %c0_144 = arith.constant 0 : index
      %145 = vector.load %arg12[%c160, %c0_144] : memref<1000x128xbf16, #tpu.memory_space<vmem>>, vector<8x128xbf16>
      tpu.vector_store %arg12[%c160, %c0_144], %144 {strides = array<i32>} : memref<1000x128xbf16, #tpu.memory_space<vmem>>, vector<8x128xbf16>,
      %c0_145 = arith.constant 0 : index
      %c0_146 = arith.constant 0 : index
      %c0_147 = arith.constant 0 : index
      %c49 = arith.constant 49 : index
      %146 = vector.load %arg2[%c0_145, %c0_146, %c0_147, %c49] : memref<1x1x8x256xbf16, #tpu.memory_space<vmem>>, vector<1x1x8x128xbf16>
      %147 = vector.shape_cast %146 : vector<1x1x8x128xbf16> to vector<8x128xbf16>
      %c168 = arith.constant 168 : index
      %c0_148 = arith.constant 0 : index
      %148 = vector.load %arg12[%c168, %c0_148] : memref<1000x128xbf16, #tpu.memory_space<vmem>>, vector<8x128xbf16>
      tpu.vector_store %arg12[%c168, %c0_148], %147 {strides = array<i32>} : memref<1000x128xbf16, #tpu.memory_space<vmem>>, vector<8x128xbf16>,
      %c0_149 = arith.constant 0 : index
      %c0_150 = arith.constant 0 : index
      %c0_151 = arith.constant 0 : index
      %c50 = arith.constant 50 : index
      %149 = vector.load %arg2[%c0_149, %c0_150, %c0_151, %c50] : memref<1x1x8x256xbf16, #tpu.memory_space<vmem>>, vector<1x1x8x128xbf16>
      %150 = vector.shape_cast %149 : vector<1x1x8x128xbf16> to vector<8x128xbf16>
      %c176 = arith.constant 176 : index
      %c0_152 = arith.constant 0 : index
      %151 = vector.load %arg12[%c176, %c0_152] : memref<1000x128xbf16, #tpu.memory_space<vmem>>, vector<8x128xbf16>
      tpu.vector_store %arg12[%c176, %c0_152], %150 {strides = array<i32>} : memref<1000x128xbf16, #tpu.memory_space<vmem>>, vector<8x128xbf16>,
      %c0_153 = arith.constant 0 : index
      %c0_154 = arith.constant 0 : index
      %c0_155 = arith.constant 0 : index
      %c51 = arith.constant 51 : index
      %152 = vector.load %arg2[%c0_153, %c0_154, %c0_155, %c51] : memref<1x1x8x256xbf16, #tpu.memory_space<vmem>>, vector<1x1x8x128xbf16>
      %153 = vector.shape_cast %152 : vector<1x1x8x128xbf16> to vector<8x128xbf16>
      %c184 = arith.constant 184 : index
      %c0_156 = arith.constant 0 : index
      %154 = vector.load %arg12[%c184, %c0_156] : memref<1000x128xbf16, #tpu.memory_space<vmem>>, vector<8x128xbf16>
      tpu.vector_store %arg12[%c184, %c0_156], %153 {strides = array<i32>} : memref<1000x128xbf16, #tpu.memory_space<vmem>>, vector<8x128xbf16>,
      %c0_157 = arith.constant 0 : index
      %c0_158 = arith.constant 0 : index
      %c0_159 = arith.constant 0 : index
      %c52 = arith.constant 52 : index
      %155 = vector.load %arg2[%c0_157, %c0_158, %c0_159, %c52] : memref<1x1x8x256xbf16, #tpu.memory_space<vmem>>, vector<1x1x8x128xbf16>
      %156 = vector.shape_cast %155 : vector<1x1x8x128xbf16> to vector<8x128xbf16>
      %c192 = arith.constant 192 : index
      %c0_160 = arith.constant 0 : index
      %157 = vector.load %arg12[%c192, %c0_160] : memref<1000x128xbf16, #tpu.memory_space<vmem>>, vector<8x128xbf16>
      tpu.vector_store %arg12[%c192, %c0_160], %156 {strides = array<i32>} : memref<1000x128xbf16, #tpu.memory_space<vmem>>, vector<8x128xbf16>,
    } else {
    }
    %true = arith.constant true
    %10 = arith.xori %7, %true : i1
    %11 = arith.extui %10 : i1 to i32
    %c0_i32_4 = arith.constant 0 : i32
    %12 = arith.cmpi ne, %11, %c0_i32_4 : i32
    scf.if %12 {
      %cst_55 = arith.constant 0.000000e+00 : bf16
      %83 = vector.broadcast %cst_55 : bf16 to vector<200x128xbf16>
      %c0_56 = arith.constant 0 : index
      %c0_57 = arith.constant 0 : index
      %84 = vector.load %arg12[%c0_56, %c0_57] : memref<1000x128xbf16, #tpu.memory_space<vmem>>, vector<200x128xbf16>
      tpu.vector_store %arg12[%c0_56, %c0_57], %83 {strides = array<i32>} : memref<1000x128xbf16, #tpu.memory_space<vmem>>, vector<200x128xbf16>,
    } else {
    }
    %c1_i32 = arith.constant 1 : i32
    %13 = arith.addi %arg1, %c1_i32 : i32
    %c2_i32_5 = arith.constant 2 : i32
    %14 = arith.subi %13, %c2_i32_5 : i32
    %c0_i32_6 = arith.constant 0 : i32
    %15 = arith.cmpi sge, %14, %c0_i32_6 : i32
    %c8_i32_7 = arith.constant 8 : i32
    %16 = arith.cmpi slt, %14, %c8_i32_7 : i32
    %17 = arith.andi %15, %16 : i1
    %18 = arith.extui %17 : i1 to i32
    %c0_i32_8 = arith.constant 0 : i32
    %19 = arith.cmpi ne, %18, %c0_i32_8 : i32
    scf.if %19 {
      %c0_55 = arith.constant 0 : index
      %c0_56 = arith.constant 0 : index
      %c0_57 = arith.constant 0 : index
      %c0_58 = arith.constant 0 : index
      %83 = vector.load %arg3[%c0_55, %c0_56, %c0_57, %c0_58] : memref<1x1x8x256xbf16, #tpu.memory_space<vmem>>, vector<1x1x8x128xbf16>
      %84 = vector.shape_cast %83 : vector<1x1x8x128xbf16> to vector<8x128xbf16>
      %c200 = arith.constant 200 : index
      %c0_59 = arith.constant 0 : index
      %85 = vector.load %arg12[%c200, %c0_59] : memref<1000x128xbf16, #tpu.memory_space<vmem>>, vector<8x128xbf16>
      tpu.vector_store %arg12[%c200, %c0_59], %84 {strides = array<i32>} : memref<1000x128xbf16, #tpu.memory_space<vmem>>, vector<8x128xbf16>,
      %c0_60 = arith.constant 0 : index
      %c0_61 = arith.constant 0 : index
      %c0_62 = arith.constant 0 : index
      %c1 = arith.constant 1 : index
      %86 = vector.load %arg3[%c0_60, %c0_61, %c0_62, %c1] : memref<1x1x8x256xbf16, #tpu.memory_space<vmem>>, vector<1x1x8x128xbf16>
      %87 = vector.shape_cast %86 : vector<1x1x8x128xbf16> to vector<8x128xbf16>
      %c208 = arith.constant 208 : index
      %c0_63 = arith.constant 0 : index
      %88 = vector.load %arg12[%c208, %c0_63] : memref<1000x128xbf16, #tpu.memory_space<vmem>>, vector<8x128xbf16>
      tpu.vector_store %arg12[%c208, %c0_63], %87 {strides = array<i32>} : memref<1000x128xbf16, #tpu.memory_space<vmem>>, vector<8x128xbf16>,
      %c0_64 = arith.constant 0 : index
      %c0_65 = arith.constant 0 : index
      %c0_66 = arith.constant 0 : index
      %c2 = arith.constant 2 : index
      %89 = vector.load %arg3[%c0_64, %c0_65, %c0_66, %c2] : memref<1x1x8x256xbf16, #tpu.memory_space<vmem>>, vector<1x1x8x128xbf16>
      %90 = vector.shape_cast %89 : vector<1x1x8x128xbf16> to vector<8x128xbf16>
      %c216 = arith.constant 216 : index
      %c0_67 = arith.constant 0 : index
      %91 = vector.load %arg12[%c216, %c0_67] : memref<1000x128xbf16, #tpu.memory_space<vmem>>, vector<8x128xbf16>
      tpu.vector_store %arg12[%c216, %c0_67], %90 {strides = array<i32>} : memref<1000x128xbf16, #tpu.memory_space<vmem>>, vector<8x128xbf16>,
      %c0_68 = arith.constant 0 : index
      %c0_69 = arith.constant 0 : index
      %c0_70 = arith.constant 0 : index
      %c3 = arith.constant 3 : index
      %92 = vector.load %arg3[%c0_68, %c0_69, %c0_70, %c3] : memref<1x1x8x256xbf16, #tpu.memory_space<vmem>>, vector<1x1x8x128xbf16>
      %93 = vector.shape_cast %92 : vector<1x1x8x128xbf16> to vector<8x128xbf16>
      %c224 = arith.constant 224 : index
      %c0_71 = arith.constant 0 : index
      %94 = vector.load %arg12[%c224, %c0_71] : memref<1000x128xbf16, #tpu.memory_space<vmem>>, vector<8x128xbf16>
      tpu.vector_store %arg12[%c224, %c0_71], %93 {strides = array<i32>} : memref<1000x128xbf16, #tpu.memory_space<vmem>>, vector<8x128xbf16>,
      %c0_72 = arith.constant 0 : index
      %c0_73 = arith.constant 0 : index
      %c0_74 = arith.constant 0 : index
      %c4 = arith.constant 4 : index
      %95 = vector.load %arg3[%c0_72, %c0_73, %c0_74, %c4] : memref<1x1x8x256xbf16, #tpu.memory_space<vmem>>, vector<1x1x8x128xbf16>
      %96 = vector.shape_cast %95 : vector<1x1x8x128xbf16> to vector<8x128xbf16>
      %c232 = arith.constant 232 : index
      %c0_75 = arith.constant 0 : index
      %97 = vector.load %arg12[%c232, %c0_75] : memref<1000x128xbf16, #tpu.memory_space<vmem>>, vector<8x128xbf16>
      tpu.vector_store %arg12[%c232, %c0_75], %96 {strides = array<i32>} : memref<1000x128xbf16, #tpu.memory_space<vmem>>, vector<8x128xbf16>,
      %c0_76 = arith.constant 0 : index
      %c0_77 = arith.constant 0 : index
      %c0_78 = arith.constant 0 : index
      %c12 = arith.constant 12 : index
      %98 = vector.load %arg3[%c0_76, %c0_77, %c0_78, %c12] : memref<1x1x8x256xbf16, #tpu.memory_space<vmem>>, vector<1x1x8x128xbf16>
      %99 = vector.shape_cast %98 : vector<1x1x8x128xbf16> to vector<8x128xbf16>
      %c240 = arith.constant 240 : index
      %c0_79 = arith.constant 0 : index
      %100 = vector.load %arg12[%c240, %c0_79] : memref<1000x128xbf16, #tpu.memory_space<vmem>>, vector<8x128xbf16>
      tpu.vector_store %arg12[%c240, %c0_79], %99 {strides = array<i32>} : memref<1000x128xbf16, #tpu.memory_space<vmem>>, vector<8x128xbf16>,
      %c0_80 = arith.constant 0 : index
      %c0_81 = arith.constant 0 : index
      %c0_82 = arith.constant 0 : index
      %c13 = arith.constant 13 : index
      %101 = vector.load %arg3[%c0_80, %c0_81, %c0_82, %c13] : memref<1x1x8x256xbf16, #tpu.memory_space<vmem>>, vector<1x1x8x128xbf16>
      %102 = vector.shape_cast %101 : vector<1x1x8x128xbf16> to vector<8x128xbf16>
      %c248 = arith.constant 248 : index
      %c0_83 = arith.constant 0 : index
      %103 = vector.load %arg12[%c248, %c0_83] : memref<1000x128xbf16, #tpu.memory_space<vmem>>, vector<8x128xbf16>
      tpu.vector_store %arg12[%c248, %c0_83], %102 {strides = array<i32>} : memref<1000x128xbf16, #tpu.memory_space<vmem>>, vector<8x128xbf16>,
      %c0_84 = arith.constant 0 : index
      %c0_85 = arith.constant 0 : index
      %c0_86 = arith.constant 0 : index
      %c14 = arith.constant 14 : index
      %104 = vector.load %arg3[%c0_84, %c0_85, %c0_86, %c14] : memref<1x1x8x256xbf16, #tpu.memory_space<vmem>>, vector<1x1x8x128xbf16>
      %105 = vector.shape_cast %104 : vector<1x1x8x128xbf16> to vector<8x128xbf16>
      %c256 = arith.constant 256 : index
      %c0_87 = arith.constant 0 : index
      %106 = vector.load %arg12[%c256, %c0_87] : memref<1000x128xbf16, #tpu.memory_space<vmem>>, vector<8x128xbf16>
      tpu.vector_store %arg12[%c256, %c0_87], %105 {strides = array<i32>} : memref<1000x128xbf16, #tpu.memory_space<vmem>>, vector<8x128xbf16>,
      %c0_88 = arith.constant 0 : index
      %c0_89 = arith.constant 0 : index
      %c0_90 = arith.constant 0 : index
      %c15 = arith.constant 15 : index
      %107 = vector.load %arg3[%c0_88, %c0_89, %c0_90, %c15] : memref<1x1x8x256xbf16, #tpu.memory_space<vmem>>, vector<1x1x8x128xbf16>
      %108 = vector.shape_cast %107 : vector<1x1x8x128xbf16> to vector<8x128xbf16>
      %c264 = arith.constant 264 : index
      %c0_91 = arith.constant 0 : index
      %109 = vector.load %arg12[%c264, %c0_91] : memref<1000x128xbf16, #tpu.memory_space<vmem>>, vector<8x128xbf16>
      tpu.vector_store %arg12[%c264, %c0_91], %108 {strides = array<i32>} : memref<1000x128xbf16, #tpu.memory_space<vmem>>, vector<8x128xbf16>,
      %c0_92 = arith.constant 0 : index
      %c0_93 = arith.constant 0 : index
      %c0_94 = arith.constant 0 : index
      %c16 = arith.constant 16 : index
      %110 = vector.load %arg3[%c0_92, %c0_93, %c0_94, %c16] : memref<1x1x8x256xbf16, #tpu.memory_space<vmem>>, vector<1x1x8x128xbf16>
      %111 = vector.shape_cast %110 : vector<1x1x8x128xbf16> to vector<8x128xbf16>
      %c272 = arith.constant 272 : index
      %c0_95 = arith.constant 0 : index
      %112 = vector.load %arg12[%c272, %c0_95] : memref<1000x128xbf16, #tpu.memory_space<vmem>>, vector<8x128xbf16>
      tpu.vector_store %arg12[%c272, %c0_95], %111 {strides = array<i32>} : memref<1000x128xbf16, #tpu.memory_space<vmem>>, vector<8x128xbf16>,
      %c0_96 = arith.constant 0 : index
      %c0_97 = arith.constant 0 : index
      %c0_98 = arith.constant 0 : index
      %c24 = arith.constant 24 : index
      %113 = vector.load %arg3[%c0_96, %c0_97, %c0_98, %c24] : memref<1x1x8x256xbf16, #tpu.memory_space<vmem>>, vector<1x1x8x128xbf16>
      %114 = vector.shape_cast %113 : vector<1x1x8x128xbf16> to vector<8x128xbf16>
      %c280 = arith.constant 280 : index
      %c0_99 = arith.constant 0 : index
      %115 = vector.load %arg12[%c280, %c0_99] : memref<1000x128xbf16, #tpu.memory_space<vmem>>, vector<8x128xbf16>
      tpu.vector_store %arg12[%c280, %c0_99], %114 {strides = array<i32>} : memref<1000x128xbf16, #tpu.memory_space<vmem>>, vector<8x128xbf16>,
      %c0_100 = arith.constant 0 : index
      %c0_101 = arith.constant 0 : index
      %c0_102 = arith.constant 0 : index
      %c25 = arith.constant 25 : index
      %116 = vector.load %arg3[%c0_100, %c0_101, %c0_102, %c25] : memref<1x1x8x256xbf16, #tpu.memory_space<vmem>>, vector<1x1x8x128xbf16>
      %117 = vector.shape_cast %116 : vector<1x1x8x128xbf16> to vector<8x128xbf16>
      %c288 = arith.constant 288 : index
      %c0_103 = arith.constant 0 : index
      %118 = vector.load %arg12[%c288, %c0_103] : memref<1000x128xbf16, #tpu.memory_space<vmem>>, vector<8x128xbf16>
      tpu.vector_store %arg12[%c288, %c0_103], %117 {strides = array<i32>} : memref<1000x128xbf16, #tpu.memory_space<vmem>>, vector<8x128xbf16>,
      %c0_104 = arith.constant 0 : index
      %c0_105 = arith.constant 0 : index
      %c0_106 = arith.constant 0 : index
      %c26 = arith.constant 26 : index
      %119 = vector.load %arg3[%c0_104, %c0_105, %c0_106, %c26] : memref<1x1x8x256xbf16, #tpu.memory_space<vmem>>, vector<1x1x8x128xbf16>
      %120 = vector.shape_cast %119 : vector<1x1x8x128xbf16> to vector<8x128xbf16>
      %c296 = arith.constant 296 : index
      %c0_107 = arith.constant 0 : index
      %121 = vector.load %arg12[%c296, %c0_107] : memref<1000x128xbf16, #tpu.memory_space<vmem>>, vector<8x128xbf16>
      tpu.vector_store %arg12[%c296, %c0_107], %120 {strides = array<i32>} : memref<1000x128xbf16, #tpu.memory_space<vmem>>, vector<8x128xbf16>,
      %c0_108 = arith.constant 0 : index
      %c0_109 = arith.constant 0 : index
      %c0_110 = arith.constant 0 : index
      %c27 = arith.constant 27 : index
      %122 = vector.load %arg3[%c0_108, %c0_109, %c0_110, %c27] : memref<1x1x8x256xbf16, #tpu.memory_space<vmem>>, vector<1x1x8x128xbf16>
      %123 = vector.shape_cast %122 : vector<1x1x8x128xbf16> to vector<8x128xbf16>
      %c304 = arith.constant 304 : index
      %c0_111 = arith.constant 0 : index
      %124 = vector.load %arg12[%c304, %c0_111] : memref<1000x128xbf16, #tpu.memory_space<vmem>>, vector<8x128xbf16>
      tpu.vector_store %arg12[%c304, %c0_111], %123 {strides = array<i32>} : memref<1000x128xbf16, #tpu.memory_space<vmem>>, vector<8x128xbf16>,
      %c0_112 = arith.constant 0 : index
      %c0_113 = arith.constant 0 : index
      %c0_114 = arith.constant 0 : index
      %c28 = arith.constant 28 : index
      %125 = vector.load %arg3[%c0_112, %c0_113, %c0_114, %c28] : memref<1x1x8x256xbf16, #tpu.memory_space<vmem>>, vector<1x1x8x128xbf16>
      %126 = vector.shape_cast %125 : vector<1x1x8x128xbf16> to vector<8x128xbf16>
      %c312 = arith.constant 312 : index
      %c0_115 = arith.constant 0 : index
      %127 = vector.load %arg12[%c312, %c0_115] : memref<1000x128xbf16, #tpu.memory_space<vmem>>, vector<8x128xbf16>
      tpu.vector_store %arg12[%c312, %c0_115], %126 {strides = array<i32>} : memref<1000x128xbf16, #tpu.memory_space<vmem>>, vector<8x128xbf16>,
      %c0_116 = arith.constant 0 : index
      %c0_117 = arith.constant 0 : index
      %c0_118 = arith.constant 0 : index
      %c36 = arith.constant 36 : index
      %128 = vector.load %arg3[%c0_116, %c0_117, %c0_118, %c36] : memref<1x1x8x256xbf16, #tpu.memory_space<vmem>>, vector<1x1x8x128xbf16>
      %129 = vector.shape_cast %128 : vector<1x1x8x128xbf16> to vector<8x128xbf16>
      %c320 = arith.constant 320 : index
      %c0_119 = arith.constant 0 : index
      %130 = vector.load %arg12[%c320, %c0_119] : memref<1000x128xbf16, #tpu.memory_space<vmem>>, vector<8x128xbf16>
      tpu.vector_store %arg12[%c320, %c0_119], %129 {strides = array<i32>} : memref<1000x128xbf16, #tpu.memory_space<vmem>>, vector<8x128xbf16>,
      %c0_120 = arith.constant 0 : index
      %c0_121 = arith.constant 0 : index
      %c0_122 = arith.constant 0 : index
      %c37 = arith.constant 37 : index
      %131 = vector.load %arg3[%c0_120, %c0_121, %c0_122, %c37] : memref<1x1x8x256xbf16, #tpu.memory_space<vmem>>, vector<1x1x8x128xbf16>
      %132 = vector.shape_cast %131 : vector<1x1x8x128xbf16> to vector<8x128xbf16>
      %c328 = arith.constant 328 : index
      %c0_123 = arith.constant 0 : index
      %133 = vector.load %arg12[%c328, %c0_123] : memref<1000x128xbf16, #tpu.memory_space<vmem>>, vector<8x128xbf16>
      tpu.vector_store %arg12[%c328, %c0_123], %132 {strides = array<i32>} : memref<1000x128xbf16, #tpu.memory_space<vmem>>, vector<8x128xbf16>,
      %c0_124 = arith.constant 0 : index
      %c0_125 = arith.constant 0 : index
      %c0_126 = arith.constant 0 : index
      %c38 = arith.constant 38 : index
      %134 = vector.load %arg3[%c0_124, %c0_125, %c0_126, %c38] : memref<1x1x8x256xbf16, #tpu.memory_space<vmem>>, vector<1x1x8x128xbf16>
      %135 = vector.shape_cast %134 : vector<1x1x8x128xbf16> to vector<8x128xbf16>
      %c336 = arith.constant 336 : index
      %c0_127 = arith.constant 0 : index
      %136 = vector.load %arg12[%c336, %c0_127] : memref<1000x128xbf16, #tpu.memory_space<vmem>>, vector<8x128xbf16>
      tpu.vector_store %arg12[%c336, %c0_127], %135 {strides = array<i32>} : memref<1000x128xbf16, #tpu.memory_space<vmem>>, vector<8x128xbf16>,
      %c0_128 = arith.constant 0 : index
      %c0_129 = arith.constant 0 : index
      %c0_130 = arith.constant 0 : index
      %c39 = arith.constant 39 : index
      %137 = vector.load %arg3[%c0_128, %c0_129, %c0_130, %c39] : memref<1x1x8x256xbf16, #tpu.memory_space<vmem>>, vector<1x1x8x128xbf16>
      %138 = vector.shape_cast %137 : vector<1x1x8x128xbf16> to vector<8x128xbf16>
      %c344 = arith.constant 344 : index
      %c0_131 = arith.constant 0 : index
      %139 = vector.load %arg12[%c344, %c0_131] : memref<1000x128xbf16, #tpu.memory_space<vmem>>, vector<8x128xbf16>
      tpu.vector_store %arg12[%c344, %c0_131], %138 {strides = array<i32>} : memref<1000x128xbf16, #tpu.memory_space<vmem>>, vector<8x128xbf16>,
      %c0_132 = arith.constant 0 : index
      %c0_133 = arith.constant 0 : index
      %c0_134 = arith.constant 0 : index
      %c40 = arith.constant 40 : index
      %140 = vector.load %arg3[%c0_132, %c0_133, %c0_134, %c40] : memref<1x1x8x256xbf16, #tpu.memory_space<vmem>>, vector<1x1x8x128xbf16>
      %141 = vector.shape_cast %140 : vector<1x1x8x128xbf16> to vector<8x128xbf16>
      %c352 = arith.constant 352 : index
      %c0_135 = arith.constant 0 : index
      %142 = vector.load %arg12[%c352, %c0_135] : memref<1000x128xbf16, #tpu.memory_space<vmem>>, vector<8x128xbf16>
      tpu.vector_store %arg12[%c352, %c0_135], %141 {strides = array<i32>} : memref<1000x128xbf16, #tpu.memory_space<vmem>>, vector<8x128xbf16>,
      %c0_136 = arith.constant 0 : index
      %c0_137 = arith.constant 0 : index
      %c0_138 = arith.constant 0 : index
      %c48 = arith.constant 48 : index
      %143 = vector.load %arg3[%c0_136, %c0_137, %c0_138, %c48] : memref<1x1x8x256xbf16, #tpu.memory_space<vmem>>, vector<1x1x8x128xbf16>
      %144 = vector.shape_cast %143 : vector<1x1x8x128xbf16> to vector<8x128xbf16>
      %c360 = arith.constant 360 : index
      %c0_139 = arith.constant 0 : index
      %145 = vector.load %arg12[%c360, %c0_139] : memref<1000x128xbf16, #tpu.memory_space<vmem>>, vector<8x128xbf16>
      tpu.vector_store %arg12[%c360, %c0_139], %144 {strides = array<i32>} : memref<1000x128xbf16, #tpu.memory_space<vmem>>, vector<8x128xbf16>,
      %c0_140 = arith.constant 0 : index
      %c0_141 = arith.constant 0 : index
      %c0_142 = arith.constant 0 : index
      %c49 = arith.constant 49 : index
      %146 = vector.load %arg3[%c0_140, %c0_141, %c0_142, %c49] : memref<1x1x8x256xbf16, #tpu.memory_space<vmem>>, vector<1x1x8x128xbf16>
      %147 = vector.shape_cast %146 : vector<1x1x8x128xbf16> to vector<8x128xbf16>
      %c368 = arith.constant 368 : index
      %c0_143 = arith.constant 0 : index
      %148 = vector.load %arg12[%c368, %c0_143] : memref<1000x128xbf16, #tpu.memory_space<vmem>>, vector<8x128xbf16>
      tpu.vector_store %arg12[%c368, %c0_143], %147 {strides = array<i32>} : memref<1000x128xbf16, #tpu.memory_space<vmem>>, vector<8x128xbf16>,
      %c0_144 = arith.constant 0 : index
      %c0_145 = arith.constant 0 : index
      %c0_146 = arith.constant 0 : index
      %c50 = arith.constant 50 : index
      %149 = vector.load %arg3[%c0_144, %c0_145, %c0_146, %c50] : memref<1x1x8x256xbf16, #tpu.memory_space<vmem>>, vector<1x1x8x128xbf16>
      %150 = vector.shape_cast %149 : vector<1x1x8x128xbf16> to vector<8x128xbf16>
      %c376 = arith.constant 376 : index
      %c0_147 = arith.constant 0 : index
      %151 = vector.load %arg12[%c376, %c0_147] : memref<1000x128xbf16, #tpu.memory_space<vmem>>, vector<8x128xbf16>
      tpu.vector_store %arg12[%c376, %c0_147], %150 {strides = array<i32>} : memref<1000x128xbf16, #tpu.memory_space<vmem>>, vector<8x128xbf16>,
      %c0_148 = arith.constant 0 : index
      %c0_149 = arith.constant 0 : index
      %c0_150 = arith.constant 0 : index
      %c51 = arith.constant 51 : index
      %152 = vector.load %arg3[%c0_148, %c0_149, %c0_150, %c51] : memref<1x1x8x256xbf16, #tpu.memory_space<vmem>>, vector<1x1x8x128xbf16>
      %153 = vector.shape_cast %152 : vector<1x1x8x128xbf16> to vector<8x128xbf16>
      %c384 = arith.constant 384 : index
      %c0_151 = arith.constant 0 : index
      %154 = vector.load %arg12[%c384, %c0_151] : memref<1000x128xbf16, #tpu.memory_space<vmem>>, vector<8x128xbf16>
      tpu.vector_store %arg12[%c384, %c0_151], %153 {strides = array<i32>} : memref<1000x128xbf16, #tpu.memory_space<vmem>>, vector<8x128xbf16>,
      %c0_152 = arith.constant 0 : index
      %c0_153 = arith.constant 0 : index
      %c0_154 = arith.constant 0 : index
      %c52 = arith.constant 52 : index
      %155 = vector.load %arg3[%c0_152, %c0_153, %c0_154, %c52] : memref<1x1x8x256xbf16, #tpu.memory_space<vmem>>, vector<1x1x8x128xbf16>
      %156 = vector.shape_cast %155 : vector<1x1x8x128xbf16> to vector<8x128xbf16>
      %c392 = arith.constant 392 : index
      %c0_155 = arith.constant 0 : index
      %157 = vector.load %arg12[%c392, %c0_155] : memref<1000x128xbf16, #tpu.memory_space<vmem>>, vector<8x128xbf16>
      tpu.vector_store %arg12[%c392, %c0_155], %156 {strides = array<i32>} : memref<1000x128xbf16, #tpu.memory_space<vmem>>, vector<8x128xbf16>,
    } else {
    }
    %true_9 = arith.constant true
    %20 = arith.xori %17, %true_9 : i1
    %21 = arith.extui %20 : i1 to i32
    %c0_i32_10 = arith.constant 0 : i32
    %22 = arith.cmpi ne, %21, %c0_i32_10 : i32
    scf.if %22 {
      %cst_55 = arith.constant 0.000000e+00 : bf16
      %83 = vector.broadcast %cst_55 : bf16 to vector<200x128xbf16>
      %c200 = arith.constant 200 : index
      %c0_56 = arith.constant 0 : index
      %84 = vector.load %arg12[%c200, %c0_56] : memref<1000x128xbf16, #tpu.memory_space<vmem>>, vector<200x128xbf16>
      tpu.vector_store %arg12[%c200, %c0_56], %83 {strides = array<i32>} : memref<1000x128xbf16, #tpu.memory_space<vmem>>, vector<200x128xbf16>,
    } else {
    }
    %c2_i32_11 = arith.constant 2 : i32
    %23 = arith.addi %arg1, %c2_i32_11 : i32
    %c2_i32_12 = arith.constant 2 : i32
    %24 = arith.subi %23, %c2_i32_12 : i32
    %c0_i32_13 = arith.constant 0 : i32
    %25 = arith.cmpi sge, %24, %c0_i32_13 : i32
    %c8_i32_14 = arith.constant 8 : i32
    %26 = arith.cmpi slt, %24, %c8_i32_14 : i32
    %27 = arith.andi %25, %26 : i1
    %28 = arith.extui %27 : i1 to i32
    %c0_i32_15 = arith.constant 0 : i32
    %29 = arith.cmpi ne, %28, %c0_i32_15 : i32
    scf.if %29 {
      %c0_55 = arith.constant 0 : index
      %c0_56 = arith.constant 0 : index
      %c0_57 = arith.constant 0 : index
      %c0_58 = arith.constant 0 : index
      %83 = vector.load %arg4[%c0_55, %c0_56, %c0_57, %c0_58] : memref<1x1x8x256xbf16, #tpu.memory_space<vmem>>, vector<1x1x8x128xbf16>
      %84 = vector.shape_cast %83 : vector<1x1x8x128xbf16> to vector<8x128xbf16>
      %c400 = arith.constant 400 : index
      %c0_59 = arith.constant 0 : index
      %85 = vector.load %arg12[%c400, %c0_59] : memref<1000x128xbf16, #tpu.memory_space<vmem>>, vector<8x128xbf16>
      tpu.vector_store %arg12[%c400, %c0_59], %84 {strides = array<i32>} : memref<1000x128xbf16, #tpu.memory_space<vmem>>, vector<8x128xbf16>,
      %c0_60 = arith.constant 0 : index
      %c0_61 = arith.constant 0 : index
      %c0_62 = arith.constant 0 : index
      %c1 = arith.constant 1 : index
      %86 = vector.load %arg4[%c0_60, %c0_61, %c0_62, %c1] : memref<1x1x8x256xbf16, #tpu.memory_space<vmem>>, vector<1x1x8x128xbf16>
      %87 = vector.shape_cast %86 : vector<1x1x8x128xbf16> to vector<8x128xbf16>
      %c408 = arith.constant 408 : index
      %c0_63 = arith.constant 0 : index
      %88 = vector.load %arg12[%c408, %c0_63] : memref<1000x128xbf16, #tpu.memory_space<vmem>>, vector<8x128xbf16>
      tpu.vector_store %arg12[%c408, %c0_63], %87 {strides = array<i32>} : memref<1000x128xbf16, #tpu.memory_space<vmem>>, vector<8x128xbf16>,
      %c0_64 = arith.constant 0 : index
      %c0_65 = arith.constant 0 : index
      %c0_66 = arith.constant 0 : index
      %c2 = arith.constant 2 : index
      %89 = vector.load %arg4[%c0_64, %c0_65, %c0_66, %c2] : memref<1x1x8x256xbf16, #tpu.memory_space<vmem>>, vector<1x1x8x128xbf16>
      %90 = vector.shape_cast %89 : vector<1x1x8x128xbf16> to vector<8x128xbf16>
      %c416 = arith.constant 416 : index
      %c0_67 = arith.constant 0 : index
      %91 = vector.load %arg12[%c416, %c0_67] : memref<1000x128xbf16, #tpu.memory_space<vmem>>, vector<8x128xbf16>
      tpu.vector_store %arg12[%c416, %c0_67], %90 {strides = array<i32>} : memref<1000x128xbf16, #tpu.memory_space<vmem>>, vector<8x128xbf16>,
      %c0_68 = arith.constant 0 : index
      %c0_69 = arith.constant 0 : index
      %c0_70 = arith.constant 0 : index
      %c3 = arith.constant 3 : index
      %92 = vector.load %arg4[%c0_68, %c0_69, %c0_70, %c3] : memref<1x1x8x256xbf16, #tpu.memory_space<vmem>>, vector<1x1x8x128xbf16>
      %93 = vector.shape_cast %92 : vector<1x1x8x128xbf16> to vector<8x128xbf16>
      %c424 = arith.constant 424 : index
      %c0_71 = arith.constant 0 : index
      %94 = vector.load %arg12[%c424, %c0_71] : memref<1000x128xbf16, #tpu.memory_space<vmem>>, vector<8x128xbf16>
      tpu.vector_store %arg12[%c424, %c0_71], %93 {strides = array<i32>} : memref<1000x128xbf16, #tpu.memory_space<vmem>>, vector<8x128xbf16>,
      %c0_72 = arith.constant 0 : index
      %c0_73 = arith.constant 0 : index
      %c0_74 = arith.constant 0 : index
      %c4 = arith.constant 4 : index
      %95 = vector.load %arg4[%c0_72, %c0_73, %c0_74, %c4] : memref<1x1x8x256xbf16, #tpu.memory_space<vmem>>, vector<1x1x8x128xbf16>
      %96 = vector.shape_cast %95 : vector<1x1x8x128xbf16> to vector<8x128xbf16>
      %c432 = arith.constant 432 : index
      %c0_75 = arith.constant 0 : index
      %97 = vector.load %arg12[%c432, %c0_75] : memref<1000x128xbf16, #tpu.memory_space<vmem>>, vector<8x128xbf16>
      tpu.vector_store %arg12[%c432, %c0_75], %96 {strides = array<i32>} : memref<1000x128xbf16, #tpu.memory_space<vmem>>, vector<8x128xbf16>,
      %c0_76 = arith.constant 0 : index
      %c0_77 = arith.constant 0 : index
      %c0_78 = arith.constant 0 : index
      %c12 = arith.constant 12 : index
      %98 = vector.load %arg4[%c0_76, %c0_77, %c0_78, %c12] : memref<1x1x8x256xbf16, #tpu.memory_space<vmem>>, vector<1x1x8x128xbf16>
      %99 = vector.shape_cast %98 : vector<1x1x8x128xbf16> to vector<8x128xbf16>
      %c440 = arith.constant 440 : index
      %c0_79 = arith.constant 0 : index
      %100 = vector.load %arg12[%c440, %c0_79] : memref<1000x128xbf16, #tpu.memory_space<vmem>>, vector<8x128xbf16>
      tpu.vector_store %arg12[%c440, %c0_79], %99 {strides = array<i32>} : memref<1000x128xbf16, #tpu.memory_space<vmem>>, vector<8x128xbf16>,
      %c0_80 = arith.constant 0 : index
      %c0_81 = arith.constant 0 : index
      %c0_82 = arith.constant 0 : index
      %c13 = arith.constant 13 : index
      %101 = vector.load %arg4[%c0_80, %c0_81, %c0_82, %c13] : memref<1x1x8x256xbf16, #tpu.memory_space<vmem>>, vector<1x1x8x128xbf16>
      %102 = vector.shape_cast %101 : vector<1x1x8x128xbf16> to vector<8x128xbf16>
      %c448 = arith.constant 448 : index
      %c0_83 = arith.constant 0 : index
      %103 = vector.load %arg12[%c448, %c0_83] : memref<1000x128xbf16, #tpu.memory_space<vmem>>, vector<8x128xbf16>
      tpu.vector_store %arg12[%c448, %c0_83], %102 {strides = array<i32>} : memref<1000x128xbf16, #tpu.memory_space<vmem>>, vector<8x128xbf16>,
      %c0_84 = arith.constant 0 : index
      %c0_85 = arith.constant 0 : index
      %c0_86 = arith.constant 0 : index
      %c14 = arith.constant 14 : index
      %104 = vector.load %arg4[%c0_84, %c0_85, %c0_86, %c14] : memref<1x1x8x256xbf16, #tpu.memory_space<vmem>>, vector<1x1x8x128xbf16>
      %105 = vector.shape_cast %104 : vector<1x1x8x128xbf16> to vector<8x128xbf16>
      %c456 = arith.constant 456 : index
      %c0_87 = arith.constant 0 : index
      %106 = vector.load %arg12[%c456, %c0_87] : memref<1000x128xbf16, #tpu.memory_space<vmem>>, vector<8x128xbf16>
      tpu.vector_store %arg12[%c456, %c0_87], %105 {strides = array<i32>} : memref<1000x128xbf16, #tpu.memory_space<vmem>>, vector<8x128xbf16>,
      %c0_88 = arith.constant 0 : index
      %c0_89 = arith.constant 0 : index
      %c0_90 = arith.constant 0 : index
      %c15 = arith.constant 15 : index
      %107 = vector.load %arg4[%c0_88, %c0_89, %c0_90, %c15] : memref<1x1x8x256xbf16, #tpu.memory_space<vmem>>, vector<1x1x8x128xbf16>
      %108 = vector.shape_cast %107 : vector<1x1x8x128xbf16> to vector<8x128xbf16>
      %c464 = arith.constant 464 : index
      %c0_91 = arith.constant 0 : index
      %109 = vector.load %arg12[%c464, %c0_91] : memref<1000x128xbf16, #tpu.memory_space<vmem>>, vector<8x128xbf16>
      tpu.vector_store %arg12[%c464, %c0_91], %108 {strides = array<i32>} : memref<1000x128xbf16, #tpu.memory_space<vmem>>, vector<8x128xbf16>,
      %c0_92 = arith.constant 0 : index
      %c0_93 = arith.constant 0 : index
      %c0_94 = arith.constant 0 : index
      %c16 = arith.constant 16 : index
      %110 = vector.load %arg4[%c0_92, %c0_93, %c0_94, %c16] : memref<1x1x8x256xbf16, #tpu.memory_space<vmem>>, vector<1x1x8x128xbf16>
      %111 = vector.shape_cast %110 : vector<1x1x8x128xbf16> to vector<8x128xbf16>
      %c472 = arith.constant 472 : index
      %c0_95 = arith.constant 0 : index
      %112 = vector.load %arg12[%c472, %c0_95] : memref<1000x128xbf16, #tpu.memory_space<vmem>>, vector<8x128xbf16>
      tpu.vector_store %arg12[%c472, %c0_95], %111 {strides = array<i32>} : memref<1000x128xbf16, #tpu.memory_space<vmem>>, vector<8x128xbf16>,
      %c0_96 = arith.constant 0 : index
      %c0_97 = arith.constant 0 : index
      %c0_98 = arith.constant 0 : index
      %c24 = arith.constant 24 : index
      %113 = vector.load %arg4[%c0_96, %c0_97, %c0_98, %c24] : memref<1x1x8x256xbf16, #tpu.memory_space<vmem>>, vector<1x1x8x128xbf16>
      %114 = vector.shape_cast %113 : vector<1x1x8x128xbf16> to vector<8x128xbf16>
      %c480 = arith.constant 480 : index
      %c0_99 = arith.constant 0 : index
      %115 = vector.load %arg12[%c480, %c0_99] : memref<1000x128xbf16, #tpu.memory_space<vmem>>, vector<8x128xbf16>
      tpu.vector_store %arg12[%c480, %c0_99], %114 {strides = array<i32>} : memref<1000x128xbf16, #tpu.memory_space<vmem>>, vector<8x128xbf16>,
      %c0_100 = arith.constant 0 : index
      %c0_101 = arith.constant 0 : index
      %c0_102 = arith.constant 0 : index
      %c25 = arith.constant 25 : index
      %116 = vector.load %arg4[%c0_100, %c0_101, %c0_102, %c25] : memref<1x1x8x256xbf16, #tpu.memory_space<vmem>>, vector<1x1x8x128xbf16>
      %117 = vector.shape_cast %116 : vector<1x1x8x128xbf16> to vector<8x128xbf16>
      %c488 = arith.constant 488 : index
      %c0_103 = arith.constant 0 : index
      %118 = vector.load %arg12[%c488, %c0_103] : memref<1000x128xbf16, #tpu.memory_space<vmem>>, vector<8x128xbf16>
      tpu.vector_store %arg12[%c488, %c0_103], %117 {strides = array<i32>} : memref<1000x128xbf16, #tpu.memory_space<vmem>>, vector<8x128xbf16>,
      %c0_104 = arith.constant 0 : index
      %c0_105 = arith.constant 0 : index
      %c0_106 = arith.constant 0 : index
      %c26 = arith.constant 26 : index
      %119 = vector.load %arg4[%c0_104, %c0_105, %c0_106, %c26] : memref<1x1x8x256xbf16, #tpu.memory_space<vmem>>, vector<1x1x8x128xbf16>
      %120 = vector.shape_cast %119 : vector<1x1x8x128xbf16> to vector<8x128xbf16>
      %c496 = arith.constant 496 : index
      %c0_107 = arith.constant 0 : index
      %121 = vector.load %arg12[%c496, %c0_107] : memref<1000x128xbf16, #tpu.memory_space<vmem>>, vector<8x128xbf16>
      tpu.vector_store %arg12[%c496, %c0_107], %120 {strides = array<i32>} : memref<1000x128xbf16, #tpu.memory_space<vmem>>, vector<8x128xbf16>,
      %c0_108 = arith.constant 0 : index
      %c0_109 = arith.constant 0 : index
      %c0_110 = arith.constant 0 : index
      %c27 = arith.constant 27 : index
      %122 = vector.load %arg4[%c0_108, %c0_109, %c0_110, %c27] : memref<1x1x8x256xbf16, #tpu.memory_space<vmem>>, vector<1x1x8x128xbf16>
      %123 = vector.shape_cast %122 : vector<1x1x8x128xbf16> to vector<8x128xbf16>
      %c504 = arith.constant 504 : index
      %c0_111 = arith.constant 0 : index
      %124 = vector.load %arg12[%c504, %c0_111] : memref<1000x128xbf16, #tpu.memory_space<vmem>>, vector<8x128xbf16>
      tpu.vector_store %arg12[%c504, %c0_111], %123 {strides = array<i32>} : memref<1000x128xbf16, #tpu.memory_space<vmem>>, vector<8x128xbf16>,
      %c0_112 = arith.constant 0 : index
      %c0_113 = arith.constant 0 : index
      %c0_114 = arith.constant 0 : index
      %c28 = arith.constant 28 : index
      %125 = vector.load %arg4[%c0_112, %c0_113, %c0_114, %c28] : memref<1x1x8x256xbf16, #tpu.memory_space<vmem>>, vector<1x1x8x128xbf16>
      %126 = vector.shape_cast %125 : vector<1x1x8x128xbf16> to vector<8x128xbf16>
      %c512 = arith.constant 512 : index
      %c0_115 = arith.constant 0 : index
      %127 = vector.load %arg12[%c512, %c0_115] : memref<1000x128xbf16, #tpu.memory_space<vmem>>, vector<8x128xbf16>
      tpu.vector_store %arg12[%c512, %c0_115], %126 {strides = array<i32>} : memref<1000x128xbf16, #tpu.memory_space<vmem>>, vector<8x128xbf16>,
      %c0_116 = arith.constant 0 : index
      %c0_117 = arith.constant 0 : index
      %c0_118 = arith.constant 0 : index
      %c36 = arith.constant 36 : index
      %128 = vector.load %arg4[%c0_116, %c0_117, %c0_118, %c36] : memref<1x1x8x256xbf16, #tpu.memory_space<vmem>>, vector<1x1x8x128xbf16>
      %129 = vector.shape_cast %128 : vector<1x1x8x128xbf16> to vector<8x128xbf16>
      %c520 = arith.constant 520 : index
      %c0_119 = arith.constant 0 : index
      %130 = vector.load %arg12[%c520, %c0_119] : memref<1000x128xbf16, #tpu.memory_space<vmem>>, vector<8x128xbf16>
      tpu.vector_store %arg12[%c520, %c0_119], %129 {strides = array<i32>} : memref<1000x128xbf16, #tpu.memory_space<vmem>>, vector<8x128xbf16>,
      %c0_120 = arith.constant 0 : index
      %c0_121 = arith.constant 0 : index
      %c0_122 = arith.constant 0 : index
      %c37 = arith.constant 37 : index
      %131 = vector.load %arg4[%c0_120, %c0_121, %c0_122, %c37] : memref<1x1x8x256xbf16, #tpu.memory_space<vmem>>, vector<1x1x8x128xbf16>
      %132 = vector.shape_cast %131 : vector<1x1x8x128xbf16> to vector<8x128xbf16>
      %c528 = arith.constant 528 : index
      %c0_123 = arith.constant 0 : index
      %133 = vector.load %arg12[%c528, %c0_123] : memref<1000x128xbf16, #tpu.memory_space<vmem>>, vector<8x128xbf16>
      tpu.vector_store %arg12[%c528, %c0_123], %132 {strides = array<i32>} : memref<1000x128xbf16, #tpu.memory_space<vmem>>, vector<8x128xbf16>,
      %c0_124 = arith.constant 0 : index
      %c0_125 = arith.constant 0 : index
      %c0_126 = arith.constant 0 : index
      %c38 = arith.constant 38 : index
      %134 = vector.load %arg4[%c0_124, %c0_125, %c0_126, %c38] : memref<1x1x8x256xbf16, #tpu.memory_space<vmem>>, vector<1x1x8x128xbf16>
      %135 = vector.shape_cast %134 : vector<1x1x8x128xbf16> to vector<8x128xbf16>
      %c536 = arith.constant 536 : index
      %c0_127 = arith.constant 0 : index
      %136 = vector.load %arg12[%c536, %c0_127] : memref<1000x128xbf16, #tpu.memory_space<vmem>>, vector<8x128xbf16>
      tpu.vector_store %arg12[%c536, %c0_127], %135 {strides = array<i32>} : memref<1000x128xbf16, #tpu.memory_space<vmem>>, vector<8x128xbf16>,
      %c0_128 = arith.constant 0 : index
      %c0_129 = arith.constant 0 : index
      %c0_130 = arith.constant 0 : index
      %c39 = arith.constant 39 : index
      %137 = vector.load %arg4[%c0_128, %c0_129, %c0_130, %c39] : memref<1x1x8x256xbf16, #tpu.memory_space<vmem>>, vector<1x1x8x128xbf16>
      %138 = vector.shape_cast %137 : vector<1x1x8x128xbf16> to vector<8x128xbf16>
      %c544 = arith.constant 544 : index
      %c0_131 = arith.constant 0 : index
      %139 = vector.load %arg12[%c544, %c0_131] : memref<1000x128xbf16, #tpu.memory_space<vmem>>, vector<8x128xbf16>
      tpu.vector_store %arg12[%c544, %c0_131], %138 {strides = array<i32>} : memref<1000x128xbf16, #tpu.memory_space<vmem>>, vector<8x128xbf16>,
      %c0_132 = arith.constant 0 : index
      %c0_133 = arith.constant 0 : index
      %c0_134 = arith.constant 0 : index
      %c40 = arith.constant 40 : index
      %140 = vector.load %arg4[%c0_132, %c0_133, %c0_134, %c40] : memref<1x1x8x256xbf16, #tpu.memory_space<vmem>>, vector<1x1x8x128xbf16>
      %141 = vector.shape_cast %140 : vector<1x1x8x128xbf16> to vector<8x128xbf16>
      %c552 = arith.constant 552 : index
      %c0_135 = arith.constant 0 : index
      %142 = vector.load %arg12[%c552, %c0_135] : memref<1000x128xbf16, #tpu.memory_space<vmem>>, vector<8x128xbf16>
      tpu.vector_store %arg12[%c552, %c0_135], %141 {strides = array<i32>} : memref<1000x128xbf16, #tpu.memory_space<vmem>>, vector<8x128xbf16>,
      %c0_136 = arith.constant 0 : index
      %c0_137 = arith.constant 0 : index
      %c0_138 = arith.constant 0 : index
      %c48 = arith.constant 48 : index
      %143 = vector.load %arg4[%c0_136, %c0_137, %c0_138, %c48] : memref<1x1x8x256xbf16, #tpu.memory_space<vmem>>, vector<1x1x8x128xbf16>
      %144 = vector.shape_cast %143 : vector<1x1x8x128xbf16> to vector<8x128xbf16>
      %c560 = arith.constant 560 : index
      %c0_139 = arith.constant 0 : index
      %145 = vector.load %arg12[%c560, %c0_139] : memref<1000x128xbf16, #tpu.memory_space<vmem>>, vector<8x128xbf16>
      tpu.vector_store %arg12[%c560, %c0_139], %144 {strides = array<i32>} : memref<1000x128xbf16, #tpu.memory_space<vmem>>, vector<8x128xbf16>,
      %c0_140 = arith.constant 0 : index
      %c0_141 = arith.constant 0 : index
      %c0_142 = arith.constant 0 : index
      %c49 = arith.constant 49 : index
      %146 = vector.load %arg4[%c0_140, %c0_141, %c0_142, %c49] : memref<1x1x8x256xbf16, #tpu.memory_space<vmem>>, vector<1x1x8x128xbf16>
      %147 = vector.shape_cast %146 : vector<1x1x8x128xbf16> to vector<8x128xbf16>
      %c568 = arith.constant 568 : index
      %c0_143 = arith.constant 0 : index
      %148 = vector.load %arg12[%c568, %c0_143] : memref<1000x128xbf16, #tpu.memory_space<vmem>>, vector<8x128xbf16>
      tpu.vector_store %arg12[%c568, %c0_143], %147 {strides = array<i32>} : memref<1000x128xbf16, #tpu.memory_space<vmem>>, vector<8x128xbf16>,
      %c0_144 = arith.constant 0 : index
      %c0_145 = arith.constant 0 : index
      %c0_146 = arith.constant 0 : index
      %c50 = arith.constant 50 : index
      %149 = vector.load %arg4[%c0_144, %c0_145, %c0_146, %c50] : memref<1x1x8x256xbf16, #tpu.memory_space<vmem>>, vector<1x1x8x128xbf16>
      %150 = vector.shape_cast %149 : vector<1x1x8x128xbf16> to vector<8x128xbf16>
      %c576 = arith.constant 576 : index
      %c0_147 = arith.constant 0 : index
      %151 = vector.load %arg12[%c576, %c0_147] : memref<1000x128xbf16, #tpu.memory_space<vmem>>, vector<8x128xbf16>
      tpu.vector_store %arg12[%c576, %c0_147], %150 {strides = array<i32>} : memref<1000x128xbf16, #tpu.memory_space<vmem>>, vector<8x128xbf16>,
      %c0_148 = arith.constant 0 : index
      %c0_149 = arith.constant 0 : index
      %c0_150 = arith.constant 0 : index
      %c51 = arith.constant 51 : index
      %152 = vector.load %arg4[%c0_148, %c0_149, %c0_150, %c51] : memref<1x1x8x256xbf16, #tpu.memory_space<vmem>>, vector<1x1x8x128xbf16>
      %153 = vector.shape_cast %152 : vector<1x1x8x128xbf16> to vector<8x128xbf16>
      %c584 = arith.constant 584 : index
      %c0_151 = arith.constant 0 : index
      %154 = vector.load %arg12[%c584, %c0_151] : memref<1000x128xbf16, #tpu.memory_space<vmem>>, vector<8x128xbf16>
      tpu.vector_store %arg12[%c584, %c0_151], %153 {strides = array<i32>} : memref<1000x128xbf16, #tpu.memory_space<vmem>>, vector<8x128xbf16>,
      %c0_152 = arith.constant 0 : index
      %c0_153 = arith.constant 0 : index
      %c0_154 = arith.constant 0 : index
      %c52 = arith.constant 52 : index
      %155 = vector.load %arg4[%c0_152, %c0_153, %c0_154, %c52] : memref<1x1x8x256xbf16, #tpu.memory_space<vmem>>, vector<1x1x8x128xbf16>
      %156 = vector.shape_cast %155 : vector<1x1x8x128xbf16> to vector<8x128xbf16>
      %c592 = arith.constant 592 : index
      %c0_155 = arith.constant 0 : index
      %157 = vector.load %arg12[%c592, %c0_155] : memref<1000x128xbf16, #tpu.memory_space<vmem>>, vector<8x128xbf16>
      tpu.vector_store %arg12[%c592, %c0_155], %156 {strides = array<i32>} : memref<1000x128xbf16, #tpu.memory_space<vmem>>, vector<8x128xbf16>,
    } else {
    }
    %true_16 = arith.constant true
    %30 = arith.xori %27, %true_16 : i1
    %31 = arith.extui %30 : i1 to i32
    %c0_i32_17 = arith.constant 0 : i32
    %32 = arith.cmpi ne, %31, %c0_i32_17 : i32
    scf.if %32 {
      %cst_55 = arith.constant 0.000000e+00 : bf16
      %83 = vector.broadcast %cst_55 : bf16 to vector<200x128xbf16>
      %c400 = arith.constant 400 : index
      %c0_56 = arith.constant 0 : index
      %84 = vector.load %arg12[%c400, %c0_56] : memref<1000x128xbf16, #tpu.memory_space<vmem>>, vector<200x128xbf16>
      tpu.vector_store %arg12[%c400, %c0_56], %83 {strides = array<i32>} : memref<1000x128xbf16, #tpu.memory_space<vmem>>, vector<200x128xbf16>,
    } else {
    }
    %c3_i32 = arith.constant 3 : i32
    %33 = arith.addi %arg1, %c3_i32 : i32
    %c2_i32_18 = arith.constant 2 : i32
    %34 = arith.subi %33, %c2_i32_18 : i32
    %c0_i32_19 = arith.constant 0 : i32
    %35 = arith.cmpi sge, %34, %c0_i32_19 : i32
    %c8_i32_20 = arith.constant 8 : i32
    %36 = arith.cmpi slt, %34, %c8_i32_20 : i32
    %37 = arith.andi %35, %36 : i1
    %38 = arith.extui %37 : i1 to i32
    %c0_i32_21 = arith.constant 0 : i32
    %39 = arith.cmpi ne, %38, %c0_i32_21 : i32
    scf.if %39 {
      %c0_55 = arith.constant 0 : index
      %c0_56 = arith.constant 0 : index
      %c0_57 = arith.constant 0 : index
      %c0_58 = arith.constant 0 : index
      %83 = vector.load %arg5[%c0_55, %c0_56, %c0_57, %c0_58] : memref<1x1x8x256xbf16, #tpu.memory_space<vmem>>, vector<1x1x8x128xbf16>
      %84 = vector.shape_cast %83 : vector<1x1x8x128xbf16> to vector<8x128xbf16>
      %c600 = arith.constant 600 : index
      %c0_59 = arith.constant 0 : index
      %85 = vector.load %arg12[%c600, %c0_59] : memref<1000x128xbf16, #tpu.memory_space<vmem>>, vector<8x128xbf16>
      tpu.vector_store %arg12[%c600, %c0_59], %84 {strides = array<i32>} : memref<1000x128xbf16, #tpu.memory_space<vmem>>, vector<8x128xbf16>,
      %c0_60 = arith.constant 0 : index
      %c0_61 = arith.constant 0 : index
      %c0_62 = arith.constant 0 : index
      %c1 = arith.constant 1 : index
      %86 = vector.load %arg5[%c0_60, %c0_61, %c0_62, %c1] : memref<1x1x8x256xbf16, #tpu.memory_space<vmem>>, vector<1x1x8x128xbf16>
      %87 = vector.shape_cast %86 : vector<1x1x8x128xbf16> to vector<8x128xbf16>
      %c608 = arith.constant 608 : index
      %c0_63 = arith.constant 0 : index
      %88 = vector.load %arg12[%c608, %c0_63] : memref<1000x128xbf16, #tpu.memory_space<vmem>>, vector<8x128xbf16>
      tpu.vector_store %arg12[%c608, %c0_63], %87 {strides = array<i32>} : memref<1000x128xbf16, #tpu.memory_space<vmem>>, vector<8x128xbf16>,
      %c0_64 = arith.constant 0 : index
      %c0_65 = arith.constant 0 : index
      %c0_66 = arith.constant 0 : index
      %c2 = arith.constant 2 : index
      %89 = vector.load %arg5[%c0_64, %c0_65, %c0_66, %c2] : memref<1x1x8x256xbf16, #tpu.memory_space<vmem>>, vector<1x1x8x128xbf16>
      %90 = vector.shape_cast %89 : vector<1x1x8x128xbf16> to vector<8x128xbf16>
      %c616 = arith.constant 616 : index
      %c0_67 = arith.constant 0 : index
      %91 = vector.load %arg12[%c616, %c0_67] : memref<1000x128xbf16, #tpu.memory_space<vmem>>, vector<8x128xbf16>
      tpu.vector_store %arg12[%c616, %c0_67], %90 {strides = array<i32>} : memref<1000x128xbf16, #tpu.memory_space<vmem>>, vector<8x128xbf16>,
      %c0_68 = arith.constant 0 : index
      %c0_69 = arith.constant 0 : index
      %c0_70 = arith.constant 0 : index
      %c3 = arith.constant 3 : index
      %92 = vector.load %arg5[%c0_68, %c0_69, %c0_70, %c3] : memref<1x1x8x256xbf16, #tpu.memory_space<vmem>>, vector<1x1x8x128xbf16>
      %93 = vector.shape_cast %92 : vector<1x1x8x128xbf16> to vector<8x128xbf16>
      %c624 = arith.constant 624 : index
      %c0_71 = arith.constant 0 : index
      %94 = vector.load %arg12[%c624, %c0_71] : memref<1000x128xbf16, #tpu.memory_space<vmem>>, vector<8x128xbf16>
      tpu.vector_store %arg12[%c624, %c0_71], %93 {strides = array<i32>} : memref<1000x128xbf16, #tpu.memory_space<vmem>>, vector<8x128xbf16>,
      %c0_72 = arith.constant 0 : index
      %c0_73 = arith.constant 0 : index
      %c0_74 = arith.constant 0 : index
      %c4 = arith.constant 4 : index
      %95 = vector.load %arg5[%c0_72, %c0_73, %c0_74, %c4] : memref<1x1x8x256xbf16, #tpu.memory_space<vmem>>, vector<1x1x8x128xbf16>
      %96 = vector.shape_cast %95 : vector<1x1x8x128xbf16> to vector<8x128xbf16>
      %c632 = arith.constant 632 : index
      %c0_75 = arith.constant 0 : index
      %97 = vector.load %arg12[%c632, %c0_75] : memref<1000x128xbf16, #tpu.memory_space<vmem>>, vector<8x128xbf16>
      tpu.vector_store %arg12[%c632, %c0_75], %96 {strides = array<i32>} : memref<1000x128xbf16, #tpu.memory_space<vmem>>, vector<8x128xbf16>,
      %c0_76 = arith.constant 0 : index
      %c0_77 = arith.constant 0 : index
      %c0_78 = arith.constant 0 : index
      %c12 = arith.constant 12 : index
      %98 = vector.load %arg5[%c0_76, %c0_77, %c0_78, %c12] : memref<1x1x8x256xbf16, #tpu.memory_space<vmem>>, vector<1x1x8x128xbf16>
      %99 = vector.shape_cast %98 : vector<1x1x8x128xbf16> to vector<8x128xbf16>
      %c640 = arith.constant 640 : index
      %c0_79 = arith.constant 0 : index
      %100 = vector.load %arg12[%c640, %c0_79] : memref<1000x128xbf16, #tpu.memory_space<vmem>>, vector<8x128xbf16>
      tpu.vector_store %arg12[%c640, %c0_79], %99 {strides = array<i32>} : memref<1000x128xbf16, #tpu.memory_space<vmem>>, vector<8x128xbf16>,
      %c0_80 = arith.constant 0 : index
      %c0_81 = arith.constant 0 : index
      %c0_82 = arith.constant 0 : index
      %c13 = arith.constant 13 : index
      %101 = vector.load %arg5[%c0_80, %c0_81, %c0_82, %c13] : memref<1x1x8x256xbf16, #tpu.memory_space<vmem>>, vector<1x1x8x128xbf16>
      %102 = vector.shape_cast %101 : vector<1x1x8x128xbf16> to vector<8x128xbf16>
      %c648 = arith.constant 648 : index
      %c0_83 = arith.constant 0 : index
      %103 = vector.load %arg12[%c648, %c0_83] : memref<1000x128xbf16, #tpu.memory_space<vmem>>, vector<8x128xbf16>
      tpu.vector_store %arg12[%c648, %c0_83], %102 {strides = array<i32>} : memref<1000x128xbf16, #tpu.memory_space<vmem>>, vector<8x128xbf16>,
      %c0_84 = arith.constant 0 : index
      %c0_85 = arith.constant 0 : index
      %c0_86 = arith.constant 0 : index
      %c14 = arith.constant 14 : index
      %104 = vector.load %arg5[%c0_84, %c0_85, %c0_86, %c14] : memref<1x1x8x256xbf16, #tpu.memory_space<vmem>>, vector<1x1x8x128xbf16>
      %105 = vector.shape_cast %104 : vector<1x1x8x128xbf16> to vector<8x128xbf16>
      %c656 = arith.constant 656 : index
      %c0_87 = arith.constant 0 : index
      %106 = vector.load %arg12[%c656, %c0_87] : memref<1000x128xbf16, #tpu.memory_space<vmem>>, vector<8x128xbf16>
      tpu.vector_store %arg12[%c656, %c0_87], %105 {strides = array<i32>} : memref<1000x128xbf16, #tpu.memory_space<vmem>>, vector<8x128xbf16>,
      %c0_88 = arith.constant 0 : index
      %c0_89 = arith.constant 0 : index
      %c0_90 = arith.constant 0 : index
      %c15 = arith.constant 15 : index
      %107 = vector.load %arg5[%c0_88, %c0_89, %c0_90, %c15] : memref<1x1x8x256xbf16, #tpu.memory_space<vmem>>, vector<1x1x8x128xbf16>
      %108 = vector.shape_cast %107 : vector<1x1x8x128xbf16> to vector<8x128xbf16>
      %c664 = arith.constant 664 : index
      %c0_91 = arith.constant 0 : index
      %109 = vector.load %arg12[%c664, %c0_91] : memref<1000x128xbf16, #tpu.memory_space<vmem>>, vector<8x128xbf16>
      tpu.vector_store %arg12[%c664, %c0_91], %108 {strides = array<i32>} : memref<1000x128xbf16, #tpu.memory_space<vmem>>, vector<8x128xbf16>,
      %c0_92 = arith.constant 0 : index
      %c0_93 = arith.constant 0 : index
      %c0_94 = arith.constant 0 : index
      %c16 = arith.constant 16 : index
      %110 = vector.load %arg5[%c0_92, %c0_93, %c0_94, %c16] : memref<1x1x8x256xbf16, #tpu.memory_space<vmem>>, vector<1x1x8x128xbf16>
      %111 = vector.shape_cast %110 : vector<1x1x8x128xbf16> to vector<8x128xbf16>
      %c672 = arith.constant 672 : index
      %c0_95 = arith.constant 0 : index
      %112 = vector.load %arg12[%c672, %c0_95] : memref<1000x128xbf16, #tpu.memory_space<vmem>>, vector<8x128xbf16>
      tpu.vector_store %arg12[%c672, %c0_95], %111 {strides = array<i32>} : memref<1000x128xbf16, #tpu.memory_space<vmem>>, vector<8x128xbf16>,
      %c0_96 = arith.constant 0 : index
      %c0_97 = arith.constant 0 : index
      %c0_98 = arith.constant 0 : index
      %c24 = arith.constant 24 : index
      %113 = vector.load %arg5[%c0_96, %c0_97, %c0_98, %c24] : memref<1x1x8x256xbf16, #tpu.memory_space<vmem>>, vector<1x1x8x128xbf16>
      %114 = vector.shape_cast %113 : vector<1x1x8x128xbf16> to vector<8x128xbf16>
      %c680 = arith.constant 680 : index
      %c0_99 = arith.constant 0 : index
      %115 = vector.load %arg12[%c680, %c0_99] : memref<1000x128xbf16, #tpu.memory_space<vmem>>, vector<8x128xbf16>
      tpu.vector_store %arg12[%c680, %c0_99], %114 {strides = array<i32>} : memref<1000x128xbf16, #tpu.memory_space<vmem>>, vector<8x128xbf16>,
      %c0_100 = arith.constant 0 : index
      %c0_101 = arith.constant 0 : index
      %c0_102 = arith.constant 0 : index
      %c25 = arith.constant 25 : index
      %116 = vector.load %arg5[%c0_100, %c0_101, %c0_102, %c25] : memref<1x1x8x256xbf16, #tpu.memory_space<vmem>>, vector<1x1x8x128xbf16>
      %117 = vector.shape_cast %116 : vector<1x1x8x128xbf16> to vector<8x128xbf16>
      %c688 = arith.constant 688 : index
      %c0_103 = arith.constant 0 : index
      %118 = vector.load %arg12[%c688, %c0_103] : memref<1000x128xbf16, #tpu.memory_space<vmem>>, vector<8x128xbf16>
      tpu.vector_store %arg12[%c688, %c0_103], %117 {strides = array<i32>} : memref<1000x128xbf16, #tpu.memory_space<vmem>>, vector<8x128xbf16>,
      %c0_104 = arith.constant 0 : index
      %c0_105 = arith.constant 0 : index
      %c0_106 = arith.constant 0 : index
      %c26 = arith.constant 26 : index
      %119 = vector.load %arg5[%c0_104, %c0_105, %c0_106, %c26] : memref<1x1x8x256xbf16, #tpu.memory_space<vmem>>, vector<1x1x8x128xbf16>
      %120 = vector.shape_cast %119 : vector<1x1x8x128xbf16> to vector<8x128xbf16>
      %c696 = arith.constant 696 : index
      %c0_107 = arith.constant 0 : index
      %121 = vector.load %arg12[%c696, %c0_107] : memref<1000x128xbf16, #tpu.memory_space<vmem>>, vector<8x128xbf16>
      tpu.vector_store %arg12[%c696, %c0_107], %120 {strides = array<i32>} : memref<1000x128xbf16, #tpu.memory_space<vmem>>, vector<8x128xbf16>,
      %c0_108 = arith.constant 0 : index
      %c0_109 = arith.constant 0 : index
      %c0_110 = arith.constant 0 : index
      %c27 = arith.constant 27 : index
      %122 = vector.load %arg5[%c0_108, %c0_109, %c0_110, %c27] : memref<1x1x8x256xbf16, #tpu.memory_space<vmem>>, vector<1x1x8x128xbf16>
      %123 = vector.shape_cast %122 : vector<1x1x8x128xbf16> to vector<8x128xbf16>
      %c704 = arith.constant 704 : index
      %c0_111 = arith.constant 0 : index
      %124 = vector.load %arg12[%c704, %c0_111] : memref<1000x128xbf16, #tpu.memory_space<vmem>>, vector<8x128xbf16>
      tpu.vector_store %arg12[%c704, %c0_111], %123 {strides = array<i32>} : memref<1000x128xbf16, #tpu.memory_space<vmem>>, vector<8x128xbf16>,
      %c0_112 = arith.constant 0 : index
      %c0_113 = arith.constant 0 : index
      %c0_114 = arith.constant 0 : index
      %c28 = arith.constant 28 : index
      %125 = vector.load %arg5[%c0_112, %c0_113, %c0_114, %c28] : memref<1x1x8x256xbf16, #tpu.memory_space<vmem>>, vector<1x1x8x128xbf16>
      %126 = vector.shape_cast %125 : vector<1x1x8x128xbf16> to vector<8x128xbf16>
      %c712 = arith.constant 712 : index
      %c0_115 = arith.constant 0 : index
      %127 = vector.load %arg12[%c712, %c0_115] : memref<1000x128xbf16, #tpu.memory_space<vmem>>, vector<8x128xbf16>
      tpu.vector_store %arg12[%c712, %c0_115], %126 {strides = array<i32>} : memref<1000x128xbf16, #tpu.memory_space<vmem>>, vector<8x128xbf16>,
      %c0_116 = arith.constant 0 : index
      %c0_117 = arith.constant 0 : index
      %c0_118 = arith.constant 0 : index
      %c36 = arith.constant 36 : index
      %128 = vector.load %arg5[%c0_116, %c0_117, %c0_118, %c36] : memref<1x1x8x256xbf16, #tpu.memory_space<vmem>>, vector<1x1x8x128xbf16>
      %129 = vector.shape_cast %128 : vector<1x1x8x128xbf16> to vector<8x128xbf16>
      %c720 = arith.constant 720 : index
      %c0_119 = arith.constant 0 : index
      %130 = vector.load %arg12[%c720, %c0_119] : memref<1000x128xbf16, #tpu.memory_space<vmem>>, vector<8x128xbf16>
      tpu.vector_store %arg12[%c720, %c0_119], %129 {strides = array<i32>} : memref<1000x128xbf16, #tpu.memory_space<vmem>>, vector<8x128xbf16>,
      %c0_120 = arith.constant 0 : index
      %c0_121 = arith.constant 0 : index
      %c0_122 = arith.constant 0 : index
      %c37 = arith.constant 37 : index
      %131 = vector.load %arg5[%c0_120, %c0_121, %c0_122, %c37] : memref<1x1x8x256xbf16, #tpu.memory_space<vmem>>, vector<1x1x8x128xbf16>
      %132 = vector.shape_cast %131 : vector<1x1x8x128xbf16> to vector<8x128xbf16>
      %c728 = arith.constant 728 : index
      %c0_123 = arith.constant 0 : index
      %133 = vector.load %arg12[%c728, %c0_123] : memref<1000x128xbf16, #tpu.memory_space<vmem>>, vector<8x128xbf16>
      tpu.vector_store %arg12[%c728, %c0_123], %132 {strides = array<i32>} : memref<1000x128xbf16, #tpu.memory_space<vmem>>, vector<8x128xbf16>,
      %c0_124 = arith.constant 0 : index
      %c0_125 = arith.constant 0 : index
      %c0_126 = arith.constant 0 : index
      %c38 = arith.constant 38 : index
      %134 = vector.load %arg5[%c0_124, %c0_125, %c0_126, %c38] : memref<1x1x8x256xbf16, #tpu.memory_space<vmem>>, vector<1x1x8x128xbf16>
      %135 = vector.shape_cast %134 : vector<1x1x8x128xbf16> to vector<8x128xbf16>
      %c736 = arith.constant 736 : index
      %c0_127 = arith.constant 0 : index
      %136 = vector.load %arg12[%c736, %c0_127] : memref<1000x128xbf16, #tpu.memory_space<vmem>>, vector<8x128xbf16>
      tpu.vector_store %arg12[%c736, %c0_127], %135 {strides = array<i32>} : memref<1000x128xbf16, #tpu.memory_space<vmem>>, vector<8x128xbf16>,
      %c0_128 = arith.constant 0 : index
      %c0_129 = arith.constant 0 : index
      %c0_130 = arith.constant 0 : index
      %c39 = arith.constant 39 : index
      %137 = vector.load %arg5[%c0_128, %c0_129, %c0_130, %c39] : memref<1x1x8x256xbf16, #tpu.memory_space<vmem>>, vector<1x1x8x128xbf16>
      %138 = vector.shape_cast %137 : vector<1x1x8x128xbf16> to vector<8x128xbf16>
      %c744 = arith.constant 744 : index
      %c0_131 = arith.constant 0 : index
      %139 = vector.load %arg12[%c744, %c0_131] : memref<1000x128xbf16, #tpu.memory_space<vmem>>, vector<8x128xbf16>
      tpu.vector_store %arg12[%c744, %c0_131], %138 {strides = array<i32>} : memref<1000x128xbf16, #tpu.memory_space<vmem>>, vector<8x128xbf16>,
      %c0_132 = arith.constant 0 : index
      %c0_133 = arith.constant 0 : index
      %c0_134 = arith.constant 0 : index
      %c40 = arith.constant 40 : index
      %140 = vector.load %arg5[%c0_132, %c0_133, %c0_134, %c40] : memref<1x1x8x256xbf16, #tpu.memory_space<vmem>>, vector<1x1x8x128xbf16>
      %141 = vector.shape_cast %140 : vector<1x1x8x128xbf16> to vector<8x128xbf16>
      %c752 = arith.constant 752 : index
      %c0_135 = arith.constant 0 : index
      %142 = vector.load %arg12[%c752, %c0_135] : memref<1000x128xbf16, #tpu.memory_space<vmem>>, vector<8x128xbf16>
      tpu.vector_store %arg12[%c752, %c0_135], %141 {strides = array<i32>} : memref<1000x128xbf16, #tpu.memory_space<vmem>>, vector<8x128xbf16>,
      %c0_136 = arith.constant 0 : index
      %c0_137 = arith.constant 0 : index
      %c0_138 = arith.constant 0 : index
      %c48 = arith.constant 48 : index
      %143 = vector.load %arg5[%c0_136, %c0_137, %c0_138, %c48] : memref<1x1x8x256xbf16, #tpu.memory_space<vmem>>, vector<1x1x8x128xbf16>
      %144 = vector.shape_cast %143 : vector<1x1x8x128xbf16> to vector<8x128xbf16>
      %c760 = arith.constant 760 : index
      %c0_139 = arith.constant 0 : index
      %145 = vector.load %arg12[%c760, %c0_139] : memref<1000x128xbf16, #tpu.memory_space<vmem>>, vector<8x128xbf16>
      tpu.vector_store %arg12[%c760, %c0_139], %144 {strides = array<i32>} : memref<1000x128xbf16, #tpu.memory_space<vmem>>, vector<8x128xbf16>,
      %c0_140 = arith.constant 0 : index
      %c0_141 = arith.constant 0 : index
      %c0_142 = arith.constant 0 : index
      %c49 = arith.constant 49 : index
      %146 = vector.load %arg5[%c0_140, %c0_141, %c0_142, %c49] : memref<1x1x8x256xbf16, #tpu.memory_space<vmem>>, vector<1x1x8x128xbf16>
      %147 = vector.shape_cast %146 : vector<1x1x8x128xbf16> to vector<8x128xbf16>
      %c768 = arith.constant 768 : index
      %c0_143 = arith.constant 0 : index
      %148 = vector.load %arg12[%c768, %c0_143] : memref<1000x128xbf16, #tpu.memory_space<vmem>>, vector<8x128xbf16>
      tpu.vector_store %arg12[%c768, %c0_143], %147 {strides = array<i32>} : memref<1000x128xbf16, #tpu.memory_space<vmem>>, vector<8x128xbf16>,
      %c0_144 = arith.constant 0 : index
      %c0_145 = arith.constant 0 : index
      %c0_146 = arith.constant 0 : index
      %c50 = arith.constant 50 : index
      %149 = vector.load %arg5[%c0_144, %c0_145, %c0_146, %c50] : memref<1x1x8x256xbf16, #tpu.memory_space<vmem>>, vector<1x1x8x128xbf16>
      %150 = vector.shape_cast %149 : vector<1x1x8x128xbf16> to vector<8x128xbf16>
      %c776 = arith.constant 776 : index
      %c0_147 = arith.constant 0 : index
      %151 = vector.load %arg12[%c776, %c0_147] : memref<1000x128xbf16, #tpu.memory_space<vmem>>, vector<8x128xbf16>
      tpu.vector_store %arg12[%c776, %c0_147], %150 {strides = array<i32>} : memref<1000x128xbf16, #tpu.memory_space<vmem>>, vector<8x128xbf16>,
      %c0_148 = arith.constant 0 : index
      %c0_149 = arith.constant 0 : index
      %c0_150 = arith.constant 0 : index
      %c51 = arith.constant 51 : index
      %152 = vector.load %arg5[%c0_148, %c0_149, %c0_150, %c51] : memref<1x1x8x256xbf16, #tpu.memory_space<vmem>>, vector<1x1x8x128xbf16>
      %153 = vector.shape_cast %152 : vector<1x1x8x128xbf16> to vector<8x128xbf16>
      %c784 = arith.constant 784 : index
      %c0_151 = arith.constant 0 : index
      %154 = vector.load %arg12[%c784, %c0_151] : memref<1000x128xbf16, #tpu.memory_space<vmem>>, vector<8x128xbf16>
      tpu.vector_store %arg12[%c784, %c0_151], %153 {strides = array<i32>} : memref<1000x128xbf16, #tpu.memory_space<vmem>>, vector<8x128xbf16>,
      %c0_152 = arith.constant 0 : index
      %c0_153 = arith.constant 0 : index
      %c0_154 = arith.constant 0 : index
      %c52 = arith.constant 52 : index
      %155 = vector.load %arg5[%c0_152, %c0_153, %c0_154, %c52] : memref<1x1x8x256xbf16, #tpu.memory_space<vmem>>, vector<1x1x8x128xbf16>
      %156 = vector.shape_cast %155 : vector<1x1x8x128xbf16> to vector<8x128xbf16>
      %c792 = arith.constant 792 : index
      %c0_155 = arith.constant 0 : index
      %157 = vector.load %arg12[%c792, %c0_155] : memref<1000x128xbf16, #tpu.memory_space<vmem>>, vector<8x128xbf16>
      tpu.vector_store %arg12[%c792, %c0_155], %156 {strides = array<i32>} : memref<1000x128xbf16, #tpu.memory_space<vmem>>, vector<8x128xbf16>,
    } else {
    }
    %true_22 = arith.constant true
    %40 = arith.xori %37, %true_22 : i1
    %41 = arith.extui %40 : i1 to i32
    %c0_i32_23 = arith.constant 0 : i32
    %42 = arith.cmpi ne, %41, %c0_i32_23 : i32
    scf.if %42 {
      %cst_55 = arith.constant 0.000000e+00 : bf16
      %83 = vector.broadcast %cst_55 : bf16 to vector<200x128xbf16>
      %c600 = arith.constant 600 : index
      %c0_56 = arith.constant 0 : index
      %84 = vector.load %arg12[%c600, %c0_56] : memref<1000x128xbf16, #tpu.memory_space<vmem>>, vector<200x128xbf16>
      tpu.vector_store %arg12[%c600, %c0_56], %83 {strides = array<i32>} : memref<1000x128xbf16, #tpu.memory_space<vmem>>, vector<200x128xbf16>,
    } else {
    }
    %c4_i32 = arith.constant 4 : i32
    %43 = arith.addi %arg1, %c4_i32 : i32
    %c2_i32_24 = arith.constant 2 : i32
    %44 = arith.subi %43, %c2_i32_24 : i32
    %c0_i32_25 = arith.constant 0 : i32
    %45 = arith.cmpi sge, %44, %c0_i32_25 : i32
    %c8_i32_26 = arith.constant 8 : i32
    %46 = arith.cmpi slt, %44, %c8_i32_26 : i32
    %47 = arith.andi %45, %46 : i1
    %48 = arith.extui %47 : i1 to i32
    %c0_i32_27 = arith.constant 0 : i32
    %49 = arith.cmpi ne, %48, %c0_i32_27 : i32
    scf.if %49 {
      %c0_55 = arith.constant 0 : index
      %c0_56 = arith.constant 0 : index
      %c0_57 = arith.constant 0 : index
      %c0_58 = arith.constant 0 : index
      %83 = vector.load %arg6[%c0_55, %c0_56, %c0_57, %c0_58] : memref<1x1x8x256xbf16, #tpu.memory_space<vmem>>, vector<1x1x8x128xbf16>
      %84 = vector.shape_cast %83 : vector<1x1x8x128xbf16> to vector<8x128xbf16>
      %c800 = arith.constant 800 : index
      %c0_59 = arith.constant 0 : index
      %85 = vector.load %arg12[%c800, %c0_59] : memref<1000x128xbf16, #tpu.memory_space<vmem>>, vector<8x128xbf16>
      tpu.vector_store %arg12[%c800, %c0_59], %84 {strides = array<i32>} : memref<1000x128xbf16, #tpu.memory_space<vmem>>, vector<8x128xbf16>,
      %c0_60 = arith.constant 0 : index
      %c0_61 = arith.constant 0 : index
      %c0_62 = arith.constant 0 : index
      %c1 = arith.constant 1 : index
      %86 = vector.load %arg6[%c0_60, %c0_61, %c0_62, %c1] : memref<1x1x8x256xbf16, #tpu.memory_space<vmem>>, vector<1x1x8x128xbf16>
      %87 = vector.shape_cast %86 : vector<1x1x8x128xbf16> to vector<8x128xbf16>
      %c808 = arith.constant 808 : index
      %c0_63 = arith.constant 0 : index
      %88 = vector.load %arg12[%c808, %c0_63] : memref<1000x128xbf16, #tpu.memory_space<vmem>>, vector<8x128xbf16>
      tpu.vector_store %arg12[%c808, %c0_63], %87 {strides = array<i32>} : memref<1000x128xbf16, #tpu.memory_space<vmem>>, vector<8x128xbf16>,
      %c0_64 = arith.constant 0 : index
      %c0_65 = arith.constant 0 : index
      %c0_66 = arith.constant 0 : index
      %c2 = arith.constant 2 : index
      %89 = vector.load %arg6[%c0_64, %c0_65, %c0_66, %c2] : memref<1x1x8x256xbf16, #tpu.memory_space<vmem>>, vector<1x1x8x128xbf16>
      %90 = vector.shape_cast %89 : vector<1x1x8x128xbf16> to vector<8x128xbf16>
      %c816 = arith.constant 816 : index
      %c0_67 = arith.constant 0 : index
      %91 = vector.load %arg12[%c816, %c0_67] : memref<1000x128xbf16, #tpu.memory_space<vmem>>, vector<8x128xbf16>
      tpu.vector_store %arg12[%c816, %c0_67], %90 {strides = array<i32>} : memref<1000x128xbf16, #tpu.memory_space<vmem>>, vector<8x128xbf16>,
      %c0_68 = arith.constant 0 : index
      %c0_69 = arith.constant 0 : index
      %c0_70 = arith.constant 0 : index
      %c3 = arith.constant 3 : index
      %92 = vector.load %arg6[%c0_68, %c0_69, %c0_70, %c3] : memref<1x1x8x256xbf16, #tpu.memory_space<vmem>>, vector<1x1x8x128xbf16>
      %93 = vector.shape_cast %92 : vector<1x1x8x128xbf16> to vector<8x128xbf16>
      %c824 = arith.constant 824 : index
      %c0_71 = arith.constant 0 : index
      %94 = vector.load %arg12[%c824, %c0_71] : memref<1000x128xbf16, #tpu.memory_space<vmem>>, vector<8x128xbf16>
      tpu.vector_store %arg12[%c824, %c0_71], %93 {strides = array<i32>} : memref<1000x128xbf16, #tpu.memory_space<vmem>>, vector<8x128xbf16>,
      %c0_72 = arith.constant 0 : index
      %c0_73 = arith.constant 0 : index
      %c0_74 = arith.constant 0 : index
      %c4 = arith.constant 4 : index
      %95 = vector.load %arg6[%c0_72, %c0_73, %c0_74, %c4] : memref<1x1x8x256xbf16, #tpu.memory_space<vmem>>, vector<1x1x8x128xbf16>
      %96 = vector.shape_cast %95 : vector<1x1x8x128xbf16> to vector<8x128xbf16>
      %c832 = arith.constant 832 : index
      %c0_75 = arith.constant 0 : index
      %97 = vector.load %arg12[%c832, %c0_75] : memref<1000x128xbf16, #tpu.memory_space<vmem>>, vector<8x128xbf16>
      tpu.vector_store %arg12[%c832, %c0_75], %96 {strides = array<i32>} : memref<1000x128xbf16, #tpu.memory_space<vmem>>, vector<8x128xbf16>,
      %c0_76 = arith.constant 0 : index
      %c0_77 = arith.constant 0 : index
      %c0_78 = arith.constant 0 : index
      %c12 = arith.constant 12 : index
      %98 = vector.load %arg6[%c0_76, %c0_77, %c0_78, %c12] : memref<1x1x8x256xbf16, #tpu.memory_space<vmem>>, vector<1x1x8x128xbf16>
      %99 = vector.shape_cast %98 : vector<1x1x8x128xbf16> to vector<8x128xbf16>
      %c840 = arith.constant 840 : index
      %c0_79 = arith.constant 0 : index
      %100 = vector.load %arg12[%c840, %c0_79] : memref<1000x128xbf16, #tpu.memory_space<vmem>>, vector<8x128xbf16>
      tpu.vector_store %arg12[%c840, %c0_79], %99 {strides = array<i32>} : memref<1000x128xbf16, #tpu.memory_space<vmem>>, vector<8x128xbf16>,
      %c0_80 = arith.constant 0 : index
      %c0_81 = arith.constant 0 : index
      %c0_82 = arith.constant 0 : index
      %c13 = arith.constant 13 : index
      %101 = vector.load %arg6[%c0_80, %c0_81, %c0_82, %c13] : memref<1x1x8x256xbf16, #tpu.memory_space<vmem>>, vector<1x1x8x128xbf16>
      %102 = vector.shape_cast %101 : vector<1x1x8x128xbf16> to vector<8x128xbf16>
      %c848 = arith.constant 848 : index
      %c0_83 = arith.constant 0 : index
      %103 = vector.load %arg12[%c848, %c0_83] : memref<1000x128xbf16, #tpu.memory_space<vmem>>, vector<8x128xbf16>
      tpu.vector_store %arg12[%c848, %c0_83], %102 {strides = array<i32>} : memref<1000x128xbf16, #tpu.memory_space<vmem>>, vector<8x128xbf16>,
      %c0_84 = arith.constant 0 : index
      %c0_85 = arith.constant 0 : index
      %c0_86 = arith.constant 0 : index
      %c14 = arith.constant 14 : index
      %104 = vector.load %arg6[%c0_84, %c0_85, %c0_86, %c14] : memref<1x1x8x256xbf16, #tpu.memory_space<vmem>>, vector<1x1x8x128xbf16>
      %105 = vector.shape_cast %104 : vector<1x1x8x128xbf16> to vector<8x128xbf16>
      %c856 = arith.constant 856 : index
      %c0_87 = arith.constant 0 : index
      %106 = vector.load %arg12[%c856, %c0_87] : memref<1000x128xbf16, #tpu.memory_space<vmem>>, vector<8x128xbf16>
      tpu.vector_store %arg12[%c856, %c0_87], %105 {strides = array<i32>} : memref<1000x128xbf16, #tpu.memory_space<vmem>>, vector<8x128xbf16>,
      %c0_88 = arith.constant 0 : index
      %c0_89 = arith.constant 0 : index
      %c0_90 = arith.constant 0 : index
      %c15 = arith.constant 15 : index
      %107 = vector.load %arg6[%c0_88, %c0_89, %c0_90, %c15] : memref<1x1x8x256xbf16, #tpu.memory_space<vmem>>, vector<1x1x8x128xbf16>
      %108 = vector.shape_cast %107 : vector<1x1x8x128xbf16> to vector<8x128xbf16>
      %c864 = arith.constant 864 : index
      %c0_91 = arith.constant 0 : index
      %109 = vector.load %arg12[%c864, %c0_91] : memref<1000x128xbf16, #tpu.memory_space<vmem>>, vector<8x128xbf16>
      tpu.vector_store %arg12[%c864, %c0_91], %108 {strides = array<i32>} : memref<1000x128xbf16, #tpu.memory_space<vmem>>, vector<8x128xbf16>,
      %c0_92 = arith.constant 0 : index
      %c0_93 = arith.constant 0 : index
      %c0_94 = arith.constant 0 : index
      %c16 = arith.constant 16 : index
      %110 = vector.load %arg6[%c0_92, %c0_93, %c0_94, %c16] : memref<1x1x8x256xbf16, #tpu.memory_space<vmem>>, vector<1x1x8x128xbf16>
      %111 = vector.shape_cast %110 : vector<1x1x8x128xbf16> to vector<8x128xbf16>
      %c872 = arith.constant 872 : index
      %c0_95 = arith.constant 0 : index
      %112 = vector.load %arg12[%c872, %c0_95] : memref<1000x128xbf16, #tpu.memory_space<vmem>>, vector<8x128xbf16>
      tpu.vector_store %arg12[%c872, %c0_95], %111 {strides = array<i32>} : memref<1000x128xbf16, #tpu.memory_space<vmem>>, vector<8x128xbf16>,
      %c0_96 = arith.constant 0 : index
      %c0_97 = arith.constant 0 : index
      %c0_98 = arith.constant 0 : index
      %c24 = arith.constant 24 : index
      %113 = vector.load %arg6[%c0_96, %c0_97, %c0_98, %c24] : memref<1x1x8x256xbf16, #tpu.memory_space<vmem>>, vector<1x1x8x128xbf16>
      %114 = vector.shape_cast %113 : vector<1x1x8x128xbf16> to vector<8x128xbf16>
      %c880 = arith.constant 880 : index
      %c0_99 = arith.constant 0 : index
      %115 = vector.load %arg12[%c880, %c0_99] : memref<1000x128xbf16, #tpu.memory_space<vmem>>, vector<8x128xbf16>
      tpu.vector_store %arg12[%c880, %c0_99], %114 {strides = array<i32>} : memref<1000x128xbf16, #tpu.memory_space<vmem>>, vector<8x128xbf16>,
      %c0_100 = arith.constant 0 : index
      %c0_101 = arith.constant 0 : index
      %c0_102 = arith.constant 0 : index
      %c25 = arith.constant 25 : index
      %116 = vector.load %arg6[%c0_100, %c0_101, %c0_102, %c25] : memref<1x1x8x256xbf16, #tpu.memory_space<vmem>>, vector<1x1x8x128xbf16>
      %117 = vector.shape_cast %116 : vector<1x1x8x128xbf16> to vector<8x128xbf16>
      %c888 = arith.constant 888 : index
      %c0_103 = arith.constant 0 : index
      %118 = vector.load %arg12[%c888, %c0_103] : memref<1000x128xbf16, #tpu.memory_space<vmem>>, vector<8x128xbf16>
      tpu.vector_store %arg12[%c888, %c0_103], %117 {strides = array<i32>} : memref<1000x128xbf16, #tpu.memory_space<vmem>>, vector<8x128xbf16>,
      %c0_104 = arith.constant 0 : index
      %c0_105 = arith.constant 0 : index
      %c0_106 = arith.constant 0 : index
      %c26 = arith.constant 26 : index
      %119 = vector.load %arg6[%c0_104, %c0_105, %c0_106, %c26] : memref<1x1x8x256xbf16, #tpu.memory_space<vmem>>, vector<1x1x8x128xbf16>
      %120 = vector.shape_cast %119 : vector<1x1x8x128xbf16> to vector<8x128xbf16>
      %c896 = arith.constant 896 : index
      %c0_107 = arith.constant 0 : index
      %121 = vector.load %arg12[%c896, %c0_107] : memref<1000x128xbf16, #tpu.memory_space<vmem>>, vector<8x128xbf16>
      tpu.vector_store %arg12[%c896, %c0_107], %120 {strides = array<i32>} : memref<1000x128xbf16, #tpu.memory_space<vmem>>, vector<8x128xbf16>,
      %c0_108 = arith.constant 0 : index
      %c0_109 = arith.constant 0 : index
      %c0_110 = arith.constant 0 : index
      %c27 = arith.constant 27 : index
      %122 = vector.load %arg6[%c0_108, %c0_109, %c0_110, %c27] : memref<1x1x8x256xbf16, #tpu.memory_space<vmem>>, vector<1x1x8x128xbf16>
      %123 = vector.shape_cast %122 : vector<1x1x8x128xbf16> to vector<8x128xbf16>
      %c904 = arith.constant 904 : index
      %c0_111 = arith.constant 0 : index
      %124 = vector.load %arg12[%c904, %c0_111] : memref<1000x128xbf16, #tpu.memory_space<vmem>>, vector<8x128xbf16>
      tpu.vector_store %arg12[%c904, %c0_111], %123 {strides = array<i32>} : memref<1000x128xbf16, #tpu.memory_space<vmem>>, vector<8x128xbf16>,
      %c0_112 = arith.constant 0 : index
      %c0_113 = arith.constant 0 : index
      %c0_114 = arith.constant 0 : index
      %c28 = arith.constant 28 : index
      %125 = vector.load %arg6[%c0_112, %c0_113, %c0_114, %c28] : memref<1x1x8x256xbf16, #tpu.memory_space<vmem>>, vector<1x1x8x128xbf16>
      %126 = vector.shape_cast %125 : vector<1x1x8x128xbf16> to vector<8x128xbf16>
      %c912 = arith.constant 912 : index
      %c0_115 = arith.constant 0 : index
      %127 = vector.load %arg12[%c912, %c0_115] : memref<1000x128xbf16, #tpu.memory_space<vmem>>, vector<8x128xbf16>
      tpu.vector_store %arg12[%c912, %c0_115], %126 {strides = array<i32>} : memref<1000x128xbf16, #tpu.memory_space<vmem>>, vector<8x128xbf16>,
      %c0_116 = arith.constant 0 : index
      %c0_117 = arith.constant 0 : index
      %c0_118 = arith.constant 0 : index
      %c36 = arith.constant 36 : index
      %128 = vector.load %arg6[%c0_116, %c0_117, %c0_118, %c36] : memref<1x1x8x256xbf16, #tpu.memory_space<vmem>>, vector<1x1x8x128xbf16>
      %129 = vector.shape_cast %128 : vector<1x1x8x128xbf16> to vector<8x128xbf16>
      %c920 = arith.constant 920 : index
      %c0_119 = arith.constant 0 : index
      %130 = vector.load %arg12[%c920, %c0_119] : memref<1000x128xbf16, #tpu.memory_space<vmem>>, vector<8x128xbf16>
      tpu.vector_store %arg12[%c920, %c0_119], %129 {strides = array<i32>} : memref<1000x128xbf16, #tpu.memory_space<vmem>>, vector<8x128xbf16>,
      %c0_120 = arith.constant 0 : index
      %c0_121 = arith.constant 0 : index
      %c0_122 = arith.constant 0 : index
      %c37 = arith.constant 37 : index
      %131 = vector.load %arg6[%c0_120, %c0_121, %c0_122, %c37] : memref<1x1x8x256xbf16, #tpu.memory_space<vmem>>, vector<1x1x8x128xbf16>
      %132 = vector.shape_cast %131 : vector<1x1x8x128xbf16> to vector<8x128xbf16>
      %c928 = arith.constant 928 : index
      %c0_123 = arith.constant 0 : index
      %133 = vector.load %arg12[%c928, %c0_123] : memref<1000x128xbf16, #tpu.memory_space<vmem>>, vector<8x128xbf16>
      tpu.vector_store %arg12[%c928, %c0_123], %132 {strides = array<i32>} : memref<1000x128xbf16, #tpu.memory_space<vmem>>, vector<8x128xbf16>,
      %c0_124 = arith.constant 0 : index
      %c0_125 = arith.constant 0 : index
      %c0_126 = arith.constant 0 : index
      %c38 = arith.constant 38 : index
      %134 = vector.load %arg6[%c0_124, %c0_125, %c0_126, %c38] : memref<1x1x8x256xbf16, #tpu.memory_space<vmem>>, vector<1x1x8x128xbf16>
      %135 = vector.shape_cast %134 : vector<1x1x8x128xbf16> to vector<8x128xbf16>
      %c936 = arith.constant 936 : index
      %c0_127 = arith.constant 0 : index
      %136 = vector.load %arg12[%c936, %c0_127] : memref<1000x128xbf16, #tpu.memory_space<vmem>>, vector<8x128xbf16>
      tpu.vector_store %arg12[%c936, %c0_127], %135 {strides = array<i32>} : memref<1000x128xbf16, #tpu.memory_space<vmem>>, vector<8x128xbf16>,
      %c0_128 = arith.constant 0 : index
      %c0_129 = arith.constant 0 : index
      %c0_130 = arith.constant 0 : index
      %c39 = arith.constant 39 : index
      %137 = vector.load %arg6[%c0_128, %c0_129, %c0_130, %c39] : memref<1x1x8x256xbf16, #tpu.memory_space<vmem>>, vector<1x1x8x128xbf16>
      %138 = vector.shape_cast %137 : vector<1x1x8x128xbf16> to vector<8x128xbf16>
      %c944 = arith.constant 944 : index
      %c0_131 = arith.constant 0 : index
      %139 = vector.load %arg12[%c944, %c0_131] : memref<1000x128xbf16, #tpu.memory_space<vmem>>, vector<8x128xbf16>
      tpu.vector_store %arg12[%c944, %c0_131], %138 {strides = array<i32>} : memref<1000x128xbf16, #tpu.memory_space<vmem>>, vector<8x128xbf16>,
      %c0_132 = arith.constant 0 : index
      %c0_133 = arith.constant 0 : index
      %c0_134 = arith.constant 0 : index
      %c40 = arith.constant 40 : index
      %140 = vector.load %arg6[%c0_132, %c0_133, %c0_134, %c40] : memref<1x1x8x256xbf16, #tpu.memory_space<vmem>>, vector<1x1x8x128xbf16>
      %141 = vector.shape_cast %140 : vector<1x1x8x128xbf16> to vector<8x128xbf16>
      %c952 = arith.constant 952 : index
      %c0_135 = arith.constant 0 : index
      %142 = vector.load %arg12[%c952, %c0_135] : memref<1000x128xbf16, #tpu.memory_space<vmem>>, vector<8x128xbf16>
      tpu.vector_store %arg12[%c952, %c0_135], %141 {strides = array<i32>} : memref<1000x128xbf16, #tpu.memory_space<vmem>>, vector<8x128xbf16>,
      %c0_136 = arith.constant 0 : index
      %c0_137 = arith.constant 0 : index
      %c0_138 = arith.constant 0 : index
      %c48 = arith.constant 48 : index
      %143 = vector.load %arg6[%c0_136, %c0_137, %c0_138, %c48] : memref<1x1x8x256xbf16, #tpu.memory_space<vmem>>, vector<1x1x8x128xbf16>
      %144 = vector.shape_cast %143 : vector<1x1x8x128xbf16> to vector<8x128xbf16>
      %c960 = arith.constant 960 : index
      %c0_139 = arith.constant 0 : index
      %145 = vector.load %arg12[%c960, %c0_139] : memref<1000x128xbf16, #tpu.memory_space<vmem>>, vector<8x128xbf16>
      tpu.vector_store %arg12[%c960, %c0_139], %144 {strides = array<i32>} : memref<1000x128xbf16, #tpu.memory_space<vmem>>, vector<8x128xbf16>,
      %c0_140 = arith.constant 0 : index
      %c0_141 = arith.constant 0 : index
      %c0_142 = arith.constant 0 : index
      %c49 = arith.constant 49 : index
      %146 = vector.load %arg6[%c0_140, %c0_141, %c0_142, %c49] : memref<1x1x8x256xbf16, #tpu.memory_space<vmem>>, vector<1x1x8x128xbf16>
      %147 = vector.shape_cast %146 : vector<1x1x8x128xbf16> to vector<8x128xbf16>
      %c968 = arith.constant 968 : index
      %c0_143 = arith.constant 0 : index
      %148 = vector.load %arg12[%c968, %c0_143] : memref<1000x128xbf16, #tpu.memory_space<vmem>>, vector<8x128xbf16>
      tpu.vector_store %arg12[%c968, %c0_143], %147 {strides = array<i32>} : memref<1000x128xbf16, #tpu.memory_space<vmem>>, vector<8x128xbf16>,
      %c0_144 = arith.constant 0 : index
      %c0_145 = arith.constant 0 : index
      %c0_146 = arith.constant 0 : index
      %c50 = arith.constant 50 : index
      %149 = vector.load %arg6[%c0_144, %c0_145, %c0_146, %c50] : memref<1x1x8x256xbf16, #tpu.memory_space<vmem>>, vector<1x1x8x128xbf16>
      %150 = vector.shape_cast %149 : vector<1x1x8x128xbf16> to vector<8x128xbf16>
      %c976 = arith.constant 976 : index
      %c0_147 = arith.constant 0 : index
      %151 = vector.load %arg12[%c976, %c0_147] : memref<1000x128xbf16, #tpu.memory_space<vmem>>, vector<8x128xbf16>
      tpu.vector_store %arg12[%c976, %c0_147], %150 {strides = array<i32>} : memref<1000x128xbf16, #tpu.memory_space<vmem>>, vector<8x128xbf16>,
      %c0_148 = arith.constant 0 : index
      %c0_149 = arith.constant 0 : index
      %c0_150 = arith.constant 0 : index
      %c51 = arith.constant 51 : index
      %152 = vector.load %arg6[%c0_148, %c0_149, %c0_150, %c51] : memref<1x1x8x256xbf16, #tpu.memory_space<vmem>>, vector<1x1x8x128xbf16>
      %153 = vector.shape_cast %152 : vector<1x1x8x128xbf16> to vector<8x128xbf16>
      %c984 = arith.constant 984 : index
      %c0_151 = arith.constant 0 : index
      %154 = vector.load %arg12[%c984, %c0_151] : memref<1000x128xbf16, #tpu.memory_space<vmem>>, vector<8x128xbf16>
      tpu.vector_store %arg12[%c984, %c0_151], %153 {strides = array<i32>} : memref<1000x128xbf16, #tpu.memory_space<vmem>>, vector<8x128xbf16>,
      %c0_152 = arith.constant 0 : index
      %c0_153 = arith.constant 0 : index
      %c0_154 = arith.constant 0 : index
      %c52 = arith.constant 52 : index
      %155 = vector.load %arg6[%c0_152, %c0_153, %c0_154, %c52] : memref<1x1x8x256xbf16, #tpu.memory_space<vmem>>, vector<1x1x8x128xbf16>
      %156 = vector.shape_cast %155 : vector<1x1x8x128xbf16> to vector<8x128xbf16>
      %c992 = arith.constant 992 : index
      %c0_155 = arith.constant 0 : index
      %157 = vector.load %arg12[%c992, %c0_155] : memref<1000x128xbf16, #tpu.memory_space<vmem>>, vector<8x128xbf16>
      tpu.vector_store %arg12[%c992, %c0_155], %156 {strides = array<i32>} : memref<1000x128xbf16, #tpu.memory_space<vmem>>, vector<8x128xbf16>,
    } else {
    }
    %true_28 = arith.constant true
    %50 = arith.xori %47, %true_28 : i1
    %51 = arith.extui %50 : i1 to i32
    %c0_i32_29 = arith.constant 0 : i32
    %52 = arith.cmpi ne, %51, %c0_i32_29 : i32
    scf.if %52 {
      %cst_55 = arith.constant 0.000000e+00 : bf16
      %83 = vector.broadcast %cst_55 : bf16 to vector<200x128xbf16>
      %c800 = arith.constant 800 : index
      %c0_56 = arith.constant 0 : index
      %84 = vector.load %arg12[%c800, %c0_56] : memref<1000x128xbf16, #tpu.memory_space<vmem>>, vector<200x128xbf16>
      tpu.vector_store %arg12[%c800, %c0_56], %83 {strides = array<i32>} : memref<1000x128xbf16, #tpu.memory_space<vmem>>, vector<200x128xbf16>,
    } else {
    }
    %c0 = arith.constant 0 : index
    %c0_30 = arith.constant 0 : index
    %53 = vector.load %arg7[%c0, %c0_30] : memref<8x1000xbf16, #tpu.memory_space<vmem>>, vector<8x1000xbf16>
    %c0_31 = arith.constant 0 : index
    %c0_32 = arith.constant 0 : index
    %54 = vector.load %arg12[%c0_31, %c0_32] : memref<1000x128xbf16, #tpu.memory_space<vmem>>, vector<1000x128xbf16>
    %cst = arith.constant dense<0.000000e+00> : vector<8x128xf32>
    %55 = tpu.matmul %53, %54, %cst {dimension_numbers = #tpu.dot_dimension_numbers<[1], [0], [0], [1], [0, 0, 1, 1], [], []>} : vector<8x1000xbf16>, vector<1000x128xbf16>, vector<8x128xf32> -> vector<8x128xf32>
    %c0_33 = arith.constant 0 : index
    %c0_34 = arith.constant 0 : index
    %56 = vector.load %arg8[%c0_33, %c0_34] : memref<1x128xf32, #tpu.memory_space<vmem>>, vector<1x128xf32>
    %57 = vector.broadcast %56 : vector<1x128xf32> to vector<8x128xf32>
    %58 = arith.mulf %55, %57 : vector<8x128xf32>
    %c0_35 = arith.constant 0 : index
    %c0_36 = arith.constant 0 : index
    %c0_37 = arith.constant 0 : index
    %59 = vector.load %arg10[%c0_35, %c0_36, %c0_37] : memref<1x8x1xf32, #tpu.memory_space<vmem>>, vector<1x8x1xf32>
    %60 = vector.shape_cast %59 : vector<1x8x1xf32> to vector<8x1xf32>
    %cst_38 = arith.constant dense<0.000000e+00> : vector<8xf32>
    %61 = vector.multi_reduction <add>, %58, %cst_38 [1] : vector<8x128xf32> to vector<8xf32>
    %62 = vector.shape_cast %61 : vector<8xf32> to vector<8x1xf32>
    %63 = arith.addf %60, %62 : vector<8x1xf32>
    %c0_39 = arith.constant 0 : index
    %c0_40 = arith.constant 0 : index
    %c0_41 = arith.constant 0 : index
    %64 = vector.load %arg10[%c0_39, %c0_40, %c0_41] : memref<1x8x1xf32, #tpu.memory_space<vmem>>, vector<1x8x1xf32>
    %65 = vector.shape_cast %64 : vector<1x8x1xf32> to vector<8x1xf32>
    %66 = vector.shape_cast %63 : vector<8x1xf32> to vector<1x8x1xf32>
    tpu.vector_store %arg10[%c0_39, %c0_40, %c0_41], %66 {strides = array<i32>} : memref<1x8x1xf32, #tpu.memory_space<vmem>>, vector<1x8x1xf32>,
    %c0_42 = arith.constant 0 : index
    %c0_43 = arith.constant 0 : index
    %c0_44 = arith.constant 0 : index
    %67 = vector.load %arg11[%c0_42, %c0_43, %c0_44] : memref<1x8x1xf32, #tpu.memory_space<vmem>>, vector<1x8x1xf32>
    %68 = vector.shape_cast %67 : vector<1x8x1xf32> to vector<8x1xf32>
    %69 = arith.mulf %55, %58 : vector<8x128xf32>
    %cst_45 = arith.constant dense<0.000000e+00> : vector<8xf32>
    %70 = vector.multi_reduction <add>, %69, %cst_45 [1] : vector<8x128xf32> to vector<8xf32>
    %71 = vector.shape_cast %70 : vector<8xf32> to vector<8x1xf32>
    %72 = arith.addf %68, %71 : vector<8x1xf32>
    %c0_46 = arith.constant 0 : index
    %c0_47 = arith.constant 0 : index
    %c0_48 = arith.constant 0 : index
    %73 = vector.load %arg11[%c0_46, %c0_47, %c0_48] : memref<1x8x1xf32, #tpu.memory_space<vmem>>, vector<1x8x1xf32>
    %74 = vector.shape_cast %73 : vector<1x8x1xf32> to vector<8x1xf32>
    %75 = vector.shape_cast %72 : vector<8x1xf32> to vector<1x8x1xf32>
    tpu.vector_store %arg11[%c0_46, %c0_47, %c0_48], %75 {strides = array<i32>} : memref<1x8x1xf32, #tpu.memory_space<vmem>>, vector<1x8x1xf32>,
    %cst_49 = arith.constant 0.000000e+00 : f32
    %76 = vector.broadcast %cst_49 : f32 to vector<8x26xf32>
    %cst_50 = arith.constant 0.000000e+00 : f32
    %77 = vector.broadcast %cst_50 : f32 to vector<8x102xf32>
    %78 = tpu.concatenate %76, %55, %77 in 1 : vector<8x26xf32>, vector<8x128xf32>, vector<8x102xf32> -> vector<8x256xf32>
    %79 = arith.truncf %78 : vector<8x256xf32> to vector<8x256xbf16>
    %c0_51 = arith.constant 0 : index
    %c0_52 = arith.constant 0 : index
    %c0_53 = arith.constant 0 : index
    %c0_54 = arith.constant 0 : index
    %80 = vector.load %arg9[%c0_51, %c0_52, %c0_53, %c0_54] : memref<1x1x8x256xbf16, #tpu.memory_space<vmem>>, vector<1x1x8x256xbf16>
    %81 = vector.shape_cast %80 : vector<1x1x8x256xbf16> to vector<8x256xbf16>
    %82 = vector.shape_cast %79 : vector<8x256xbf16> to vector<1x1x8x256xbf16>
    tpu.vector_store %arg9[%c0_51, %c0_52, %c0_53, %c0_54], %82 {strides = array<i32>} : memref<1x1x8x256xbf16, #tpu.memory_space<vmem>>, vector<1x1x8x256xbf16>,
    return
  }
  func.func @transform_0(%arg0: i32, %arg1: i32) -> (i32, i32, i32, i32) {
    %c0_i32 = arith.constant 0 : i32
    %0 = arith.addi %arg1, %c0_i32 : i32
    %c2_i32 = arith.constant 2 : i32
    %1 = arith.subi %0, %c2_i32 : i32
    %c0_i32_0 = arith.constant 0 : i32
    %2 = arith.maxsi %1, %c0_i32_0 : i32
    %c7_i32 = arith.constant 7 : i32
    %3 = arith.minsi %2, %c7_i32 : i32
    %c0_i32_1 = arith.constant 0 : i32
    %c0_i32_2 = arith.constant 0 : i32
    %c0_i32_3 = arith.constant 0 : i32
    return %arg0, %3, %c0_i32_1, %c0_i32_2 : i32, i32, i32, i32
  }
  func.func @transform_1(%arg0: i32, %arg1: i32) -> (i32, i32, i32, i32) {
    %c1_i32 = arith.constant 1 : i32
    %0 = arith.addi %arg1, %c1_i32 : i32
    %c2_i32 = arith.constant 2 : i32
    %1 = arith.subi %0, %c2_i32 : i32
    %c0_i32 = arith.constant 0 : i32
    %2 = arith.maxsi %1, %c0_i32 : i32
    %c7_i32 = arith.constant 7 : i32
    %3 = arith.minsi %2, %c7_i32 : i32
    %c0_i32_0 = arith.constant 0 : i32
    %c0_i32_1 = arith.constant 0 : i32
    %c0_i32_2 = arith.constant 0 : i32
    return %arg0, %3, %c0_i32_0, %c0_i32_1 : i32, i32, i32, i32
  }
  func.func @transform_2(%arg0: i32, %arg1: i32) -> (i32, i32, i32, i32) {
    %c2_i32 = arith.constant 2 : i32
    %0 = arith.addi %arg1, %c2_i32 : i32
    %c2_i32_0 = arith.constant 2 : i32
    %1 = arith.subi %0, %c2_i32_0 : i32
    %c0_i32 = arith.constant 0 : i32
    %2 = arith.maxsi %1, %c0_i32 : i32
    %c7_i32 = arith.constant 7 : i32
    %3 = arith.minsi %2, %c7_i32 : i32
    %c0_i32_1 = arith.constant 0 : i32
    %c0_i32_2 = arith.constant 0 : i32
    %c0_i32_3 = arith.constant 0 : i32
    return %arg0, %3, %c0_i32_1, %c0_i32_2 : i32, i32, i32, i32
  }
  func.func @transform_3(%arg0: i32, %arg1: i32) -> (i32, i32, i32, i32) {
    %c3_i32 = arith.constant 3 : i32
    %0 = arith.addi %arg1, %c3_i32 : i32
    %c2_i32 = arith.constant 2 : i32
    %1 = arith.subi %0, %c2_i32 : i32
    %c0_i32 = arith.constant 0 : i32
    %2 = arith.maxsi %1, %c0_i32 : i32
    %c7_i32 = arith.constant 7 : i32
    %3 = arith.minsi %2, %c7_i32 : i32
    %c0_i32_0 = arith.constant 0 : i32
    %c0_i32_1 = arith.constant 0 : i32
    %c0_i32_2 = arith.constant 0 : i32
    return %arg0, %3, %c0_i32_0, %c0_i32_1 : i32, i32, i32, i32
  }
  func.func @transform_4(%arg0: i32, %arg1: i32) -> (i32, i32, i32, i32) {
    %c4_i32 = arith.constant 4 : i32
    %0 = arith.addi %arg1, %c4_i32 : i32
    %c2_i32 = arith.constant 2 : i32
    %1 = arith.subi %0, %c2_i32 : i32
    %c0_i32 = arith.constant 0 : i32
    %2 = arith.maxsi %1, %c0_i32 : i32
    %c7_i32 = arith.constant 7 : i32
    %3 = arith.minsi %2, %c7_i32 : i32
    %c0_i32_0 = arith.constant 0 : i32
    %c0_i32_1 = arith.constant 0 : i32
    %c0_i32_2 = arith.constant 0 : i32
    return %arg0, %3, %c0_i32_0, %c0_i32_1 : i32, i32, i32, i32
  }
  func.func @transform_5(%arg0: i32, %arg1: i32) -> (i32, i32) {
    %c0_i32 = arith.constant 0 : i32
    %c0_i32_0 = arith.constant 0 : i32
    %c0_i32_1 = arith.constant 0 : i32
    return %c0_i32, %c0_i32_0 : i32, i32
  }
  func.func @transform_6(%arg0: i32, %arg1: i32) -> (i32, i32) {
    %c0_i32 = arith.constant 0 : i32
    %c0_i32_0 = arith.constant 0 : i32
    %c0_i32_1 = arith.constant 0 : i32
    return %c0_i32, %c0_i32_0 : i32, i32
  }
  func.func @transform_7(%arg0: i32, %arg1: i32) -> (i32, i32, i32, i32) {
    %c0_i32 = arith.constant 0 : i32
    %c0_i32_0 = arith.constant 0 : i32
    %c0_i32_1 = arith.constant 0 : i32
    return %arg0, %arg1, %c0_i32, %c0_i32_0 : i32, i32, i32, i32
  }
  func.func @transform_8(%arg0: i32, %arg1: i32) -> (i32, i32, i32) {
    %c0_i32 = arith.constant 0 : i32
    %c0_i32_0 = arith.constant 0 : i32
    %c0_i32_1 = arith.constant 0 : i32
    return %arg0, %c0_i32, %c0_i32_0 : i32, i32, i32
  }
  func.func @transform_9(%arg0: i32, %arg1: i32) -> (i32, i32, i32) {
    %c0_i32 = arith.constant 0 : i32
    %c0_i32_0 = arith.constant 0 : i32
    %c0_i32_1 = arith.constant 0 : i32
    return %arg0, %c0_i32, %c0_i32_0 : i32, i32, i32
  }
}

module attributes {stable_mosaic.version = 11 : i64} {
  func.func @_bn_act_kernel(%arg0: i32, %arg1: i32, %arg2: memref<1x8x8x256xbf16, #tpu.memory_space<vmem>>, %arg3: memref<1x8x8x256xbf16, #tpu.memory_space<vmem>>, %arg4: memref<8x1xf32, #tpu.memory_space<vmem>>, %arg5: memref<8x1xf32, #tpu.memory_space<vmem>>, %arg6: memref<1x256xf32, #tpu.memory_space<vmem>>, %arg7: memref<1x8x8x256xf32, #tpu.memory_space<vmem>>) attributes {dimension_semantics = [#tpu.dimension_semantics<parallel>, #tpu.dimension_semantics<parallel>], iteration_bounds = array<i64: 2, 1>, scalar_prefetch = 0 : i64, scratch_operands = 0 : i64, tpu.core_type = #tpu.core_type<tc>, window_params = [{transform_indices = @transform_0, window_bounds = array<i64: 1, 8, 8, 256>}, {transform_indices = @transform_1, window_bounds = array<i64: 1, 8, 8, 256>}, {pipeline_mode = #tpu.pipeline_mode<synchronous>, transform_indices = @transform_2, window_bounds = array<i64: 8, 1>}, {pipeline_mode = #tpu.pipeline_mode<synchronous>, transform_indices = @transform_3, window_bounds = array<i64: 8, 1>}, {pipeline_mode = #tpu.pipeline_mode<synchronous>, transform_indices = @transform_4, window_bounds = array<i64: 1, 256>}, {transform_indices = @transform_5, window_bounds = array<i64: 1, 8, 8, 256>}]} {
    %c0 = arith.constant 0 : index
    %c0_0 = arith.constant 0 : index
    %c0_1 = arith.constant 0 : index
    %c0_2 = arith.constant 0 : index
    %0 = vector.load %arg2[%c0, %c0_0, %c0_1, %c0_2] : memref<1x8x8x256xbf16, #tpu.memory_space<vmem>>, vector<1x8x8x256xbf16>
    %1 = vector.shape_cast %0 : vector<1x8x8x256xbf16> to vector<8x8x256xbf16>
    %2 = arith.extf %1 : vector<8x8x256xbf16> to vector<8x8x256xf32>
    %c0_3 = arith.constant 0 : index
    %c0_4 = arith.constant 0 : index
    %3 = vector.load %arg4[%c0_3, %c0_4] : memref<8x1xf32, #tpu.memory_space<vmem>>, vector<8x1xf32>
    %4 = vector.shape_cast %3 : vector<8x1xf32> to vector<1x8x1xf32>
    %5 = vector.broadcast %4 : vector<1x8x1xf32> to vector<8x8x256xf32>
    %6 = arith.mulf %2, %5 : vector<8x8x256xf32>
    %c0_5 = arith.constant 0 : index
    %c0_6 = arith.constant 0 : index
    %7 = vector.load %arg5[%c0_5, %c0_6] : memref<8x1xf32, #tpu.memory_space<vmem>>, vector<8x1xf32>
    %8 = vector.shape_cast %7 : vector<8x1xf32> to vector<1x8x1xf32>
    %9 = vector.broadcast %8 : vector<1x8x1xf32> to vector<8x8x256xf32>
    %10 = arith.addf %6, %9 : vector<8x8x256xf32>
    %cst = arith.constant 0.000000e+00 : f32
    %11 = vector.broadcast %cst : f32 to vector<8x8x256xf32>
    %12 = arith.cmpf ogt, %10, %11 : vector<8x8x256xf32>
    %13 = math.exp %10 : vector<8x8x256xf32>
    %cst_7 = arith.constant 1.000000e+00 : f32
    %14 = vector.broadcast %cst_7 : f32 to vector<8x8x256xf32>
    %15 = arith.subf %13, %14 : vector<8x8x256xf32>
    %16 = arith.select %12, %10, %15 : vector<8x8x256xi1>, vector<8x8x256xf32>
    %c0_8 = arith.constant 0 : index
    %c0_9 = arith.constant 0 : index
    %c0_10 = arith.constant 0 : index
    %c0_11 = arith.constant 0 : index
    %17 = vector.load %arg3[%c0_8, %c0_9, %c0_10, %c0_11] : memref<1x8x8x256xbf16, #tpu.memory_space<vmem>>, vector<1x8x8x256xbf16>
    %18 = vector.shape_cast %17 : vector<1x8x8x256xbf16> to vector<8x8x256xbf16>
    %19 = arith.extf %18 : vector<8x8x256xbf16> to vector<8x8x256xf32>
    %20 = arith.addf %16, %19 : vector<8x8x256xf32>
    %cst_12 = arith.constant 0.000000e+00 : f32
    %21 = vector.broadcast %cst_12 : f32 to vector<8x8x256xf32>
    %22 = arith.cmpf ogt, %20, %21 : vector<8x8x256xf32>
    %23 = math.exp %20 : vector<8x8x256xf32>
    %cst_13 = arith.constant 1.000000e+00 : f32
    %24 = vector.broadcast %cst_13 : f32 to vector<8x8x256xf32>
    %25 = arith.subf %23, %24 : vector<8x8x256xf32>
    %26 = arith.select %22, %20, %25 : vector<8x8x256xi1>, vector<8x8x256xf32>
    %c0_14 = arith.constant 0 : index
    %c0_15 = arith.constant 0 : index
    %27 = vector.load %arg6[%c0_14, %c0_15] : memref<1x256xf32, #tpu.memory_space<vmem>>, vector<1x256xf32>
    %28 = vector.shape_cast %27 : vector<1x256xf32> to vector<1x1x256xf32>
    %29 = vector.broadcast %28 : vector<1x1x256xf32> to vector<8x8x256xf32>
    %30 = arith.mulf %26, %29 : vector<8x8x256xf32>
    %c0_16 = arith.constant 0 : index
    %c0_17 = arith.constant 0 : index
    %c0_18 = arith.constant 0 : index
    %c0_19 = arith.constant 0 : index
    %31 = vector.load %arg7[%c0_16, %c0_17, %c0_18, %c0_19] : memref<1x8x8x256xf32, #tpu.memory_space<vmem>>, vector<1x8x8x256xf32>
    %32 = vector.shape_cast %31 : vector<1x8x8x256xf32> to vector<8x8x256xf32>
    %33 = vector.shape_cast %30 : vector<8x8x256xf32> to vector<1x8x8x256xf32>
    tpu.vector_store %arg7[%c0_16, %c0_17, %c0_18, %c0_19], %33 {strides = array<i32>} : memref<1x8x8x256xf32, #tpu.memory_space<vmem>>, vector<1x8x8x256xf32>,
    return
  }
  func.func @transform_0(%arg0: i32, %arg1: i32) -> (i32, i32, i32, i32) {
    %c0_i32 = arith.constant 0 : i32
    %c0_i32_0 = arith.constant 0 : i32
    %c0_i32_1 = arith.constant 0 : i32
    return %arg0, %arg1, %c0_i32, %c0_i32_0 : i32, i32, i32, i32
  }
  func.func @transform_1(%arg0: i32, %arg1: i32) -> (i32, i32, i32, i32) {
    %c0_i32 = arith.constant 0 : i32
    %c0_i32_0 = arith.constant 0 : i32
    %c0_i32_1 = arith.constant 0 : i32
    return %arg0, %arg1, %c0_i32, %c0_i32_0 : i32, i32, i32, i32
  }
  func.func @transform_2(%arg0: i32, %arg1: i32) -> (i32, i32) {
    %c0_i32 = arith.constant 0 : i32
    %c0_i32_0 = arith.constant 0 : i32
    %c0_i32_1 = arith.constant 0 : i32
    return %c0_i32, %c0_i32_0 : i32, i32
  }
  func.func @transform_3(%arg0: i32, %arg1: i32) -> (i32, i32) {
    %c0_i32 = arith.constant 0 : i32
    %c0_i32_0 = arith.constant 0 : i32
    %c0_i32_1 = arith.constant 0 : i32
    return %c0_i32, %c0_i32_0 : i32, i32
  }
  func.func @transform_4(%arg0: i32, %arg1: i32) -> (i32, i32) {
    %c0_i32 = arith.constant 0 : i32
    %c0_i32_0 = arith.constant 0 : i32
    %c0_i32_1 = arith.constant 0 : i32
    return %c0_i32, %c0_i32_0 : i32, i32
  }
  func.func @transform_5(%arg0: i32, %arg1: i32) -> (i32, i32, i32, i32) {
    %c0_i32 = arith.constant 0 : i32
    %c0_i32_0 = arith.constant 0 : i32
    %c0_i32_1 = arith.constant 0 : i32
    return %arg0, %arg1, %c0_i32, %c0_i32_0 : i32, i32, i32, i32
  }
}

</mosaic_0001>

<bundles_post_ra>
// kernel: down_transition_forward.7
= control target key start
LH: loop header
LB: loop body
LE: loop exit
PB: predicated region body
PF: predicated region fallthrough
CT: control target
= control target key end

     0   :  { %s739_s15 = smov 0   ;;  %s741_s16 = smov 0   ;;  %s964_s0 = inlined_call_operand.vmem [shape: bf16[2,8,8,256], index: 0, kind: input, shape index: {}]   ;;  %s965_s1 = inlined_call_operand.vmem [shape: f32[8,1], index: 1, kind: input, shape index: {}]   ;;  %s966_s2 = inlined_call_operand.vmem [shape: f32[8,1], index: 2, kind: input, shape index: {}]   ;;  %s967_s3 = inlined_call_operand.vmem [shape: f32[1,256], index: 3, kind: input, shape index: {}]   ;;  %s968_s4 = inlined_call_operand.vmem [shape: bf16[2,8,8,256], index: 4, kind: output, shape index: {}]  }
   0x1   :  { %s743_s17 = smov 0  }
   0x2 LB: > { %s26_s18 = sadd.s32 1, %s707_s16  ;;  %p590_p0 = scmp.ge.s32.totalorder %s711_s17, 1  ;;  %s711_s17 = sphi %s743_s17, %s14_s17   ;;  %s707_s16 = sphi %s741_s16, %s970_s16   ;;  %s703_s15 = sphi %s739_s15, %s969_s15  }
   0x3   : > { %p28_p1 = scmp.ge.s32.totalorder %s26_s18, 2  ;;  %p184_p2 = scmp.lt.s32.totalorder %s711_s17, 3 }
   0x5   : > { %s972_s18 = smov (%p28_p1, %s26_s18), 0  ;;  %p185_p3 = pnand %p590_p0, %p184_p2 }
   0x6   : > { %p221_p4 = scmp.lt.s32.totalorder (!%p185_p3), %s703_s15, 1 }
   0x7   : > { %188 = sbr.rel (%p185_p3) target bundleno = 183 (0xb7), region = 36 }
   0xc   : > { %v266_v0 = vld [vmem:[%s965_s1] sm:$0xff]  ;;  %v713_v1 = vmov 0   ;;  %s974_s15 = smov (!%p221_p4, %s703_s15), 1  ;;  %v392_v6 = vlaneseq }
   0xd   : > { %656 = vset.pattern.permute.xlu0 %v713_v1  ;;  %v288_v2 = vld [vmem:[%s966_s2] sm:$0xff]  ;;  %s621_s23 = sshll.u32 %s974_s15, 6 }
   0xe   : > { %269 = vperm.xlu0 %656, %v266_v0   ;;  %s229_s26 = scalar_lea.vmem %s964_s0, %s621_s23  ;;  %v773_v15 = vshrl.u32 %v392_v6, 7  ;;  %s891_s5 = scalar_lea.vmem %s968_s4, %s621_s23 }
   0xf   : > { %v242_v4 = vld [vmem:[%s229_s26] sm:$0xff]  ;;  %v243_v5 = vld [vmem:[%s229_s26 + $0x8] sm:$0xff]  ;;  %v244_v7 = vld [vmem:[%s229_s26 + $0x10] sm:$0xff] }
  0x10   : > { %v250_v8 = vunpack.c.l.bf16 %v242_v4  ;;  %v251_v9 = vunpack.c.h.bf16 %v242_v4  ;;  %v252_v10 = vunpack.c.l.bf16 %v243_v5  ;;  %v245_v11 = vld [vmem:[%s229_s26 + $0x18] sm:$0xff]  ;;  %v253_v12 = vunpack.c.h.bf16 %v243_v5  ;;  %v246_v13 = vld [vmem:[%s229_s26 + $0x20] sm:$0xff]  ;;  %v247_v18 = vld [vmem:[%s229_s26 + $0x28] sm:$0xff] }
  0x11   : > { %v254_v14 = vunpack.c.l.bf16 %v244_v7  ;;  %v255_v17 = vunpack.c.h.bf16 %v244_v7  ;;  %v256_v19 = vunpack.c.l.bf16 %v245_v11  ;;  %v248_v23 = vld [vmem:[%s229_s26 + $0x30] sm:$0xff]  ;;  %v257_v24 = vunpack.c.h.bf16 %v245_v11  ;;  %v249_v28 = vld [vmem:[%s229_s26 + $0x38] sm:$0xff] }
  0x12   : > { %291 = vperm.xlu0 %656, %v288_v2   ;;  %v258_v25 = vunpack.c.l.bf16 %v246_v13  ;;  %v259_v26 = vunpack.c.h.bf16 %v246_v13  ;;  %v260_v33 = vunpack.c.l.bf16 %v247_v18  ;;  %v261_v34 = vunpack.c.h.bf16 %v247_v18 }
  0x13   : > { %v262_v37 = vunpack.c.l.bf16 %v248_v23  ;;  %v263_v38 = vunpack.c.h.bf16 %v248_v23  ;;  %v264_v41 = vunpack.c.l.bf16 %v249_v28  ;;  %v265_v49 = vunpack.c.h.bf16 %v249_v28 }
  0x14   : > { %v398_v13 = vsub.s32 1, %v773_v15 }
  0x89   : > { %v771_v3 = vpop.permute.xlu0 %269 }
  0x8a   : > { %v272_v20 = vmul.f32 %v771_v3, %v250_v8  ;;  %v273_v21 = vmul.f32 %v771_v3, %v251_v9  ;;  %v274_v22 = vmul.f32 %v771_v3, %v252_v10  ;;  %v275_v27 = vmul.f32 %v771_v3, %v253_v12 }
  0x8b   : > { %v276_v29 = vmul.f32 %v771_v3, %v254_v14  ;;  %v277_v35 = vmul.f32 %v771_v3, %v255_v17  ;;  %v278_v39 = vmul.f32 %v771_v3, %v256_v19  ;;  %v279_v42 = vmul.f32 %v771_v3, %v257_v24  ;;  %v390_v17 = vld [vmem:[%s967_s3] sm:$0x3] }
  0x8c   : > { %v280_v43 = vmul.f32 %v771_v3, %v258_v25  ;;  %v281_v50 = vmul.f32 %v771_v3, %v259_v26  ;;  %v282_v53 = vmul.f32 %v771_v3, %v260_v33  ;;  %v283_v56 = vmul.f32 %v771_v3, %v261_v34 }
  0x8d   : > { %v775_v16 = vpop.permute.xlu0 %291  ;;  %v284_v59 = vmul.f32 %v771_v3, %v262_v37  ;;  %v285_v62 = vmul.f32 %v771_v3, %v263_v38  ;;  %v286_v1 = vmul.f32 %v771_v3, %v264_v41  ;;  %v287_v5 = vmul.f32 %v771_v3, %v265_v49 }
  0x8e   : > { %v783_v30 = vadd.f32 %v775_v16, %v272_v20  ;;  %v786_v31 = vadd.f32 %v775_v16, %v273_v21  ;;  %v789_v32 = vadd.f32 %v775_v16, %v274_v22  ;;  %v793_v36 = vadd.f32 %v775_v16, %v275_v27 }
  0x8f   : > { %v797_v40 = vadd.f32 %v775_v16, %v276_v29  ;;  %v802_v44 = vadd.f32 %v775_v16, %v277_v35  ;;  %v805_v45 = vadd.f32 %v775_v16, %v278_v39  ;;  %v812_v51 = vadd.f32 %v775_v16, %v279_v42 }
  0x90   : > { %v326_v46 = vmul.f32 1.442695, %v783_v30  ;;  %v328_v47 = vmul.f32 1.442695, %v786_v31  ;;  %v330_v48 = vmul.f32 1.442695, %v789_v32  ;;  %v817_v54 = vadd.f32 %v775_v16, %v280_v43 }
  0x91   : > { %v332_v52 = vmul.f32 1.442695, %v793_v36  ;;  %v334_v55 = vmul.f32 1.442695, %v797_v40  ;;  %v822_v57 = vadd.f32 %v775_v16, %v281_v50  ;;  %v336_v58 = vmul.f32 1.442695, %v802_v44 }
  0x92   : > { %657 = vpow2.f32 %v326_v46  ;;  %v827_v60 = vadd.f32 %v775_v16, %v282_v53  ;;  %v338_v61 = vmul.f32 1.442695, %v805_v45  ;;  %v832_v63 = vadd.f32 %v775_v16, %v283_v56 }
  0x93   : > { %659 = vpow2.f32 %v328_v47  ;;  %v340_v0 = vmul.f32 1.442695, %v812_v51  ;;  %v837_v2 = vadd.f32 %v775_v16, %v284_v59  ;;  %v342_v4 = vmul.f32 1.442695, %v817_v54 }
  0x94   : > { %661 = vpow2.f32 %v330_v48  ;;  %v842_v6 = vadd.f32 %v775_v16, %v285_v62  ;;  %v344_v7 = vmul.f32 1.442695, %v822_v57  ;;  %v846_v8 = vadd.f32 %v775_v16, %v286_v1 }
  0x95   : > { %663 = vpow2.f32 %v332_v52  ;;  %v346_v9 = vmul.f32 1.442695, %v827_v60  ;;  %v850_v10 = vadd.f32 %v775_v16, %v287_v5  ;;  %v348_v11 = vmul.f32 1.442695, %v832_v63 }
  0x96   : > { %665 = vpow2.f32 %v334_v55  ;;  %v350_v3 = vmul.f32 1.442695, %v837_v2  ;;  %v394_v12 = vsub.s32 0, %v773_v15  ;;  %v352_v14 = vmul.f32 1.442695, %v842_v6 }
  0x97   : > { %667 = vpow2.f32 %v336_v58  ;;  %v354_v16 = vmul.f32 1.442695, %v846_v8  ;;  %v356_v18 = vmul.f32 1.442695, %v850_v10  ;;  %v864_v21 = vrot.slane %v390_v17, %v398_v13 }
  0x98   : > { %669 = vpow2.f32 %v338_v61  ;;  %v862_v20 = vrot.slane %v390_v17, %v394_v12  ;;  %vm310_vm0 = vcmp.gt.f32.partialorder %v783_v30, 0.0  ;;  %vm311_vm1 = vcmp.gt.f32.partialorder %v786_v31, 0.0 }
  0x99   : > { %671 = vpow2.f32 %v340_v0  ;;  %vm312_vm2 = vcmp.gt.f32.partialorder %v789_v32, 0.0  ;;  %vm313_vm3 = vcmp.gt.f32.partialorder %v793_v36, 0.0  ;;  %vm314_vm4 = vcmp.gt.f32.partialorder %v797_v40, 0.0 }
  0x9a   : > { %673 = vpow2.f32 %v342_v4  ;;  %vm315_vm5 = vcmp.gt.f32.partialorder %v802_v44, 0.0  ;;  %vm316_vm6 = vcmp.gt.f32.partialorder %v805_v45, 0.0  ;;  %vm317_vm7 = vcmp.gt.f32.partialorder %v812_v51, 0.0 }
  0x9b   : > { %675 = vpow2.f32 %v344_v7  ;;  %vm318_vm8 = vcmp.gt.f32.partialorder %v817_v54, 0.0  ;;  %vm319_vm9 = vcmp.gt.f32.partialorder %v822_v57, 0.0  ;;  %vm320_vm10 = vcmp.gt.f32.partialorder %v827_v60, 0.0 }
  0x9c   : > { %677 = vpow2.f32 %v346_v9  ;;  %vm321_vm11 = vcmp.gt.f32.partialorder %v832_v63, 0.0  ;;  %vm322_vm12 = vcmp.gt.f32.partialorder %v837_v2, 0.0  ;;  %vm323_vm13 = vcmp.gt.f32.partialorder %v842_v6, 0.0 }
  0x9d   : > { %679 = vpow2.f32 %v348_v11  ;;  %vm324_vm14 = vcmp.gt.f32.partialorder %v846_v8, 0.0  ;;  %vm325_vm15 = vcmp.gt.f32.partialorder %v850_v10, 0.0 }
  0x9e   : > { %681 = vpow2.f32 %v350_v3 }
  0x9f   : > { %v658_v19 = vpop.eup %657  ;;  %683 = vpow2.f32 %v352_v14 }
  0xa0   : > { %v660_v15 = vpop.eup %659  ;;  %685 = vpow2.f32 %v354_v16  ;;  %v595_v22 = vadd.f32 -1.0, %v658_v19 }
  0xa1   : > { %v662_v23 = vpop.eup %661  ;;  %687 = vpow2.f32 %v356_v18  ;;  %v596_v24 = vadd.f32 -1.0, %v660_v15 }
  0xa2   : > { %v664_v25 = vpop.eup %663  ;;  %v597_v26 = vadd.f32 -1.0, %v662_v23  ;;  %v374_v27 = vsel %vm310_vm0, %v783_v30, %v595_v22 }
  0xa3   : > { %v666_v28 = vpop.eup %665  ;;  %v598_v29 = vadd.f32 -1.0, %v664_v25  ;;  %v375_v33 = vsel %vm311_vm1, %v786_v31, %v596_v24  ;;  %v402_v34 = vmul.f32 %v862_v20, %v374_v27 }
  0xa4   : > { %v668_v35 = vpop.eup %667  ;;  %v599_v37 = vadd.f32 -1.0, %v666_v28  ;;  %v376_v38 = vsel %vm312_vm2, %v789_v32, %v597_v26  ;;  %v403_v30 = vmul.f32 %v864_v21, %v375_v33 }
  0xa5   : > { %v670_v39 = vpop.eup %669  ;;  %v600_v31 = vadd.f32 -1.0, %v668_v35  ;;  %v377_v41 = vsel %vm313_vm3, %v793_v36, %v598_v29  ;;  %v404_v42 = vmul.f32 %v862_v20, %v376_v38 }
  0xa6   : > { %v672_v32 = vpop.eup %671  ;;  %v601_v43 = vadd.f32 -1.0, %v670_v39  ;;  %v378_v46 = vsel %vm314_vm4, %v797_v40, %v599_v37  ;;  %v405_v47 = vmul.f32 %v864_v21, %v377_v41  ;;  %v623_v48 = vpack.c.bf16 %v403_v30, %v402_v34 }
  0xa7   : > { %v674_v49 = vpop.eup %673  ;;  %v602_v50 = vadd.f32 -1.0, %v672_v32  ;;  %v379_v36 = vsel %vm315_vm5, %v802_v44, %v600_v31  ;;  %v406_v52 = vmul.f32 %v862_v20, %v378_v46 }
  0xa8   : > { %v676_v53 = vpop.eup %675  ;;  %v603_v55 = vadd.f32 -1.0, %v674_v49  ;;  %v380_v40 = vsel %vm316_vm6, %v805_v45, %v601_v43  ;;  %v407_v56 = vmul.f32 %v864_v21, %v379_v36  ;;  %v624_v58 = vpack.c.bf16 %v405_v47, %v404_v42  ;;  %482 = vst [vmem:[%s891_s5] sm:$0xff] %v623_v48 }
  0xa9   : > { %v678_v59 = vpop.eup %677  ;;  %v604_v61 = vadd.f32 -1.0, %v676_v53  ;;  %v381_v44 = vsel %vm317_vm7, %v812_v51, %v602_v50  ;;  %v408_v62 = vmul.f32 %v862_v20, %v380_v40 }
  0xaa   : > { %v680_v0 = vpop.eup %679  ;;  %v605_v1 = vadd.f32 -1.0, %v678_v59  ;;  %v382_v45 = vsel %vm318_vm8, %v817_v54, %v603_v55  ;;  %v409_v4 = vmul.f32 %v864_v21, %v381_v44  ;;  %v625_v5 = vpack.c.bf16 %v407_v56, %v406_v52  ;;  %483 = vst [vmem:[%s891_s5 + $0x8] sm:$0xff] %v624_v58 }
  0xab   : > { %v682_v7 = vpop.eup %681  ;;  %v606_v9 = vadd.f32 -1.0, %v680_v0  ;;  %v383_v51 = vsel %vm319_vm9, %v822_v57, %v604_v61  ;;  %v410_v11 = vmul.f32 %v862_v20, %v382_v45 }
  0xac   : > { %v684_v3 = vpop.eup %683  ;;  %v607_v12 = vadd.f32 -1.0, %v682_v7  ;;  %v384_v54 = vsel %vm320_vm10, %v827_v60, %v605_v1  ;;  %v411_v13 = vmul.f32 %v864_v21, %v383_v51  ;;  %v626_v14 = vpack.c.bf16 %v409_v4, %v408_v62  ;;  %484 = vst [vmem:[%s891_s5 + $0x10] sm:$0xff] %v625_v5 }
  0xad   : > { %v686_v17 = vpop.eup %685  ;;  %v608_v16 = vadd.f32 -1.0, %v684_v3  ;;  %v385_v57 = vsel %vm321_vm11, %v832_v63, %v606_v9  ;;  %v412_v18 = vmul.f32 %v862_v20, %v384_v54 }
  0xae   : > { %v688_v19 = vpop.eup %687  ;;  %v609_v15 = vadd.f32 -1.0, %v686_v17  ;;  %v386_v60 = vsel %vm322_vm12, %v837_v2, %v607_v12  ;;  %v413_v22 = vmul.f32 %v864_v21, %v385_v57  ;;  %v627_v23 = vpack.c.bf16 %v411_v13, %v410_v11  ;;  %485 = vst [vmem:[%s891_s5 + $0x18] sm:$0xff] %v626_v14 }
  0xaf   : > { %v610_v24 = vadd.f32 -1.0, %v688_v19  ;;  %v387_v63 = vsel %vm323_vm13, %v842_v6, %v608_v16  ;;  %v414_v25 = vmul.f32 %v862_v20, %v386_v60 }
  0xb0   : > { %v388_v26 = vsel %vm324_vm14, %v846_v8, %v609_v15  ;;  %v415_v2 = vmul.f32 %v864_v21, %v387_v63  ;;  %v628_v27 = vpack.c.bf16 %v413_v22, %v412_v18  ;;  %486 = vst [vmem:[%s891_s5 + $0x20] sm:$0xff] %v627_v23 }
  0xb1   : > { %v389_v28 = vsel %vm325_vm15, %v850_v10, %v610_v24  ;;  %v416_v29 = vmul.f32 %v862_v20, %v388_v26 }
  0xb2   : > { %v417_v33 = vmul.f32 %v864_v21, %v389_v28  ;;  %v629_v34 = vpack.c.bf16 %v415_v2, %v414_v25  ;;  %487 = vst [vmem:[%s891_s5 + $0x28] sm:$0xff] %v628_v27 }
  0xb4   : > { %v630_v35 = vpack.c.bf16 %v417_v33, %v416_v29  ;;  %488 = vst [vmem:[%s891_s5 + $0x30] sm:$0xff] %v629_v34 }
  0xb6   : > { %489 = vst [vmem:[%s891_s5 + $0x38] sm:$0xff] %v630_v35 }
  0xb7 PF: > { %s14_s17 = sadd.s32 1, %s711_s17   ;;  %s969_s15 = smov %s707_s16 }
  0xb8   : > { %p11_p5 = scmp.ge.s32.totalorder %s14_s17, 4   ;;  %s970_s16 = smov %s972_s18 }
  0xba   :  { %13 = sbr.rel (!%p11_p5) target bundleno = 2 (0x2), region = 66 }

// kernel: down_transition_forward.6
= control target key start
LH: loop header
LB: loop body
LE: loop exit
PB: predicated region body
PF: predicated region fallthrough
CT: control target
= control target key end

     0   :  { %s1556_s24 = smov 0   ;;  %s1558_s25 = smov 0   ;;  %s1730_s0 = inlined_call_operand.vmem [shape: bf16[2,8,4,4,256], index: 0, kind: input, shape index: {}, may-alias: {0,1,2}]   ;;  %s1731_s1 = inlined_call_operand.vmem [shape: bf16[2,8,4,4,256], index: 1, kind: input, shape index: {}, may-alias: {0,1,2}]   ;;  %s1732_s2 = inlined_call_operand.vmem [shape: bf16[2,8,4,4,256], index: 2, kind: input, shape index: {}, may-alias: {0,1,2}]   ;;  %s1733_s3 = inlined_call_operand.vmem [shape: bf16[8,108], index: 3, kind: input, shape index: {}]   ;;  %s1734_s4 = inlined_call_operand.vmem [shape: f32[1,128], index: 4, kind: input, shape index: {}]   ;;  %s1735_s5 = inlined_call_operand.vmem [shape: bf16[2,8,8,256], index: 5, kind: output, shape index: {0}]   ;;  %s1736_s6 = inlined_call_operand.vmem [shape: f32[2,8,1], index: 6, kind: output, shape index: {1}]   ;;  %s1737_s7 = inlined_call_operand.vmem [shape: f32[2,8,1], index: 7, kind: output, shape index: {2}]  }
   0x1   :  { %1740 = sst [smem:[#allocation7_spill]] %s1730_s0  ;;  %s1560_s26 = smov 0  }
   0x2   :  { %1741 = sst [smem:[#allocation8_spill]] %s1736_s6  ;;  %s1562_s27 = smov 0  }
   0x3   :  { %s1564_s28 = smov 0  }
   0x4 LB: > { %1742 = sst [smem:[#allocation3_spill]] %s1487_s26  ;;  %s27_s29 = sadd.s32 1, %s1487_s26  ;;  %s1495_s28 = sphi %s1564_s28, %s18_s28   ;;  %s1491_s27 = sphi %s1562_s27, %s1754_s27   ;;  %s1487_s26 = sphi %s1560_s26, %s1753_s26   ;;  %s1483_s25 = sphi %s1558_s25, %s1752_s25   ;;  %s1479_s24 = sphi %s1556_s24, %s1751_s24  }
   0x5   : > { %1743 = sst [smem:[#allocation4_spill]] %s1491_s27  ;;  %s30_s30 = sadd.s32 1, %s1491_s27 }
   0x6   : > { %p28_p0 = scmp.ge.s32.totalorder %s27_s29, 8  ;;  %p1261_p1 = scmp.ge.s32.totalorder %s1495_s28, 1 }
   0x7   : > { %p350_p2 = scmp.lt.s32.totalorder %s1495_s28, 17 }
   0x8   : > { %s1756_s29 = smov (%p28_p0, %s27_s29), 0  ;;  %s1758_s30 = smov (!%p28_p0, %s30_s30), %s1491_s27 }
   0x9   : > { %1744 = sst [smem:[#allocation5_spill]] %s1756_s29  ;;  %p351_p3 = pnand %p1261_p1, %p350_p2 }
   0xa   : > { %p32_p4 = scmp.ge.s32.totalorder %s1758_s30, 2  ;;  %s1589_s8 = sadd.s32 (!%p351_p3), 4294967295, %s1479_s24 }
   0xb   : > { %354 = sbr.rel (%p351_p3) target bundleno = 857 (0x359), region = 40  ;;  %p435_p5 = scmp.lt.s32.totalorder (!%p351_p3), %s1483_s25, 1 }
   0xc   : > { %s1760_s30 = smov (%p32_p4, %s1758_s30), 0  ;;  %p431_p6 = scmp.gt.s32.totalorder (!%p351_p3), %s1589_s8, 0 }
   0xd   : > { %1745 = sst [smem:[#allocation6_spill]] %s1760_s30  ;;  %p1262_p7 = scmp.lt.s32.totalorder (!%p351_p3), %s1589_s8, 7 }
   0xe   : > { %p449_p8 = scmp.gt.s32.totalorder (!%p351_p3), %s1479_s24, 0  ;;  %p1270_p10 = scmp.lt.s32.totalorder (!%p351_p3), %s1479_s24, 7 }
   0xf   : > { %s1603_s12 = sadd.s32 (!%p351_p3), 1, %s1479_s24  ;;  %s1746_s0 = sld [smem:[#allocation7_spill]] (!%p351_p3) }
  0x10   : > { %s1762_s25 = smov (!%p435_p5, %s1483_s25), 1  ;;  %p467_p11 = scmp.gt.s32.totalorder %s1603_s12, 0 }
  0x11   : > { %s432_s9 = scalar_select %p431_p6, %s1589_s8, 0 }
  0x12   : > { %s450_s10 = scalar_select %p449_p8, %s1479_s24, 0 }
  0x13   : > { %s1764_s9 = smov (!%p1262_p7, %s432_s9), 7  ;;  %s1600_s11 = sshll.u32 %s1762_s25, 6 }
  0x14   : > { %p437_p9 = scmp.lt.s32.totalorder %s1764_s9, 7  ;;  %s1768_s10 = smov (!%p1270_p10, %s450_s10), 7 }
  0x15   : > { %p455_p12 = scmp.lt.s32.totalorder %s1768_s10, 7  ;;  %p1278_p13 = scmp.lt.s32.totalorder %s1603_s12, 7 }
  0x16   : > { %s1766_s9 = smov (!%p437_p9, %s1764_s9), 7  ;;  %s1289_s19 = sshll.u32 %s1762_s25, 3 }
  0x17   : > { %s1267_s13 = sshll.u32 %s1766_s9, 3  ;;  %s1770_s10 = smov (!%p455_p12, %s1768_s10), 7 }
  0x18   : > { %s441_s14 = sadd.s32 %s1600_s11, %s1267_s13  ;;  %s1275_s21 = sshll.u32 %s1770_s10, 3 }
  0x19   : > { %s1269_s15 = sshll.u32 %s441_s14, 1  ;;  %s1747_s6 = sld [smem:[#allocation8_spill]] }
  0x1a   : > { %s1613_s18 = scalar_lea.vmem %s1746_s0, %s1269_s15  ;;  %s459_s13 = sadd.s32 %s1275_s21, %s1600_s11 }
  0x1b   : > { %s468_s20 = scalar_select %p467_p11, %s1603_s12, 0 }
  0x1c   : > { %s1626_s14 = scalar_lea.vmem %s1737_s7, %s1289_s19  ;;  %s1277_s27 = sshll.u32 %s459_s13, 1 }
  0x1d   : > { %s1631_s17 = scalar_lea.vmem %s1731_s1, %s1277_s27  ;;  %s1772_s20 = smov (!%p1278_p13, %s468_s20), 7 }
  0x1e   : > { %s488_s10 = scalar_select %p1270_p10, %s1479_s24, 7 }
  0x1f   : > { %s1620_s9 = scalar_lea.vmem %s1747_s6, %s1289_s19  ;;  %p473_p0 = scmp.lt.s32.totalorder %s1772_s20, 7 }
  0x20   : > { %s1287_s0 = sshll.u32 %s1762_s25, 4  ;;  %s1286_s22 = sshll.u32 %s488_s10, 1 }
  0x21   : > { %s1774_s20 = smov (!%p473_p0, %s1772_s20), 7  ;;  %s491_s23 = sadd.s32 %s1287_s0, %s1286_s22 }
  0x22   : > { %s1283_s21 = sshll.u32 %s1774_s20, 3  ;;  %s1288_s6 = sshll.u32 %s491_s23, 2 }
  0x23   : > { %s477_s26 = sadd.s32 %s1283_s21, %s1600_s11  ;;  %s1641_s19 = scalar_lea.vmem %s1735_s5, %s1288_s6 }
  0x24   : > { %s1285_s13 = sshll.u32 %s477_s26, 1  ;;  %p1291_p1 = scmp.ne.s32.totalorder %s1479_s24, 0 }
  0x25   : > { %s1646_s15 = scalar_lea.vmem %s1732_s2, %s1285_s13 }
  0x26   : > { %506 = sbr.rel (%p1291_p1) target bundleno = 45 (0x2d), region = 44 }
  0x2b   : > { %vm507_vm0 = vcmask 7168   ;;  %v1497_v0 = vmov 0.0  }
  0x2c   : > { %508 = vst.msk [vmem:[%s1620_s9] sm:$0xff] %vm507_vm0, %v1497_v0  ;;  %509 = vst.msk [vmem:[%s1626_s14] sm:$0xff] %vm507_vm0, %v1497_v0 }
  0x2d PF: > { %p511_p2 = scmp.ge.s32.totalorder %s1589_s8, 0  ;;  %p512_p3 = scmp.lt.s32.totalorder %s1589_s8, 8 }
  0x2f   : > { %p1653_p4 = pnand %p512_p3, %p511_p2 }
  0x30   : > { %s1498_s6 = smov (!%p1653_p4), 127   ;;  %s1499_s25 = smov (!%p1653_p4), 116  }
  0x31   : > { %516 = sbr.rel (%p1653_p4) target bundleno = 186 (0xba), region = 48  ;;  %s1501_s26 = smov (!%p1653_p4), 115  }
  0x36   : > { %v1294_v1 = vld.sshfl [vmem:[%s1613_s18] sm:$0x33 pattern:$0x76325410]  ;;  %v570_v2 = vlaneseq  ;;  %v1500_v3 = vmov 1983009808  }
  0x37   : > { %541 = vrot.lane.b32.xlu0 %v1294_v1, %s1498_s6  ;;  %589 = vrot.lane.b32.xlu1 %v1294_v1, %s1499_s25  ;;  %v568_v4 = vunpack.c.l.s4 %v1500_v3  ;;  %v1437_v6 = vld [vmem:[%s1613_s18 + $0x8] ss:$0 sps:$4 sm:$0xff]   ;;  %v1438_v7 = vld [vmem:[%s1613_s18 + $0x4] ss:$0 sps:$4 sm:$0xff]   ;;  %vm544_vm1 = vcmask 1039360   ;;  %vm592_vm2 = vcmask 949248  }
  0x38   : > { %v571_v5 = vshrl.u32 %v570_v2, 7  ;;  %v517_v8 = vld [vmem:[%s1613_s18] sm:$0x3]  ;;  %v1439_v10 = vld [vmem:[%s1613_s18 + $0x4] ss:$0 sps:$4 sm:$0x33]  }
  0x39   : > { %v569_v9 = vunpack.c.0.s8 %v568_v4  ;;  %518 = vst [vmem:[#allocation2] sm:$0x3] %v517_v8  ;;  %v1440_v11 = vld [vmem:[%s1613_s18 + $0x8] ss:$0 sps:$4 sm:$0x33]   ;;  %vm624_vm3 = vcmask 941056  }
  0x3a   : > { %1293 = vst.sshfl [vmem:[#allocation2] sm:$0x30 pattern:$0x76325410] %v1439_v10  ;;  %v1297_v13 = vld [vmem:[%s1613_s18 + $0xc] sm:$0x3] }
  0x3b   : > { %v572_v12 = vsub.s32 %v569_v9, %v571_v5  ;;  %1296 = vst.sshfl [vmem:[#allocation2 + $0x4] sm:$0x30 pattern:$0x76325410] %v1440_v11  ;;  %563 = vst [vmem:[#allocation2 + $0x8] sm:$0x3] %v1297_v13 }
  0x3d   : > { %v573_v14 = vrot.slane %v1437_v6, %v572_v12  ;;  %v605_v15 = vrot.slane %v1438_v7, %v572_v12 }
  0x3f   : > { %574 = vrot.lane.b32.xlu0 %v573_v14, %s1498_s6  ;;  %606 = vrot.lane.b32.xlu1 %v605_v15, %s1499_s25 }
  0x43   : > { %621 = vrot.lane.b32.xlu0 %v1294_v1, %s1501_s26 }
  0xa9   : > { %v542_v16 = vpop.permute.xlu0 %541  ;;  %v590_v17 = vpop.permute.xlu1 %589 }
  0xaa   : > { %v543_v18 = vrot.slane %v542_v16, 4  ;;  %v591_v19 = vrot.slane %v590_v17, 4 }
  0xac   : > { %v545_v20 = vsel %vm544_vm1, %v542_v16, %v543_v18  ;;  %v593_v21 = vsel %vm592_vm2, %v590_v17, %v591_v19 }
  0xad   : > { %547 = vst [vmem:[#allocation2 + $0x4] sm:$0x3] %v545_v20  ;;  %595 = vst [vmem:[#allocation2 + $0xc] sm:$0x3] %v593_v21 }
  0xb1   : > { %v575_v22 = vpop.permute.xlu0 %574  ;;  %v607_v23 = vpop.permute.xlu1 %606 }
  0xb2   : > { %v576_v24 = vrot.slane %v575_v22, 4  ;;  %v608_v25 = vrot.slane %v607_v23, 4 }
  0xb4   : > { %v577_v26 = vsel %vm544_vm1, %v575_v22, %v576_v24  ;;  %v609_v27 = vsel %vm592_vm2, %v607_v23, %v608_v25 }
  0xb5   : > { %579 = vst [vmem:[#allocation2 + $0x8] sm:$0xc] %v577_v26  ;;  %611 = vst [vmem:[#allocation2 + $0xc] sm:$0xc] %v609_v27  ;;  %v622_v28 = vpop.permute.xlu0 %621 }
  0xb6   : > { %v623_v29 = vrot.slane %v622_v28, 4 }
  0xb8   : > { %v625_v30 = vsel %vm624_vm3, %v622_v28, %v623_v29 }
  0xb9   : > { %627 = vst [vmem:[#allocation2 + $0x10] sm:$0x3] %v625_v30 }
  0xba PF: > { %630 = sbr.rel (!%p1653_p4) target bundleno = 191 (0xbf), region = 52  ;;  %v1502_v31 = vmov (%p1653_p4), 0  }
  0xbb   : > { %631 = vst [vmem:[#allocation2] sm:$0xf] (%p1653_p4), %v1502_v31  ;;  %632 = vst [vmem:[#allocation2 + $0x4] sm:$0xf] (%p1653_p4), %v1502_v31 }
  0xbc   : > { %633 = vst [vmem:[#allocation2 + $0x8] sm:$0xf] (%p1653_p4), %v1502_v31  ;;  %634 = vst [vmem:[#allocation2 + $0xc] sm:$0xf] (%p1653_p4), %v1502_v31 }
  0xbd   : > { %635 = vst [vmem:[#allocation2 + $0x10] sm:$0x3] (%p1653_p4), %v1502_v31 }
  0xbf PF: > { %p636_p5 = scmp.ge.s32.totalorder %s1479_s24, 0  ;;  %p637_p6 = scmp.lt.s32.totalorder %s1479_s24, 8 }
  0xc1   : > { %p1670_p7 = pnand %p637_p6, %p636_p5 }
  0xc2   : > { %s1503_s11 = smov (!%p1670_p7), 127   ;;  %s1505_s24 = smov (!%p1670_p7), 116  }
  0xc3   : > { %641 = sbr.rel (%p1670_p7) target bundleno = 332 (0x14c), region = 56  ;;  %s1506_s18 = smov (!%p1670_p7), 115  }
  0xc8   : > { %v1308_v32 = vld.sshfl [vmem:[%s1631_s17 + $0x8] sm:$0x33 pattern:$0x76325410]  ;;  %v663_v33 = vlaneseq  ;;  %v1504_v34 = vmov 1983009808  }
  0xc9   : > { %699 = vrot.lane.b32.xlu0 %v1308_v32, %s1503_s11  ;;  %v661_v35 = vunpack.c.l.s4 %v1504_v34  ;;  %v1441_v38 = vld [vmem:[%s1631_s17] ss:$0 sps:$4 sm:$0xff]   ;;  %v1303_v43 = vld [vmem:[%s1631_s17 + $0x4] sm:$0x3]  ;;  %v1304_v44 = vld [vmem:[%s1631_s17 + $0x8] sm:$0x3] }
  0xca   : > { %v664_v36 = vshrl.u32 %v663_v33, 7  ;;  %v1442_v39 = vld [vmem:[%s1631_s17] ss:$0 sps:$4 sm:$0xff]   ;;  %656 = vst [vmem:[#allocation2 + $0x14] sm:$0x3] %v1303_v43  ;;  %vm670_vm4 = vcmask 1039360  }
  0xcb   : > { %v662_v37 = vunpack.c.0.s8 %v661_v35  ;;  %v1443_v40 = vld [vmem:[%s1631_s17] ss:$0 sps:$4 sm:$0xff]   ;;  %676 = vst [vmem:[#allocation2 + $0x18] sm:$0x3] %v1304_v44  ;;  %vm718_vm5 = vcmask 949248   ;;  %vm750_vm6 = vcmask 941056  }
  0xcc   : > { %v1444_v41 = vld [vmem:[%s1631_s17] ss:$0 sps:$4 sm:$0x33]   ;;  %v1445_v45 = vld [vmem:[%s1631_s17 + $0xc] ss:$0 sps:$4 sm:$0x33]  }
  0xcd   : > { %v665_v42 = vsub.s32 %v662_v37, %v664_v36  ;;  %1302 = vst.sshfl [vmem:[#allocation2 + $0x10] sm:$0x30 pattern:$0x76325410] %v1444_v41 }
  0xce   : > { %1306 = vst.sshfl [vmem:[#allocation2 + $0x18] sm:$0x30 pattern:$0x76325410] %v1445_v45 }
  0xcf   : > { %v714_v46 = vrot.slane %v1441_v38, %v665_v42  ;;  %v666_v47 = vrot.slane %v1442_v39, %v665_v42  ;;  %v746_v48 = vrot.slane %v1443_v40, %v665_v42  ;;  %v1310_v49 = vld.sshfl [vmem:[%s1631_s17 + $0x4] sm:$0x33 pattern:$0x76325410] }
  0xd1   : > { %715 = vrot.lane.b32.xlu1 %v714_v46, %s1505_s24  ;;  %667 = vrot.lane.b32.xlu0 %v666_v47, %s1503_s11 }
  0xd5   : > { %731 = vrot.lane.b32.xlu1 %v1310_v49, %s1505_s24  ;;  %747 = vrot.lane.b32.xlu0 %v746_v48, %s1506_s18 }
 0x13b   : > { %v700_v50 = vpop.permute.xlu0 %699 }
 0x13c   : > { %v701_v51 = vrot.slane %v700_v50, 4 }
 0x13e   : > { %v702_v52 = vsel %vm670_vm4, %v700_v50, %v701_v51 }
 0x13f   : > { %704 = vst [vmem:[#allocation2 + $0x1c] sm:$0x3] %v702_v52 }
 0x143   : > { %v716_v53 = vpop.permute.xlu1 %715  ;;  %v668_v54 = vpop.permute.xlu0 %667 }
 0x144   : > { %v717_v55 = vrot.slane %v716_v53, 4  ;;  %v669_v56 = vrot.slane %v668_v54, 4 }
 0x146   : > { %v719_v57 = vsel %vm718_vm5, %v716_v53, %v717_v55  ;;  %v671_v58 = vsel %vm670_vm4, %v668_v54, %v669_v56 }
 0x147   : > { %721 = vst [vmem:[#allocation2 + $0x1c] sm:$0xc] %v719_v57  ;;  %673 = vst [vmem:[#allocation2 + $0x14] sm:$0xc] %v671_v58  ;;  %v732_v59 = vpop.permute.xlu1 %731  ;;  %v748_v60 = vpop.permute.xlu0 %747 }
 0x148   : > { %v733_v61 = vrot.slane %v732_v59, 4  ;;  %v749_v62 = vrot.slane %v748_v60, 4 }
 0x14a   : > { %v734_v63 = vsel %vm718_vm5, %v732_v59, %v733_v61  ;;  %v751_v0 = vsel %vm750_vm6, %v748_v60, %v749_v62 }
 0x14b   : > { %736 = vst [vmem:[#allocation2 + $0x20] sm:$0x3] %v734_v63  ;;  %753 = vst [vmem:[#allocation2 + $0x20] sm:$0xc] %v751_v0 }
 0x14c PF: > { %756 = sbr.rel (!%p1670_p7) target bundleno = 337 (0x151), region = 60  ;;  %v1507_v1 = vmov (%p1670_p7), 0  }
 0x14d   : > { %757 = vst [vmem:[#allocation2 + $0x10] sm:$0xc] (%p1670_p7), %v1507_v1  ;;  %758 = vst [vmem:[#allocation2 + $0x14] sm:$0xf] (%p1670_p7), %v1507_v1 }
 0x14e   : > { %759 = vst [vmem:[#allocation2 + $0x18] sm:$0xf] (%p1670_p7), %v1507_v1  ;;  %760 = vst [vmem:[#allocation2 + $0x1c] sm:$0xf] (%p1670_p7), %v1507_v1 }
 0x14f   : > { %761 = vst [vmem:[#allocation2 + $0x20] sm:$0xf] (%p1670_p7), %v1507_v1 }
 0x151 PF: > { %p763_p8 = scmp.ge.s32.totalorder %s1603_s12, 0  ;;  %p764_p9 = scmp.lt.s32.totalorder %s1603_s12, 8 }
 0x153   : > { %p1689_p10 = pnand %p764_p9, %p763_p8 }
 0x154   : > { %s1508_s17 = smov (!%p1689_p10), 127   ;;  %s1509_s10 = smov (!%p1689_p10), 116  }
 0x155   : > { %768 = sbr.rel (%p1689_p10) target bundleno = 478 (0x1de), region = 64  ;;  %s1511_s12 = smov (!%p1689_p10), 115  }
 0x15a   : > { %v1313_v2 = vld.sshfl [vmem:[%s1646_s15] sm:$0x33 pattern:$0x76325410]  ;;  %v822_v3 = vlaneseq  ;;  %v1510_v4 = vmov 1983009808  }
 0x15b   : > { %793 = vrot.lane.b32.xlu0 %v1313_v2, %s1508_s17  ;;  %841 = vrot.lane.b32.xlu1 %v1313_v2, %s1509_s10  ;;  %v820_v5 = vunpack.c.l.s4 %v1510_v4  ;;  %v1446_v7 = vld [vmem:[%s1646_s15 + $0x8] ss:$0 sps:$4 sm:$0xff]   ;;  %v1447_v8 = vld [vmem:[%s1646_s15 + $0x4] ss:$0 sps:$4 sm:$0xff]   ;;  %vm796_vm7 = vcmask 1039360   ;;  %vm844_vm8 = vcmask 949248  }
 0x15c   : > { %v823_v6 = vshrl.u32 %v822_v3, 7  ;;  %v769_v9 = vld [vmem:[%s1646_s15] sm:$0x3]  ;;  %v1448_v11 = vld [vmem:[%s1646_s15 + $0x4] ss:$0 sps:$4 sm:$0x33]  }
 0x15d   : > { %v821_v10 = vunpack.c.0.s8 %v820_v5  ;;  %770 = vst [vmem:[#allocation2 + $0x24] sm:$0x3] %v769_v9  ;;  %v1449_v12 = vld [vmem:[%s1646_s15 + $0x8] ss:$0 sps:$4 sm:$0x33]   ;;  %vm876_vm9 = vcmask 941056  }
 0x15e   : > { %1312 = vst.sshfl [vmem:[#allocation2 + $0x24] sm:$0x30 pattern:$0x76325410] %v1448_v11  ;;  %v1316_v14 = vld [vmem:[%s1646_s15 + $0xc] sm:$0x3] }
 0x15f   : > { %v824_v13 = vsub.s32 %v821_v10, %v823_v6  ;;  %1315 = vst.sshfl [vmem:[#allocation2 + $0x28] sm:$0x30 pattern:$0x76325410] %v1449_v12  ;;  %815 = vst [vmem:[#allocation2 + $0x2c] sm:$0x3] %v1316_v14 }
 0x161   : > { %v825_v15 = vrot.slane %v1446_v7, %v824_v13  ;;  %v857_v16 = vrot.slane %v1447_v8, %v824_v13 }
 0x163   : > { %826 = vrot.lane.b32.xlu0 %v825_v15, %s1508_s17  ;;  %858 = vrot.lane.b32.xlu1 %v857_v16, %s1509_s10 }
 0x167   : > { %873 = vrot.lane.b32.xlu0 %v1313_v2, %s1511_s12 }
 0x1cd   : > { %v794_v17 = vpop.permute.xlu0 %793  ;;  %v842_v18 = vpop.permute.xlu1 %841 }
 0x1ce   : > { %v795_v19 = vrot.slane %v794_v17, 4  ;;  %v843_v20 = vrot.slane %v842_v18, 4 }
 0x1d0   : > { %v797_v21 = vsel %vm796_vm7, %v794_v17, %v795_v19  ;;  %v845_v22 = vsel %vm844_vm8, %v842_v18, %v843_v20 }
 0x1d1   : > { %799 = vst [vmem:[#allocation2 + $0x28] sm:$0x3] %v797_v21  ;;  %847 = vst [vmem:[#allocation2 + $0x30] sm:$0x3] %v845_v22 }
 0x1d5   : > { %v827_v23 = vpop.permute.xlu0 %826  ;;  %v859_v24 = vpop.permute.xlu1 %858 }
 0x1d6   : > { %v828_v25 = vrot.slane %v827_v23, 4  ;;  %v860_v26 = vrot.slane %v859_v24, 4 }
 0x1d8   : > { %v829_v27 = vsel %vm796_vm7, %v827_v23, %v828_v25  ;;  %v861_v28 = vsel %vm844_vm8, %v859_v24, %v860_v26 }
 0x1d9   : > { %831 = vst [vmem:[#allocation2 + $0x2c] sm:$0xc] %v829_v27  ;;  %863 = vst [vmem:[#allocation2 + $0x30] sm:$0xc] %v861_v28  ;;  %v874_v29 = vpop.permute.xlu0 %873 }
 0x1da   : > { %v875_v30 = vrot.slane %v874_v29, 4 }
 0x1dc   : > { %v877_v31 = vsel %vm876_vm9, %v874_v29, %v875_v30 }
 0x1dd   : > { %879 = vst [vmem:[#allocation2 + $0x34] sm:$0x3] %v877_v31 }
 0x1de PF: > { %882 = sbr.rel (!%p1689_p10) target bundleno = 483 (0x1e3), region = 68  ;;  %v1512_v32 = vmov (%p1689_p10), 0  }
 0x1df   : > { %883 = vst [vmem:[#allocation2 + $0x24] sm:$0xf] (%p1689_p10), %v1512_v32  ;;  %884 = vst [vmem:[#allocation2 + $0x28] sm:$0xf] (%p1689_p10), %v1512_v32 }
 0x1e0   : > { %885 = vst [vmem:[#allocation2 + $0x2c] sm:$0xf] (%p1689_p10), %v1512_v32  ;;  %886 = vst [vmem:[#allocation2 + $0x30] sm:$0xf] (%p1689_p10), %v1512_v32 }
 0x1e1   : > { %887 = vst [vmem:[#allocation2 + $0x34] sm:$0x3] (%p1689_p10), %v1512_v32 }
 0x1e3 PF: > { %vm948_vm10 = vcmask 1045504   ;;  %v1513_v33 = vmov 0.0   ;;  %vm1514_vm11 = vmmov 0   ;;  %v1453_v38 = vld [vmem:[#allocation2 + $0x18] sm:$0xff]   ;;  %v1454_v39 = vld [vmem:[#allocation2 + $0x10] sm:$0xff]   ;;  %v1455_v40 = vld [vmem:[#allocation2 + $0x8] sm:$0xff]  }
 0x1e4   : > { %1360 = vmatprep.subr.bf16.mxu0 %v1513_v33  ;;  %1374 = vmatprep.mubr.msk.bf16.mxu0 %vm1514_vm11, %v1513_v33  ;;  %v1456_v41 = vld [vmem:[#allocation2] sm:$0xff]   ;;  %vm944_vm12 = vcmask 883712   ;;  %s1515_s30 = smov 26   ;;  %vm1016_vm13 = vcmask 211968   ;;  %vm1004_vm14 = vcmask 7168  }
 0x1e5   : > { %v888_v42 = vld [vmem:[%s1733_s3] sm:$0xf] }
 0x1e6   : > { %v1452_v37 = vld [vmem:[#allocation2 + $0x20] sm:$0xff]  }
 0x1e7   : > { %v1451_v36 = vld [vmem:[#allocation2 + $0x28] sm:$0xff]   ;;  %v1329_v43 = vld [vmem:[%s1734_s4] ss:$0 sm:$0xff] }
 0x1e8   : > { %v1450_v34 = vld [vmem:[#allocation2 + $0x30] sm:$0x3f]   ;;  %v1000_v54 = vld [vmem:[%s1620_s9] sm:$0xff] }
 0x1e9   : > { %v950_v35 = vsel %vm948_vm10, %v1450_v34, 0  ;;  %v1006_v57 = vld [vmem:[%s1626_s14] sm:$0xff] }
 0x1ea   : > { %1361 = vmatpush3.bf16.msra.mxu0 %v950_v35 }
 0x1eb   : > { %1362 = vmatprep.subr.bf16.mxu0 %v1513_v33 }
 0x1ee   : > { %1363 = vmatpush3.bf16.msra.mxu0 %v1451_v36 }
 0x1ef   : > { %1364 = vmatprep.subr.bf16.mxu0 %v1513_v33 }
 0x1f2   : > { %1365 = vmatpush3.bf16.msra.mxu0 %v1452_v37 }
 0x1f3   : > { %1366 = vmatprep.subr.bf16.mxu0 %v1513_v33 }
 0x1f6   : > { %1367 = vmatpush3.bf16.msra.mxu0 %v1453_v38 }
 0x1f7   : > { %1368 = vmatprep.subr.bf16.mxu0 %v1513_v33 }
 0x1fa   : > { %1369 = vmatpush3.bf16.msra.mxu0 %v1454_v39 }
 0x1fb   : > { %1370 = vmatprep.subr.bf16.mxu0 %v1513_v33 }
 0x1fe   : > { %1371 = vmatpush3.bf16.msra.mxu0 %v1455_v40 }
 0x1ff   : > { %1372 = vmatprep.subr.bf16.mxu0 %v1513_v33 }
 0x202   : > { %1373 = vmatpush3.bf16.msra.mxu0 %v1456_v41 }
 0x205   : > { %1375 = vmatmul.mubr.msk.bf16.vlgmr.msra.gmra.mxu0 %vm944_vm12, %v888_v42 }
 0x2c5   : > { %v986_v44 = vpop.f32.mrf.mxu0 }
 0x2c6   : > { %1013 = vrot.lane.b32.xlu1 %v986_v44, %s1515_s30  ;;  %v999_v45 = vmul.f32 %v1329_v43, %v986_v44 }
 0x2c7   : > { %v1376_v46 = vpop.f32.mrf.mxu0 }
 0x2c8   : > { %1001 = vadd.xlane.f32.xlu0 %v999_v45  ;;  %v1007_v48 = vmul.f32 %v999_v45, %v986_v44 }
 0x2c9   : > { %v989_v47 = vpop.f32.mrf.mxu0 }
 0x2cb   : > { %v1377_v49 = vpop.f32.mrf.mxu0 }
 0x2cc   : > { %1008 = vadd.xlane.f32.xlu0 %v1007_v48 }
 0x338   : > { %v1014_v50 = vpop.permute.xlu1 %1013 }
 0x339   : > { %v1017_v51 = vsel %vm1016_vm13, 0.0, %v1014_v50  ;;  %v1018_v52 = vsel %vm1016_vm13, %v1014_v50, 0.0 }
 0x33a   : > { %v1351_v53 = vpack.c.bf16 %v1018_v52, %v1017_v51 }
 0x33c   : > { %1027 = vst [vmem:[%s1641_s19] sm:$0xff] %v1351_v53 }
 0x351   : > { %v1002_v55 = vpop.xlane.xlu0 %1001 }
 0x352   : > { %v1003_v56 = vadd.f32 %v1002_v55, %v1000_v54 }
 0x354   : > { %1005 = vst.msk [vmem:[%s1620_s9] sm:$0xff] %vm1004_vm14, %v1003_v56 }
 0x355   : > { %v1009_v58 = vpop.xlane.xlu0 %1008 }
 0x356   : > { %v1010_v59 = vadd.f32 %v1009_v58, %v1006_v57 }
 0x358   : > { %1011 = vst.msk [vmem:[%s1626_s14] sm:$0xff] %vm1004_vm14, %v1010_v59 }
 0x359 PF: > { %s18_s28 = sadd.s32 1, %s1495_s28   ;;  %s1751_s24 = sld [smem:[#allocation3_spill]] }
 0x35a   : > { %p15_p11 = scmp.ge.s32.totalorder %s18_s28, 18   ;;  %s1752_s25 = sld [smem:[#allocation4_spill]] }
 0x35b   : > { %s1753_s26 = sld [smem:[#allocation5_spill]] }
 0x35c   : > { %s1754_s27 = sld [smem:[#allocation6_spill]]  ;;  %17 = sbr.rel (!%p15_p11) target bundleno = 4 (0x4), region = 137 }

// kernel: down_transition_forward.11
= control target key start
LH: loop header
LB: loop body
LE: loop exit
PB: predicated region body
PF: predicated region fallthrough
CT: control target
= control target key end

     0   :  { %s930_s18 = smov 0   ;;  %s932_s19 = smov 0   ;;  %s1324_s0 = inlined_call_operand.vmem [shape: bf16[2,8,8,256], index: 0, kind: input, shape index: {}]   ;;  %s1325_s1 = inlined_call_operand.vmem [shape: bf16[2,8,8,256], index: 1, kind: input, shape index: {}]   ;;  %s1326_s2 = inlined_call_operand.vmem [shape: f32[8,1], index: 2, kind: input, shape index: {}]   ;;  %s1327_s3 = inlined_call_operand.vmem [shape: f32[8,1], index: 3, kind: input, shape index: {}]   ;;  %s1328_s4 = inlined_call_operand.vmem [shape: f32[1,256], index: 4, kind: input, shape index: {}]   ;;  %s1329_s5 = inlined_call_operand.vmem [shape: f32[2,8,8,256], index: 5, kind: output, shape index: {}]  }
   0x1   :  { %s934_s20 = smov 0  }
   0x2 LB: > { %s27_s21 = sadd.s32 1, %s893_s19  ;;  %p741_p0 = scmp.ge.s32.totalorder %s897_s20, 1  ;;  %s897_s20 = sphi %s934_s20, %s15_s20   ;;  %s893_s19 = sphi %s932_s19, %s1331_s19   ;;  %s889_s18 = sphi %s930_s18, %s1330_s18  }
   0x3   : > { %p29_p1 = scmp.ge.s32.totalorder %s27_s21, 2  ;;  %p227_p2 = scmp.lt.s32.totalorder %s897_s20, 3 }
   0x5   : > { %s1333_s21 = smov (%p29_p1, %s27_s21), 0  ;;  %p228_p3 = pnand %p741_p0, %p227_p2 }
   0x6   : > { %p276_p4 = scmp.lt.s32.totalorder (!%p228_p3), %s889_s18, 1 }
   0x7   : > { %231 = sbr.rel (%p228_p3) target bundleno = 209 (0xd1), region = 40 }
   0xc   : > { %v332_v0 = vld [vmem:[%s1326_s2] sm:$0xff]  ;;  %v899_v1 = vmov 0   ;;  %s1335_s18 = smov (!%p276_p4, %s889_s18), 1 }
   0xd   : > { %810 = vset.pattern.permute.xlu0 %v899_v1  ;;  %v354_v2 = vld [vmem:[%s1327_s3] sm:$0xff]  ;;  %s782_s26 = sshll.u32 %s1335_s18, 6  ;;  %s784_s10 = sshll.u32 %s1335_s18, 7 }
   0xe   : > { %335 = vperm.xlu0 %810, %v332_v0   ;;  %s962_s29 = scalar_lea.vmem %s1324_s0, %s782_s26  ;;  %s295_s7 = scalar_lea.vmem %s1325_s1, %s782_s26 }
   0xf   : > { %v308_v4 = vld [vmem:[%s962_s29] sm:$0xff]  ;;  %v309_v5 = vld [vmem:[%s962_s29 + $0x8] sm:$0xff]  ;;  %v310_v6 = vld [vmem:[%s962_s29 + $0x10] sm:$0xff]  ;;  %s1250_s13 = scalar_lea.vmem %s1329_s5, %s784_s10 }
  0x10   : > { %v316_v7 = vunpack.c.l.bf16 %v308_v4  ;;  %v317_v8 = vunpack.c.h.bf16 %v308_v4  ;;  %v318_v9 = vunpack.c.l.bf16 %v309_v5  ;;  %v311_v10 = vld [vmem:[%s962_s29 + $0x18] sm:$0xff]  ;;  %v319_v11 = vunpack.c.h.bf16 %v309_v5  ;;  %v312_v12 = vld [vmem:[%s962_s29 + $0x20] sm:$0xff]  ;;  %v313_v16 = vld [vmem:[%s962_s29 + $0x28] sm:$0xff] }
  0x11   : > { %v320_v13 = vunpack.c.l.bf16 %v310_v6  ;;  %v321_v15 = vunpack.c.h.bf16 %v310_v6  ;;  %v322_v17 = vunpack.c.l.bf16 %v311_v10  ;;  %v314_v21 = vld [vmem:[%s962_s29 + $0x30] sm:$0xff]  ;;  %v323_v22 = vunpack.c.h.bf16 %v311_v10  ;;  %v315_v33 = vld [vmem:[%s962_s29 + $0x38] sm:$0xff] }
  0x12   : > { %357 = vperm.xlu0 %810, %v354_v2   ;;  %v324_v23 = vunpack.c.l.bf16 %v312_v12  ;;  %v325_v29 = vunpack.c.h.bf16 %v312_v12  ;;  %v326_v30 = vunpack.c.l.bf16 %v313_v16  ;;  %v327_v34 = vunpack.c.h.bf16 %v313_v16  ;;  %v1060_v12 = vld [vmem:[%s295_s7] sm:$0xff]  ;;  %v1065_v16 = vld [vmem:[%s295_s7 + $0x10] sm:$0xff] }
  0x13   : > { %v328_v35 = vunpack.c.l.bf16 %v314_v21  ;;  %v329_v38 = vunpack.c.h.bf16 %v314_v21  ;;  %v330_v46 = vunpack.c.l.bf16 %v315_v33  ;;  %v331_v56 = vunpack.c.h.bf16 %v315_v33  ;;  %v1071_v21 = vld [vmem:[%s295_s7 + $0x28] sm:$0xff] }
  0x14   : > { %v468_v33 = vunpack.c.l.bf16 %v1065_v16 }
  0x89   : > { %v964_v3 = vpop.permute.xlu0 %335 }
  0x8a   : > { %v338_v18 = vmul.f32 %v964_v3, %v316_v7  ;;  %v339_v19 = vmul.f32 %v964_v3, %v317_v8  ;;  %v340_v20 = vmul.f32 %v964_v3, %v318_v9  ;;  %v341_v24 = vmul.f32 %v964_v3, %v319_v11 }
  0x8b   : > { %v342_v25 = vmul.f32 %v964_v3, %v320_v13  ;;  %v343_v31 = vmul.f32 %v964_v3, %v321_v15  ;;  %v344_v36 = vmul.f32 %v964_v3, %v322_v17  ;;  %v345_v39 = vmul.f32 %v964_v3, %v323_v22  ;;  %v1062_v13 = vld [vmem:[%s295_s7 + $0x8] sm:$0xff]  ;;  %v1073_v22 = vld [vmem:[%s295_s7 + $0x30] sm:$0xff] }
  0x8c   : > { %v346_v40 = vmul.f32 %v964_v3, %v324_v23  ;;  %v347_v47 = vmul.f32 %v964_v3, %v325_v29  ;;  %v348_v50 = vmul.f32 %v964_v3, %v326_v30  ;;  %v349_v53 = vmul.f32 %v964_v3, %v327_v34  ;;  %v1078_v30 = vld [vmem:[%s295_s7 + $0x38] sm:$0xff] }
  0x8d   : > { %v971_v14 = vpop.permute.xlu0 %357  ;;  %v350_v59 = vmul.f32 %v964_v3, %v328_v35  ;;  %v351_v62 = vmul.f32 %v964_v3, %v329_v38  ;;  %v352_v0 = vmul.f32 %v964_v3, %v330_v46  ;;  %v353_v4 = vmul.f32 %v964_v3, %v331_v56 }
  0x8e   : > { %v981_v26 = vadd.f32 %v971_v14, %v338_v18  ;;  %v984_v27 = vadd.f32 %v971_v14, %v339_v19  ;;  %v987_v28 = vadd.f32 %v971_v14, %v340_v20  ;;  %v991_v32 = vadd.f32 %v971_v14, %v341_v24  ;;  %v1067_v18 = vld [vmem:[%s295_s7 + $0x18] sm:$0xff]  ;;  %v1069_v19 = vld [vmem:[%s295_s7 + $0x20] sm:$0xff] }
  0x8f   : > { %v996_v37 = vadd.f32 %v971_v14, %v342_v25  ;;  %v1001_v41 = vadd.f32 %v971_v14, %v343_v31  ;;  %v1004_v42 = vadd.f32 %v971_v14, %v344_v36  ;;  %v1011_v48 = vadd.f32 %v971_v14, %v345_v39 }
  0x90   : > { %v392_v43 = vmul.f32 1.442695, %v981_v26  ;;  %v394_v44 = vmul.f32 1.442695, %v984_v27  ;;  %v396_v45 = vmul.f32 1.442695, %v987_v28  ;;  %v1016_v51 = vadd.f32 %v971_v14, %v346_v40 }
  0x91   : > { %v398_v49 = vmul.f32 1.442695, %v991_v32  ;;  %v400_v52 = vmul.f32 1.442695, %v996_v37  ;;  %v1021_v54 = vadd.f32 %v971_v14, %v347_v47  ;;  %v402_v55 = vmul.f32 1.442695, %v1001_v41 }
  0x92   : > { %811 = vpow2.f32 %v392_v43  ;;  %v1025_v57 = vadd.f32 %v971_v14, %v348_v50  ;;  %v404_v58 = vmul.f32 1.442695, %v1004_v42  ;;  %v1030_v60 = vadd.f32 %v971_v14, %v349_v53 }
  0x93   : > { %813 = vpow2.f32 %v394_v44  ;;  %v406_v61 = vmul.f32 1.442695, %v1011_v48  ;;  %v408_v63 = vmul.f32 1.442695, %v1016_v51  ;;  %v1037_v1 = vadd.f32 %v971_v14, %v350_v59 }
  0x94   : > { %815 = vpow2.f32 %v396_v45  ;;  %v410_v2 = vmul.f32 1.442695, %v1021_v54  ;;  %v1042_v5 = vadd.f32 %v971_v14, %v351_v62  ;;  %v412_v6 = vmul.f32 1.442695, %v1025_v57 }
  0x95   : > { %817 = vpow2.f32 %v398_v49  ;;  %v1046_v7 = vadd.f32 %v971_v14, %v352_v0  ;;  %v414_v8 = vmul.f32 1.442695, %v1030_v60  ;;  %v1055_v9 = vadd.f32 %v971_v14, %v353_v4 }
  0x96   : > { %819 = vpow2.f32 %v400_v52  ;;  %v416_v3 = vmul.f32 1.442695, %v1037_v1  ;;  %v418_v10 = vmul.f32 1.442695, %v1042_v5  ;;  %v578_v17 = vlaneseq }
  0x97   : > { %821 = vpow2.f32 %v402_v55  ;;  %v420_v11 = vmul.f32 1.442695, %v1046_v7  ;;  %v422_v15 = vmul.f32 1.442695, %v1055_v9  ;;  %v464_v23 = vunpack.c.l.bf16 %v1060_v12 }
  0x98   : > { %823 = vpow2.f32 %v404_v58  ;;  %v465_v24 = vunpack.c.h.bf16 %v1060_v12  ;;  %v466_v25 = vunpack.c.l.bf16 %v1062_v13  ;;  %v467_v31 = vunpack.c.h.bf16 %v1062_v13 }
  0x99   : > { %825 = vpow2.f32 %v406_v61  ;;  %v469_v34 = vunpack.c.h.bf16 %v1065_v16  ;;  %v470_v36 = vunpack.c.l.bf16 %v1067_v18  ;;  %v471_v38 = vunpack.c.h.bf16 %v1067_v18 }
  0x9a   : > { %827 = vpow2.f32 %v408_v63  ;;  %v472_v39 = vunpack.c.l.bf16 %v1069_v19  ;;  %v473_v43 = vunpack.c.h.bf16 %v1069_v19  ;;  %v474_v44 = vunpack.c.l.bf16 %v1071_v21 }
  0x9b   : > { %829 = vpow2.f32 %v410_v2  ;;  %v475_v45 = vunpack.c.h.bf16 %v1071_v21  ;;  %v476_v46 = vunpack.c.l.bf16 %v1073_v22  ;;  %vm376_vm0 = vcmp.gt.f32.partialorder %v981_v26, 0.0 }
  0x9c   : > { %831 = vpow2.f32 %v412_v6  ;;  %v477_v49 = vunpack.c.h.bf16 %v1073_v22  ;;  %v478_v50 = vunpack.c.l.bf16 %v1078_v30  ;;  %v479_v52 = vunpack.c.h.bf16 %v1078_v30 }
  0x9d   : > { %833 = vpow2.f32 %v414_v8  ;;  %vm377_vm1 = vcmp.gt.f32.partialorder %v984_v27, 0.0  ;;  %vm378_vm2 = vcmp.gt.f32.partialorder %v987_v28, 0.0  ;;  %vm379_vm3 = vcmp.gt.f32.partialorder %v991_v32, 0.0 }
  0x9e   : > { %835 = vpow2.f32 %v416_v3  ;;  %vm380_vm4 = vcmp.gt.f32.partialorder %v996_v37, 0.0  ;;  %vm381_vm5 = vcmp.gt.f32.partialorder %v1001_v41, 0.0  ;;  %vm382_vm6 = vcmp.gt.f32.partialorder %v1004_v42, 0.0 }
  0x9f   : > { %v812_v14 = vpop.eup %811  ;;  %837 = vpow2.f32 %v418_v10  ;;  %vm383_vm7 = vcmp.gt.f32.partialorder %v1011_v48, 0.0  ;;  %vm384_vm8 = vcmp.gt.f32.partialorder %v1016_v51, 0.0  ;;  %vm385_vm9 = vcmp.gt.f32.partialorder %v1021_v54, 0.0 }
  0xa0   : > { %v814_v20 = vpop.eup %813  ;;  %839 = vpow2.f32 %v420_v11  ;;  %v748_v55 = vadd.f32 -1.0, %v812_v14  ;;  %vm386_vm10 = vcmp.gt.f32.partialorder %v1025_v57, 0.0  ;;  %vm387_vm11 = vcmp.gt.f32.partialorder %v1030_v60, 0.0 }
  0xa1   : > { %v816_v29 = vpop.eup %815  ;;  %841 = vpow2.f32 %v422_v15  ;;  %v749_v58 = vadd.f32 -1.0, %v814_v20  ;;  %vm388_vm12 = vcmp.gt.f32.partialorder %v1037_v1, 0.0  ;;  %vm389_vm13 = vcmp.gt.f32.partialorder %v1042_v5, 0.0 }
  0xa2   : > { %v818_v35 = vpop.eup %817  ;;  %v750_v61 = vadd.f32 -1.0, %v816_v29  ;;  %v440_v10 = vsel %vm376_vm0, %v981_v26, %v748_v55  ;;  %vm390_vm14 = vcmp.gt.f32.partialorder %v1046_v7, 0.0  ;;  %vm391_vm15 = vcmp.gt.f32.partialorder %v1055_v9, 0.0 }
  0xa3   : > { %v820_v40 = vpop.eup %819  ;;  %v751_v62 = vadd.f32 -1.0, %v818_v35  ;;  %v441_v14 = vsel %vm377_vm1, %v984_v27, %v749_v58 }
  0xa4   : > { %v822_v47 = vpop.eup %821  ;;  %v752_v63 = vadd.f32 -1.0, %v820_v40  ;;  %v442_v29 = vsel %vm378_vm2, %v987_v28, %v750_v61  ;;  %v1131_v28 = vadd.f32 %v464_v23, %v440_v10  ;;  %v1142_v55 = vadd.f32 %v465_v24, %v441_v14 }
  0xa5   : > { %v824_v53 = vpop.eup %823  ;;  %v753_v2 = vadd.f32 -1.0, %v822_v47  ;;  %v443_v26 = vsel %vm379_vm3, %v991_v32, %v751_v62 }
  0xa6   : > { %v826_v56 = vpop.eup %825  ;;  %v754_v4 = vadd.f32 -1.0, %v824_v53  ;;  %v444_v35 = vsel %vm380_vm4, %v996_v37, %v752_v63  ;;  %vm496_vm0 = vcmp.gt.f32.partialorder %v1131_v28, 0.0  ;;  %vm497_vm1 = vcmp.gt.f32.partialorder %v1142_v55, 0.0 }
  0xa7   : > { %v828_v59 = vpop.eup %827  ;;  %v755_v8 = vadd.f32 -1.0, %v826_v56  ;;  %v445_v27 = vsel %vm381_vm5, %v1001_v41, %v753_v2  ;;  %v1149_v56 = vadd.f32 %v466_v25, %v442_v29 }
  0xa8   : > { %v830_v0 = vpop.eup %829  ;;  %v756_v3 = vadd.f32 -1.0, %v828_v59  ;;  %v446_v47 = vsel %vm382_vm6, %v1004_v42, %v754_v4  ;;  %v512_v59 = vmul.f32 1.442695, %v1131_v28 }
  0xa9   : > { %v832_v6 = vpop.eup %831  ;;  %v757_v15 = vadd.f32 -1.0, %v830_v0  ;;  %v447_v37 = vsel %vm383_vm7, %v1011_v48, %v755_v8  ;;  %v1153_v48 = vadd.f32 %v467_v31, %v443_v26  ;;  %v1168_v25 = vadd.f32 %v470_v36, %v446_v47 }
  0xaa   : > { %v834_v11 = vpop.eup %833  ;;  %v758_v20 = vadd.f32 -1.0, %v832_v6  ;;  %v448_v41 = vsel %vm384_vm8, %v1016_v51, %v756_v3  ;;  %v1157_v51 = vadd.f32 %v468_v33, %v444_v35  ;;  %v1172_v31 = vadd.f32 %v471_v38, %v447_v37 }
  0xab   : > { %v836_v40 = vpop.eup %835  ;;  %v759_v53 = vadd.f32 -1.0, %v834_v11  ;;  %v449_v23 = vsel %vm385_vm9, %v1021_v54, %v757_v15  ;;  %v1164_v54 = vadd.f32 %v469_v34, %v445_v27  ;;  %v1176_v33 = vadd.f32 %v472_v39, %v448_v41 }
  0xac   : > { %v838_v32 = vpop.eup %837  ;;  %v760_v24 = vadd.f32 -1.0, %v836_v40  ;;  %v450_v58 = vsel %vm386_vm10, %v1025_v57, %v758_v20  ;;  %v1184_v34 = vadd.f32 %v473_v43, %v449_v23  ;;  %v514_v36 = vmul.f32 1.442695, %v1142_v55 }
  0xad   : > { %v840_v42 = vpop.eup %839  ;;  %v761_v13 = vadd.f32 -1.0, %v838_v32  ;;  %v451_v16 = vsel %vm387_vm11, %v1030_v60, %v759_v53  ;;  %v1189_v38 = vadd.f32 %v474_v44, %v450_v58  ;;  %843 = vpow2.f32 %v512_v59 }
  0xae   : > { %v842_v12 = vpop.eup %841  ;;  %v762_v57 = vadd.f32 -1.0, %v840_v42  ;;  %v516_v39 = vmul.f32 1.442695, %v1149_v56  ;;  %v452_v61 = vsel %vm388_vm12, %v1037_v1, %v760_v24  ;;  %845 = vpow2.f32 %v514_v36 }
  0xaf   : > { %v763_v18 = vadd.f32 -1.0, %v842_v12  ;;  %v518_v60 = vmul.f32 1.442695, %v1153_v48  ;;  %v520_v19 = vmul.f32 1.442695, %v1157_v51  ;;  %v453_v43 = vsel %vm389_vm13, %v1042_v5, %v761_v13 }
  0xb0   : > { %847 = vpow2.f32 %v516_v39  ;;  %v522_v44 = vmul.f32 1.442695, %v1164_v54  ;;  %v524_v62 = vmul.f32 1.442695, %v1168_v25  ;;  %v454_v63 = vsel %vm390_vm14, %v1046_v7, %v762_v57 }
  0xb1   : > { %v1207_v1 = vadd.f32 %v475_v45, %v451_v16  ;;  %849 = vpow2.f32 %v518_v60  ;;  %v526_v0 = vmul.f32 1.442695, %v1172_v31  ;;  %v455_v5 = vsel %vm391_vm15, %v1055_v9, %v763_v18 }
  0xb2   : > { %v1215_v2 = vadd.f32 %v476_v46, %v452_v61  ;;  %851 = vpow2.f32 %v520_v19  ;;  %v528_v4 = vmul.f32 1.442695, %v1176_v33  ;;  %v579_v7 = vshrl.u32 %v578_v17, 7 }
  0xb3   : > { %v1221_v21 = vadd.f32 %v477_v49, %v453_v43  ;;  %853 = vpow2.f32 %v522_v44  ;;  %v530_v45 = vmul.f32 1.442695, %v1184_v34  ;;  %v1226_v6 = vadd.f32 %v478_v50, %v454_v63  ;;  %v576_v50 = vld [vmem:[%s1328_s4] sm:$0x3] }
  0xb4   : > { %855 = vpow2.f32 %v524_v62  ;;  %v532_v9 = vmul.f32 1.442695, %v1189_v38  ;;  %v1231_v46 = vadd.f32 %v479_v52, %v455_v5  ;;  %v534_v17 = vmul.f32 1.442695, %v1207_v1 }
  0xb5   : > { %857 = vpow2.f32 %v526_v0  ;;  %v536_v22 = vmul.f32 1.442695, %v1215_v2  ;;  %v580_v49 = vsub.s32 0, %v579_v7  ;;  %v538_v8 = vmul.f32 1.442695, %v1221_v21 }
  0xb6   : > { %859 = vpow2.f32 %v528_v4  ;;  %v584_v3 = vsub.s32 1, %v579_v7  ;;  %v540_v30 = vmul.f32 1.442695, %v1226_v6  ;;  %v542_v52 = vmul.f32 1.442695, %v1231_v46 }
  0xb7   : > { %861 = vpow2.f32 %v530_v45  ;;  %v1241_v11 = vrot.slane %v576_v50, %v580_v49  ;;  %vm498_vm2 = vcmp.gt.f32.partialorder %v1149_v56, 0.0  ;;  %vm499_vm3 = vcmp.gt.f32.partialorder %v1153_v48, 0.0 }
  0xb8   : > { %863 = vpow2.f32 %v532_v9  ;;  %v1244_v14 = vrot.slane %v576_v50, %v584_v3  ;;  %vm500_vm4 = vcmp.gt.f32.partialorder %v1157_v51, 0.0  ;;  %vm501_vm5 = vcmp.gt.f32.partialorder %v1164_v54, 0.0 }
  0xb9   : > { %865 = vpow2.f32 %v534_v17  ;;  %vm502_vm6 = vcmp.gt.f32.partialorder %v1168_v25, 0.0  ;;  %vm503_vm7 = vcmp.gt.f32.partialorder %v1172_v31, 0.0  ;;  %vm504_vm8 = vcmp.gt.f32.partialorder %v1176_v33, 0.0 }
  0xba   : > { %867 = vpow2.f32 %v536_v22  ;;  %v844_v10 = vpop.eup %843  ;;  %vm505_vm9 = vcmp.gt.f32.partialorder %v1184_v34, 0.0  ;;  %vm506_vm10 = vcmp.gt.f32.partialorder %v1189_v38, 0.0  ;;  %vm507_vm11 = vcmp.gt.f32.partialorder %v1207_v1, 0.0 }
  0xbb   : > { %869 = vpow2.f32 %v538_v8  ;;  %v846_v15 = vpop.eup %845  ;;  %v764_v20 = vadd.f32 -1.0, %v844_v10  ;;  %vm508_vm12 = vcmp.gt.f32.partialorder %v1215_v2, 0.0  ;;  %vm509_vm13 = vcmp.gt.f32.partialorder %v1221_v21, 0.0 }
  0xbc   : > { %871 = vpow2.f32 %v540_v30  ;;  %v765_v26 = vadd.f32 -1.0, %v846_v15  ;;  %vm510_vm14 = vcmp.gt.f32.partialorder %v1226_v6, 0.0  ;;  %vm511_vm15 = vcmp.gt.f32.partialorder %v1231_v46, 0.0 }
  0xbd   : > { %v848_v29 = vpop.eup %847  ;;  %873 = vpow2.f32 %v542_v52  ;;  %v560_v27 = vsel %vm496_vm0, %v1131_v28, %v764_v20 }
  0xbe   : > { %v850_v35 = vpop.eup %849  ;;  %v766_v40 = vadd.f32 -1.0, %v848_v29  ;;  %v561_v53 = vsel %vm497_vm1, %v1142_v55, %v765_v26  ;;  %v588_v37 = vmul.f32 %v1241_v11, %v560_v27 }
  0xbf   : > { %v852_v47 = vpop.eup %851  ;;  %v767_v32 = vadd.f32 -1.0, %v850_v35  ;;  %v589_v12 = vmul.f32 %v1244_v14, %v561_v53 }
  0xc0   : > { %v854_v41 = vpop.eup %853  ;;  %v768_v42 = vadd.f32 -1.0, %v852_v47  ;;  %v562_v23 = vsel %vm498_vm2, %v1149_v56, %v766_v40  ;;  %604 = vst [vmem:[%s1250_s13] sm:$0xff] %v588_v37 }
  0xc1   : > { %v856_v24 = vpop.eup %855  ;;  %v769_v28 = vadd.f32 -1.0, %v854_v41  ;;  %v563_v58 = vsel %vm499_vm3, %v1153_v48, %v767_v32  ;;  %v590_v55 = vmul.f32 %v1241_v11, %v562_v23  ;;  %605 = vst [vmem:[%s1250_s13 + $0x8] sm:$0xff] %v589_v12 }
  0xc2   : > { %v858_v13 = vpop.eup %857  ;;  %v770_v59 = vadd.f32 -1.0, %v856_v24  ;;  %v564_v57 = vsel %vm500_vm4, %v1157_v51, %v768_v42  ;;  %v591_v56 = vmul.f32 %v1244_v14, %v563_v58 }
  0xc3   : > { %v860_v16 = vpop.eup %859  ;;  %v771_v36 = vadd.f32 -1.0, %v858_v13  ;;  %v565_v48 = vsel %vm501_vm5, %v1164_v54, %v769_v28  ;;  %v592_v18 = vmul.f32 %v1241_v11, %v564_v57  ;;  %606 = vst [vmem:[%s1250_s13 + $0x10] sm:$0xff] %v590_v55 }
  0xc4   : > { %v862_v39 = vpop.eup %861  ;;  %v772_v61 = vadd.f32 -1.0, %v860_v16  ;;  %v566_v51 = vsel %vm502_vm6, %v1168_v25, %v770_v59  ;;  %v593_v60 = vmul.f32 %v1244_v14, %v565_v48  ;;  %607 = vst [vmem:[%s1250_s13 + $0x18] sm:$0xff] %v591_v56 }
  0xc5   : > { %v864_v19 = vpop.eup %863  ;;  %v773_v43 = vadd.f32 -1.0, %v862_v39  ;;  %v567_v54 = vsel %vm503_vm7, %v1172_v31, %v771_v36  ;;  %v594_v44 = vmul.f32 %v1241_v11, %v566_v51  ;;  %608 = vst [vmem:[%s1250_s13 + $0x20] sm:$0xff] %v592_v18 }
  0xc6   : > { %v866_v62 = vpop.eup %865  ;;  %v774_v63 = vadd.f32 -1.0, %v864_v19  ;;  %v568_v25 = vsel %vm504_vm8, %v1176_v33, %v772_v61  ;;  %v595_v0 = vmul.f32 %v1244_v14, %v567_v54  ;;  %609 = vst [vmem:[%s1250_s13 + $0x28] sm:$0xff] %v593_v60 }
  0xc7   : > { %v868_v5 = vpop.eup %867  ;;  %v775_v4 = vadd.f32 -1.0, %v866_v62  ;;  %v569_v31 = vsel %vm505_vm9, %v1184_v34, %v773_v43  ;;  %v596_v7 = vmul.f32 %v1241_v11, %v568_v25  ;;  %610 = vst [vmem:[%s1250_s13 + $0x30] sm:$0xff] %v594_v44 }
  0xc8   : > { %v870_v45 = vpop.eup %869  ;;  %v776_v9 = vadd.f32 -1.0, %v868_v5  ;;  %v570_v33 = vsel %vm506_vm10, %v1189_v38, %v774_v63  ;;  %v597_v17 = vmul.f32 %v1244_v14, %v569_v31  ;;  %611 = vst [vmem:[%s1250_s13 + $0x38] sm:$0xff] %v595_v0 }
  0xc9   : > { %v872_v22 = vpop.eup %871  ;;  %v777_v49 = vadd.f32 -1.0, %v870_v45  ;;  %v571_v34 = vsel %vm507_vm11, %v1207_v1, %v775_v4  ;;  %v598_v8 = vmul.f32 %v1241_v11, %v570_v33  ;;  %612 = vst [vmem:[%s1250_s13 + $0x40] sm:$0xff] %v596_v7 }
  0xca   : > { %v874_v50 = vpop.eup %873  ;;  %v778_v3 = vadd.f32 -1.0, %v872_v22  ;;  %v572_v38 = vsel %vm508_vm12, %v1215_v2, %v776_v9  ;;  %v599_v30 = vmul.f32 %v1244_v14, %v571_v34  ;;  %613 = vst [vmem:[%s1250_s13 + $0x48] sm:$0xff] %v597_v17 }
  0xcb   : > { %v779_v1 = vadd.f32 -1.0, %v874_v50  ;;  %v573_v52 = vsel %vm509_vm13, %v1221_v21, %v777_v49  ;;  %v600_v10 = vmul.f32 %v1241_v11, %v572_v38  ;;  %614 = vst [vmem:[%s1250_s13 + $0x50] sm:$0xff] %v598_v8 }
  0xcc   : > { %v574_v15 = vsel %vm510_vm14, %v1226_v6, %v778_v3  ;;  %v601_v2 = vmul.f32 %v1244_v14, %v573_v52  ;;  %615 = vst [vmem:[%s1250_s13 + $0x58] sm:$0xff] %v599_v30 }
  0xcd   : > { %v575_v20 = vsel %vm511_vm15, %v1231_v46, %v779_v1  ;;  %v602_v29 = vmul.f32 %v1241_v11, %v574_v15  ;;  %616 = vst [vmem:[%s1250_s13 + $0x60] sm:$0xff] %v600_v10 }
  0xce   : > { %v603_v26 = vmul.f32 %v1244_v14, %v575_v20  ;;  %617 = vst [vmem:[%s1250_s13 + $0x68] sm:$0xff] %v601_v2 }
  0xcf   : > { %618 = vst [vmem:[%s1250_s13 + $0x70] sm:$0xff] %v602_v29 }
  0xd0   : > { %619 = vst [vmem:[%s1250_s13 + $0x78] sm:$0xff] %v603_v26 }
  0xd1 PF: > { %s15_s20 = sadd.s32 1, %s897_s20   ;;  %s1330_s18 = smov %s893_s19 }
  0xd2   : > { %p12_p5 = scmp.ge.s32.totalorder %s15_s20, 4   ;;  %s1331_s19 = smov %s1333_s21 }
  0xd4   :  { %14 = sbr.rel (!%p12_p5) target bundleno = 2 (0x2), region = 73 }

// kernel: down_transition_forward.8
= control target key start
LH: loop header
LB: loop body
LE: loop exit
PB: predicated region body
PF: predicated region fallthrough
CT: control target
= control target key end

     0   :  { %s3673_s30 = smov 0   ;;  %s3675_s10 = smov 0   ;;  %s3902_s0 = inlined_call_operand.vmem [shape: bf16[2,8,8,256], index: 0, kind: input, shape index: {}, may-alias: {0,1,2,3,4}]   ;;  %s3903_s1 = inlined_call_operand.vmem [shape: bf16[2,8,8,256], index: 1, kind: input, shape index: {}, may-alias: {0,1,2,3,4}]   ;;  %s3904_s2 = inlined_call_operand.vmem [shape: bf16[2,8,8,256], index: 2, kind: input, shape index: {}, may-alias: {0,1,2,3,4}]   ;;  %s3905_s3 = inlined_call_operand.vmem [shape: bf16[2,8,8,256], index: 3, kind: input, shape index: {}, may-alias: {0,1,2,3,4}]   ;;  %s3906_s4 = inlined_call_operand.vmem [shape: bf16[2,8,8,256], index: 4, kind: input, shape index: {}, may-alias: {0,1,2,3,4}]   ;;  %s3907_s5 = inlined_call_operand.vmem [shape: bf16[8,1000], index: 5, kind: input, shape index: {}]   ;;  %s3908_s6 = inlined_call_operand.vmem [shape: f32[1,128], index: 6, kind: input, shape index: {}]   ;;  %s3909_s7 = inlined_call_operand.vmem [shape: bf16[2,8,8,256], index: 7, kind: output, shape index: {0}]   ;;  %s3910_s8 = inlined_call_operand.vmem [shape: f32[2,8,1], index: 8, kind: output, shape index: {1}]   ;;  %s3911_s9 = inlined_call_operand.vmem [shape: f32[2,8,1], index: 9, kind: output, shape index: {2}]  }
   0x1   :  { %3915 = sst [smem:[#allocation8_spill]] %s3902_s0  ;;  %s3677_s11 = smov 0  }
   0x2   :  { %3916 = sst [smem:[#allocation9_spill]] %s3903_s1  ;;  %s3679_s12 = smov 0  }
   0x3   :  { %3917 = sst [smem:[#allocation10_spill]] %s3904_s2  ;;  %s3681_s13 = smov 0  }
   0x4   :  { %3918 = sst [smem:[#allocation11_spill]] %s3908_s6 }
   0x5   :  { %3919 = sst [smem:[#allocation12_spill]] %s3910_s8 }
   0x6   :  { %3920 = sst [smem:[#allocation13_spill]] %s3911_s9 }
   0x7 LB: > { %3921 = sst [smem:[#allocation3_spill]] %s3485_s11  ;;  %s29_s14 = sadd.s32 1, %s3485_s11  ;;  %s3493_s13 = sphi %s3681_s13, %s20_s13   ;;  %s3489_s12 = sphi %s3679_s12, %s3941_s12   ;;  %s3485_s11 = sphi %s3677_s11, %s3940_s11   ;;  %s3481_s10 = sphi %s3675_s10, %s3939_s10   ;;  %s3477_s30 = sphi %s3673_s30, %s3938_s30  }
   0x8   : > { %3922 = sst [smem:[#allocation4_spill]] %s3489_s12  ;;  %s32_s15 = sadd.s32 1, %s3489_s12 }
   0x9   : > { %3923 = sst [smem:[#allocation5_spill]] %s3493_s13  ;;  %p30_p0 = scmp.ge.s32.totalorder %s29_s14, 8 }
   0xa   : > { %p2996_p1 = scmp.ge.s32.totalorder %s3493_s13, 1  ;;  %p472_p2 = scmp.lt.s32.totalorder %s3493_s13, 17 }
   0xb   : > { %s3943_s14 = smov (%p30_p0, %s29_s14), 0  ;;  %s3945_s15 = smov (!%p30_p0, %s32_s15), %s3489_s12 }
   0xc   : > { %3924 = sst [smem:[#allocation6_spill]] %s3943_s14  ;;  %p473_p3 = pnand %p2996_p1, %p472_p2 }
   0xd   : > { %p34_p4 = scmp.ge.s32.totalorder %s3945_s15, 2  ;;  %s3706_s16 = sadd.s32 (!%p473_p3), 4294967294, %s3477_s30 }
   0xe   : > { %476 = sbr.rel (%p473_p3) target bundleno = 1432 (0x598), region = 48  ;;  %p589_p5 = scmp.lt.s32.totalorder (!%p473_p3), %s3481_s10, 1 }
   0xf   : > { %s3947_s15 = smov (%p34_p4, %s3945_s15), 0  ;;  %p585_p6 = scmp.gt.s32.totalorder (!%p473_p3), %s3706_s16, 0 }
  0x10   : > { %3925 = sst [smem:[#allocation7_spill]] %s3947_s15  ;;  %p2997_p7 = scmp.lt.s32.totalorder (!%p473_p3), %s3706_s16, 7 }
  0x11   : > { %s3714_s18 = sadd.s32 (!%p473_p3), 4294967295, %s3477_s30  ;;  %p622_p11 = scmp.gt.s32.totalorder (!%p473_p3), %s3477_s30, 0 }
  0x12   : > { %p604_p8 = scmp.gt.s32.totalorder (!%p473_p3), %s3714_s18, 0  ;;  %p3005_p9 = scmp.lt.s32.totalorder (!%p473_p3), %s3714_s18, 7 }
  0x13   : > { %s3949_s10 = smov (!%p589_p5, %s3481_s10), 1  ;;  %s3926_s0 = sld [smem:[#allocation8_spill]] }
  0x14   : > { %s586_s17 = scalar_select %p585_p6, %s3706_s16, 0 }
  0x15   : > { %s3719_s19 = sshll.u32 %s3949_s10, 4  ;;  %s3730_s27 = sadd.s32 1, %s3477_s30 }
  0x16   : > { %s3951_s17 = smov (!%p2997_p7, %s586_s17), 7  ;;  %p3013_p13 = scmp.lt.s32.totalorder %s3477_s30, 7 }
  0x17   : > { %p591_p10 = scmp.lt.s32.totalorder %s3951_s17, 7  ;;  %p640_p0 = scmp.gt.s32.totalorder %s3730_s27, 0 }
  0x18   : > { %s605_s20 = scalar_select %p604_p8, %s3714_s18, 0 }
  0x19   : > { %s3953_s17 = smov (!%p591_p10, %s3951_s17), 7  ;;  %p3021_p1 = scmp.lt.s32.totalorder %s3730_s27, 7 }
  0x1a   : > { %s3955_s20 = smov (!%p3005_p9, %s605_s20), 7  ;;  %s3002_s21 = sshll.u32 %s3953_s17, 1 }
  0x1b   : > { %s595_s22 = sadd.s32 %s3719_s19, %s3002_s21  ;;  %p610_p12 = scmp.lt.s32.totalorder %s3955_s20, 7 }
  0x1c   : > { %s3004_s23 = sshll.u32 %s595_s22, 2  ;;  %s3927_s1 = sld [smem:[#allocation9_spill]] }
  0x1d   : > { %s3727_s26 = scalar_lea.vmem %s3926_s0, %s3004_s23  ;;  %s3957_s20 = smov (!%p610_p12, %s3955_s20), 7 }
  0x1e   : > { %s623_s28 = scalar_select %p622_p11, %s3477_s30, 0 }
  0x1f   : > { %s3010_s29 = sshll.u32 %s3957_s20, 1  ;;  %s3743_s23 = sadd.s32 2, %s3477_s30 }
  0x20   : > { %s614_s17 = sadd.s32 %s3010_s29, %s3719_s19  ;;  %s3959_s28 = smov (!%p3013_p13, %s623_s28), 7 }
  0x21   : > { %s3012_s21 = sshll.u32 %s614_s17, 2  ;;  %p628_p2 = scmp.lt.s32.totalorder %s3959_s28, 7 }
  0x22   : > { %s3740_s24 = scalar_lea.vmem %s3927_s1, %s3012_s21  ;;  %s3040_s20 = sshll.u32 %s3949_s10, 3 }
  0x23   : > { %s641_s25 = scalar_select %p640_p0, %s3730_s27, 0 }
  0x24   : > { %s3963_s28 = smov (!%p628_p2, %s3959_s28), 7  ;;  %s3928_s8 = sld [smem:[#allocation12_spill]] }
  0x25   : > { %s3961_s25 = smov (!%p3021_p1, %s641_s25), 7  ;;  %s3018_s21 = sshll.u32 %s3963_s28, 1 }
  0x26   : > { %p646_p3 = scmp.lt.s32.totalorder %s3961_s25, 7  ;;  %s3929_s9 = sld [smem:[#allocation13_spill]] }
  0x27   : > { %s632_s14 = sadd.s32 %s3018_s21, %s3719_s19  ;;  %p659_p4 = scmp.gt.s32.totalorder %s3743_s23, 0 }
  0x28   : > { %s3020_s10 = sshll.u32 %s632_s14, 2  ;;  %s3930_s2 = sld [smem:[#allocation10_spill]] }
  0x29   : > { %s3965_s25 = smov (!%p646_p3, %s3961_s25), 7  ;;  %p3029_p5 = scmp.lt.s32.totalorder %s3743_s23, 7 }
  0x2a   : > { %s3752_s15 = scalar_lea.vmem %s3928_s8, %s3040_s20  ;;  %s3026_s17 = sshll.u32 %s3965_s25, 1 }
  0x2b   : > { %s660_s29 = scalar_select %p659_p4, %s3743_s23, 0 }
  0x2c   : > { %s3757_s1 = scalar_lea.vmem %s3929_s9, %s3040_s20  ;;  %s650_s28 = sadd.s32 %s3026_s17, %s3719_s19 }
  0x2d   : > { %s3028_s8 = sshll.u32 %s650_s28, 2  ;;  %s3967_s29 = smov (!%p3029_p5, %s660_s29), 7 }
  0x2e   : > { %s3764_s13 = scalar_lea.vmem %s3930_s2, %s3020_s10  ;;  %s3772_s20 = scalar_lea.vmem %s3905_s3, %s3028_s8 }
  0x2f   : > { %s680_s14 = scalar_select %p3013_p13, %s3477_s30, 7 }
  0x30   : > { %p665_p6 = scmp.lt.s32.totalorder %s3967_s29, 7  ;;  %p3042_p7 = scmp.ne.s32.totalorder %s3477_s30, 0 }
  0x31   : > { %s3037_s21 = sshll.u32 %s680_s14, 1 }
  0x32   : > { %s3969_s29 = smov (!%p665_p6, %s3967_s29), 7  ;;  %s683_s11 = sadd.s32 %s3037_s21, %s3719_s19 }
  0x33   : > { %s3034_s12 = sshll.u32 %s3969_s29, 1  ;;  %s3039_s22 = sshll.u32 %s683_s11, 2 }
  0x34   : > { %s669_s10 = sadd.s32 %s3034_s12, %s3719_s19  ;;  %s3782_s17 = scalar_lea.vmem %s3909_s7, %s3039_s22 }
  0x35   : > { %s3036_s28 = sshll.u32 %s669_s10, 2  ;;  %698 = sbr.rel (%p3042_p7) target bundleno = 60 (0x3c), region = 52 }
  0x36   : > { %s3787_s8 = scalar_lea.vmem %s3906_s4, %s3036_s28 }
  0x3a   : > { %vm699_vm0 = vcmask 7168   ;;  %v3495_v0 = vmov 0.0  }
  0x3b   : > { %700 = vst.msk [vmem:[%s3752_s15] sm:$0xff] %vm699_vm0, %v3495_v0  ;;  %701 = vst.msk [vmem:[%s3757_s1] sm:$0xff] %vm699_vm0, %v3495_v0 }
  0x3c PF: > { %p703_p8 = scmp.ge.s32.totalorder %s3706_s16, 0  ;;  %p704_p9 = scmp.lt.s32.totalorder %s3706_s16, 8 }
  0x3e   : > { %p3794_p10 = pnand %p704_p9, %p703_p8 }
  0x3f   : > { %s3496_s9 = smov (!%p3794_p10), 125   ;;  %s3497_s19 = smov (!%p3794_p10), 127  }
  0x40   : > { %708 = sbr.rel (%p3794_p10) target bundleno = 233 (0xe9), region = 56  ;;  %s3498_s29 = smov (!%p3794_p10), 124  }
  0x41   : > { %s3499_s0 = smov (!%p3794_p10), 126   ;;  %s3500_s14 = smov (!%p3794_p10), 115  }
  0x42   : > { %s3501_s16 = smov (!%p3794_p10), 116   ;;  %s3502_s21 = smov (!%p3794_p10), 113  }
  0x43   : > { %s3503_s11 = smov (!%p3794_p10), 114   ;;  %s3504_s12 = smov (!%p3794_p10), 104  }
  0x44   : > { %s3505_s22 = smov (!%p3794_p10), 112   ;;  %s3506_s10 = smov (!%p3794_p10), 102  }
  0x45   : > { %v729_v1 = vld [vmem:[%s3727_s26] sm:$0xff]  ;;  %s3507_s25 = smov 103   ;;  %s3508_s28 = smov 100   ;;  %vm734_vm1 = vcmask 1022976   ;;  %vm716_vm2 = vcmask 1039360   ;;  %vm743_vm3 = vcmask 1014784  }
  0x46   : > { %731 = vrot.lane.b32.xlu1 %v729_v1, %s3496_s9  ;;  %713 = vrot.lane.b32.xlu0 %v729_v1, %s3497_s19  ;;  %s3509_s6 = smov 101   ;;  %s3510_s9 = smov 91   ;;  %v709_v2 = vld [vmem:[%s3727_s26] sm:$0xf]  ;;  %vm725_vm4 = vcmask 1031168   ;;  %vm761_vm5 = vcmask 941056  }
  0x47   : > { %s3511_s19 = smov 92   ;;  %710 = vst [vmem:[#allocation2] sm:$0xf] %v709_v2  ;;  %vm752_vm6 = vcmask 949248   ;;  %vm779_vm7 = vcmask 924672   ;;  %vm770_vm8 = vcmask 932864  }
  0x48   : > { %vm797_vm9 = vcmask 850944   ;;  %vm788_vm10 = vcmask 916480   ;;  %vm815_vm11 = vcmask 834560   ;;  %vm806_vm12 = vcmask 842752  }
  0x49   : > { %vm833_vm13 = vcmask 818176   ;;  %vm824_vm14 = vcmask 826368   ;;  %vm851_vm15 = vcmask 744448   ;;  %vm842_vm0 = vcmask 752640  }
  0x4a   : > { %740 = vrot.lane.b32.xlu1 %v729_v1, %s3498_s29  ;;  %722 = vrot.lane.b32.xlu0 %v729_v1, %s3499_s0  ;;  %s3512_s29 = smov 89   ;;  %s3513_s0 = smov 90  }
  0x4e   : > { %758 = vrot.lane.b32.xlu1 %v729_v1, %s3500_s14  ;;  %749 = vrot.lane.b32.xlu0 %v729_v1, %s3501_s16  ;;  %s3514_s14 = smov 80   ;;  %s3515_s16 = smov 88  }
  0x52   : > { %776 = vrot.lane.b32.xlu1 %v729_v1, %s3502_s21  ;;  %767 = vrot.lane.b32.xlu0 %v729_v1, %s3503_s11  ;;  %s3516_s21 = smov 78   ;;  %s3517_s11 = smov 79  }
  0x56   : > { %794 = vrot.lane.b32.xlu1 %v729_v1, %s3504_s12  ;;  %785 = vrot.lane.b32.xlu0 %v729_v1, %s3505_s22  ;;  %s3518_s12 = smov 76   ;;  %s3519_s22 = smov 77  }
  0x5a   : > { %812 = vrot.lane.b32.xlu1 %v729_v1, %s3506_s10  ;;  %803 = vrot.lane.b32.xlu0 %v729_v1, %s3507_s25 }
  0x5e   : > { %830 = vrot.lane.b32.xlu1 %v729_v1, %s3508_s28  ;;  %821 = vrot.lane.b32.xlu0 %v729_v1, %s3509_s6 }
  0x62   : > { %848 = vrot.lane.b32.xlu1 %v729_v1, %s3510_s9  ;;  %839 = vrot.lane.b32.xlu0 %v729_v1, %s3511_s19 }
  0x66   : > { %866 = vrot.lane.b32.xlu1 %v729_v1, %s3512_s29  ;;  %857 = vrot.lane.b32.xlu0 %v729_v1, %s3513_s0 }
  0x6a   : > { %884 = vrot.lane.b32.xlu1 %v729_v1, %s3514_s14  ;;  %875 = vrot.lane.b32.xlu0 %v729_v1, %s3515_s16 }
  0x6e   : > { %902 = vrot.lane.b32.xlu1 %v729_v1, %s3516_s21  ;;  %893 = vrot.lane.b32.xlu0 %v729_v1, %s3517_s11 }
  0x72   : > { %920 = vrot.lane.b32.xlu1 %v729_v1, %s3518_s12  ;;  %911 = vrot.lane.b32.xlu0 %v729_v1, %s3519_s22 }
  0xb8   : > { %v732_v3 = vpop.permute.xlu1 %731  ;;  %v714_v4 = vpop.permute.xlu0 %713 }
  0xb9   : > { %v733_v5 = vrot.slane %v732_v3, 4  ;;  %v715_v6 = vrot.slane %v714_v4, 4 }
  0xbb   : > { %v735_v7 = vsel %vm734_vm1, %v732_v3, %v733_v5  ;;  %v717_v8 = vsel %vm716_vm2, %v714_v4, %v715_v6  ;;  %vm869_vm1 = vcmask 728064   ;;  %vm860_vm2 = vcmask 736256  }
  0xbc   : > { %737 = vst [vmem:[#allocation2 + $0xc] sm:$0xf] %v735_v7  ;;  %719 = vst [vmem:[#allocation2 + $0x4] sm:$0xf] %v717_v8  ;;  %v741_v9 = vpop.permute.xlu1 %740  ;;  %v723_v10 = vpop.permute.xlu0 %722 }
  0xbd   : > { %v742_v11 = vrot.slane %v741_v9, 4  ;;  %v724_v12 = vrot.slane %v723_v10, 4 }
  0xbf   : > { %v744_v13 = vsel %vm743_vm3, %v741_v9, %v742_v11  ;;  %v726_v14 = vsel %vm725_vm4, %v723_v10, %v724_v12  ;;  %vm887_vm3 = vcmask 654336   ;;  %vm878_vm4 = vcmask 719872  }
  0xc0   : > { %746 = vst [vmem:[#allocation2 + $0x10] sm:$0xf] %v744_v13  ;;  %728 = vst [vmem:[#allocation2 + $0x8] sm:$0xf] %v726_v14  ;;  %v759_v15 = vpop.permute.xlu1 %758  ;;  %v750_v16 = vpop.permute.xlu0 %749 }
  0xc1   : > { %v760_v17 = vrot.slane %v759_v15, 4  ;;  %v751_v18 = vrot.slane %v750_v16, 4 }
  0xc3   : > { %v762_v19 = vsel %vm761_vm5, %v759_v15, %v760_v17  ;;  %v753_v20 = vsel %vm752_vm6, %v750_v16, %v751_v18  ;;  %vm905_vm5 = vcmask 637952   ;;  %vm896_vm6 = vcmask 646144  }
  0xc4   : > { %764 = vst [vmem:[#allocation2 + $0x18] sm:$0xf] %v762_v19  ;;  %755 = vst [vmem:[#allocation2 + $0x14] sm:$0xf] %v753_v20  ;;  %v777_v21 = vpop.permute.xlu1 %776  ;;  %v768_v22 = vpop.permute.xlu0 %767 }
  0xc5   : > { %v778_v23 = vrot.slane %v777_v21, 4  ;;  %v769_v24 = vrot.slane %v768_v22, 4 }
  0xc7   : > { %v780_v25 = vsel %vm779_vm7, %v777_v21, %v778_v23  ;;  %v771_v26 = vsel %vm770_vm8, %v768_v22, %v769_v24  ;;  %vm923_vm7 = vcmask 621568   ;;  %vm914_vm8 = vcmask 629760  }
  0xc8   : > { %782 = vst [vmem:[#allocation2 + $0x20] sm:$0xf] %v780_v25  ;;  %773 = vst [vmem:[#allocation2 + $0x1c] sm:$0xf] %v771_v26  ;;  %v795_v27 = vpop.permute.xlu1 %794  ;;  %v786_v28 = vpop.permute.xlu0 %785 }
  0xc9   : > { %v796_v29 = vrot.slane %v795_v27, 4  ;;  %v787_v30 = vrot.slane %v786_v28, 4 }
  0xcb   : > { %v798_v31 = vsel %vm797_vm9, %v795_v27, %v796_v29  ;;  %v789_v32 = vsel %vm788_vm10, %v786_v28, %v787_v30 }
  0xcc   : > { %800 = vst [vmem:[#allocation2 + $0x28] sm:$0xf] %v798_v31  ;;  %791 = vst [vmem:[#allocation2 + $0x24] sm:$0xf] %v789_v32  ;;  %v813_v33 = vpop.permute.xlu1 %812  ;;  %v804_v34 = vpop.permute.xlu0 %803 }
  0xcd   : > { %v814_v35 = vrot.slane %v813_v33, 4  ;;  %v805_v36 = vrot.slane %v804_v34, 4 }
  0xcf   : > { %v816_v37 = vsel %vm815_vm11, %v813_v33, %v814_v35  ;;  %v807_v38 = vsel %vm806_vm12, %v804_v34, %v805_v36 }
  0xd0   : > { %818 = vst [vmem:[#allocation2 + $0x30] sm:$0xf] %v816_v37  ;;  %809 = vst [vmem:[#allocation2 + $0x2c] sm:$0xf] %v807_v38  ;;  %v831_v39 = vpop.permute.xlu1 %830  ;;  %v822_v40 = vpop.permute.xlu0 %821 }
  0xd1   : > { %v832_v41 = vrot.slane %v831_v39, 4  ;;  %v823_v42 = vrot.slane %v822_v40, 4 }
  0xd3   : > { %v834_v43 = vsel %vm833_vm13, %v831_v39, %v832_v41  ;;  %v825_v44 = vsel %vm824_vm14, %v822_v40, %v823_v42 }
  0xd4   : > { %836 = vst [vmem:[#allocation2 + $0x38] sm:$0xf] %v834_v43  ;;  %827 = vst [vmem:[#allocation2 + $0x34] sm:$0xf] %v825_v44  ;;  %v849_v45 = vpop.permute.xlu1 %848  ;;  %v840_v46 = vpop.permute.xlu0 %839 }
  0xd5   : > { %v850_v47 = vrot.slane %v849_v45, 4  ;;  %v841_v48 = vrot.slane %v840_v46, 4 }
  0xd7   : > { %v852_v49 = vsel %vm851_vm15, %v849_v45, %v850_v47  ;;  %v843_v50 = vsel %vm842_vm0, %v840_v46, %v841_v48 }
  0xd8   : > { %854 = vst [vmem:[#allocation2 + $0x40] sm:$0xf] %v852_v49  ;;  %845 = vst [vmem:[#allocation2 + $0x3c] sm:$0xf] %v843_v50  ;;  %v867_v51 = vpop.permute.xlu1 %866  ;;  %v858_v52 = vpop.permute.xlu0 %857 }
  0xd9   : > { %v868_v53 = vrot.slane %v867_v51, 4  ;;  %v859_v54 = vrot.slane %v858_v52, 4 }
  0xdb   : > { %v870_v55 = vsel %vm869_vm1, %v867_v51, %v868_v53  ;;  %v861_v56 = vsel %vm860_vm2, %v858_v52, %v859_v54 }
  0xdc   : > { %872 = vst [vmem:[#allocation2 + $0x48] sm:$0xf] %v870_v55  ;;  %863 = vst [vmem:[#allocation2 + $0x44] sm:$0xf] %v861_v56  ;;  %v885_v57 = vpop.permute.xlu1 %884  ;;  %v876_v58 = vpop.permute.xlu0 %875 }
  0xdd   : > { %v886_v59 = vrot.slane %v885_v57, 4  ;;  %v877_v60 = vrot.slane %v876_v58, 4 }
  0xdf   : > { %v888_v61 = vsel %vm887_vm3, %v885_v57, %v886_v59  ;;  %v879_v62 = vsel %vm878_vm4, %v876_v58, %v877_v60 }
  0xe0   : > { %890 = vst [vmem:[#allocation2 + $0x50] sm:$0xf] %v888_v61  ;;  %881 = vst [vmem:[#allocation2 + $0x4c] sm:$0xf] %v879_v62  ;;  %v903_v63 = vpop.permute.xlu1 %902  ;;  %v894_v0 = vpop.permute.xlu0 %893 }
  0xe1   : > { %v904_v1 = vrot.slane %v903_v63, 4  ;;  %v895_v2 = vrot.slane %v894_v0, 4 }
  0xe3   : > { %v906_v3 = vsel %vm905_vm5, %v903_v63, %v904_v1  ;;  %v897_v4 = vsel %vm896_vm6, %v894_v0, %v895_v2 }
  0xe4   : > { %908 = vst [vmem:[#allocation2 + $0x58] sm:$0xf] %v906_v3  ;;  %899 = vst [vmem:[#allocation2 + $0x54] sm:$0xf] %v897_v4  ;;  %v921_v5 = vpop.permute.xlu1 %920  ;;  %v912_v6 = vpop.permute.xlu0 %911 }
  0xe5   : > { %v922_v7 = vrot.slane %v921_v5, 4  ;;  %v913_v8 = vrot.slane %v912_v6, 4 }
  0xe7   : > { %v924_v9 = vsel %vm923_vm7, %v921_v5, %v922_v7  ;;  %v915_v10 = vsel %vm914_vm8, %v912_v6, %v913_v8 }
  0xe8   : > { %926 = vst [vmem:[#allocation2 + $0x60] sm:$0xf] %v924_v9  ;;  %917 = vst [vmem:[#allocation2 + $0x5c] sm:$0xf] %v915_v10 }
  0xe9 PF: > { %929 = sbr.rel (!%p3794_p10) target bundleno = 247 (0xf7), region = 60  ;;  %v3520_v11 = vmov (%p3794_p10), 0  }
  0xea   : > { %930 = vst [vmem:[#allocation2] sm:$0xf] (%p3794_p10), %v3520_v11  ;;  %931 = vst [vmem:[#allocation2 + $0x4] sm:$0xf] (%p3794_p10), %v3520_v11 }
  0xeb   : > { %932 = vst [vmem:[#allocation2 + $0x8] sm:$0xf] (%p3794_p10), %v3520_v11  ;;  %933 = vst [vmem:[#allocation2 + $0xc] sm:$0xf] (%p3794_p10), %v3520_v11 }
  0xec   : > { %934 = vst [vmem:[#allocation2 + $0x10] sm:$0xf] (%p3794_p10), %v3520_v11  ;;  %935 = vst [vmem:[#allocation2 + $0x14] sm:$0xf] (%p3794_p10), %v3520_v11 }
  0xed   : > { %936 = vst [vmem:[#allocation2 + $0x18] sm:$0xf] (%p3794_p10), %v3520_v11  ;;  %937 = vst [vmem:[#allocation2 + $0x1c] sm:$0xf] (%p3794_p10), %v3520_v11 }
  0xee   : > { %938 = vst [vmem:[#allocation2 + $0x20] sm:$0xf] %v3520_v11  ;;  %939 = vst [vmem:[#allocation2 + $0x24] sm:$0xf] %v3520_v11 }
  0xef   : > { %940 = vst [vmem:[#allocation2 + $0x28] sm:$0xf] %v3520_v11  ;;  %941 = vst [vmem:[#allocation2 + $0x2c] sm:$0xf] %v3520_v11 }
  0xf0   : > { %942 = vst [vmem:[#allocation2 + $0x30] sm:$0xf] %v3520_v11  ;;  %943 = vst [vmem:[#allocation2 + $0x34] sm:$0xf] %v3520_v11 }
  0xf1   : > { %944 = vst [vmem:[#allocation2 + $0x38] sm:$0xf] %v3520_v11  ;;  %945 = vst [vmem:[#allocation2 + $0x3c] sm:$0xf] %v3520_v11 }
  0xf2   : > { %946 = vst [vmem:[#allocation2 + $0x40] sm:$0xf] %v3520_v11  ;;  %947 = vst [vmem:[#allocation2 + $0x44] sm:$0xf] %v3520_v11 }
  0xf3   : > { %948 = vst [vmem:[#allocation2 + $0x48] sm:$0xf] %v3520_v11  ;;  %949 = vst [vmem:[#allocation2 + $0x4c] sm:$0xf] %v3520_v11 }
  0xf4   : > { %950 = vst [vmem:[#allocation2 + $0x50] sm:$0xf] %v3520_v11  ;;  %951 = vst [vmem:[#allocation2 + $0x54] sm:$0xf] %v3520_v11 }
  0xf5   : > { %952 = vst [vmem:[#allocation2 + $0x58] sm:$0xf] %v3520_v11  ;;  %953 = vst [vmem:[#allocation2 + $0x5c] sm:$0xf] %v3520_v11 }
  0xf6   : > { %954 = vst [vmem:[#allocation2 + $0x60] sm:$0xf] %v3520_v11 }
  0xf7 PF: > { %p956_p11 = scmp.ge.s32.totalorder %s3714_s18, 0  ;;  %p957_p12 = scmp.lt.s32.totalorder %s3714_s18, 8 }
  0xf9   : > { %p3806_p13 = pnand %p957_p12, %p956_p11 }
  0xfa   : > { %s3521_s2 = smov (!%p3806_p13), 125   ;;  %s3522_s10 = smov (!%p3806_p13), 127  }
  0xfb   : > { %961 = sbr.rel (%p3806_p13) target bundleno = 420 (0x1a4), region = 64  ;;  %s3523_s25 = smov (!%p3806_p13), 124  }
  0xfc   : > { %s3524_s28 = smov (!%p3806_p13), 126   ;;  %s3525_s6 = smov (!%p3806_p13), 115  }
  0xfd   : > { %s3526_s18 = smov (!%p3806_p13), 116   ;;  %s3527_s9 = smov (!%p3806_p13), 113  }
  0xfe   : > { %s3528_s19 = smov (!%p3806_p13), 114   ;;  %s3529_s29 = smov (!%p3806_p13), 104  }
  0xff   : > { %s3530_s0 = smov (!%p3806_p13), 112   ;;  %s3531_s14 = smov (!%p3806_p13), 102  }
 0x100   : > { %v982_v12 = vld [vmem:[%s3740_s24] sm:$0xff]  ;;  %s3532_s16 = smov 103   ;;  %s3533_s21 = smov 100   ;;  %vm987_vm9 = vcmask 1022976   ;;  %vm969_vm10 = vcmask 1039360   ;;  %vm996_vm11 = vcmask 1014784  }
 0x101   : > { %984 = vrot.lane.b32.xlu1 %v982_v12, %s3521_s2  ;;  %966 = vrot.lane.b32.xlu0 %v982_v12, %s3522_s10  ;;  %s3534_s11 = smov 101   ;;  %s3535_s12 = smov 91   ;;  %v962_v13 = vld [vmem:[%s3740_s24] sm:$0xf]  ;;  %vm978_vm12 = vcmask 1031168   ;;  %vm1014_vm13 = vcmask 941056  }
 0x102   : > { %s3536_s22 = smov 92   ;;  %s3537_s2 = smov 89   ;;  %963 = vst [vmem:[#allocation2 + $0x64] sm:$0xf] %v962_v13  ;;  %vm1005_vm14 = vcmask 949248   ;;  %vm1032_vm15 = vcmask 924672  }
 0x103   : > { %s3538_s10 = smov 90   ;;  %vm1023_vm0 = vcmask 932864   ;;  %vm1050_vm1 = vcmask 850944   ;;  %vm1041_vm2 = vcmask 916480   ;;  %vm1068_vm3 = vcmask 834560  }
 0x104   : > { %vm1059_vm4 = vcmask 842752   ;;  %vm1086_vm5 = vcmask 818176   ;;  %vm1077_vm6 = vcmask 826368   ;;  %vm1104_vm7 = vcmask 744448  }
 0x105   : > { %993 = vrot.lane.b32.xlu1 %v982_v12, %s3523_s25  ;;  %975 = vrot.lane.b32.xlu0 %v982_v12, %s3524_s28  ;;  %s3539_s25 = smov 80   ;;  %s3540_s28 = smov 88   ;;  %vm1095_vm8 = vcmask 752640  }
 0x109   : > { %1011 = vrot.lane.b32.xlu1 %v982_v12, %s3525_s6  ;;  %1002 = vrot.lane.b32.xlu0 %v982_v12, %s3526_s18  ;;  %s3541_s6 = smov 78   ;;  %s3542_s18 = smov 79  }
 0x10d   : > { %1029 = vrot.lane.b32.xlu1 %v982_v12, %s3527_s9  ;;  %1020 = vrot.lane.b32.xlu0 %v982_v12, %s3528_s19  ;;  %s3543_s9 = smov 76   ;;  %s3544_s19 = smov 77  }
 0x111   : > { %1047 = vrot.lane.b32.xlu1 %v982_v12, %s3529_s29  ;;  %1038 = vrot.lane.b32.xlu0 %v982_v12, %s3530_s0 }
 0x115   : > { %1065 = vrot.lane.b32.xlu1 %v982_v12, %s3531_s14  ;;  %1056 = vrot.lane.b32.xlu0 %v982_v12, %s3532_s16 }
 0x119   : > { %1083 = vrot.lane.b32.xlu1 %v982_v12, %s3533_s21  ;;  %1074 = vrot.lane.b32.xlu0 %v982_v12, %s3534_s11 }
 0x11d   : > { %1101 = vrot.lane.b32.xlu1 %v982_v12, %s3535_s12  ;;  %1092 = vrot.lane.b32.xlu0 %v982_v12, %s3536_s22 }
 0x121   : > { %1119 = vrot.lane.b32.xlu1 %v982_v12, %s3537_s2  ;;  %1110 = vrot.lane.b32.xlu0 %v982_v12, %s3538_s10 }
 0x125   : > { %1137 = vrot.lane.b32.xlu1 %v982_v12, %s3539_s25  ;;  %1128 = vrot.lane.b32.xlu0 %v982_v12, %s3540_s28 }
 0x129   : > { %1155 = vrot.lane.b32.xlu1 %v982_v12, %s3541_s6  ;;  %1146 = vrot.lane.b32.xlu0 %v982_v12, %s3542_s18 }
 0x12d   : > { %1173 = vrot.lane.b32.xlu1 %v982_v12, %s3543_s9  ;;  %1164 = vrot.lane.b32.xlu0 %v982_v12, %s3544_s19 }
 0x173   : > { %v985_v14 = vpop.permute.xlu1 %984  ;;  %v967_v15 = vpop.permute.xlu0 %966 }
 0x174   : > { %v986_v16 = vrot.slane %v985_v14, 4  ;;  %v968_v17 = vrot.slane %v967_v15, 4 }
 0x176   : > { %v988_v18 = vsel %vm987_vm9, %v985_v14, %v986_v16  ;;  %v970_v19 = vsel %vm969_vm10, %v967_v15, %v968_v17  ;;  %vm1122_vm9 = vcmask 728064   ;;  %vm1113_vm10 = vcmask 736256  }
 0x177   : > { %990 = vst [vmem:[#allocation2 + $0x70] sm:$0xf] %v988_v18  ;;  %972 = vst [vmem:[#allocation2 + $0x68] sm:$0xf] %v970_v19  ;;  %v994_v20 = vpop.permute.xlu1 %993  ;;  %v976_v21 = vpop.permute.xlu0 %975 }
 0x178   : > { %v995_v22 = vrot.slane %v994_v20, 4  ;;  %v977_v23 = vrot.slane %v976_v21, 4 }
 0x17a   : > { %v997_v24 = vsel %vm996_vm11, %v994_v20, %v995_v22  ;;  %v979_v25 = vsel %vm978_vm12, %v976_v21, %v977_v23  ;;  %vm1140_vm11 = vcmask 654336   ;;  %vm1131_vm12 = vcmask 719872  }
 0x17b   : > { %999 = vst [vmem:[#allocation2 + $0x74] sm:$0xf] %v997_v24  ;;  %981 = vst [vmem:[#allocation2 + $0x6c] sm:$0xf] %v979_v25  ;;  %v1012_v26 = vpop.permute.xlu1 %1011  ;;  %v1003_v27 = vpop.permute.xlu0 %1002 }
 0x17c   : > { %v1013_v28 = vrot.slane %v1012_v26, 4  ;;  %v1004_v29 = vrot.slane %v1003_v27, 4 }
 0x17e   : > { %v1015_v30 = vsel %vm1014_vm13, %v1012_v26, %v1013_v28  ;;  %v1006_v31 = vsel %vm1005_vm14, %v1003_v27, %v1004_v29  ;;  %vm1158_vm13 = vcmask 637952   ;;  %vm1149_vm14 = vcmask 646144  }
 0x17f   : > { %1017 = vst [vmem:[#allocation2 + $0x7c] sm:$0xf] %v1015_v30  ;;  %1008 = vst [vmem:[#allocation2 + $0x78] sm:$0xf] %v1006_v31  ;;  %v1030_v32 = vpop.permute.xlu1 %1029  ;;  %v1021_v33 = vpop.permute.xlu0 %1020 }
 0x180   : > { %v1031_v34 = vrot.slane %v1030_v32, 4  ;;  %v1022_v35 = vrot.slane %v1021_v33, 4 }
 0x182   : > { %v1033_v36 = vsel %vm1032_vm15, %v1030_v32, %v1031_v34  ;;  %v1024_v37 = vsel %vm1023_vm0, %v1021_v33, %v1022_v35  ;;  %vm1176_vm15 = vcmask 621568   ;;  %vm1167_vm0 = vcmask 629760  }
 0x183   : > { %1035 = vst [vmem:[#allocation2 + $0x84] sm:$0xf] %v1033_v36  ;;  %1026 = vst [vmem:[#allocation2 + $0x80] sm:$0xf] %v1024_v37  ;;  %v1048_v38 = vpop.permute.xlu1 %1047  ;;  %v1039_v39 = vpop.permute.xlu0 %1038 }
 0x184   : > { %v1049_v40 = vrot.slane %v1048_v38, 4  ;;  %v1040_v41 = vrot.slane %v1039_v39, 4 }
 0x186   : > { %v1051_v42 = vsel %vm1050_vm1, %v1048_v38, %v1049_v40  ;;  %v1042_v43 = vsel %vm1041_vm2, %v1039_v39, %v1040_v41 }
 0x187   : > { %1053 = vst [vmem:[#allocation2 + $0x8c] sm:$0xf] %v1051_v42  ;;  %1044 = vst [vmem:[#allocation2 + $0x88] sm:$0xf] %v1042_v43  ;;  %v1066_v44 = vpop.permute.xlu1 %1065  ;;  %v1057_v45 = vpop.permute.xlu0 %1056 }
 0x188   : > { %v1067_v46 = vrot.slane %v1066_v44, 4  ;;  %v1058_v47 = vrot.slane %v1057_v45, 4 }
 0x18a   : > { %v1069_v48 = vsel %vm1068_vm3, %v1066_v44, %v1067_v46  ;;  %v1060_v49 = vsel %vm1059_vm4, %v1057_v45, %v1058_v47 }
 0x18b   : > { %1071 = vst [vmem:[#allocation2 + $0x94] sm:$0xf] %v1069_v48  ;;  %1062 = vst [vmem:[#allocation2 + $0x90] sm:$0xf] %v1060_v49  ;;  %v1084_v50 = vpop.permute.xlu1 %1083  ;;  %v1075_v51 = vpop.permute.xlu0 %1074 }
 0x18c   : > { %v1085_v52 = vrot.slane %v1084_v50, 4  ;;  %v1076_v53 = vrot.slane %v1075_v51, 4 }
 0x18e   : > { %v1087_v54 = vsel %vm1086_vm5, %v1084_v50, %v1085_v52  ;;  %v1078_v55 = vsel %vm1077_vm6, %v1075_v51, %v1076_v53 }
 0x18f   : > { %1089 = vst [vmem:[#allocation2 + $0x9c] sm:$0xf] %v1087_v54  ;;  %1080 = vst [vmem:[#allocation2 + $0x98] sm:$0xf] %v1078_v55  ;;  %v1102_v56 = vpop.permute.xlu1 %1101  ;;  %v1093_v57 = vpop.permute.xlu0 %1092 }
 0x190   : > { %v1103_v58 = vrot.slane %v1102_v56, 4  ;;  %v1094_v59 = vrot.slane %v1093_v57, 4 }
 0x192   : > { %v1105_v60 = vsel %vm1104_vm7, %v1102_v56, %v1103_v58  ;;  %v1096_v61 = vsel %vm1095_vm8, %v1093_v57, %v1094_v59 }
 0x193   : > { %1107 = vst [vmem:[#allocation2 + $0xa4] sm:$0xf] %v1105_v60  ;;  %1098 = vst [vmem:[#allocation2 + $0xa0] sm:$0xf] %v1096_v61  ;;  %v1120_v62 = vpop.permute.xlu1 %1119  ;;  %v1111_v63 = vpop.permute.xlu0 %1110 }
 0x194   : > { %v1121_v0 = vrot.slane %v1120_v62, 4  ;;  %v1112_v1 = vrot.slane %v1111_v63, 4 }
 0x196   : > { %v1123_v2 = vsel %vm1122_vm9, %v1120_v62, %v1121_v0  ;;  %v1114_v3 = vsel %vm1113_vm10, %v1111_v63, %v1112_v1 }
 0x197   : > { %1125 = vst [vmem:[#allocation2 + $0xac] sm:$0xf] %v1123_v2  ;;  %1116 = vst [vmem:[#allocation2 + $0xa8] sm:$0xf] %v1114_v3  ;;  %v1138_v4 = vpop.permute.xlu1 %1137  ;;  %v1129_v5 = vpop.permute.xlu0 %1128 }
 0x198   : > { %v1139_v6 = vrot.slane %v1138_v4, 4  ;;  %v1130_v7 = vrot.slane %v1129_v5, 4 }
 0x19a   : > { %v1141_v8 = vsel %vm1140_vm11, %v1138_v4, %v1139_v6  ;;  %v1132_v9 = vsel %vm1131_vm12, %v1129_v5, %v1130_v7 }
 0x19b   : > { %1143 = vst [vmem:[#allocation2 + $0xb4] sm:$0xf] %v1141_v8  ;;  %1134 = vst [vmem:[#allocation2 + $0xb0] sm:$0xf] %v1132_v9  ;;  %v1156_v10 = vpop.permute.xlu1 %1155  ;;  %v1147_v11 = vpop.permute.xlu0 %1146 }
 0x19c   : > { %v1157_v12 = vrot.slane %v1156_v10, 4  ;;  %v1148_v13 = vrot.slane %v1147_v11, 4 }
 0x19e   : > { %v1159_v14 = vsel %vm1158_vm13, %v1156_v10, %v1157_v12  ;;  %v1150_v15 = vsel %vm1149_vm14, %v1147_v11, %v1148_v13 }
 0x19f   : > { %1161 = vst [vmem:[#allocation2 + $0xbc] sm:$0xf] %v1159_v14  ;;  %1152 = vst [vmem:[#allocation2 + $0xb8] sm:$0xf] %v1150_v15  ;;  %v1174_v16 = vpop.permute.xlu1 %1173  ;;  %v1165_v17 = vpop.permute.xlu0 %1164 }
 0x1a0   : > { %v1175_v18 = vrot.slane %v1174_v16, 4  ;;  %v1166_v19 = vrot.slane %v1165_v17, 4 }
 0x1a2   : > { %v1177_v20 = vsel %vm1176_vm15, %v1174_v16, %v1175_v18  ;;  %v1168_v21 = vsel %vm1167_vm0, %v1165_v17, %v1166_v19 }
 0x1a3   : > { %1179 = vst [vmem:[#allocation2 + $0xc4] sm:$0xf] %v1177_v20  ;;  %1170 = vst [vmem:[#allocation2 + $0xc0] sm:$0xf] %v1168_v21 }
 0x1a4 PF: > { %1182 = sbr.rel (!%p3806_p13) target bundleno = 434 (0x1b2), region = 68  ;;  %v3545_v22 = vmov (%p3806_p13), 0  }
 0x1a5   : > { %1183 = vst [vmem:[#allocation2 + $0x64] sm:$0xf] (%p3806_p13), %v3545_v22  ;;  %1184 = vst [vmem:[#allocation2 + $0x68] sm:$0xf] (%p3806_p13), %v3545_v22 }
 0x1a6   : > { %1185 = vst [vmem:[#allocation2 + $0x6c] sm:$0xf] (%p3806_p13), %v3545_v22  ;;  %1186 = vst [vmem:[#allocation2 + $0x70] sm:$0xf] (%p3806_p13), %v3545_v22 }
 0x1a7   : > { %1187 = vst [vmem:[#allocation2 + $0x74] sm:$0xf] (%p3806_p13), %v3545_v22  ;;  %1188 = vst [vmem:[#allocation2 + $0x78] sm:$0xf] (%p3806_p13), %v3545_v22 }
 0x1a8   : > { %1189 = vst [vmem:[#allocation2 + $0x7c] sm:$0xf] (%p3806_p13), %v3545_v22  ;;  %1190 = vst [vmem:[#allocation2 + $0x80] sm:$0xf] (%p3806_p13), %v3545_v22 }
 0x1a9   : > { %1191 = vst [vmem:[#allocation2 + $0x84] sm:$0xf] %v3545_v22  ;;  %1192 = vst [vmem:[#allocation2 + $0x88] sm:$0xf] %v3545_v22 }
 0x1aa   : > { %1193 = vst [vmem:[#allocation2 + $0x8c] sm:$0xf] %v3545_v22  ;;  %1194 = vst [vmem:[#allocation2 + $0x90] sm:$0xf] %v3545_v22 }
 0x1ab   : > { %1195 = vst [vmem:[#allocation2 + $0x94] sm:$0xf] %v3545_v22  ;;  %1196 = vst [vmem:[#allocation2 + $0x98] sm:$0xf] %v3545_v22 }
 0x1ac   : > { %1197 = vst [vmem:[#allocation2 + $0x9c] sm:$0xf] %v3545_v22  ;;  %1198 = vst [vmem:[#allocation2 + $0xa0] sm:$0xf] %v3545_v22 }
 0x1ad   : > { %1199 = vst [vmem:[#allocation2 + $0xa4] sm:$0xf] %v3545_v22  ;;  %1200 = vst [vmem:[#allocation2 + $0xa8] sm:$0xf] %v3545_v22 }
 0x1ae   : > { %1201 = vst [vmem:[#allocation2 + $0xac] sm:$0xf] %v3545_v22  ;;  %1202 = vst [vmem:[#allocation2 + $0xb0] sm:$0xf] %v3545_v22 }
 0x1af   : > { %1203 = vst [vmem:[#allocation2 + $0xb4] sm:$0xf] %v3545_v22  ;;  %1204 = vst [vmem:[#allocation2 + $0xb8] sm:$0xf] %v3545_v22 }
 0x1b0   : > { %1205 = vst [vmem:[#allocation2 + $0xbc] sm:$0xf] %v3545_v22  ;;  %1206 = vst [vmem:[#allocation2 + $0xc0] sm:$0xf] %v3545_v22 }
 0x1b1   : > { %1207 = vst [vmem:[#allocation2 + $0xc4] sm:$0xf] %v3545_v22 }
 0x1b2 PF: > { %p1208_p0 = scmp.ge.s32.totalorder %s3477_s30, 0  ;;  %p1209_p1 = scmp.lt.s32.totalorder %s3477_s30, 8 }
 0x1b4   : > { %p3818_p2 = pnand %p1209_p1, %p1208_p0 }
 0x1b5   : > { %s3546_s26 = smov (!%p3818_p2), 125   ;;  %s3547_s29 = smov (!%p3818_p2), 127  }
 0x1b6   : > { %1213 = sbr.rel (%p3818_p2) target bundleno = 607 (0x25f), region = 72  ;;  %s3548_s0 = smov (!%p3818_p2), 124  }
 0x1b7   : > { %s3549_s14 = smov (!%p3818_p2), 126   ;;  %s3550_s16 = smov (!%p3818_p2), 115  }
 0x1b8   : > { %s3551_s30 = smov (!%p3818_p2), 116   ;;  %s3552_s21 = smov (!%p3818_p2), 113  }
 0x1b9   : > { %s3553_s11 = smov (!%p3818_p2), 114   ;;  %s3554_s12 = smov (!%p3818_p2), 104  }
 0x1ba   : > { %s3555_s22 = smov (!%p3818_p2), 112   ;;  %s3556_s2 = smov (!%p3818_p2), 102  }
 0x1bb   : > { %v1234_v23 = vld [vmem:[%s3764_s13] sm:$0xff]  ;;  %s3557_s10 = smov 103   ;;  %s3558_s25 = smov 100   ;;  %vm1239_vm1 = vcmask 1022976   ;;  %vm1221_vm2 = vcmask 1039360   ;;  %vm1248_vm3 = vcmask 1014784  }
 0x1bc   : > { %1236 = vrot.lane.b32.xlu1 %v1234_v23, %s3546_s26  ;;  %1218 = vrot.lane.b32.xlu0 %v1234_v23, %s3547_s29  ;;  %s3559_s28 = smov 101   ;;  %s3560_s6 = smov 91   ;;  %v1214_v24 = vld [vmem:[%s3764_s13] sm:$0xf]  ;;  %vm1230_vm4 = vcmask 1031168   ;;  %vm1266_vm5 = vcmask 941056  }
 0x1bd   : > { %s3561_s18 = smov 92   ;;  %s3562_s9 = smov 89   ;;  %1215 = vst [vmem:[#allocation2 + $0xc8] sm:$0xf] %v1214_v24  ;;  %vm1257_vm6 = vcmask 949248   ;;  %vm1284_vm7 = vcmask 924672  }
 0x1be   : > { %s3563_s19 = smov 90   ;;  %s3564_s26 = smov 80   ;;  %vm1275_vm8 = vcmask 932864   ;;  %vm1302_vm9 = vcmask 850944   ;;  %vm1293_vm10 = vcmask 916480   ;;  %vm1320_vm11 = vcmask 834560  }
 0x1bf   : > { %s3565_s29 = smov 88   ;;  %vm1311_vm12 = vcmask 842752   ;;  %vm1338_vm13 = vcmask 818176   ;;  %vm1329_vm14 = vcmask 826368   ;;  %vm1356_vm15 = vcmask 744448  }
 0x1c0   : > { %1245 = vrot.lane.b32.xlu1 %v1234_v23, %s3548_s0  ;;  %1227 = vrot.lane.b32.xlu0 %v1234_v23, %s3549_s14  ;;  %s3566_s0 = smov 78   ;;  %s3567_s14 = smov 79   ;;  %vm1347_vm0 = vcmask 752640  }
 0x1c4   : > { %1263 = vrot.lane.b32.xlu1 %v1234_v23, %s3550_s16  ;;  %1254 = vrot.lane.b32.xlu0 %v1234_v23, %s3551_s30  ;;  %s3568_s16 = smov 76   ;;  %s3569_s30 = smov 77  }
 0x1c8   : > { %1281 = vrot.lane.b32.xlu1 %v1234_v23, %s3552_s21  ;;  %1272 = vrot.lane.b32.xlu0 %v1234_v23, %s3553_s11 }
 0x1cc   : > { %1299 = vrot.lane.b32.xlu1 %v1234_v23, %s3554_s12  ;;  %1290 = vrot.lane.b32.xlu0 %v1234_v23, %s3555_s22 }
 0x1d0   : > { %1317 = vrot.lane.b32.xlu1 %v1234_v23, %s3556_s2  ;;  %1308 = vrot.lane.b32.xlu0 %v1234_v23, %s3557_s10 }
 0x1d4   : > { %1335 = vrot.lane.b32.xlu1 %v1234_v23, %s3558_s25  ;;  %1326 = vrot.lane.b32.xlu0 %v1234_v23, %s3559_s28 }
 0x1d8   : > { %1353 = vrot.lane.b32.xlu1 %v1234_v23, %s3560_s6  ;;  %1344 = vrot.lane.b32.xlu0 %v1234_v23, %s3561_s18 }
 0x1dc   : > { %1371 = vrot.lane.b32.xlu1 %v1234_v23, %s3562_s9  ;;  %1362 = vrot.lane.b32.xlu0 %v1234_v23, %s3563_s19 }
 0x1e0   : > { %1389 = vrot.lane.b32.xlu1 %v1234_v23, %s3564_s26  ;;  %1380 = vrot.lane.b32.xlu0 %v1234_v23, %s3565_s29 }
 0x1e4   : > { %1407 = vrot.lane.b32.xlu1 %v1234_v23, %s3566_s0  ;;  %1398 = vrot.lane.b32.xlu0 %v1234_v23, %s3567_s14 }
 0x1e8   : > { %1425 = vrot.lane.b32.xlu1 %v1234_v23, %s3568_s16  ;;  %1416 = vrot.lane.b32.xlu0 %v1234_v23, %s3569_s30 }
 0x22e   : > { %v1237_v25 = vpop.permute.xlu1 %1236  ;;  %v1219_v26 = vpop.permute.xlu0 %1218 }
 0x22f   : > { %v1238_v27 = vrot.slane %v1237_v25, 4  ;;  %v1220_v28 = vrot.slane %v1219_v26, 4 }
 0x231   : > { %v1240_v29 = vsel %vm1239_vm1, %v1237_v25, %v1238_v27  ;;  %v1222_v30 = vsel %vm1221_vm2, %v1219_v26, %v1220_v28  ;;  %vm1374_vm1 = vcmask 728064   ;;  %vm1365_vm2 = vcmask 736256  }
 0x232   : > { %1242 = vst [vmem:[#allocation2 + $0xd4] sm:$0xf] %v1240_v29  ;;  %1224 = vst [vmem:[#allocation2 + $0xcc] sm:$0xf] %v1222_v30  ;;  %v1246_v31 = vpop.permute.xlu1 %1245  ;;  %v1228_v32 = vpop.permute.xlu0 %1227 }
 0x233   : > { %v1247_v33 = vrot.slane %v1246_v31, 4  ;;  %v1229_v34 = vrot.slane %v1228_v32, 4 }
 0x235   : > { %v1249_v35 = vsel %vm1248_vm3, %v1246_v31, %v1247_v33  ;;  %v1231_v36 = vsel %vm1230_vm4, %v1228_v32, %v1229_v34  ;;  %vm1392_vm3 = vcmask 654336   ;;  %vm1383_vm4 = vcmask 719872  }
 0x236   : > { %1251 = vst [vmem:[#allocation2 + $0xd8] sm:$0xf] %v1249_v35  ;;  %1233 = vst [vmem:[#allocation2 + $0xd0] sm:$0xf] %v1231_v36  ;;  %v1264_v37 = vpop.permute.xlu1 %1263  ;;  %v1255_v38 = vpop.permute.xlu0 %1254 }
 0x237   : > { %v1265_v39 = vrot.slane %v1264_v37, 4  ;;  %v1256_v40 = vrot.slane %v1255_v38, 4 }
 0x239   : > { %v1267_v41 = vsel %vm1266_vm5, %v1264_v37, %v1265_v39  ;;  %v1258_v42 = vsel %vm1257_vm6, %v1255_v38, %v1256_v40  ;;  %vm1410_vm5 = vcmask 637952   ;;  %vm1401_vm6 = vcmask 646144  }
 0x23a   : > { %1269 = vst [vmem:[#allocation2 + $0xe0] sm:$0xf] %v1267_v41  ;;  %1260 = vst [vmem:[#allocation2 + $0xdc] sm:$0xf] %v1258_v42  ;;  %v1282_v43 = vpop.permute.xlu1 %1281  ;;  %v1273_v44 = vpop.permute.xlu0 %1272 }
 0x23b   : > { %v1283_v45 = vrot.slane %v1282_v43, 4  ;;  %v1274_v46 = vrot.slane %v1273_v44, 4 }
 0x23d   : > { %v1285_v47 = vsel %vm1284_vm7, %v1282_v43, %v1283_v45  ;;  %v1276_v48 = vsel %vm1275_vm8, %v1273_v44, %v1274_v46  ;;  %vm1428_vm7 = vcmask 621568   ;;  %vm1419_vm8 = vcmask 629760  }
 0x23e   : > { %1287 = vst [vmem:[#allocation2 + $0xe8] sm:$0xf] %v1285_v47  ;;  %1278 = vst [vmem:[#allocation2 + $0xe4] sm:$0xf] %v1276_v48  ;;  %v1300_v49 = vpop.permute.xlu1 %1299  ;;  %v1291_v50 = vpop.permute.xlu0 %1290 }
 0x23f   : > { %v1301_v51 = vrot.slane %v1300_v49, 4  ;;  %v1292_v52 = vrot.slane %v1291_v50, 4 }
 0x241   : > { %v1303_v53 = vsel %vm1302_vm9, %v1300_v49, %v1301_v51  ;;  %v1294_v54 = vsel %vm1293_vm10, %v1291_v50, %v1292_v52 }
 0x242   : > { %1305 = vst [vmem:[#allocation2 + $0xf0] sm:$0xf] %v1303_v53  ;;  %1296 = vst [vmem:[#allocation2 + $0xec] sm:$0xf] %v1294_v54  ;;  %v1318_v55 = vpop.permute.xlu1 %1317  ;;  %v1309_v56 = vpop.permute.xlu0 %1308 }
 0x243   : > { %v1319_v57 = vrot.slane %v1318_v55, 4  ;;  %v1310_v58 = vrot.slane %v1309_v56, 4 }
 0x245   : > { %v1321_v59 = vsel %vm1320_vm11, %v1318_v55, %v1319_v57  ;;  %v1312_v60 = vsel %vm1311_vm12, %v1309_v56, %v1310_v58 }
 0x246   : > { %1323 = vst [vmem:[#allocation2 + $0xf8] sm:$0xf] %v1321_v59  ;;  %1314 = vst [vmem:[#allocation2 + $0xf4] sm:$0xf] %v1312_v60  ;;  %v1336_v61 = vpop.permute.xlu1 %1335  ;;  %v1327_v62 = vpop.permute.xlu0 %1326 }
 0x247   : > { %v1337_v63 = vrot.slane %v1336_v61, 4  ;;  %v1328_v0 = vrot.slane %v1327_v62, 4 }
 0x249   : > { %v1339_v1 = vsel %vm1338_vm13, %v1336_v61, %v1337_v63  ;;  %v1330_v2 = vsel %vm1329_vm14, %v1327_v62, %v1328_v0 }
 0x24a   : > { %1341 = vst [vmem:[#allocation2 + $0x100] sm:$0xf] %v1339_v1  ;;  %1332 = vst [vmem:[#allocation2 + $0xfc] sm:$0xf] %v1330_v2  ;;  %v1354_v3 = vpop.permute.xlu1 %1353  ;;  %v1345_v4 = vpop.permute.xlu0 %1344 }
 0x24b   : > { %v1355_v5 = vrot.slane %v1354_v3, 4  ;;  %v1346_v6 = vrot.slane %v1345_v4, 4 }
 0x24d   : > { %v1357_v7 = vsel %vm1356_vm15, %v1354_v3, %v1355_v5  ;;  %v1348_v8 = vsel %vm1347_vm0, %v1345_v4, %v1346_v6 }
 0x24e   : > { %1359 = vst [vmem:[#allocation2 + $0x108] sm:$0xf] %v1357_v7  ;;  %1350 = vst [vmem:[#allocation2 + $0x104] sm:$0xf] %v1348_v8  ;;  %v1372_v9 = vpop.permute.xlu1 %1371  ;;  %v1363_v10 = vpop.permute.xlu0 %1362 }
 0x24f   : > { %v1373_v11 = vrot.slane %v1372_v9, 4  ;;  %v1364_v12 = vrot.slane %v1363_v10, 4 }
 0x251   : > { %v1375_v13 = vsel %vm1374_vm1, %v1372_v9, %v1373_v11  ;;  %v1366_v14 = vsel %vm1365_vm2, %v1363_v10, %v1364_v12 }
 0x252   : > { %1377 = vst [vmem:[#allocation2 + $0x110] sm:$0xf] %v1375_v13  ;;  %1368 = vst [vmem:[#allocation2 + $0x10c] sm:$0xf] %v1366_v14  ;;  %v1390_v15 = vpop.permute.xlu1 %1389  ;;  %v1381_v16 = vpop.permute.xlu0 %1380 }
 0x253   : > { %v1391_v17 = vrot.slane %v1390_v15, 4  ;;  %v1382_v18 = vrot.slane %v1381_v16, 4 }
 0x255   : > { %v1393_v19 = vsel %vm1392_vm3, %v1390_v15, %v1391_v17  ;;  %v1384_v20 = vsel %vm1383_vm4, %v1381_v16, %v1382_v18 }
 0x256   : > { %1395 = vst [vmem:[#allocation2 + $0x118] sm:$0xf] %v1393_v19  ;;  %1386 = vst [vmem:[#allocation2 + $0x114] sm:$0xf] %v1384_v20  ;;  %v1408_v21 = vpop.permute.xlu1 %1407  ;;  %v1399_v22 = vpop.permute.xlu0 %1398 }
 0x257   : > { %v1409_v23 = vrot.slane %v1408_v21, 4  ;;  %v1400_v24 = vrot.slane %v1399_v22, 4 }
 0x259   : > { %v1411_v25 = vsel %vm1410_vm5, %v1408_v21, %v1409_v23  ;;  %v1402_v26 = vsel %vm1401_vm6, %v1399_v22, %v1400_v24 }
 0x25a   : > { %1413 = vst [vmem:[#allocation2 + $0x120] sm:$0xf] %v1411_v25  ;;  %1404 = vst [vmem:[#allocation2 + $0x11c] sm:$0xf] %v1402_v26  ;;  %v1426_v27 = vpop.permute.xlu1 %1425  ;;  %v1417_v28 = vpop.permute.xlu0 %1416 }
 0x25b   : > { %v1427_v29 = vrot.slane %v1426_v27, 4  ;;  %v1418_v30 = vrot.slane %v1417_v28, 4 }
 0x25d   : > { %v1429_v31 = vsel %vm1428_vm7, %v1426_v27, %v1427_v29  ;;  %v1420_v32 = vsel %vm1419_vm8, %v1417_v28, %v1418_v30 }
 0x25e   : > { %1431 = vst [vmem:[#allocation2 + $0x128] sm:$0xf] %v1429_v31  ;;  %1422 = vst [vmem:[#allocation2 + $0x124] sm:$0xf] %v1420_v32 }
 0x25f PF: > { %1434 = sbr.rel (!%p3818_p2) target bundleno = 621 (0x26d), region = 76  ;;  %v3570_v33 = vmov (%p3818_p2), 0  }
 0x260   : > { %1435 = vst [vmem:[#allocation2 + $0xc8] sm:$0xf] (%p3818_p2), %v3570_v33  ;;  %1436 = vst [vmem:[#allocation2 + $0xcc] sm:$0xf] (%p3818_p2), %v3570_v33 }
 0x261   : > { %1437 = vst [vmem:[#allocation2 + $0xd0] sm:$0xf] (%p3818_p2), %v3570_v33  ;;  %1438 = vst [vmem:[#allocation2 + $0xd4] sm:$0xf] (%p3818_p2), %v3570_v33 }
 0x262   : > { %1439 = vst [vmem:[#allocation2 + $0xd8] sm:$0xf] (%p3818_p2), %v3570_v33  ;;  %1440 = vst [vmem:[#allocation2 + $0xdc] sm:$0xf] (%p3818_p2), %v3570_v33 }
 0x263   : > { %1441 = vst [vmem:[#allocation2 + $0xe0] sm:$0xf] (%p3818_p2), %v3570_v33  ;;  %1442 = vst [vmem:[#allocation2 + $0xe4] sm:$0xf] (%p3818_p2), %v3570_v33 }
 0x264   : > { %1443 = vst [vmem:[#allocation2 + $0xe8] sm:$0xf] %v3570_v33  ;;  %1444 = vst [vmem:[#allocation2 + $0xec] sm:$0xf] %v3570_v33 }
 0x265   : > { %1445 = vst [vmem:[#allocation2 + $0xf0] sm:$0xf] %v3570_v33  ;;  %1446 = vst [vmem:[#allocation2 + $0xf4] sm:$0xf] %v3570_v33 }
 0x266   : > { %1447 = vst [vmem:[#allocation2 + $0xf8] sm:$0xf] %v3570_v33  ;;  %1448 = vst [vmem:[#allocation2 + $0xfc] sm:$0xf] %v3570_v33 }
 0x267   : > { %1449 = vst [vmem:[#allocation2 + $0x100] sm:$0xf] %v3570_v33  ;;  %1450 = vst [vmem:[#allocation2 + $0x104] sm:$0xf] %v3570_v33 }
 0x268   : > { %1451 = vst [vmem:[#allocation2 + $0x108] sm:$0xf] %v3570_v33  ;;  %1452 = vst [vmem:[#allocation2 + $0x10c] sm:$0xf] %v3570_v33 }
 0x269   : > { %1453 = vst [vmem:[#allocation2 + $0x110] sm:$0xf] %v3570_v33  ;;  %1454 = vst [vmem:[#allocation2 + $0x114] sm:$0xf] %v3570_v33 }
 0x26a   : > { %1455 = vst [vmem:[#allocation2 + $0x118] sm:$0xf] %v3570_v33  ;;  %1456 = vst [vmem:[#allocation2 + $0x11c] sm:$0xf] %v3570_v33 }
 0x26b   : > { %1457 = vst [vmem:[#allocation2 + $0x120] sm:$0xf] %v3570_v33  ;;  %1458 = vst [vmem:[#allocation2 + $0x124] sm:$0xf] %v3570_v33 }
 0x26c   : > { %1459 = vst [vmem:[#allocation2 + $0x128] sm:$0xf] %v3570_v33 }
 0x26d PF: > { %p1461_p3 = scmp.ge.s32.totalorder %s3730_s27, 0  ;;  %p1462_p4 = scmp.lt.s32.totalorder %s3730_s27, 8 }
 0x26f   : > { %p3830_p5 = pnand %p1462_p4, %p1461_p3 }
 0x270   : > { %s3571_s24 = smov (!%p3830_p5), 125   ;;  %s3572_s21 = smov (!%p3830_p5), 127  }
 0x271   : > { %1466 = sbr.rel (%p3830_p5) target bundleno = 794 (0x31a), region = 80  ;;  %s3573_s11 = smov (!%p3830_p5), 124  }
 0x272   : > { %s3574_s12 = smov (!%p3830_p5), 126   ;;  %s3575_s22 = smov (!%p3830_p5), 115  }
 0x273   : > { %s3576_s27 = smov (!%p3830_p5), 116   ;;  %s3577_s2 = smov (!%p3830_p5), 113  }
 0x274   : > { %s3578_s10 = smov (!%p3830_p5), 114   ;;  %s3579_s25 = smov (!%p3830_p5), 104  }
 0x275   : > { %s3580_s28 = smov (!%p3830_p5), 112   ;;  %s3581_s6 = smov (!%p3830_p5), 102  }
 0x276   : > { %v1487_v34 = vld [vmem:[%s3772_s20] sm:$0xff]  ;;  %s3582_s18 = smov 103   ;;  %s3583_s9 = smov 100   ;;  %vm1492_vm9 = vcmask 1022976   ;;  %vm1474_vm10 = vcmask 1039360   ;;  %vm1501_vm11 = vcmask 1014784  }
 0x277   : > { %1489 = vrot.lane.b32.xlu1 %v1487_v34, %s3571_s24  ;;  %1471 = vrot.lane.b32.xlu0 %v1487_v34, %s3572_s21  ;;  %s3584_s19 = smov 101   ;;  %s3585_s26 = smov 91   ;;  %v1467_v35 = vld [vmem:[%s3772_s20] sm:$0xf]  ;;  %vm1483_vm12 = vcmask 1031168   ;;  %vm1519_vm13 = vcmask 941056  }
 0x278   : > { %s3586_s29 = smov 92   ;;  %s3587_s0 = smov 89   ;;  %1468 = vst [vmem:[#allocation2 + $0x12c] sm:$0xf] %v1467_v35  ;;  %vm1510_vm14 = vcmask 949248   ;;  %vm1537_vm15 = vcmask 924672  }
 0x279   : > { %s3588_s14 = smov 90   ;;  %s3589_s16 = smov 80   ;;  %vm1528_vm0 = vcmask 932864   ;;  %vm1555_vm1 = vcmask 850944   ;;  %vm1546_vm2 = vcmask 916480   ;;  %vm1573_vm3 = vcmask 834560  }
 0x27a   : > { %s3590_s30 = smov 88   ;;  %s3591_s24 = smov 78   ;;  %vm1564_vm4 = vcmask 842752   ;;  %vm1591_vm5 = vcmask 818176   ;;  %vm1582_vm6 = vcmask 826368   ;;  %vm1609_vm7 = vcmask 744448  }
 0x27b   : > { %1498 = vrot.lane.b32.xlu1 %v1487_v34, %s3573_s11  ;;  %1480 = vrot.lane.b32.xlu0 %v1487_v34, %s3574_s12  ;;  %s3592_s21 = smov 79   ;;  %s3593_s11 = smov 76   ;;  %vm1600_vm8 = vcmask 752640  }
 0x27c   : > { %s3594_s12 = smov 77  }
 0x27f   : > { %1516 = vrot.lane.b32.xlu1 %v1487_v34, %s3575_s22  ;;  %1507 = vrot.lane.b32.xlu0 %v1487_v34, %s3576_s27 }
 0x283   : > { %1534 = vrot.lane.b32.xlu1 %v1487_v34, %s3577_s2  ;;  %1525 = vrot.lane.b32.xlu0 %v1487_v34, %s3578_s10 }
 0x287   : > { %1552 = vrot.lane.b32.xlu1 %v1487_v34, %s3579_s25  ;;  %1543 = vrot.lane.b32.xlu0 %v1487_v34, %s3580_s28 }
 0x28b   : > { %1570 = vrot.lane.b32.xlu1 %v1487_v34, %s3581_s6  ;;  %1561 = vrot.lane.b32.xlu0 %v1487_v34, %s3582_s18 }
 0x28f   : > { %1588 = vrot.lane.b32.xlu1 %v1487_v34, %s3583_s9  ;;  %1579 = vrot.lane.b32.xlu0 %v1487_v34, %s3584_s19 }
 0x293   : > { %1606 = vrot.lane.b32.xlu1 %v1487_v34, %s3585_s26  ;;  %1597 = vrot.lane.b32.xlu0 %v1487_v34, %s3586_s29 }
 0x297   : > { %1624 = vrot.lane.b32.xlu1 %v1487_v34, %s3587_s0  ;;  %1615 = vrot.lane.b32.xlu0 %v1487_v34, %s3588_s14 }
 0x29b   : > { %1642 = vrot.lane.b32.xlu1 %v1487_v34, %s3589_s16  ;;  %1633 = vrot.lane.b32.xlu0 %v1487_v34, %s3590_s30 }
 0x29f   : > { %1660 = vrot.lane.b32.xlu1 %v1487_v34, %s3591_s24  ;;  %1651 = vrot.lane.b32.xlu0 %v1487_v34, %s3592_s21 }
 0x2a3   : > { %1678 = vrot.lane.b32.xlu1 %v1487_v34, %s3593_s11  ;;  %1669 = vrot.lane.b32.xlu0 %v1487_v34, %s3594_s12 }
 0x2e9   : > { %v1490_v36 = vpop.permute.xlu1 %1489  ;;  %v1472_v37 = vpop.permute.xlu0 %1471 }
 0x2ea   : > { %v1491_v38 = vrot.slane %v1490_v36, 4  ;;  %v1473_v39 = vrot.slane %v1472_v37, 4 }
 0x2ec   : > { %v1493_v40 = vsel %vm1492_vm9, %v1490_v36, %v1491_v38  ;;  %v1475_v41 = vsel %vm1474_vm10, %v1472_v37, %v1473_v39  ;;  %vm1627_vm9 = vcmask 728064   ;;  %vm1618_vm10 = vcmask 736256  }
 0x2ed   : > { %1495 = vst [vmem:[#allocation2 + $0x138] sm:$0xf] %v1493_v40  ;;  %1477 = vst [vmem:[#allocation2 + $0x130] sm:$0xf] %v1475_v41  ;;  %v1499_v42 = vpop.permute.xlu1 %1498  ;;  %v1481_v43 = vpop.permute.xlu0 %1480 }
 0x2ee   : > { %v1500_v44 = vrot.slane %v1499_v42, 4  ;;  %v1482_v45 = vrot.slane %v1481_v43, 4 }
 0x2f0   : > { %v1502_v46 = vsel %vm1501_vm11, %v1499_v42, %v1500_v44  ;;  %v1484_v47 = vsel %vm1483_vm12, %v1481_v43, %v1482_v45  ;;  %vm1645_vm11 = vcmask 654336   ;;  %vm1636_vm12 = vcmask 719872  }
 0x2f1   : > { %1504 = vst [vmem:[#allocation2 + $0x13c] sm:$0xf] %v1502_v46  ;;  %1486 = vst [vmem:[#allocation2 + $0x134] sm:$0xf] %v1484_v47  ;;  %v1517_v48 = vpop.permute.xlu1 %1516  ;;  %v1508_v49 = vpop.permute.xlu0 %1507 }
 0x2f2   : > { %v1518_v50 = vrot.slane %v1517_v48, 4  ;;  %v1509_v51 = vrot.slane %v1508_v49, 4 }
 0x2f4   : > { %v1520_v52 = vsel %vm1519_vm13, %v1517_v48, %v1518_v50  ;;  %v1511_v53 = vsel %vm1510_vm14, %v1508_v49, %v1509_v51  ;;  %vm1663_vm13 = vcmask 637952   ;;  %vm1654_vm14 = vcmask 646144  }
 0x2f5   : > { %1522 = vst [vmem:[#allocation2 + $0x144] sm:$0xf] %v1520_v52  ;;  %1513 = vst [vmem:[#allocation2 + $0x140] sm:$0xf] %v1511_v53  ;;  %v1535_v54 = vpop.permute.xlu1 %1534  ;;  %v1526_v55 = vpop.permute.xlu0 %1525 }
 0x2f6   : > { %v1536_v56 = vrot.slane %v1535_v54, 4  ;;  %v1527_v57 = vrot.slane %v1526_v55, 4 }
 0x2f8   : > { %v1538_v58 = vsel %vm1537_vm15, %v1535_v54, %v1536_v56  ;;  %v1529_v59 = vsel %vm1528_vm0, %v1526_v55, %v1527_v57  ;;  %vm1681_vm15 = vcmask 621568   ;;  %vm1672_vm0 = vcmask 629760  }
 0x2f9   : > { %1540 = vst [vmem:[#allocation2 + $0x14c] sm:$0xf] %v1538_v58  ;;  %1531 = vst [vmem:[#allocation2 + $0x148] sm:$0xf] %v1529_v59  ;;  %v1553_v60 = vpop.permute.xlu1 %1552  ;;  %v1544_v61 = vpop.permute.xlu0 %1543 }
 0x2fa   : > { %v1554_v62 = vrot.slane %v1553_v60, 4  ;;  %v1545_v63 = vrot.slane %v1544_v61, 4 }
 0x2fc   : > { %v1556_v0 = vsel %vm1555_vm1, %v1553_v60, %v1554_v62  ;;  %v1547_v1 = vsel %vm1546_vm2, %v1544_v61, %v1545_v63 }
 0x2fd   : > { %1558 = vst [vmem:[#allocation2 + $0x154] sm:$0xf] %v1556_v0  ;;  %1549 = vst [vmem:[#allocation2 + $0x150] sm:$0xf] %v1547_v1  ;;  %v1571_v2 = vpop.permute.xlu1 %1570  ;;  %v1562_v3 = vpop.permute.xlu0 %1561 }
 0x2fe   : > { %v1572_v4 = vrot.slane %v1571_v2, 4  ;;  %v1563_v5 = vrot.slane %v1562_v3, 4 }
 0x300   : > { %v1574_v6 = vsel %vm1573_vm3, %v1571_v2, %v1572_v4  ;;  %v1565_v7 = vsel %vm1564_vm4, %v1562_v3, %v1563_v5 }
 0x301   : > { %1576 = vst [vmem:[#allocation2 + $0x15c] sm:$0xf] %v1574_v6  ;;  %1567 = vst [vmem:[#allocation2 + $0x158] sm:$0xf] %v1565_v7  ;;  %v1589_v8 = vpop.permute.xlu1 %1588  ;;  %v1580_v9 = vpop.permute.xlu0 %1579 }
 0x302   : > { %v1590_v10 = vrot.slane %v1589_v8, 4  ;;  %v1581_v11 = vrot.slane %v1580_v9, 4 }
 0x304   : > { %v1592_v12 = vsel %vm1591_vm5, %v1589_v8, %v1590_v10  ;;  %v1583_v13 = vsel %vm1582_vm6, %v1580_v9, %v1581_v11 }
 0x305   : > { %1594 = vst [vmem:[#allocation2 + $0x164] sm:$0xf] %v1592_v12  ;;  %1585 = vst [vmem:[#allocation2 + $0x160] sm:$0xf] %v1583_v13  ;;  %v1607_v14 = vpop.permute.xlu1 %1606  ;;  %v1598_v15 = vpop.permute.xlu0 %1597 }
 0x306   : > { %v1608_v16 = vrot.slane %v1607_v14, 4  ;;  %v1599_v17 = vrot.slane %v1598_v15, 4 }
 0x308   : > { %v1610_v18 = vsel %vm1609_vm7, %v1607_v14, %v1608_v16  ;;  %v1601_v19 = vsel %vm1600_vm8, %v1598_v15, %v1599_v17 }
 0x309   : > { %1612 = vst [vmem:[#allocation2 + $0x16c] sm:$0xf] %v1610_v18  ;;  %1603 = vst [vmem:[#allocation2 + $0x168] sm:$0xf] %v1601_v19  ;;  %v1625_v20 = vpop.permute.xlu1 %1624  ;;  %v1616_v21 = vpop.permute.xlu0 %1615 }
 0x30a   : > { %v1626_v22 = vrot.slane %v1625_v20, 4  ;;  %v1617_v23 = vrot.slane %v1616_v21, 4 }
 0x30c   : > { %v1628_v24 = vsel %vm1627_vm9, %v1625_v20, %v1626_v22  ;;  %v1619_v25 = vsel %vm1618_vm10, %v1616_v21, %v1617_v23 }
 0x30d   : > { %1630 = vst [vmem:[#allocation2 + $0x174] sm:$0xf] %v1628_v24  ;;  %1621 = vst [vmem:[#allocation2 + $0x170] sm:$0xf] %v1619_v25  ;;  %v1643_v26 = vpop.permute.xlu1 %1642  ;;  %v1634_v27 = vpop.permute.xlu0 %1633 }
 0x30e   : > { %v1644_v28 = vrot.slane %v1643_v26, 4  ;;  %v1635_v29 = vrot.slane %v1634_v27, 4 }
 0x310   : > { %v1646_v30 = vsel %vm1645_vm11, %v1643_v26, %v1644_v28  ;;  %v1637_v31 = vsel %vm1636_vm12, %v1634_v27, %v1635_v29 }
 0x311   : > { %1648 = vst [vmem:[#allocation2 + $0x17c] sm:$0xf] %v1646_v30  ;;  %1639 = vst [vmem:[#allocation2 + $0x178] sm:$0xf] %v1637_v31  ;;  %v1661_v32 = vpop.permute.xlu1 %1660  ;;  %v1652_v33 = vpop.permute.xlu0 %1651 }
 0x312   : > { %v1662_v34 = vrot.slane %v1661_v32, 4  ;;  %v1653_v35 = vrot.slane %v1652_v33, 4 }
 0x314   : > { %v1664_v36 = vsel %vm1663_vm13, %v1661_v32, %v1662_v34  ;;  %v1655_v37 = vsel %vm1654_vm14, %v1652_v33, %v1653_v35 }
 0x315   : > { %1666 = vst [vmem:[#allocation2 + $0x184] sm:$0xf] %v1664_v36  ;;  %1657 = vst [vmem:[#allocation2 + $0x180] sm:$0xf] %v1655_v37  ;;  %v1679_v38 = vpop.permute.xlu1 %1678  ;;  %v1670_v39 = vpop.permute.xlu0 %1669 }
 0x316   : > { %v1680_v40 = vrot.slane %v1679_v38, 4  ;;  %v1671_v41 = vrot.slane %v1670_v39, 4 }
 0x318   : > { %v1682_v42 = vsel %vm1681_vm15, %v1679_v38, %v1680_v40  ;;  %v1673_v43 = vsel %vm1672_vm0, %v1670_v39, %v1671_v41 }
 0x319   : > { %1684 = vst [vmem:[#allocation2 + $0x18c] sm:$0xf] %v1682_v42  ;;  %1675 = vst [vmem:[#allocation2 + $0x188] sm:$0xf] %v1673_v43 }
 0x31a PF: > { %1687 = sbr.rel (!%p3830_p5) target bundleno = 808 (0x328), region = 84  ;;  %v3595_v44 = vmov (%p3830_p5), 0  }
 0x31b   : > { %1688 = vst [vmem:[#allocation2 + $0x12c] sm:$0xf] (%p3830_p5), %v3595_v44  ;;  %1689 = vst [vmem:[#allocation2 + $0x130] sm:$0xf] (%p3830_p5), %v3595_v44 }
 0x31c   : > { %1690 = vst [vmem:[#allocation2 + $0x134] sm:$0xf] (%p3830_p5), %v3595_v44  ;;  %1691 = vst [vmem:[#allocation2 + $0x138] sm:$0xf] (%p3830_p5), %v3595_v44 }
 0x31d   : > { %1692 = vst [vmem:[#allocation2 + $0x13c] sm:$0xf] (%p3830_p5), %v3595_v44  ;;  %1693 = vst [vmem:[#allocation2 + $0x140] sm:$0xf] (%p3830_p5), %v3595_v44 }
 0x31e   : > { %1694 = vst [vmem:[#allocation2 + $0x144] sm:$0xf] (%p3830_p5), %v3595_v44  ;;  %1695 = vst [vmem:[#allocation2 + $0x148] sm:$0xf] (%p3830_p5), %v3595_v44 }
 0x31f   : > { %1696 = vst [vmem:[#allocation2 + $0x14c] sm:$0xf] %v3595_v44  ;;  %1697 = vst [vmem:[#allocation2 + $0x150] sm:$0xf] %v3595_v44 }
 0x320   : > { %1698 = vst [vmem:[#allocation2 + $0x154] sm:$0xf] %v3595_v44  ;;  %1699 = vst [vmem:[#allocation2 + $0x158] sm:$0xf] %v3595_v44 }
 0x321   : > { %1700 = vst [vmem:[#allocation2 + $0x15c] sm:$0xf] %v3595_v44  ;;  %1701 = vst [vmem:[#allocation2 + $0x160] sm:$0xf] %v3595_v44 }
 0x322   : > { %1702 = vst [vmem:[#allocation2 + $0x164] sm:$0xf] %v3595_v44  ;;  %1703 = vst [vmem:[#allocation2 + $0x168] sm:$0xf] %v3595_v44 }
 0x323   : > { %1704 = vst [vmem:[#allocation2 + $0x16c] sm:$0xf] %v3595_v44  ;;  %1705 = vst [vmem:[#allocation2 + $0x170] sm:$0xf] %v3595_v44 }
 0x324   : > { %1706 = vst [vmem:[#allocation2 + $0x174] sm:$0xf] %v3595_v44  ;;  %1707 = vst [vmem:[#allocation2 + $0x178] sm:$0xf] %v3595_v44 }
 0x325   : > { %1708 = vst [vmem:[#allocation2 + $0x17c] sm:$0xf] %v3595_v44  ;;  %1709 = vst [vmem:[#allocation2 + $0x180] sm:$0xf] %v3595_v44 }
 0x326   : > { %1710 = vst [vmem:[#allocation2 + $0x184] sm:$0xf] %v3595_v44  ;;  %1711 = vst [vmem:[#allocation2 + $0x188] sm:$0xf] %v3595_v44 }
 0x327   : > { %1712 = vst [vmem:[#allocation2 + $0x18c] sm:$0xf] %v3595_v44 }
 0x328 PF: > { %p1714_p6 = scmp.ge.s32.totalorder %s3743_s23, 0  ;;  %p1715_p7 = scmp.lt.s32.totalorder %s3743_s23, 8 }
 0x32a   : > { %p3842_p8 = pnand %p1715_p7, %p1714_p6 }
 0x32b   : > { %s3596_s13 = smov (!%p3842_p8), 125   ;;  %s3597_s22 = smov (!%p3842_p8), 127  }
 0x32c   : > { %1719 = sbr.rel (%p3842_p8) target bundleno = 981 (0x3d5), region = 88  ;;  %s3598_s27 = smov (!%p3842_p8), 124  }
 0x32d   : > { %s3599_s2 = smov (!%p3842_p8), 126   ;;  %s3600_s10 = smov (!%p3842_p8), 115  }
 0x32e   : > { %s3601_s23 = smov (!%p3842_p8), 116   ;;  %s3602_s25 = smov (!%p3842_p8), 113  }
 0x32f   : > { %s3603_s28 = smov (!%p3842_p8), 114   ;;  %s3604_s6 = smov (!%p3842_p8), 104  }
 0x330   : > { %s3605_s18 = smov (!%p3842_p8), 112   ;;  %s3606_s9 = smov (!%p3842_p8), 102  }
 0x331   : > { %v1740_v45 = vld [vmem:[%s3787_s8] sm:$0xff]  ;;  %s3607_s19 = smov 103   ;;  %s3608_s26 = smov 100   ;;  %vm1745_vm1 = vcmask 1022976   ;;  %vm1727_vm2 = vcmask 1039360   ;;  %vm1754_vm3 = vcmask 1014784  }
 0x332   : > { %1742 = vrot.lane.b32.xlu1 %v1740_v45, %s3596_s13  ;;  %1724 = vrot.lane.b32.xlu0 %v1740_v45, %s3597_s22  ;;  %s3609_s29 = smov 101   ;;  %s3610_s0 = smov 91   ;;  %v1720_v46 = vld [vmem:[%s3787_s8] sm:$0xf]  ;;  %vm1736_vm4 = vcmask 1031168   ;;  %vm1772_vm5 = vcmask 941056  }
 0x333   : > { %s3611_s14 = smov 92   ;;  %s3612_s16 = smov 89   ;;  %1721 = vst [vmem:[#allocation2 + $0x190] sm:$0xf] %v1720_v46  ;;  %vm1763_vm6 = vcmask 949248   ;;  %vm1790_vm7 = vcmask 924672  }
 0x334   : > { %s3613_s30 = smov 90   ;;  %s3614_s24 = smov 80   ;;  %vm1781_vm8 = vcmask 932864   ;;  %vm1808_vm9 = vcmask 850944   ;;  %vm1799_vm10 = vcmask 916480   ;;  %vm1826_vm11 = vcmask 834560  }
 0x335   : > { %s3615_s21 = smov 88   ;;  %s3616_s11 = smov 78   ;;  %vm1817_vm12 = vcmask 842752   ;;  %vm1844_vm13 = vcmask 818176   ;;  %vm1835_vm14 = vcmask 826368   ;;  %vm1862_vm15 = vcmask 744448  }
 0x336   : > { %1751 = vrot.lane.b32.xlu1 %v1740_v45, %s3598_s27  ;;  %1733 = vrot.lane.b32.xlu0 %v1740_v45, %s3599_s2  ;;  %s3617_s12 = smov 79   ;;  %s3618_s13 = smov 76   ;;  %vm1853_vm0 = vcmask 752640  }
 0x337   : > { %s3619_s22 = smov 77  }
 0x33a   : > { %1769 = vrot.lane.b32.xlu1 %v1740_v45, %s3600_s10  ;;  %1760 = vrot.lane.b32.xlu0 %v1740_v45, %s3601_s23 }
 0x33e   : > { %1787 = vrot.lane.b32.xlu1 %v1740_v45, %s3602_s25  ;;  %1778 = vrot.lane.b32.xlu0 %v1740_v45, %s3603_s28 }
 0x342   : > { %1805 = vrot.lane.b32.xlu1 %v1740_v45, %s3604_s6  ;;  %1796 = vrot.lane.b32.xlu0 %v1740_v45, %s3605_s18 }
 0x346   : > { %1823 = vrot.lane.b32.xlu1 %v1740_v45, %s3606_s9  ;;  %1814 = vrot.lane.b32.xlu0 %v1740_v45, %s3607_s19 }
 0x34a   : > { %1841 = vrot.lane.b32.xlu1 %v1740_v45, %s3608_s26  ;;  %1832 = vrot.lane.b32.xlu0 %v1740_v45, %s3609_s29 }
 0x34e   : > { %1859 = vrot.lane.b32.xlu1 %v1740_v45, %s3610_s0  ;;  %1850 = vrot.lane.b32.xlu0 %v1740_v45, %s3611_s14 }
 0x352   : > { %1877 = vrot.lane.b32.xlu1 %v1740_v45, %s3612_s16  ;;  %1868 = vrot.lane.b32.xlu0 %v1740_v45, %s3613_s30 }
 0x356   : > { %1895 = vrot.lane.b32.xlu1 %v1740_v45, %s3614_s24  ;;  %1886 = vrot.lane.b32.xlu0 %v1740_v45, %s3615_s21 }
 0x35a   : > { %1913 = vrot.lane.b32.xlu1 %v1740_v45, %s3616_s11  ;;  %1904 = vrot.lane.b32.xlu0 %v1740_v45, %s3617_s12 }
 0x35e   : > { %1931 = vrot.lane.b32.xlu1 %v1740_v45, %s3618_s13  ;;  %1922 = vrot.lane.b32.xlu0 %v1740_v45, %s3619_s22 }
 0x3a4   : > { %v1743_v47 = vpop.permute.xlu1 %1742  ;;  %v1725_v48 = vpop.permute.xlu0 %1724 }
 0x3a5   : > { %v1744_v49 = vrot.slane %v1743_v47, 4  ;;  %v1726_v50 = vrot.slane %v1725_v48, 4 }
 0x3a7   : > { %v1746_v51 = vsel %vm1745_vm1, %v1743_v47, %v1744_v49  ;;  %v1728_v52 = vsel %vm1727_vm2, %v1725_v48, %v1726_v50  ;;  %vm1880_vm1 = vcmask 728064   ;;  %vm1871_vm2 = vcmask 736256  }
 0x3a8   : > { %1748 = vst [vmem:[#allocation2 + $0x19c] sm:$0xf] %v1746_v51  ;;  %1730 = vst [vmem:[#allocation2 + $0x194] sm:$0xf] %v1728_v52  ;;  %v1752_v53 = vpop.permute.xlu1 %1751  ;;  %v1734_v54 = vpop.permute.xlu0 %1733 }
 0x3a9   : > { %v1753_v55 = vrot.slane %v1752_v53, 4  ;;  %v1735_v56 = vrot.slane %v1734_v54, 4 }
 0x3ab   : > { %v1755_v57 = vsel %vm1754_vm3, %v1752_v53, %v1753_v55  ;;  %v1737_v58 = vsel %vm1736_vm4, %v1734_v54, %v1735_v56  ;;  %vm1898_vm3 = vcmask 654336   ;;  %vm1889_vm4 = vcmask 719872  }
 0x3ac   : > { %1757 = vst [vmem:[#allocation2 + $0x1a0] sm:$0xf] %v1755_v57  ;;  %1739 = vst [vmem:[#allocation2 + $0x198] sm:$0xf] %v1737_v58  ;;  %v1770_v59 = vpop.permute.xlu1 %1769  ;;  %v1761_v60 = vpop.permute.xlu0 %1760 }
 0x3ad   : > { %v1771_v61 = vrot.slane %v1770_v59, 4  ;;  %v1762_v62 = vrot.slane %v1761_v60, 4 }
 0x3af   : > { %v1773_v63 = vsel %vm1772_vm5, %v1770_v59, %v1771_v61  ;;  %v1764_v0 = vsel %vm1763_vm6, %v1761_v60, %v1762_v62  ;;  %vm1916_vm5 = vcmask 637952   ;;  %vm1907_vm6 = vcmask 646144  }
 0x3b0   : > { %1775 = vst [vmem:[#allocation2 + $0x1a8] sm:$0xf] %v1773_v63  ;;  %1766 = vst [vmem:[#allocation2 + $0x1a4] sm:$0xf] %v1764_v0  ;;  %v1788_v1 = vpop.permute.xlu1 %1787  ;;  %v1779_v2 = vpop.permute.xlu0 %1778 }
 0x3b1   : > { %v1789_v3 = vrot.slane %v1788_v1, 4  ;;  %v1780_v4 = vrot.slane %v1779_v2, 4 }
 0x3b3   : > { %v1791_v5 = vsel %vm1790_vm7, %v1788_v1, %v1789_v3  ;;  %v1782_v6 = vsel %vm1781_vm8, %v1779_v2, %v1780_v4  ;;  %vm1934_vm7 = vcmask 621568   ;;  %vm1925_vm8 = vcmask 629760  }
 0x3b4   : > { %1793 = vst [vmem:[#allocation2 + $0x1b0] sm:$0xf] %v1791_v5  ;;  %1784 = vst [vmem:[#allocation2 + $0x1ac] sm:$0xf] %v1782_v6  ;;  %v1806_v7 = vpop.permute.xlu1 %1805  ;;  %v1797_v8 = vpop.permute.xlu0 %1796 }
 0x3b5   : > { %v1807_v9 = vrot.slane %v1806_v7, 4  ;;  %v1798_v10 = vrot.slane %v1797_v8, 4 }
 0x3b7   : > { %v1809_v11 = vsel %vm1808_vm9, %v1806_v7, %v1807_v9  ;;  %v1800_v12 = vsel %vm1799_vm10, %v1797_v8, %v1798_v10 }
 0x3b8   : > { %1811 = vst [vmem:[#allocation2 + $0x1b8] sm:$0xf] %v1809_v11  ;;  %1802 = vst [vmem:[#allocation2 + $0x1b4] sm:$0xf] %v1800_v12  ;;  %v1824_v13 = vpop.permute.xlu1 %1823  ;;  %v1815_v14 = vpop.permute.xlu0 %1814 }
 0x3b9   : > { %v1825_v15 = vrot.slane %v1824_v13, 4  ;;  %v1816_v16 = vrot.slane %v1815_v14, 4 }
 0x3bb   : > { %v1827_v17 = vsel %vm1826_vm11, %v1824_v13, %v1825_v15  ;;  %v1818_v18 = vsel %vm1817_vm12, %v1815_v14, %v1816_v16 }
 0x3bc   : > { %1829 = vst [vmem:[#allocation2 + $0x1c0] sm:$0xf] %v1827_v17  ;;  %1820 = vst [vmem:[#allocation2 + $0x1bc] sm:$0xf] %v1818_v18  ;;  %v1842_v19 = vpop.permute.xlu1 %1841  ;;  %v1833_v20 = vpop.permute.xlu0 %1832 }
 0x3bd   : > { %v1843_v21 = vrot.slane %v1842_v19, 4  ;;  %v1834_v22 = vrot.slane %v1833_v20, 4 }
 0x3bf   : > { %v1845_v23 = vsel %vm1844_vm13, %v1842_v19, %v1843_v21  ;;  %v1836_v24 = vsel %vm1835_vm14, %v1833_v20, %v1834_v22 }
 0x3c0   : > { %1847 = vst [vmem:[#allocation2 + $0x1c8] sm:$0xf] %v1845_v23  ;;  %1838 = vst [vmem:[#allocation2 + $0x1c4] sm:$0xf] %v1836_v24  ;;  %v1860_v25 = vpop.permute.xlu1 %1859  ;;  %v1851_v26 = vpop.permute.xlu0 %1850 }
 0x3c1   : > { %v1861_v27 = vrot.slane %v1860_v25, 4  ;;  %v1852_v28 = vrot.slane %v1851_v26, 4 }
 0x3c3   : > { %v1863_v29 = vsel %vm1862_vm15, %v1860_v25, %v1861_v27  ;;  %v1854_v30 = vsel %vm1853_vm0, %v1851_v26, %v1852_v28 }
 0x3c4   : > { %1865 = vst [vmem:[#allocation2 + $0x1d0] sm:$0xf] %v1863_v29  ;;  %1856 = vst [vmem:[#allocation2 + $0x1cc] sm:$0xf] %v1854_v30  ;;  %v1878_v31 = vpop.permute.xlu1 %1877  ;;  %v1869_v32 = vpop.permute.xlu0 %1868 }
 0x3c5   : > { %v1879_v33 = vrot.slane %v1878_v31, 4  ;;  %v1870_v34 = vrot.slane %v1869_v32, 4 }
 0x3c7   : > { %v1881_v35 = vsel %vm1880_vm1, %v1878_v31, %v1879_v33  ;;  %v1872_v36 = vsel %vm1871_vm2, %v1869_v32, %v1870_v34 }
 0x3c8   : > { %1883 = vst [vmem:[#allocation2 + $0x1d8] sm:$0xf] %v1881_v35  ;;  %1874 = vst [vmem:[#allocation2 + $0x1d4] sm:$0xf] %v1872_v36  ;;  %v1896_v37 = vpop.permute.xlu1 %1895  ;;  %v1887_v38 = vpop.permute.xlu0 %1886 }
 0x3c9   : > { %v1897_v39 = vrot.slane %v1896_v37, 4  ;;  %v1888_v40 = vrot.slane %v1887_v38, 4 }
 0x3cb   : > { %v1899_v41 = vsel %vm1898_vm3, %v1896_v37, %v1897_v39  ;;  %v1890_v42 = vsel %vm1889_vm4, %v1887_v38, %v1888_v40 }
 0x3cc   : > { %1901 = vst [vmem:[#allocation2 + $0x1e0] sm:$0xf] %v1899_v41  ;;  %1892 = vst [vmem:[#allocation2 + $0x1dc] sm:$0xf] %v1890_v42  ;;  %v1914_v43 = vpop.permute.xlu1 %1913  ;;  %v1905_v44 = vpop.permute.xlu0 %1904 }
 0x3cd   : > { %v1915_v45 = vrot.slane %v1914_v43, 4  ;;  %v1906_v46 = vrot.slane %v1905_v44, 4 }
 0x3cf   : > { %v1917_v47 = vsel %vm1916_vm5, %v1914_v43, %v1915_v45  ;;  %v1908_v48 = vsel %vm1907_vm6, %v1905_v44, %v1906_v46 }
 0x3d0   : > { %1919 = vst [vmem:[#allocation2 + $0x1e8] sm:$0xf] %v1917_v47  ;;  %1910 = vst [vmem:[#allocation2 + $0x1e4] sm:$0xf] %v1908_v48  ;;  %v1932_v49 = vpop.permute.xlu1 %1931  ;;  %v1923_v50 = vpop.permute.xlu0 %1922 }
 0x3d1   : > { %v1933_v51 = vrot.slane %v1932_v49, 4  ;;  %v1924_v52 = vrot.slane %v1923_v50, 4 }
 0x3d3   : > { %v1935_v53 = vsel %vm1934_vm7, %v1932_v49, %v1933_v51  ;;  %v1926_v54 = vsel %vm1925_vm8, %v1923_v50, %v1924_v52 }
 0x3d4   : > { %1937 = vst [vmem:[#allocation2 + $0x1f0] sm:$0xf] %v1935_v53  ;;  %1928 = vst [vmem:[#allocation2 + $0x1ec] sm:$0xf] %v1926_v54 }
 0x3d5 PF: > { %1940 = sbr.rel (!%p3842_p8) target bundleno = 995 (0x3e3), region = 92  ;;  %v3620_v55 = vmov (%p3842_p8), 0  }
 0x3d6   : > { %1941 = vst [vmem:[#allocation2 + $0x190] sm:$0xf] (%p3842_p8), %v3620_v55  ;;  %1942 = vst [vmem:[#allocation2 + $0x194] sm:$0xf] (%p3842_p8), %v3620_v55 }
 0x3d7   : > { %1943 = vst [vmem:[#allocation2 + $0x198] sm:$0xf] (%p3842_p8), %v3620_v55  ;;  %1944 = vst [vmem:[#allocation2 + $0x19c] sm:$0xf] (%p3842_p8), %v3620_v55 }
 0x3d8   : > { %1945 = vst [vmem:[#allocation2 + $0x1a0] sm:$0xf] (%p3842_p8), %v3620_v55  ;;  %1946 = vst [vmem:[#allocation2 + $0x1a4] sm:$0xf] (%p3842_p8), %v3620_v55 }
 0x3d9   : > { %1947 = vst [vmem:[#allocation2 + $0x1a8] sm:$0xf] (%p3842_p8), %v3620_v55  ;;  %1948 = vst [vmem:[#allocation2 + $0x1ac] sm:$0xf] (%p3842_p8), %v3620_v55 }
 0x3da   : > { %1949 = vst [vmem:[#allocation2 + $0x1b0] sm:$0xf] %v3620_v55  ;;  %1950 = vst [vmem:[#allocation2 + $0x1b4] sm:$0xf] %v3620_v55 }
 0x3db   : > { %1951 = vst [vmem:[#allocation2 + $0x1b8] sm:$0xf] %v3620_v55  ;;  %1952 = vst [vmem:[#allocation2 + $0x1bc] sm:$0xf] %v3620_v55 }
 0x3dc   : > { %1953 = vst [vmem:[#allocation2 + $0x1c0] sm:$0xf] %v3620_v55  ;;  %1954 = vst [vmem:[#allocation2 + $0x1c4] sm:$0xf] %v3620_v55 }
 0x3dd   : > { %1955 = vst [vmem:[#allocation2 + $0x1c8] sm:$0xf] %v3620_v55  ;;  %1956 = vst [vmem:[#allocation2 + $0x1cc] sm:$0xf] %v3620_v55 }
 0x3de   : > { %1957 = vst [vmem:[#allocation2 + $0x1d0] sm:$0xf] %v3620_v55  ;;  %1958 = vst [vmem:[#allocation2 + $0x1d4] sm:$0xf] %v3620_v55 }
 0x3df   : > { %1959 = vst [vmem:[#allocation2 + $0x1d8] sm:$0xf] %v3620_v55  ;;  %1960 = vst [vmem:[#allocation2 + $0x1dc] sm:$0xf] %v3620_v55 }
 0x3e0   : > { %1961 = vst [vmem:[#allocation2 + $0x1e0] sm:$0xf] %v3620_v55  ;;  %1962 = vst [vmem:[#allocation2 + $0x1e4] sm:$0xf] %v3620_v55 }
 0x3e1   : > { %1963 = vst [vmem:[#allocation2 + $0x1e8] sm:$0xf] %v3620_v55  ;;  %1964 = vst [vmem:[#allocation2 + $0x1ec] sm:$0xf] %v3620_v55 }
 0x3e2   : > { %1965 = vst [vmem:[#allocation2 + $0x1f0] sm:$0xf] %v3620_v55 }
 0x3e3 PF: > { %v3384_v56 = vld [vmem:[#allocation2 + $0x78] sm:$0xff]   ;;  %v3388_v60 = vld [vmem:[#allocation2 + $0x70] sm:$0xff]   ;;  %v3392_v0 = vld [vmem:[#allocation2 + $0x68] sm:$0xff]   ;;  %v3621_v31 = vmov 0   ;;  %vm2501_vm9 = vcmask 1043456   ;;  %vm2497_vm10 = vcmask 850944  }
 0x3e4   : > { %v3385_v57 = vld [vmem:[#allocation2 + $0xf8] sm:$0xff]   ;;  %3150 = vmatprep.subr.bf16.mxu0 %v3384_v56  ;;  %v3389_v61 = vld [vmem:[#allocation2 + $0xf0] sm:$0xff]   ;;  %v3393_v1 = vld [vmem:[#allocation2 + $0xe8] sm:$0xff]   ;;  %s3936_s9 = sld [smem:[#allocation11_spill]]  ;;  %s3622_s19 = smov 26   ;;  %vm2689_vm11 = vcmask 211968  }
 0x3e5   : > { %v3386_v58 = vld [vmem:[#allocation2 + $0x38] sm:$0xff]   ;;  %3172 = vmatprep.subr.bf16.mxu1 %v3385_v57  ;;  %v3390_v62 = vld [vmem:[#allocation2 + $0x30] sm:$0xff]   ;;  %v3394_v2 = vld [vmem:[#allocation2 + $0x28] sm:$0xff]   ;;  %vm2677_vm12 = vcmask 7168  }
 0x3e6   : > { %v3387_v59 = vld [vmem:[#allocation2 + $0xb8] sm:$0xff]   ;;  %3151 = vmatpush3.bf16.msra.mxu0 %v3386_v58  ;;  %v3391_v63 = vld [vmem:[#allocation2 + $0xb0] sm:$0xff]   ;;  %v3395_v3 = vld [vmem:[#allocation2 + $0xa8] sm:$0xff]  }
 0x3e7   : > { %3173 = vmatpush3.bf16.msra.mxu1 %v3387_v59  ;;  %3152 = vmatprep.subr.bf16.mxu0 %v3388_v60  ;;  %v3396_v4 = vld [vmem:[#allocation2 + $0x60] sm:$0xff]   ;;  %v3400_v8 = vld [vmem:[#allocation2 + $0x58] sm:$0xff]   ;;  %v3404_v12 = vld [vmem:[#allocation2 + $0x50] sm:$0xff]  }
 0x3e8   : > { %3174 = vmatprep.subr.bf16.mxu1 %v3389_v61  ;;  %v3397_v5 = vld [vmem:[#allocation2 + $0xe0] sm:$0xff]   ;;  %v3401_v9 = vld [vmem:[#allocation2 + $0xd8] sm:$0xff]   ;;  %v3405_v13 = vld [vmem:[#allocation2 + $0xd0] sm:$0xff]  }
 0x3e9   : > { %v3398_v6 = vld [vmem:[#allocation2 + $0x20] sm:$0xff]   ;;  %v3402_v10 = vld [vmem:[#allocation2 + $0x18] sm:$0xff]   ;;  %v3406_v14 = vld [vmem:[#allocation2 + $0x10] sm:$0xff]  }
 0x3ea   : > { %3153 = vmatpush3.bf16.msra.mxu0 %v3390_v62  ;;  %v3399_v7 = vld [vmem:[#allocation2 + $0xa0] sm:$0xff]   ;;  %v3403_v11 = vld [vmem:[#allocation2 + $0x98] sm:$0xff]   ;;  %v3407_v15 = vld [vmem:[#allocation2 + $0x90] sm:$0xff]  }
 0x3eb   : > { %3175 = vmatpush3.bf16.msra.mxu1 %v3391_v63  ;;  %3154 = vmatprep.subr.bf16.mxu0 %v3392_v0  ;;  %v3408_v16 = vld [vmem:[#allocation2 + $0x48] sm:$0xff]   ;;  %v3412_v20 = vld [vmem:[#allocation2 + $0x40] sm:$0xff]   ;;  %v3420_v30 = vld [vmem:[#allocation2 + $0x178] sm:$0xff]  }
 0x3ec   : > { %3176 = vmatprep.subr.bf16.mxu1 %v3393_v1  ;;  %v3409_v17 = vld [vmem:[#allocation2 + $0xc8] sm:$0xff]   ;;  %v3413_v21 = vld [vmem:[#allocation2 + $0xc0] sm:$0xff]   ;;  %v3421_v32 = vld [vmem:[#allocation2 + $0x138] sm:$0xff]  }
 0x3ed   : > { %v3410_v18 = vld [vmem:[#allocation2 + $0x8] sm:$0xff]   ;;  %v3414_v22 = vld [vmem:[#allocation2] sm:$0xff]   ;;  %v3422_v33 = vld [vmem:[#allocation2 + $0x1b8] sm:$0xff]  }
 0x3ee   : > { %3155 = vmatpush3.bf16.msra.mxu0 %v3394_v2  ;;  %v3411_v19 = vld [vmem:[#allocation2 + $0x88] sm:$0xff]   ;;  %v3415_v23 = vld [vmem:[#allocation2 + $0x80] sm:$0xff]   ;;  %v3423_v34 = vld [vmem:[#allocation2 + $0x170] sm:$0xff]  }
 0x3ef   : > { %3177 = vmatpush3.bf16.msra.mxu1 %v3395_v3  ;;  %3156 = vmatprep.subr.bf16.mxu0 %v3396_v4  ;;  %v1966_v24 = vld [vmem:[%s3907_s5] sm:$0xff]  ;;  %v1967_v25 = vld [vmem:[%s3907_s5 + $0x8] sm:$0xff]  ;;  %v3424_v35 = vld [vmem:[#allocation2 + $0x130] sm:$0xff]  }
 0x3f0   : > { %3178 = vmatprep.subr.bf16.mxu1 %v3397_v5  ;;  %v3043_v26 = vcombine.low %v1966_v24, %v1966_v24  ;;  %v3044_v27 = vcombine.high %v1966_v24, %v1966_v24  ;;  %v3045_v28 = vcombine.low %v1967_v25, %v1967_v25  ;;  %v3046_v29 = vcombine.high %v1967_v25, %v1967_v25  ;;  %v3425_v36 = vld [vmem:[#allocation2 + $0x1b0] sm:$0xff]   ;;  %v3426_v37 = vld [vmem:[#allocation2 + $0x168] sm:$0xff]   ;;  %v3429_v40 = vld [vmem:[#allocation2 + $0x160] sm:$0xff]  }
 0x3f1   : > { %v3428_v38 = vld [vmem:[#allocation2 + $0x1a8] sm:$0xff]   ;;  %v3431_v41 = vld [vmem:[#allocation2 + $0x1a0] sm:$0xff]   ;;  %v3432_v43 = vld [vmem:[#allocation2 + $0x158] sm:$0xff]  }
 0x3f2   : > { %3157 = vmatpush3.bf16.msra.mxu0 %v3398_v6  ;;  %2537 = vmatprep.mubr.bf16.mxu0 %v3044_v27  ;;  %v3427_v39 = vld [vmem:[#allocation2 + $0x128] sm:$0xff]   ;;  %v3430_v42 = vld [vmem:[#allocation2 + $0x120] sm:$0xff]   ;;  %v3434_v44 = vld [vmem:[#allocation2 + $0x198] sm:$0xff]  }
 0x3f3   : > { %3179 = vmatpush3.bf16.msra.mxu1 %v3399_v7  ;;  %3158 = vmatprep.subr.bf16.mxu0 %v3400_v8  ;;  %v3433_v45 = vld [vmem:[#allocation2 + $0x118] sm:$0xff]   ;;  %v3435_v46 = vld [vmem:[#allocation2 + $0x150] sm:$0xff]   ;;  %v3438_v49 = vld [vmem:[#allocation2 + $0x148] sm:$0xff]  }
 0x3f4   : > { %3180 = vmatprep.subr.bf16.mxu1 %v3401_v9  ;;  %2577 = vmatprep.mubr.bf16.mxu1 %v3046_v29  ;;  %v3437_v47 = vld [vmem:[#allocation2 + $0x190] sm:$0xff]   ;;  %v3440_v51 = vld [vmem:[#allocation2 + $0x188] sm:$0xff]   ;;  %v3441_v54 = vld [vmem:[#allocation2 + $0x140] sm:$0xff]  }
 0x3f5   : > { %v3436_v48 = vld [vmem:[#allocation2 + $0x110] sm:$0xff]   ;;  %v3439_v53 = vld [vmem:[#allocation2 + $0x108] sm:$0xff]   ;;  %v3442_v55 = vld [vmem:[#allocation2 + $0x100] sm:$0xff]  }
 0x3f6   : > { %3159 = vmatpush3.bf16.msra.mxu0 %v3402_v10  ;;  %v1968_v50 = vld [vmem:[%s3907_s5 + $0x10] sm:$0xff]  ;;  %v3443_v56 = vld [vmem:[#allocation2 + $0x180] sm:$0xff]   ;;  %v1969_v58 = vld [vmem:[%s3907_s5 + $0x18] sm:$0xff] }
 0x3f7   : > { %3181 = vmatpush3.bf16.msra.mxu1 %v3403_v11  ;;  %3160 = vmatprep.subr.bf16.mxu0 %v3404_v12  ;;  %v3048_v52 = vcombine.high %v1968_v50, %v1968_v50  ;;  %v3446_v57 = vld [vmem:[#allocation2 + $0x1f0] ss:$0 sps:$4 sm:$0xff]   ;;  %v3050_v59 = vcombine.high %v1969_v58, %v1969_v58  ;;  %v3047_v60 = vcombine.low %v1968_v50, %v1968_v50  ;;  %v3447_v62 = vld [vmem:[#allocation2 + $0x1e8] sm:$0xff]   ;;  %v3448_v63 = vld [vmem:[#allocation2 + $0x1e0] sm:$0xff]  }
 0x3f8   : > { %3182 = vmatprep.subr.bf16.mxu1 %v3405_v13  ;;  %v2503_v61 = vsel %vm2501_vm9, %v3446_v57, 0  ;;  %v3449_v0 = vld [vmem:[#allocation2 + $0x1d8] sm:$0xff]   ;;  %v3450_v1 = vld [vmem:[#allocation2 + $0x1d0] sm:$0xff]   ;;  %v3451_v2 = vld [vmem:[#allocation2 + $0x1c8] sm:$0xff]   ;;  %v3049_v4 = vcombine.low %v1969_v58, %v1969_v58 }
 0x3f9   : > { %v3452_v3 = vld [vmem:[#allocation2 + $0x1c0] sm:$0xff]  }
 0x3fa   : > { %3161 = vmatpush3.bf16.msra.mxu0 %v3406_v14 }
 0x3fb   : > { %3183 = vmatpush3.bf16.msra.mxu1 %v3407_v15  ;;  %3162 = vmatprep.subr.bf16.mxu0 %v3408_v16 }
 0x3fc   : > { %3184 = vmatprep.subr.bf16.mxu1 %v3409_v17 }
 0x3fe   : > { %3163 = vmatpush3.bf16.msra.mxu0 %v3410_v18 }
 0x3ff   : > { %3185 = vmatpush3.bf16.msra.mxu1 %v3411_v19  ;;  %3164 = vmatprep.subr.bf16.mxu0 %v3412_v20 }
 0x400   : > { %3186 = vmatprep.subr.bf16.mxu1 %v3413_v21 }
 0x402   : > { %3165 = vmatpush3.bf16.msra.mxu0 %v3414_v22 }
 0x403   : > { %3187 = vmatpush3.bf16.msra.mxu1 %v3415_v23  ;;  %3194 = vmatprep.subr.bf16.mxu0 %v3420_v30  ;;  %v3115_v23 = vld [vmem:[%s3936_s9] ss:$0 sm:$0xff] }
 0x404   : > { %2625 = vmatprep.subr.bf16.mxu1 %v3621_v31 }
 0x405   : > { %2538 = vmatmul.mubr.bf16.vlgmr.msra.gmra.mxu0 %v3043_v26 }
 0x406   : > { %2578 = vmatmul.mubr.bf16.vlgmr.msra.gmra.mxu1 %v3045_v28  ;;  %3195 = vmatpush3.bf16.msra.mxu0 %v3421_v32 }
 0x407   : > { %2626 = vmatpush1.bf16.msra.mxu1 %v3422_v33  ;;  %3196 = vmatprep.subr.bf16.mxu0 %v3423_v34  ;;  %v2673_v34 = vld [vmem:[%s3752_s15] sm:$0xff] }
 0x408   : > { %2627 = vmatprep.subr.bf16.mxu1 %v3621_v31  ;;  %2617 = vmatprep.mubr.bf16.mxu0 %v3048_v52 }
 0x409   : > { %3114 = vmatprep.mubr.msk.bf16.mxu1 %vm2497_vm10, %v3050_v59 }
 0x40a   : > { %3197 = vmatpush3.bf16.msra.mxu0 %v3424_v35 }
 0x40b   : > { %2628 = vmatpush1.bf16.msra.mxu1 %v3425_v36  ;;  %3198 = vmatprep.subr.bf16.mxu0 %v3426_v37  ;;  %v2679_v37 = vld [vmem:[%s3757_s1] sm:$0xff] }
 0x40c   : > { %2629 = vmatprep.subr.bf16.mxu1 %v3621_v31 }
 0x40e   : > { %3199 = vmatpush3.bf16.msra.mxu0 %v3427_v39 }
 0x40f   : > { %2630 = vmatpush1.bf16.msra.mxu1 %v3428_v38  ;;  %3200 = vmatprep.subr.bf16.mxu0 %v3429_v40 }
 0x410   : > { %2631 = vmatprep.subr.bf16.mxu1 %v3621_v31 }
 0x412   : > { %3201 = vmatpush3.bf16.msra.mxu0 %v3430_v42 }
 0x413   : > { %2632 = vmatpush1.bf16.msra.mxu1 %v3431_v41  ;;  %3202 = vmatprep.subr.bf16.mxu0 %v3432_v43 }
 0x414   : > { %2633 = vmatprep.subr.bf16.mxu1 %v3621_v31 }
 0x416   : > { %3203 = vmatpush3.bf16.msra.mxu0 %v3433_v45 }
 0x417   : > { %2634 = vmatpush1.bf16.msra.mxu1 %v3434_v44  ;;  %3204 = vmatprep.subr.bf16.mxu0 %v3435_v46 }
 0x418   : > { %2635 = vmatprep.subr.bf16.mxu1 %v3621_v31 }
 0x41a   : > { %3205 = vmatpush3.bf16.msra.mxu0 %v3436_v48 }
 0x41b   : > { %2636 = vmatpush1.bf16.msra.mxu1 %v3437_v47  ;;  %3206 = vmatprep.subr.bf16.mxu0 %v3438_v49 }
 0x41c   : > { %2637 = vmatprep.subr.bf16.mxu1 %v3621_v31 }
 0x41e   : > { %3207 = vmatpush3.bf16.msra.mxu0 %v3439_v53 }
 0x41f   : > { %2638 = vmatpush1.bf16.msra.mxu1 %v3440_v51  ;;  %3208 = vmatprep.subr.bf16.mxu0 %v3441_v54 }
 0x420   : > { %2639 = vmatprep.subr.bf16.mxu1 %v3621_v31 }
 0x422   : > { %3209 = vmatpush3.bf16.msra.mxu0 %v3442_v55 }
 0x423   : > { %2640 = vmatpush1.bf16.msra.mxu1 %v3443_v56 }
 0x424   : > { %2643 = vmatprep.subr.bf16.mxu1 %v3621_v31 }
 0x425   : > { %2618 = vmatmul.mubr.bf16.vlgmr.msra.gmra.mxu0 %v3047_v60 }
 0x427   : > { %2644 = vmatpush2.bf16.msra.mxu1 %v2503_v61 }
 0x428   : > { %2645 = vmatprep.subr.bf16.mxu1 %v3621_v31 }
 0x42b   : > { %2646 = vmatpush2.bf16.msra.mxu1 %v3447_v62 }
 0x42c   : > { %2647 = vmatprep.subr.bf16.mxu1 %v3621_v31 }
 0x42f   : > { %2648 = vmatpush2.bf16.msra.mxu1 %v3448_v63 }
 0x430   : > { %2649 = vmatprep.subr.bf16.mxu1 %v3621_v31 }
 0x433   : > { %2650 = vmatpush2.bf16.msra.mxu1 %v3449_v0 }
 0x434   : > { %2651 = vmatprep.subr.bf16.mxu1 %v3621_v31 }
 0x437   : > { %2652 = vmatpush2.bf16.msra.mxu1 %v3450_v1 }
 0x438   : > { %2653 = vmatprep.subr.bf16.mxu1 %v3621_v31 }
 0x43b   : > { %2654 = vmatpush2.bf16.msra.mxu1 %v3451_v2 }
 0x43c   : > { %2655 = vmatprep.subr.bf16.mxu1 %v3621_v31 }
 0x43f   : > { %2656 = vmatpush2.bf16.msra.mxu1 %v3452_v3 }
 0x442   : > { %2658 = vmatmul.mubr.bf16.vlgmr.msra.gmra.mxu1 %v3049_v4 }
 0x4c5   : > { %v3166_v5 = vpop.f32.mrf.mxu0 }
 0x4c6   : > { %v3188_v6 = vpop.f32.mrf.mxu1 }
 0x4c7   : > { %v3167_v7 = vpop.f32.mrf.mxu0 }
 0x4c8   : > { %v3189_v8 = vpop.f32.mrf.mxu1  ;;  %v3168_v17 = vadd.f32 %v3167_v7, %v3166_v5 }
 0x4c9   : > { %v3169_v10 = vpop.f32.mrf.mxu0  ;;  %v3190_v18 = vadd.f32 %v3189_v8, %v3188_v6 }
 0x4ca   : > { %v3191_v9 = vpop.f32.mrf.mxu1 }
 0x4cb   : > { %v3170_v12 = vpop.f32.mrf.mxu0  ;;  %v2580_v20 = vadd.f32 %v3190_v18, %v3168_v17 }
 0x4cc   : > { %v3192_v11 = vpop.f32.mrf.mxu1 }
 0x4e5   : > { %v3210_v13 = vpop.f32.mrf.mxu0 }
 0x4e7   : > { %v3211_v14 = vpop.f32.mrf.mxu0 }
 0x4e8   : > { %v3212_v19 = vadd.f32 %v3211_v14, %v3210_v13 }
 0x4e9   : > { %v3213_v15 = vpop.f32.mrf.mxu0 }
 0x4ea   : > { %v2620_v21 = vadd.f32 %v3212_v19, %v2580_v20 }
 0x4eb   : > { %v3214_v16 = vpop.f32.mrf.mxu0 }
 0x502   : > { %v2659_v22 = vpop.f32.mrf.mxu1 }
 0x503   : > { %v2660_v24 = vadd.f32 %v2659_v22, %v2620_v21 }
 0x504   : > { %v2661_v25 = vpop.f32.mrf.mxu1 }
 0x505   : > { %2686 = vrot.lane.b32.xlu1 %v2660_v24, %s3622_s19  ;;  %v2672_v26 = vmul.f32 %v3115_v23, %v2660_v24 }
 0x506   : > { %v2662_v27 = vpop.f32.mrf.mxu1 }
 0x507   : > { %2674 = vadd.xlane.f32.xlu0 %v2672_v26  ;;  %v2680_v29 = vmul.f32 %v2672_v26, %v2660_v24 }
 0x508   : > { %v2663_v28 = vpop.f32.mrf.mxu1 }
 0x50b   : > { %2681 = vadd.xlane.f32.xlu0 %v2680_v29 }
 0x577   : > { %v2687_v30 = vpop.permute.xlu1 %2686 }
 0x578   : > { %v2690_v31 = vsel %vm2689_vm11, 0.0, %v2687_v30  ;;  %v2691_v32 = vsel %vm2689_vm11, %v2687_v30, 0.0 }
 0x579   : > { %v3149_v33 = vpack.c.bf16 %v2691_v32, %v2690_v31 }
 0x57b   : > { %2700 = vst [vmem:[%s3782_s17] sm:$0xff] %v3149_v33 }
 0x590   : > { %v2675_v35 = vpop.xlane.xlu0 %2674 }
 0x591   : > { %v2676_v36 = vadd.f32 %v2675_v35, %v2673_v34 }
 0x593   : > { %2678 = vst.msk [vmem:[%s3752_s15] sm:$0xff] %vm2677_vm12, %v2676_v36 }
 0x594   : > { %v2682_v38 = vpop.xlane.xlu0 %2681 }
 0x595   : > { %v2683_v39 = vadd.f32 %v2682_v38, %v2679_v37 }
 0x597   : > { %2684 = vst.msk [vmem:[%s3757_s1] sm:$0xff] %vm2677_vm12, %v2683_v39 }
 0x598 PF: > { %s3937_s26 = sld [smem:[#allocation5_spill]] }
 0x599   : > { %s3938_s30 = sld [smem:[#allocation3_spill]] }
 0x59a   : > { %s3939_s10 = sld [smem:[#allocation4_spill]] }
 0x59b   : > { %s3940_s11 = sld [smem:[#allocation6_spill]] }
 0x59c   : > { %s3941_s12 = sld [smem:[#allocation7_spill]] }
 0x59e   : > { %s20_s13 = sadd.s32 1, %s3937_s26  }
 0x59f   : > { %p17_p9 = scmp.ge.s32.totalorder %s20_s13, 18  }
 0x5a1   :  { %19 = sbr.rel (!%p17_p9) target bundleno = 7 (0x7), region = 158 }

</bundles_post_ra>
